<compile_context>
chip_gen: v7x
topology: tpu7x:2x2x1
jax: 0.10.0
libtpu: 0.0.40
codegen_flags: <defaults>
</compile_context>

<pallas_src>
import math

import jax
import jax.numpy as jnp
from jax.experimental import pallas as pl
from jax.experimental.pallas import tpu as pltpu


def _sigmoid(x):
    return 1.0 / (1.0 + jnp.exp(-x))


def _cparams(*sem):
    return pltpu.CompilerParams(dimension_semantics=tuple(sem),
                                vmem_limit_bytes=32 * 1024 * 1024)


# ---------- Kernel 1: in_proj matmul, (x, z) split in-kernel ----------
def _in_proj_kernel(x_ref, w_ref, ox_ref, oz_ref):
    xz = jnp.dot(x_ref[...], w_ref[...], preferred_element_type=jnp.float32)
    Dh = ox_ref.shape[1]
    ox_ref[...] = xz[:, :Dh]
    oz_ref[...] = xz[:, Dh:]


def pallas_in_proj(x_bf16, w_bf16, d_inner, block_m=1024):
    M, Kdim = x_bf16.shape
    bm = min(block_m, M)
    return pl.pallas_call(
        _in_proj_kernel,
        out_shape=(jax.ShapeDtypeStruct((M, d_inner), jnp.float32),
                   jax.ShapeDtypeStruct((M, d_inner), jnp.float32)),
        grid=(pl.cdiv(M, bm),),
        in_specs=[pl.BlockSpec((bm, Kdim), lambda i: (i, 0)),
                  pl.BlockSpec((Kdim, 2 * d_inner), lambda i: (0, 0))],
        out_specs=(pl.BlockSpec((bm, d_inner), lambda i: (i, 0)),
                   pl.BlockSpec((bm, d_inner), lambda i: (i, 0))),
        compiler_params=_cparams("parallel"),
    )(x_bf16, w_bf16)


# ---------------- Kernel 2: depthwise 3x3 conv + SiLU ----------------
def _dwconv_silu_kernel(x_ref, w_ref, b_ref, o_ref, xp_ref):
    H, W, C = x_ref.shape
    # zero-pad inside VMEM (no host-side padded copy in HBM)
    xp_ref[...] = jnp.zeros(xp_ref.shape, xp_ref.dtype)
    xp_ref[1:H + 1, 1:W + 1, :] = x_ref[...]
    xp = xp_ref[...]
    acc = jnp.zeros((H, W, C), jnp.float32)
    for i in range(3):
        for j in range(3):
            acc = acc + xp[i:i + H, j:j + W, :] * w_ref[i:i + 1, j:j + 1, :]
    acc = acc + b_ref[...]
    # module applies act (SiLU) right after conv2d
    o_ref[...] = (acc * _sigmoid(acc)).astype(o_ref.dtype)


def pallas_dwconv_silu(x_nhwc, w33c, bias, out_dtype=jnp.bfloat16):
    B, H, W, C = x_nhwc.shape
    b_11c = bias.reshape(1, 1, C)
    return pl.pallas_call(
        _dwconv_silu_kernel,
        out_shape=jax.ShapeDtypeStruct((B, H, W, C), out_dtype),
        grid=(B,),
        in_specs=[
            pl.BlockSpec((None, H, W, C), lambda b: (b, 0, 0, 0)),
            pl.BlockSpec((3, 3, C), lambda b: (0, 0, 0)),
            pl.BlockSpec((1, 1, C), lambda b: (0, 0, 0)),
        ],
        out_specs=pl.BlockSpec((None, H, W, C), lambda b: (b, 0, 0, 0)),
        scratch_shapes=[pltpu.VMEM((H + 2, W + 2, C), jnp.float32)],
        compiler_params=_cparams("parallel"),
    )(x_nhwc, w33c, b_11c)


# ---- Kernel 3: fused x_proj(+folded dt_proj) + softplus + selective scan ----
#
# One grid point = (spatial layout j in {row-major, col-major}, batch b).
# It runs BOTH the forward direction (k = j) and the flipped direction
# (k = j + 2).  The flipped direction is mathematically identical to running
# the same recurrence backward in time on the unflipped sequence, with its
# output landing directly at the original positions, so no data flips are
# needed anywhere and the fwd+bwd CrossMerge add happens in-kernel.
def _make_ssm_scan_kernel(N, T):
    def kernel(xs_ref, wcat_ref, dtb_ref, a_ref, ds_ref, o_ref,
               dAf_ref, xtf_ref, dAb_ref, xtb_ref):
        # xs_ref:  (L, D) bf16        wcat_ref: (D, 2*(D+2N)) bf16
        # dtb_ref: (2, D) f32         a_ref: (2, N, D) f32
        # ds_ref:  (1, D) f32 (D_fwd + D_bwd)      o_ref: (L, D) f32
        # scratch: dAf/xtf/dAb/xtb (L, N*D) f32
        L, D = xs_ref.shape
        ND = N * D
        Cd = D + 2 * N

        xb = xs_ref[...]                           # (L, D) bf16
        x = xb.astype(jnp.float32)

        # single fused MXU pass: [dt_f | B_f | C_f | dt_b | B_b | C_b]
        dbl = jnp.dot(xb, wcat_ref[...], preferred_element_type=jnp.float32)

        # Vectorized precompute (out of the serial dependency chain),
        # lane-flat layout: col n*D + d  <->  (state n, channel d)
        #   dA[l, nD+d] = exp(delta[l,d] * A[n,d])
        #   xt[l, nD+d] = B[l,n] * delta[l,d] * u[l,d]
        for s, (dA_ref, xt_ref) in enumerate(((dAf_ref, xtf_ref),
                                              (dAb_ref, xtb_ref))):
            off = s * Cd
            a_s = a_ref[s]                                    # (N, D)
            dt = dbl[:, off:off + D] + dtb_ref[s:s + 1, :]
            sp = jnp.log(1.0 + jnp.exp(jnp.minimum(dt, 20.0)))
            delta = jnp.where(dt > 20.0, dt, sp)              # softplus, f32
            du = delta * x                                    # (L, D)
            for n in range(N):
                lo = n * D
                dA_ref[:, lo:lo + D] = jnp.exp(delta * a_s[n:n + 1, :])
                b_n = jnp.broadcast_to(dbl[:, off + D + n:off + D + n + 1],
                                       (L, D))
                xt_ref[:, lo:lo + D] = b_n * du

        # Serial recurrences, fwd and bwd chains interleaved (2 independent
        # dependency chains per step), chunked by T with one dense (T, N*D)
        # history store per chain per chunk.  The h history overwrites xt.
        nchunks = L // T

        def chunk(c, carry):
            hf, hb = carry
            base = pl.multiple_of(c * T, T)                 # fwd chunk start
            rb = pl.multiple_of((nchunks - 1 - c) * T, T)   # bwd chunk start
            f_rows, b_rows = [], []
            for t in range(T):                              # unrolled
                lf = base + t
                lb = rb + (T - 1 - t)                       # = L-1-base-t
                hf = dAf_ref[pl.ds(lf, 1), :] * hf + xtf_ref[pl.ds(lf, 1), :]
                hb = dAb_ref[pl.ds(lb, 1), :] * hb + xtb_ref[pl.ds(lb, 1), :]
                f_rows.append(hf)
                b_rows.append(hb)
            xtf_ref[pl.ds(base, T), :] = jnp.concatenate(f_rows, axis=0)
            xtb_ref[pl.ds(rb, T), :] = jnp.concatenate(b_rows[::-1], axis=0)
            return hf, hb

        h0 = jnp.zeros((1, ND), jnp.float32)
        jax.lax.fori_loop(0, nchunks, chunk, (h0, h0))

        # Batched readout (fwd + bwd merged):
        #   y[l,d] = (Df+Db)[d]*u[l,d] + sum_n Cf[l,n]*hf[l,nD+d]
        #                              + sum_n Cb[l,n]*hb[l,nD+d]
        y = ds_ref[...] * x
        for s, xt_ref in enumerate((xtf_ref, xtb_ref)):
            off = s * Cd + D + N
            for n in range(N):
                c_n = jnp.broadcast_to(dbl[:, off + n:off + n + 1], (L, D))
                y = y + c_n * xt_ref[:, n * D:(n + 1) * D]
        o_ref[...] = y

    return kernel


def pallas_ssm_scan(xs, wcat_bf16, dtbcat, acat, dssum):
    Kdir, B, L, D = xs.shape                       # Kdir == 2
    Cd2 = wcat_bf16.shape[-1]
    Cd = Cd2 // 2
    N = (Cd - D) // 2
    T = 8 if L % 8 == 0 else (4 if L % 4 == 0 else (2 if L % 2 == 0 else 1))
    kernel = _make_ssm_scan_kernel(N, T)
    return pl.pallas_call(
        kernel,
        out_shape=jax.ShapeDtypeStruct((Kdir, B, L, D), jnp.float32),
        grid=(Kdir, B),                            # b fastest: weights resident
        in_specs=[
            pl.BlockSpec((None, None, L, D), lambda j, b: (j, b, 0, 0)),
            pl.BlockSpec((None, D, Cd2), lambda j, b: (j, 0, 0)),
            pl.BlockSpec((None, 2, D), lambda j, b: (j, 0, 0)),
            pl.BlockSpec((None, 2, N, D), lambda j, b: (j, 0, 0, 0)),
            pl.BlockSpec((None, 1, D), lambda j, b: (j, 0, 0)),
        ],
        out_specs=pl.BlockSpec((None, None, L, D), lambda j, b: (j, b, 0, 0)),
        scratch_shapes=[pltpu.VMEM((L, N * D), jnp.float32) for _ in range(4)],
        compiler_params=_cparams("parallel", "arbitrary"),
    )(xs, wcat_bf16, dtbcat, acat, dssum)


# ---------- Kernel 4: LayerNorm + z-gating (SiLU) + out_proj ----------
def _ln_gate_proj_kernel(y_ref, z_ref, g_ref, b_ref, w_ref, o_ref):
    y = y_ref[...]
    mean = jnp.mean(y, axis=1, keepdims=True)
    var = jnp.mean(jnp.square(y - mean), axis=1, keepdims=True)
    yn = (y - mean) * jax.lax.rsqrt(var + 1e-5) * g_ref[...] + b_ref[...]
    z = z_ref[...]
    gated = yn * (z * _sigmoid(z))                 # y * SiLU(z)
    o_ref[...] = jnp.dot(gated.astype(jnp.bfloat16), w_ref[...],
                         preferred_element_type=jnp.float32)


def pallas_ln_gate_proj(y2d, z2d, gamma, beta, w_out_t_bf16, block_m=1024):
    M, D = y2d.shape
    dm = w_out_t_bf16.shape[1]
    bm = min(block_m, M)
    return pl.pallas_call(
        _ln_gate_proj_kernel,
        out_shape=jax.ShapeDtypeStruct((M, dm), jnp.float32),
        grid=(pl.cdiv(M, bm),),
        in_specs=[
            pl.BlockSpec((bm, D), lambda i: (i, 0)),
            pl.BlockSpec((bm, D), lambda i: (i, 0)),
            pl.BlockSpec((1, D), lambda i: (0, 0)),
            pl.BlockSpec((1, D), lambda i: (0, 0)),
            pl.BlockSpec((D, dm), lambda i: (0, 0)),
        ],
        out_specs=pl.BlockSpec((bm, dm), lambda i: (i, 0)),
        compiler_params=_cparams("parallel"),
    )(y2d, z2d, gamma, beta, w_out_t_bf16)


# ------------------------- full SS2D forward -------------------------
def ss2d_forward(x, p):
    B, H, W, dm = x.shape
    D = p['conv_w'].shape[-1]
    N = p['A_nd'].shape[1]
    R = p['dtw_t'].shape[1]
    L = H * W
    M = B * L
    Cd = D + 2 * N

    w_in_b = p['w_in_t'].astype(jnp.bfloat16)
    w_out_b = p['w_out_t'].astype(jnp.bfloat16)

    # Fold dt_proj into x_proj offline (exact: both are linear maps) and pack
    # the fwd (k=j) / bwd (k=j+2) weights of each spatial layout side by side
    # so a single matmul emits [dt_f | B_f | C_f | dt_b | B_b | C_b].
    w_dtfull = jnp.einsum('kdr,kre->kde', p['xpw_t'][..., :R], p['dtw_t'])
    w_fused = jnp.concatenate([w_dtfull, p['xpw_t'][..., R:]], axis=-1)  # (K,D,Cd)
    order = jnp.array([0, 2, 1, 3])
    wcat = (w_fused[order].reshape(2, 2, D, Cd)
            .transpose(0, 2, 1, 3).reshape(2, D, 2 * Cd).astype(jnp.bfloat16))
    dtbcat = p['dtb'][order].reshape(2, 2, D)
    acat = p['A_nd'][order].reshape(2, 2, N, D)
    dssum = p['Ds_kd'][:2] + p['Ds_kd'][2:]                  # (2, 1, D)

    # in_proj (Linear, bias=False); (x, z) split happens inside the kernel
    xc2d, z2d = pallas_in_proj(x.reshape(M, dm).astype(jnp.bfloat16), w_in_b, D)

    # depthwise conv 3x3 (+bias) + SiLU; bf16 activation out (memory-bound)
    xa = pallas_dwconv_silu(xc2d.reshape(B, H, W, D), p['conv_w'], p['conv_b'])

    # CrossScan reduced to the 2 spatial layouts only (flipped directions are
    # handled in-kernel as backward recurrences): xs is (2, B, L, D) bf16.
    d0 = xa.reshape(B, L, D)
    d1 = jnp.transpose(xa, (0, 2, 1, 3)).reshape(B, L, D)
    xs = jnp.stack([d0, d1], axis=0)

    # fused x_proj / dt / softplus / fwd+bwd selective scan (+ fwd/bwd merge)
    ys = pallas_ssm_scan(xs, wcat, dtbcat, acat, dssum)      # (2, B, L, D)

    # remaining CrossMerge glue: fold the col-major layout back to row-major
    y = ys[0] + jnp.transpose(ys[1].reshape(B, W, H, D),
                              (0, 2, 1, 3)).reshape(B, L, D)

    # LayerNorm(out_norm) + y*SiLU(z) + out_proj (bias=False); dropout = Identity
    out = pallas_ln_gate_proj(y.reshape(M, D), z2d,
                              p['ln_g'], p['ln_b'], w_out_b)
    return out.reshape(B, H, W, dm)


# ------------------------- parameter init -------------------------
def init_params(key, d_model=32, d_state=8, ssm_ratio=2.0, d_conv=3,
                k_group=4, dt_min=0.001, dt_max=0.1, dt_init_floor=1e-4):
    D = int(ssm_ratio * d_model)
    R = math.ceil(d_model / 16)
    N = d_state
    K = k_group
    ks = jax.random.split(key, 8)

    def uni(k, shape, bound):
        return jax.random.uniform(k, shape, jnp.float32, -bound, bound)

    w_in = uni(ks[0], (2 * D, d_model), 1.0 / math.sqrt(d_model))
    conv_w = uni(ks[1], (d_conv, d_conv, D), 1.0 / math.sqrt(d_conv * d_conv))
    conv_b = uni(ks[2], (D,), 1.0 / math.sqrt(d_conv * d_conv))
    x_proj_w = uni(ks[3], (K, R + 2 * N, D), 1.0 / math.sqrt(D))
    dtw = uni(ks[4], (K, D, R), R ** -0.5)
    dt = jnp.exp(jax.random.uniform(ks[5], (K, D)) *
                 (math.log(dt_max) - math.log(dt_min)) + math.log(dt_min))
    dt = jnp.maximum(dt, dt_init_floor)
    dtb = dt + jnp.log(-jnp.expm1(-dt))                 # inverse-softplus bias
    A_logs = jnp.log(jnp.arange(1, N + 1, dtype=jnp.float32))      # A_log_init
    A_nd = -jnp.exp(A_logs)[None, :, None] * jnp.ones((K, N, D), jnp.float32)
    Ds_kd = jnp.ones((K, 1, D), jnp.float32)                       # D_init
    w_out = uni(ks[6], (d_model, D), 1.0 / math.sqrt(D))
    return dict(
        w_in_t=jnp.transpose(w_in),                                # (dm, 2D)
        conv_w=conv_w, conv_b=conv_b,
        xpw_t=jnp.transpose(x_proj_w, (0, 2, 1)),                  # (K, D, R+2N)
        dtw_t=jnp.transpose(dtw, (0, 2, 1)),                       # (K, R, D)
        dtb=dtb.reshape(K, 1, D),
        A_nd=A_nd, Ds_kd=Ds_kd,
        ln_g=jnp.ones((1, D), jnp.float32),
        ln_b=jnp.zeros((1, D), jnp.float32),
        w_out_t=jnp.transpose(w_out),                              # (D, dm)
    )


# ------------------------- pure-JAX reference -------------------------
def ss2d_reference(x, p):
    B, H, W, dm = x.shape
    D = p['conv_w'].shape[-1]
    N = p['A_nd'].shape[1]
    R = p['dtw_t'].shape[1]
    L = H * W
    xz = (x.reshape(B * L, dm) @ p['w_in_t']).reshape(B, H, W, 2 * D)
    xc, z = xz[..., :D], xz[..., D:]
    xp = jnp.pad(xc, ((0, 0), (1, 1), (1, 1), (0, 0)))
    acc = jnp.zeros_like(xc)
    for i in range(3):
        for j in range(3):
            acc = acc + xp[:, i:i + H, j:j + W, :] * p['conv_w'][i, j][None, None, None, :]
    acc = acc + p['conv_b'][None, None, None, :]
    xa = acc * jax.nn.sigmoid(acc)
    d0 = xa.reshape(B, L, D)
    d1 = jnp.transpose(xa, (0, 2, 1, 3)).reshape(B, L, D)
    xs = jnp.stack([d0, d1, d0[:, ::-1], d1[:, ::-1]], axis=1)
    dt = jnp.einsum('bkld,kdr->bklr', xs, p['xpw_t'][..., :R])
    dt = jnp.einsum('bklr,krd->bkld', dt, p['dtw_t']) + p['dtb'][None]
    delta = jax.nn.softplus(dt)
    bc = jnp.einsum('bkld,kdc->bklc', xs, p['xpw_t'][..., R:])
    Bm, Cm = bc[..., :N], bc[..., N:]
    A = p['A_nd']
    Ds = p['Ds_kd'][:, 0, :]

    def scan_one(u, d, bm, cm, a_nd, dvec):
        def step(h, inp):
            u_l, d_l, b_l, c_l = inp
            h = jnp.exp(d_l[None, :] * a_nd) * h + b_l[:, None] * (d_l * u_l)[None, :]
            return h, c_l @ h + dvec * u_l
        h0 = jnp.zeros((N, u.shape[1]), jnp.float32)
        _, ys = jax.lax.scan(step, h0, (u, d, bm, cm))
        return ys

    per_k = jax.vmap(scan_one, in_axes=(0, 0, 0, 0, 0, 0))
    per_bk = jax.vmap(per_k, in_axes=(0, 0, 0, 0, None, None))
    ys = per_bk(xs, delta, Bm, Cm, A, Ds)
    ym = ys[:, 0:2] + ys[:, 2:4, ::-1]
    y = ym[:, 0] + jnp.transpose(ym[:, 1].reshape(B, W, H, D),
                                 (0, 2, 1, 3)).reshape(B, L, D)
    mean = jnp.mean(y, axis=-1, keepdims=True)
    var = jnp.mean(jnp.square(y - mean), axis=-1, keepdims=True)
    yn = (y - mean) * jax.lax.rsqrt(var + 1e-5) * p['ln_g'][0] + p['ln_b'][0]
    zf = z.reshape(B, L, D)
    gated = yn * (zf * jax.nn.sigmoid(zf))
    out = gated.reshape(B * L, D) @ p['w_out_t']
    return out.reshape(B, H, W, dm)


if __name__ == "__main__":
    key = jax.random.PRNGKey(0)
    kx, kp = jax.random.split(key)
    B, H, W, d_model = 2, 8, 8, 32     # d_inner=64, d_state=8, dt_rank=2, K=4
    x = jax.random.normal(kx, (B, H, W, d_model), jnp.float32)
    params = init_params(kp, d_model=d_model, d_state=8, ssm_ratio=2.0)

    out = jax.jit(ss2d_forward)(x, params)
    out = jax.block_until_ready(out)

    ref = ss2d_reference(x, params)
    rel_err = float(jnp.max(jnp.abs(out - ref)) / (jnp.max(jnp.abs(ref)) + 1e-6))
    assert out.shape == (B, H, W, d_model)
    assert rel_err < 5e-2, f"mismatch vs reference: rel-max-err={rel_err}"
    print("KERNEL_OK")
</pallas_src>

<mosaic_0001>
module attributes {stable_mosaic.version = 11 : i64} {
  func.func @_in_proj_kernel(%arg0: i32, %arg1: memref<128x32xbf16, #tpu.memory_space<vmem>>, %arg2: memref<32x128xbf16, #tpu.memory_space<vmem>>, %arg3: memref<128x64xf32, #tpu.memory_space<vmem>>, %arg4: memref<128x64xf32, #tpu.memory_space<vmem>>) attributes {dimension_semantics = [#tpu.dimension_semantics<parallel>], iteration_bounds = array<i64: 1>, scalar_prefetch = 0 : i64, scratch_operands = 0 : i64, tpu.core_type = #tpu.core_type<tc>, window_params = [{transform_indices = @transform_0, window_bounds = array<i64: 128, 32>}, {pipeline_mode = #tpu.pipeline_mode<synchronous>, transform_indices = @transform_1, window_bounds = array<i64: 32, 128>}, {transform_indices = @transform_2, window_bounds = array<i64: 128, 64>}, {transform_indices = @transform_3, window_bounds = array<i64: 128, 64>}]} {
    %c0 = arith.constant 0 : index
    %c0_0 = arith.constant 0 : index
    %0 = vector.load %arg1[%c0, %c0_0] : memref<128x32xbf16, #tpu.memory_space<vmem>>, vector<128x32xbf16>
    %c0_1 = arith.constant 0 : index
    %c0_2 = arith.constant 0 : index
    %1 = vector.load %arg2[%c0_1, %c0_2] : memref<32x128xbf16, #tpu.memory_space<vmem>>, vector<32x128xbf16>
    %cst = arith.constant dense<0.000000e+00> : vector<128x128xf32>
    %2 = tpu.matmul %0, %1, %cst {dimension_numbers = #tpu.dot_dimension_numbers<[1], [0], [0], [1], [0, 0, 1, 1], [], []>} : vector<128x32xbf16>, vector<32x128xbf16>, vector<128x128xf32> -> vector<128x128xf32>
    %3 = vector.extract_strided_slice %2 {offsets = [0, 0], sizes = [128, 64], strides = [1, 1]} : vector<128x128xf32> to vector<128x64xf32>
    %c0_3 = arith.constant 0 : index
    %c0_4 = arith.constant 0 : index
    %4 = vector.load %arg3[%c0_3, %c0_4] : memref<128x64xf32, #tpu.memory_space<vmem>>, vector<128x64xf32>
    tpu.vector_store %arg3[%c0_3, %c0_4], %3 {strides = array<i32>} : memref<128x64xf32, #tpu.memory_space<vmem>>, vector<128x64xf32>,
    %5 = vector.extract_strided_slice %2 {offsets = [0, 64], sizes = [128, 64], strides = [1, 1]} : vector<128x128xf32> to vector<128x64xf32>
    %c0_5 = arith.constant 0 : index
    %c0_6 = arith.constant 0 : index
    %6 = vector.load %arg4[%c0_5, %c0_6] : memref<128x64xf32, #tpu.memory_space<vmem>>, vector<128x64xf32>
    tpu.vector_store %arg4[%c0_5, %c0_6], %5 {strides = array<i32>} : memref<128x64xf32, #tpu.memory_space<vmem>>, vector<128x64xf32>,
    return
  }
  func.func @transform_0(%arg0: i32) -> (i32, i32) {
    %c0_i32 = arith.constant 0 : i32
    %c0_i32_0 = arith.constant 0 : i32
    return %arg0, %c0_i32 : i32, i32
  }
  func.func @transform_1(%arg0: i32) -> (i32, i32) {
    %c0_i32 = arith.constant 0 : i32
    %c0_i32_0 = arith.constant 0 : i32
    %c0_i32_1 = arith.constant 0 : i32
    return %c0_i32, %c0_i32_0 : i32, i32
  }
  func.func @transform_2(%arg0: i32) -> (i32, i32) {
    %c0_i32 = arith.constant 0 : i32
    %c0_i32_0 = arith.constant 0 : i32
    return %arg0, %c0_i32 : i32, i32
  }
  func.func @transform_3(%arg0: i32) -> (i32, i32) {
    %c0_i32 = arith.constant 0 : i32
    %c0_i32_0 = arith.constant 0 : i32
    return %arg0, %c0_i32 : i32, i32
  }
}

module attributes {stable_mosaic.version = 11 : i64} {
  func.func @_dwconv_silu_kernel(%arg0: i32, %arg1: memref<1x8x8x64xf32, #tpu.memory_space<vmem>>, %arg2: memref<3x3x64xf32, #tpu.memory_space<vmem>>, %arg3: memref<1x1x64xf32, #tpu.memory_space<vmem>>, %arg4: memref<1x8x8x64xbf16, #tpu.memory_space<vmem>>, %arg5: memref<10x10x64xf32, #tpu.memory_space<vmem>>) attributes {dimension_semantics = [#tpu.dimension_semantics<parallel>], iteration_bounds = array<i64: 2>, scalar_prefetch = 0 : i64, scratch_operands = 1 : i64, tpu.core_type = #tpu.core_type<tc>, window_params = [{transform_indices = @transform_0, window_bounds = array<i64: 1, 8, 8, 64>}, {pipeline_mode = #tpu.pipeline_mode<synchronous>, transform_indices = @transform_1, window_bounds = array<i64: 3, 3, 64>}, {pipeline_mode = #tpu.pipeline_mode<synchronous>, transform_indices = @transform_2, window_bounds = array<i64: 1, 1, 64>}, {transform_indices = @transform_3, window_bounds = array<i64: 1, 8, 8, 64>}]} {
    %cst = arith.constant 0.000000e+00 : f32
    %0 = vector.broadcast %cst : f32 to vector<10x10x64xf32>
    %c0 = arith.constant 0 : index
    %c0_0 = arith.constant 0 : index
    %c0_1 = arith.constant 0 : index
    %1 = vector.load %arg5[%c0, %c0_0, %c0_1] : memref<10x10x64xf32, #tpu.memory_space<vmem>>, vector<10x10x64xf32>
    tpu.vector_store %arg5[%c0, %c0_0, %c0_1], %0 {strides = array<i32>} : memref<10x10x64xf32, #tpu.memory_space<vmem>>, vector<10x10x64xf32>,
    %c0_2 = arith.constant 0 : index
    %c0_3 = arith.constant 0 : index
    %c0_4 = arith.constant 0 : index
    %c0_5 = arith.constant 0 : index
    %2 = vector.load %arg1[%c0_2, %c0_3, %c0_4, %c0_5] : memref<1x8x8x64xf32, #tpu.memory_space<vmem>>, vector<1x8x8x64xf32>
    %3 = vector.shape_cast %2 : vector<1x8x8x64xf32> to vector<8x8x64xf32>
    %c1 = arith.constant 1 : index
    %c1_6 = arith.constant 1 : index
    %c0_7 = arith.constant 0 : index
    %4 = vector.load %arg5[%c1, %c1_6, %c0_7] : memref<10x10x64xf32, #tpu.memory_space<vmem>>, vector<8x8x64xf32>
    tpu.vector_store %arg5[%c1, %c1_6, %c0_7], %3 {strides = array<i32>} : memref<10x10x64xf32, #tpu.memory_space<vmem>>, vector<8x8x64xf32>,
    %c0_8 = arith.constant 0 : index
    %c0_9 = arith.constant 0 : index
    %c0_10 = arith.constant 0 : index
    %5 = vector.load %arg5[%c0_8, %c0_9, %c0_10] : memref<10x10x64xf32, #tpu.memory_space<vmem>>, vector<10x10x64xf32>
    %cst_11 = arith.constant 0.000000e+00 : f32
    %6 = vector.broadcast %cst_11 : f32 to vector<8x8x64xf32>
    %7 = vector.extract_strided_slice %5 {offsets = [0, 0, 0], sizes = [8, 8, 64], strides = [1, 1, 1]} : vector<10x10x64xf32> to vector<8x8x64xf32>
    %c0_12 = arith.constant 0 : index
    %c0_13 = arith.constant 0 : index
    %c0_14 = arith.constant 0 : index
    %8 = vector.load %arg2[%c0_12, %c0_13, %c0_14] : memref<3x3x64xf32, #tpu.memory_space<vmem>>, vector<1x1x64xf32>
    %9 = vector.broadcast %8 : vector<1x1x64xf32> to vector<8x8x64xf32>
    %10 = arith.mulf %7, %9 : vector<8x8x64xf32>
    %11 = arith.addf %6, %10 : vector<8x8x64xf32>
    %12 = vector.extract_strided_slice %5 {offsets = [0, 1, 0], sizes = [8, 8, 64], strides = [1, 1, 1]} : vector<10x10x64xf32> to vector<8x8x64xf32>
    %c0_15 = arith.constant 0 : index
    %c1_16 = arith.constant 1 : index
    %c0_17 = arith.constant 0 : index
    %13 = vector.load %arg2[%c0_15, %c1_16, %c0_17] : memref<3x3x64xf32, #tpu.memory_space<vmem>>, vector<1x1x64xf32>
    %14 = vector.broadcast %13 : vector<1x1x64xf32> to vector<8x8x64xf32>
    %15 = arith.mulf %12, %14 : vector<8x8x64xf32>
    %16 = arith.addf %11, %15 : vector<8x8x64xf32>
    %17 = vector.extract_strided_slice %5 {offsets = [0, 2, 0], sizes = [8, 8, 64], strides = [1, 1, 1]} : vector<10x10x64xf32> to vector<8x8x64xf32>
    %c0_18 = arith.constant 0 : index
    %c2 = arith.constant 2 : index
    %c0_19 = arith.constant 0 : index
    %18 = vector.load %arg2[%c0_18, %c2, %c0_19] : memref<3x3x64xf32, #tpu.memory_space<vmem>>, vector<1x1x64xf32>
    %19 = vector.broadcast %18 : vector<1x1x64xf32> to vector<8x8x64xf32>
    %20 = arith.mulf %17, %19 : vector<8x8x64xf32>
    %21 = arith.addf %16, %20 : vector<8x8x64xf32>
    %22 = vector.extract_strided_slice %5 {offsets = [1, 0, 0], sizes = [8, 8, 64], strides = [1, 1, 1]} : vector<10x10x64xf32> to vector<8x8x64xf32>
    %c1_20 = arith.constant 1 : index
    %c0_21 = arith.constant 0 : index
    %c0_22 = arith.constant 0 : index
    %23 = vector.load %arg2[%c1_20, %c0_21, %c0_22] : memref<3x3x64xf32, #tpu.memory_space<vmem>>, vector<1x1x64xf32>
    %24 = vector.broadcast %23 : vector<1x1x64xf32> to vector<8x8x64xf32>
    %25 = arith.mulf %22, %24 : vector<8x8x64xf32>
    %26 = arith.addf %21, %25 : vector<8x8x64xf32>
    %27 = vector.extract_strided_slice %5 {offsets = [1, 1, 0], sizes = [8, 8, 64], strides = [1, 1, 1]} : vector<10x10x64xf32> to vector<8x8x64xf32>
    %c1_23 = arith.constant 1 : index
    %c1_24 = arith.constant 1 : index
    %c0_25 = arith.constant 0 : index
    %28 = vector.load %arg2[%c1_23, %c1_24, %c0_25] : memref<3x3x64xf32, #tpu.memory_space<vmem>>, vector<1x1x64xf32>
    %29 = vector.broadcast %28 : vector<1x1x64xf32> to vector<8x8x64xf32>
    %30 = arith.mulf %27, %29 : vector<8x8x64xf32>
    %31 = arith.addf %26, %30 : vector<8x8x64xf32>
    %32 = vector.extract_strided_slice %5 {offsets = [1, 2, 0], sizes = [8, 8, 64], strides = [1, 1, 1]} : vector<10x10x64xf32> to vector<8x8x64xf32>
    %c1_26 = arith.constant 1 : index
    %c2_27 = arith.constant 2 : index
    %c0_28 = arith.constant 0 : index
    %33 = vector.load %arg2[%c1_26, %c2_27, %c0_28] : memref<3x3x64xf32, #tpu.memory_space<vmem>>, vector<1x1x64xf32>
    %34 = vector.broadcast %33 : vector<1x1x64xf32> to vector<8x8x64xf32>
    %35 = arith.mulf %32, %34 : vector<8x8x64xf32>
    %36 = arith.addf %31, %35 : vector<8x8x64xf32>
    %37 = vector.extract_strided_slice %5 {offsets = [2, 0, 0], sizes = [8, 8, 64], strides = [1, 1, 1]} : vector<10x10x64xf32> to vector<8x8x64xf32>
    %c2_29 = arith.constant 2 : index
    %c0_30 = arith.constant 0 : index
    %c0_31 = arith.constant 0 : index
    %38 = vector.load %arg2[%c2_29, %c0_30, %c0_31] : memref<3x3x64xf32, #tpu.memory_space<vmem>>, vector<1x1x64xf32>
    %39 = vector.broadcast %38 : vector<1x1x64xf32> to vector<8x8x64xf32>
    %40 = arith.mulf %37, %39 : vector<8x8x64xf32>
    %41 = arith.addf %36, %40 : vector<8x8x64xf32>
    %42 = vector.extract_strided_slice %5 {offsets = [2, 1, 0], sizes = [8, 8, 64], strides = [1, 1, 1]} : vector<10x10x64xf32> to vector<8x8x64xf32>
    %c2_32 = arith.constant 2 : index
    %c1_33 = arith.constant 1 : index
    %c0_34 = arith.constant 0 : index
    %43 = vector.load %arg2[%c2_32, %c1_33, %c0_34] : memref<3x3x64xf32, #tpu.memory_space<vmem>>, vector<1x1x64xf32>
    %44 = vector.broadcast %43 : vector<1x1x64xf32> to vector<8x8x64xf32>
    %45 = arith.mulf %42, %44 : vector<8x8x64xf32>
    %46 = arith.addf %41, %45 : vector<8x8x64xf32>
    %47 = vector.extract_strided_slice %5 {offsets = [2, 2, 0], sizes = [8, 8, 64], strides = [1, 1, 1]} : vector<10x10x64xf32> to vector<8x8x64xf32>
    %c2_35 = arith.constant 2 : index
    %c2_36 = arith.constant 2 : index
    %c0_37 = arith.constant 0 : index
    %48 = vector.load %arg2[%c2_35, %c2_36, %c0_37] : memref<3x3x64xf32, #tpu.memory_space<vmem>>, vector<1x1x64xf32>
    %49 = vector.broadcast %48 : vector<1x1x64xf32> to vector<8x8x64xf32>
    %50 = arith.mulf %47, %49 : vector<8x8x64xf32>
    %51 = arith.addf %46, %50 : vector<8x8x64xf32>
    %c0_38 = arith.constant 0 : index
    %c0_39 = arith.constant 0 : index
    %c0_40 = arith.constant 0 : index
    %52 = vector.load %arg3[%c0_38, %c0_39, %c0_40] : memref<1x1x64xf32, #tpu.memory_space<vmem>>, vector<1x1x64xf32>
    %53 = vector.broadcast %52 : vector<1x1x64xf32> to vector<8x8x64xf32>
    %54 = arith.addf %51, %53 : vector<8x8x64xf32>
    %cst_41 = arith.constant 0.000000e+00 : f32
    %55 = vector.broadcast %cst_41 : f32 to vector<8x8x64xf32>
    %56 = arith.subf %55, %54 : vector<8x8x64xf32>
    %57 = math.exp %56 : vector<8x8x64xf32>
    %cst_42 = arith.constant 1.000000e+00 : f32
    %58 = vector.broadcast %cst_42 : f32 to vector<8x8x64xf32>
    %59 = arith.addf %58, %57 : vector<8x8x64xf32>
    %cst_43 = arith.constant 1.000000e+00 : f32
    %60 = vector.broadcast %cst_43 : f32 to vector<8x8x64xf32>
    %61 = arith.divf %60, %59 : vector<8x8x64xf32>
    %62 = arith.mulf %54, %61 : vector<8x8x64xf32>
    %63 = arith.truncf %62 : vector<8x8x64xf32> to vector<8x8x64xbf16>
    %c0_44 = arith.constant 0 : index
    %c0_45 = arith.constant 0 : index
    %c0_46 = arith.constant 0 : index
    %c0_47 = arith.constant 0 : index
    %64 = vector.load %arg4[%c0_44, %c0_45, %c0_46, %c0_47] : memref<1x8x8x64xbf16, #tpu.memory_space<vmem>>, vector<1x8x8x64xbf16>
    %65 = vector.shape_cast %64 : vector<1x8x8x64xbf16> to vector<8x8x64xbf16>
    %66 = vector.shape_cast %63 : vector<8x8x64xbf16> to vector<1x8x8x64xbf16>
    tpu.vector_store %arg4[%c0_44, %c0_45, %c0_46, %c0_47], %66 {strides = array<i32>} : memref<1x8x8x64xbf16, #tpu.memory_space<vmem>>, vector<1x8x8x64xbf16>,
    return
  }
  func.func @transform_0(%arg0: i32) -> (i32, i32, i32, i32) {
    %c0_i32 = arith.constant 0 : i32
    %c0_i32_0 = arith.constant 0 : i32
    %c0_i32_1 = arith.constant 0 : i32
    %c0_i32_2 = arith.constant 0 : i32
    return %arg0, %c0_i32, %c0_i32_0, %c0_i32_1 : i32, i32, i32, i32
  }
  func.func @transform_1(%arg0: i32) -> (i32, i32, i32) {
    %c0_i32 = arith.constant 0 : i32
    %c0_i32_0 = arith.constant 0 : i32
    %c0_i32_1 = arith.constant 0 : i32
    %c0_i32_2 = arith.constant 0 : i32
    return %c0_i32, %c0_i32_0, %c0_i32_1 : i32, i32, i32
  }
  func.func @transform_2(%arg0: i32) -> (i32, i32, i32) {
    %c0_i32 = arith.constant 0 : i32
    %c0_i32_0 = arith.constant 0 : i32
    %c0_i32_1 = arith.constant 0 : i32
    %c0_i32_2 = arith.constant 0 : i32
    return %c0_i32, %c0_i32_0, %c0_i32_1 : i32, i32, i32
  }
  func.func @transform_3(%arg0: i32) -> (i32, i32, i32, i32) {
    %c0_i32 = arith.constant 0 : i32
    %c0_i32_0 = arith.constant 0 : i32
    %c0_i32_1 = arith.constant 0 : i32
    %c0_i32_2 = arith.constant 0 : i32
    return %arg0, %c0_i32, %c0_i32_0, %c0_i32_1 : i32, i32, i32, i32
  }
}

module attributes {stable_mosaic.version = 11 : i64} {
  func.func @kernel(%arg0: i32, %arg1: i32, %arg2: memref<1x1x64x64xbf16, #tpu.memory_space<vmem>>, %arg3: memref<1x64x160xbf16, #tpu.memory_space<vmem>>, %arg4: memref<1x2x64xf32, #tpu.memory_space<vmem>>, %arg5: memref<1x2x8x64xf32, #tpu.memory_space<vmem>>, %arg6: memref<1x1x64xf32, #tpu.memory_space<vmem>>, %arg7: memref<1x1x64x64xf32, #tpu.memory_space<vmem>>, %arg8: memref<64x512xf32, #tpu.memory_space<vmem>>, %arg9: memref<64x512xf32, #tpu.memory_space<vmem>>, %arg10: memref<64x512xf32, #tpu.memory_space<vmem>>, %arg11: memref<64x512xf32, #tpu.memory_space<vmem>>) attributes {dimension_semantics = [#tpu.dimension_semantics<parallel>, #tpu.dimension_semantics<arbitrary>], iteration_bounds = array<i64: 2, 2>, scalar_prefetch = 0 : i64, scratch_operands = 4 : i64, tpu.core_type = #tpu.core_type<tc>, window_params = [{transform_indices = @transform_0, window_bounds = array<i64: 1, 1, 64, 64>}, {transform_indices = @transform_1, window_bounds = array<i64: 1, 64, 160>}, {transform_indices = @transform_2, window_bounds = array<i64: 1, 2, 64>}, {transform_indices = @transform_3, window_bounds = array<i64: 1, 2, 8, 64>}, {transform_indices = @transform_4, window_bounds = array<i64: 1, 1, 64>}, {transform_indices = @transform_5, window_bounds = array<i64: 1, 1, 64, 64>}]} {
    %c0 = arith.constant 0 : index
    %c0_0 = arith.constant 0 : index
    %c0_1 = arith.constant 0 : index
    %c0_2 = arith.constant 0 : index
    %0 = vector.load %arg2[%c0, %c0_0, %c0_1, %c0_2] : memref<1x1x64x64xbf16, #tpu.memory_space<vmem>>, vector<1x1x64x64xbf16>
    %1 = vector.shape_cast %0 : vector<1x1x64x64xbf16> to vector<64x64xbf16>
    %2 = arith.extf %1 : vector<64x64xbf16> to vector<64x64xf32>
    %c0_3 = arith.constant 0 : index
    %c0_4 = arith.constant 0 : index
    %c0_5 = arith.constant 0 : index
    %3 = vector.load %arg3[%c0_3, %c0_4, %c0_5] : memref<1x64x160xbf16, #tpu.memory_space<vmem>>, vector<1x64x160xbf16>
    %4 = vector.shape_cast %3 : vector<1x64x160xbf16> to vector<64x160xbf16>
    %cst = arith.constant dense<0.000000e+00> : vector<64x160xf32>
    %5 = tpu.matmul %1, %4, %cst {dimension_numbers = #tpu.dot_dimension_numbers<[1], [0], [0], [1], [0, 0, 1, 1], [], []>} : vector<64x64xbf16>, vector<64x160xbf16>, vector<64x160xf32> -> vector<64x160xf32>
    %c0_6 = arith.constant 0 : index
    %c0_7 = arith.constant 0 : index
    %c0_8 = arith.constant 0 : index
    %c0_9 = arith.constant 0 : index
    %6 = vector.load %arg5[%c0_6, %c0_7, %c0_8, %c0_9] : memref<1x2x8x64xf32, #tpu.memory_space<vmem>>, vector<1x1x8x64xf32>
    %7 = vector.shape_cast %6 : vector<1x1x8x64xf32> to vector<8x64xf32>
    %8 = vector.extract_strided_slice %5 {offsets = [0, 0], sizes = [64, 64], strides = [1, 1]} : vector<64x160xf32> to vector<64x64xf32>
    %c0_10 = arith.constant 0 : index
    %c0_11 = arith.constant 0 : index
    %c0_12 = arith.constant 0 : index
    %9 = vector.load %arg4[%c0_10, %c0_11, %c0_12] : memref<1x2x64xf32, #tpu.memory_space<vmem>>, vector<1x1x64xf32>
    %10 = vector.shape_cast %9 : vector<1x1x64xf32> to vector<1x64xf32>
    %11 = vector.broadcast %10 : vector<1x64xf32> to vector<64x64xf32>
    %12 = arith.addf %8, %11 : vector<64x64xf32>
    %cst_13 = arith.constant 2.000000e+01 : f32
    %13 = vector.broadcast %cst_13 : f32 to vector<64x64xf32>
    %14 = arith.minimumf %12, %13 : vector<64x64xf32>
    %15 = math.exp %14 : vector<64x64xf32>
    %cst_14 = arith.constant 1.000000e+00 : f32
    %16 = vector.broadcast %cst_14 : f32 to vector<64x64xf32>
    %17 = arith.addf %16, %15 : vector<64x64xf32>
    %18 = math.log %17 : vector<64x64xf32>
    %cst_15 = arith.constant 2.000000e+01 : f32
    %19 = vector.broadcast %cst_15 : f32 to vector<64x64xf32>
    %20 = arith.cmpf ogt, %12, %19 : vector<64x64xf32>
    %21 = arith.select %20, %12, %18 : vector<64x64xi1>, vector<64x64xf32>
    %22 = arith.mulf %21, %2 : vector<64x64xf32>
    %23 = vector.extract_strided_slice %7 {offsets = [0, 0], sizes = [1, 64], strides = [1, 1]} : vector<8x64xf32> to vector<1x64xf32>
    %24 = vector.broadcast %23 : vector<1x64xf32> to vector<64x64xf32>
    %25 = arith.mulf %21, %24 : vector<64x64xf32>
    %26 = math.exp %25 : vector<64x64xf32>
    %c0_16 = arith.constant 0 : index
    %c0_17 = arith.constant 0 : index
    %27 = vector.load %arg8[%c0_16, %c0_17] : memref<64x512xf32, #tpu.memory_space<vmem>>, vector<64x64xf32>
    tpu.vector_store %arg8[%c0_16, %c0_17], %26 {strides = array<i32>} : memref<64x512xf32, #tpu.memory_space<vmem>>, vector<64x64xf32>,
    %28 = vector.extract_strided_slice %5 {offsets = [0, 64], sizes = [64, 1], strides = [1, 1]} : vector<64x160xf32> to vector<64x1xf32>
    %29 = vector.shape_cast %28 : vector<64x1xf32> to vector<64x1xf32>
    %30 = vector.broadcast %29 : vector<64x1xf32> to vector<64x64xf32>
    %31 = arith.mulf %30, %22 : vector<64x64xf32>
    %c0_18 = arith.constant 0 : index
    %c0_19 = arith.constant 0 : index
    %32 = vector.load %arg9[%c0_18, %c0_19] : memref<64x512xf32, #tpu.memory_space<vmem>>, vector<64x64xf32>
    tpu.vector_store %arg9[%c0_18, %c0_19], %31 {strides = array<i32>} : memref<64x512xf32, #tpu.memory_space<vmem>>, vector<64x64xf32>,
    %33 = vector.extract_strided_slice %7 {offsets = [1, 0], sizes = [1, 64], strides = [1, 1]} : vector<8x64xf32> to vector<1x64xf32>
    %34 = vector.broadcast %33 : vector<1x64xf32> to vector<64x64xf32>
    %35 = arith.mulf %21, %34 : vector<64x64xf32>
    %36 = math.exp %35 : vector<64x64xf32>
    %c0_20 = arith.constant 0 : index
    %c64 = arith.constant 64 : index
    %37 = vector.load %arg8[%c0_20, %c64] : memref<64x512xf32, #tpu.memory_space<vmem>>, vector<64x64xf32>
    tpu.vector_store %arg8[%c0_20, %c64], %36 {strides = array<i32>} : memref<64x512xf32, #tpu.memory_space<vmem>>, vector<64x64xf32>,
    %38 = vector.extract_strided_slice %5 {offsets = [0, 65], sizes = [64, 1], strides = [1, 1]} : vector<64x160xf32> to vector<64x1xf32>
    %39 = vector.shape_cast %38 : vector<64x1xf32> to vector<64x1xf32>
    %40 = vector.broadcast %39 : vector<64x1xf32> to vector<64x64xf32>
    %41 = arith.mulf %40, %22 : vector<64x64xf32>
    %c0_21 = arith.constant 0 : index
    %c64_22 = arith.constant 64 : index
    %42 = vector.load %arg9[%c0_21, %c64_22] : memref<64x512xf32, #tpu.memory_space<vmem>>, vector<64x64xf32>
    tpu.vector_store %arg9[%c0_21, %c64_22], %41 {strides = array<i32>} : memref<64x512xf32, #tpu.memory_space<vmem>>, vector<64x64xf32>,
    %43 = vector.extract_strided_slice %7 {offsets = [2, 0], sizes = [1, 64], strides = [1, 1]} : vector<8x64xf32> to vector<1x64xf32>
    %44 = vector.broadcast %43 : vector<1x64xf32> to vector<64x64xf32>
    %45 = arith.mulf %21, %44 : vector<64x64xf32>
    %46 = math.exp %45 : vector<64x64xf32>
    %c0_23 = arith.constant 0 : index
    %c128 = arith.constant 128 : index
    %47 = vector.load %arg8[%c0_23, %c128] : memref<64x512xf32, #tpu.memory_space<vmem>>, vector<64x64xf32>
    tpu.vector_store %arg8[%c0_23, %c128], %46 {strides = array<i32>} : memref<64x512xf32, #tpu.memory_space<vmem>>, vector<64x64xf32>,
    %48 = vector.extract_strided_slice %5 {offsets = [0, 66], sizes = [64, 1], strides = [1, 1]} : vector<64x160xf32> to vector<64x1xf32>
    %49 = vector.shape_cast %48 : vector<64x1xf32> to vector<64x1xf32>
    %50 = vector.broadcast %49 : vector<64x1xf32> to vector<64x64xf32>
    %51 = arith.mulf %50, %22 : vector<64x64xf32>
    %c0_24 = arith.constant 0 : index
    %c128_25 = arith.constant 128 : index
    %52 = vector.load %arg9[%c0_24, %c128_25] : memref<64x512xf32, #tpu.memory_space<vmem>>, vector<64x64xf32>
    tpu.vector_store %arg9[%c0_24, %c128_25], %51 {strides = array<i32>} : memref<64x512xf32, #tpu.memory_space<vmem>>, vector<64x64xf32>,
    %53 = vector.extract_strided_slice %7 {offsets = [3, 0], sizes = [1, 64], strides = [1, 1]} : vector<8x64xf32> to vector<1x64xf32>
    %54 = vector.broadcast %53 : vector<1x64xf32> to vector<64x64xf32>
    %55 = arith.mulf %21, %54 : vector<64x64xf32>
    %56 = math.exp %55 : vector<64x64xf32>
    %c0_26 = arith.constant 0 : index
    %c192 = arith.constant 192 : index
    %57 = vector.load %arg8[%c0_26, %c192] : memref<64x512xf32, #tpu.memory_space<vmem>>, vector<64x64xf32>
    tpu.vector_store %arg8[%c0_26, %c192], %56 {strides = array<i32>} : memref<64x512xf32, #tpu.memory_space<vmem>>, vector<64x64xf32>,
    %58 = vector.extract_strided_slice %5 {offsets = [0, 67], sizes = [64, 1], strides = [1, 1]} : vector<64x160xf32> to vector<64x1xf32>
    %59 = vector.shape_cast %58 : vector<64x1xf32> to vector<64x1xf32>
    %60 = vector.broadcast %59 : vector<64x1xf32> to vector<64x64xf32>
    %61 = arith.mulf %60, %22 : vector<64x64xf32>
    %c0_27 = arith.constant 0 : index
    %c192_28 = arith.constant 192 : index
    %62 = vector.load %arg9[%c0_27, %c192_28] : memref<64x512xf32, #tpu.memory_space<vmem>>, vector<64x64xf32>
    tpu.vector_store %arg9[%c0_27, %c192_28], %61 {strides = array<i32>} : memref<64x512xf32, #tpu.memory_space<vmem>>, vector<64x64xf32>,
    %63 = vector.extract_strided_slice %7 {offsets = [4, 0], sizes = [1, 64], strides = [1, 1]} : vector<8x64xf32> to vector<1x64xf32>
    %64 = vector.broadcast %63 : vector<1x64xf32> to vector<64x64xf32>
    %65 = arith.mulf %21, %64 : vector<64x64xf32>
    %66 = math.exp %65 : vector<64x64xf32>
    %c0_29 = arith.constant 0 : index
    %c256 = arith.constant 256 : index
    %67 = vector.load %arg8[%c0_29, %c256] : memref<64x512xf32, #tpu.memory_space<vmem>>, vector<64x64xf32>
    tpu.vector_store %arg8[%c0_29, %c256], %66 {strides = array<i32>} : memref<64x512xf32, #tpu.memory_space<vmem>>, vector<64x64xf32>,
    %68 = vector.extract_strided_slice %5 {offsets = [0, 68], sizes = [64, 1], strides = [1, 1]} : vector<64x160xf32> to vector<64x1xf32>
    %69 = vector.shape_cast %68 : vector<64x1xf32> to vector<64x1xf32>
    %70 = vector.broadcast %69 : vector<64x1xf32> to vector<64x64xf32>
    %71 = arith.mulf %70, %22 : vector<64x64xf32>
    %c0_30 = arith.constant 0 : index
    %c256_31 = arith.constant 256 : index
    %72 = vector.load %arg9[%c0_30, %c256_31] : memref<64x512xf32, #tpu.memory_space<vmem>>, vector<64x64xf32>
    tpu.vector_store %arg9[%c0_30, %c256_31], %71 {strides = array<i32>} : memref<64x512xf32, #tpu.memory_space<vmem>>, vector<64x64xf32>,
    %73 = vector.extract_strided_slice %7 {offsets = [5, 0], sizes = [1, 64], strides = [1, 1]} : vector<8x64xf32> to vector<1x64xf32>
    %74 = vector.broadcast %73 : vector<1x64xf32> to vector<64x64xf32>
    %75 = arith.mulf %21, %74 : vector<64x64xf32>
    %76 = math.exp %75 : vector<64x64xf32>
    %c0_32 = arith.constant 0 : index
    %c320 = arith.constant 320 : index
    %77 = vector.load %arg8[%c0_32, %c320] : memref<64x512xf32, #tpu.memory_space<vmem>>, vector<64x64xf32>
    tpu.vector_store %arg8[%c0_32, %c320], %76 {strides = array<i32>} : memref<64x512xf32, #tpu.memory_space<vmem>>, vector<64x64xf32>,
    %78 = vector.extract_strided_slice %5 {offsets = [0, 69], sizes = [64, 1], strides = [1, 1]} : vector<64x160xf32> to vector<64x1xf32>
    %79 = vector.shape_cast %78 : vector<64x1xf32> to vector<64x1xf32>
    %80 = vector.broadcast %79 : vector<64x1xf32> to vector<64x64xf32>
    %81 = arith.mulf %80, %22 : vector<64x64xf32>
    %c0_33 = arith.constant 0 : index
    %c320_34 = arith.constant 320 : index
    %82 = vector.load %arg9[%c0_33, %c320_34] : memref<64x512xf32, #tpu.memory_space<vmem>>, vector<64x64xf32>
    tpu.vector_store %arg9[%c0_33, %c320_34], %81 {strides = array<i32>} : memref<64x512xf32, #tpu.memory_space<vmem>>, vector<64x64xf32>,
    %83 = vector.extract_strided_slice %7 {offsets = [6, 0], sizes = [1, 64], strides = [1, 1]} : vector<8x64xf32> to vector<1x64xf32>
    %84 = vector.broadcast %83 : vector<1x64xf32> to vector<64x64xf32>
    %85 = arith.mulf %21, %84 : vector<64x64xf32>
    %86 = math.exp %85 : vector<64x64xf32>
    %c0_35 = arith.constant 0 : index
    %c384 = arith.constant 384 : index
    %87 = vector.load %arg8[%c0_35, %c384] : memref<64x512xf32, #tpu.memory_space<vmem>>, vector<64x64xf32>
    tpu.vector_store %arg8[%c0_35, %c384], %86 {strides = array<i32>} : memref<64x512xf32, #tpu.memory_space<vmem>>, vector<64x64xf32>,
    %88 = vector.extract_strided_slice %5 {offsets = [0, 70], sizes = [64, 1], strides = [1, 1]} : vector<64x160xf32> to vector<64x1xf32>
    %89 = vector.shape_cast %88 : vector<64x1xf32> to vector<64x1xf32>
    %90 = vector.broadcast %89 : vector<64x1xf32> to vector<64x64xf32>
    %91 = arith.mulf %90, %22 : vector<64x64xf32>
    %c0_36 = arith.constant 0 : index
    %c384_37 = arith.constant 384 : index
    %92 = vector.load %arg9[%c0_36, %c384_37] : memref<64x512xf32, #tpu.memory_space<vmem>>, vector<64x64xf32>
    tpu.vector_store %arg9[%c0_36, %c384_37], %91 {strides = array<i32>} : memref<64x512xf32, #tpu.memory_space<vmem>>, vector<64x64xf32>,
    %93 = vector.extract_strided_slice %7 {offsets = [7, 0], sizes = [1, 64], strides = [1, 1]} : vector<8x64xf32> to vector<1x64xf32>
    %94 = vector.broadcast %93 : vector<1x64xf32> to vector<64x64xf32>
    %95 = arith.mulf %21, %94 : vector<64x64xf32>
    %96 = math.exp %95 : vector<64x64xf32>
    %c0_38 = arith.constant 0 : index
    %c448 = arith.constant 448 : index
    %97 = vector.load %arg8[%c0_38, %c448] : memref<64x512xf32, #tpu.memory_space<vmem>>, vector<64x64xf32>
    tpu.vector_store %arg8[%c0_38, %c448], %96 {strides = array<i32>} : memref<64x512xf32, #tpu.memory_space<vmem>>, vector<64x64xf32>,
    %98 = vector.extract_strided_slice %5 {offsets = [0, 71], sizes = [64, 1], strides = [1, 1]} : vector<64x160xf32> to vector<64x1xf32>
    %99 = vector.shape_cast %98 : vector<64x1xf32> to vector<64x1xf32>
    %100 = vector.broadcast %99 : vector<64x1xf32> to vector<64x64xf32>
    %101 = arith.mulf %100, %22 : vector<64x64xf32>
    %c0_39 = arith.constant 0 : index
    %c448_40 = arith.constant 448 : index
    %102 = vector.load %arg9[%c0_39, %c448_40] : memref<64x512xf32, #tpu.memory_space<vmem>>, vector<64x64xf32>
    tpu.vector_store %arg9[%c0_39, %c448_40], %101 {strides = array<i32>} : memref<64x512xf32, #tpu.memory_space<vmem>>, vector<64x64xf32>,
    %c0_41 = arith.constant 0 : index
    %c1 = arith.constant 1 : index
    %c0_42 = arith.constant 0 : index
    %c0_43 = arith.constant 0 : index
    %103 = vector.load %arg5[%c0_41, %c1, %c0_42, %c0_43] : memref<1x2x8x64xf32, #tpu.memory_space<vmem>>, vector<1x1x8x64xf32>
    %104 = vector.shape_cast %103 : vector<1x1x8x64xf32> to vector<8x64xf32>
    %105 = vector.extract_strided_slice %5 {offsets = [0, 80], sizes = [64, 64], strides = [1, 1]} : vector<64x160xf32> to vector<64x64xf32>
    %c0_44 = arith.constant 0 : index
    %c1_45 = arith.constant 1 : index
    %c0_46 = arith.constant 0 : index
    %106 = vector.load %arg4[%c0_44, %c1_45, %c0_46] : memref<1x2x64xf32, #tpu.memory_space<vmem>>, vector<1x1x64xf32>
    %107 = vector.shape_cast %106 : vector<1x1x64xf32> to vector<1x64xf32>
    %108 = vector.broadcast %107 : vector<1x64xf32> to vector<64x64xf32>
    %109 = arith.addf %105, %108 : vector<64x64xf32>
    %cst_47 = arith.constant 2.000000e+01 : f32
    %110 = vector.broadcast %cst_47 : f32 to vector<64x64xf32>
    %111 = arith.minimumf %109, %110 : vector<64x64xf32>
    %112 = math.exp %111 : vector<64x64xf32>
    %cst_48 = arith.constant 1.000000e+00 : f32
    %113 = vector.broadcast %cst_48 : f32 to vector<64x64xf32>
    %114 = arith.addf %113, %112 : vector<64x64xf32>
    %115 = math.log %114 : vector<64x64xf32>
    %cst_49 = arith.constant 2.000000e+01 : f32
    %116 = vector.broadcast %cst_49 : f32 to vector<64x64xf32>
    %117 = arith.cmpf ogt, %109, %116 : vector<64x64xf32>
    %118 = arith.select %117, %109, %115 : vector<64x64xi1>, vector<64x64xf32>
    %119 = arith.mulf %118, %2 : vector<64x64xf32>
    %120 = vector.extract_strided_slice %104 {offsets = [0, 0], sizes = [1, 64], strides = [1, 1]} : vector<8x64xf32> to vector<1x64xf32>
    %121 = vector.broadcast %120 : vector<1x64xf32> to vector<64x64xf32>
    %122 = arith.mulf %118, %121 : vector<64x64xf32>
    %123 = math.exp %122 : vector<64x64xf32>
    %c0_50 = arith.constant 0 : index
    %c0_51 = arith.constant 0 : index
    %124 = vector.load %arg10[%c0_50, %c0_51] : memref<64x512xf32, #tpu.memory_space<vmem>>, vector<64x64xf32>
    tpu.vector_store %arg10[%c0_50, %c0_51], %123 {strides = array<i32>} : memref<64x512xf32, #tpu.memory_space<vmem>>, vector<64x64xf32>,
    %125 = vector.extract_strided_slice %5 {offsets = [0, 144], sizes = [64, 1], strides = [1, 1]} : vector<64x160xf32> to vector<64x1xf32>
    %126 = vector.shape_cast %125 : vector<64x1xf32> to vector<64x1xf32>
    %127 = vector.broadcast %126 : vector<64x1xf32> to vector<64x64xf32>
    %128 = arith.mulf %127, %119 : vector<64x64xf32>
    %c0_52 = arith.constant 0 : index
    %c0_53 = arith.constant 0 : index
    %129 = vector.load %arg11[%c0_52, %c0_53] : memref<64x512xf32, #tpu.memory_space<vmem>>, vector<64x64xf32>
    tpu.vector_store %arg11[%c0_52, %c0_53], %128 {strides = array<i32>} : memref<64x512xf32, #tpu.memory_space<vmem>>, vector<64x64xf32>,
    %130 = vector.extract_strided_slice %104 {offsets = [1, 0], sizes = [1, 64], strides = [1, 1]} : vector<8x64xf32> to vector<1x64xf32>
    %131 = vector.broadcast %130 : vector<1x64xf32> to vector<64x64xf32>
    %132 = arith.mulf %118, %131 : vector<64x64xf32>
    %133 = math.exp %132 : vector<64x64xf32>
    %c0_54 = arith.constant 0 : index
    %c64_55 = arith.constant 64 : index
    %134 = vector.load %arg10[%c0_54, %c64_55] : memref<64x512xf32, #tpu.memory_space<vmem>>, vector<64x64xf32>
    tpu.vector_store %arg10[%c0_54, %c64_55], %133 {strides = array<i32>} : memref<64x512xf32, #tpu.memory_space<vmem>>, vector<64x64xf32>,
    %135 = vector.extract_strided_slice %5 {offsets = [0, 145], sizes = [64, 1], strides = [1, 1]} : vector<64x160xf32> to vector<64x1xf32>
    %136 = vector.shape_cast %135 : vector<64x1xf32> to vector<64x1xf32>
    %137 = vector.broadcast %136 : vector<64x1xf32> to vector<64x64xf32>
    %138 = arith.mulf %137, %119 : vector<64x64xf32>
    %c0_56 = arith.constant 0 : index
    %c64_57 = arith.constant 64 : index
    %139 = vector.load %arg11[%c0_56, %c64_57] : memref<64x512xf32, #tpu.memory_space<vmem>>, vector<64x64xf32>
    tpu.vector_store %arg11[%c0_56, %c64_57], %138 {strides = array<i32>} : memref<64x512xf32, #tpu.memory_space<vmem>>, vector<64x64xf32>,
    %140 = vector.extract_strided_slice %104 {offsets = [2, 0], sizes = [1, 64], strides = [1, 1]} : vector<8x64xf32> to vector<1x64xf32>
    %141 = vector.broadcast %140 : vector<1x64xf32> to vector<64x64xf32>
    %142 = arith.mulf %118, %141 : vector<64x64xf32>
    %143 = math.exp %142 : vector<64x64xf32>
    %c0_58 = arith.constant 0 : index
    %c128_59 = arith.constant 128 : index
    %144 = vector.load %arg10[%c0_58, %c128_59] : memref<64x512xf32, #tpu.memory_space<vmem>>, vector<64x64xf32>
    tpu.vector_store %arg10[%c0_58, %c128_59], %143 {strides = array<i32>} : memref<64x512xf32, #tpu.memory_space<vmem>>, vector<64x64xf32>,
    %145 = vector.extract_strided_slice %5 {offsets = [0, 146], sizes = [64, 1], strides = [1, 1]} : vector<64x160xf32> to vector<64x1xf32>
    %146 = vector.shape_cast %145 : vector<64x1xf32> to vector<64x1xf32>
    %147 = vector.broadcast %146 : vector<64x1xf32> to vector<64x64xf32>
    %148 = arith.mulf %147, %119 : vector<64x64xf32>
    %c0_60 = arith.constant 0 : index
    %c128_61 = arith.constant 128 : index
    %149 = vector.load %arg11[%c0_60, %c128_61] : memref<64x512xf32, #tpu.memory_space<vmem>>, vector<64x64xf32>
    tpu.vector_store %arg11[%c0_60, %c128_61], %148 {strides = array<i32>} : memref<64x512xf32, #tpu.memory_space<vmem>>, vector<64x64xf32>,
    %150 = vector.extract_strided_slice %104 {offsets = [3, 0], sizes = [1, 64], strides = [1, 1]} : vector<8x64xf32> to vector<1x64xf32>
    %151 = vector.broadcast %150 : vector<1x64xf32> to vector<64x64xf32>
    %152 = arith.mulf %118, %151 : vector<64x64xf32>
    %153 = math.exp %152 : vector<64x64xf32>
    %c0_62 = arith.constant 0 : index
    %c192_63 = arith.constant 192 : index
    %154 = vector.load %arg10[%c0_62, %c192_63] : memref<64x512xf32, #tpu.memory_space<vmem>>, vector<64x64xf32>
    tpu.vector_store %arg10[%c0_62, %c192_63], %153 {strides = array<i32>} : memref<64x512xf32, #tpu.memory_space<vmem>>, vector<64x64xf32>,
    %155 = vector.extract_strided_slice %5 {offsets = [0, 147], sizes = [64, 1], strides = [1, 1]} : vector<64x160xf32> to vector<64x1xf32>
    %156 = vector.shape_cast %155 : vector<64x1xf32> to vector<64x1xf32>
    %157 = vector.broadcast %156 : vector<64x1xf32> to vector<64x64xf32>
    %158 = arith.mulf %157, %119 : vector<64x64xf32>
    %c0_64 = arith.constant 0 : index
    %c192_65 = arith.constant 192 : index
    %159 = vector.load %arg11[%c0_64, %c192_65] : memref<64x512xf32, #tpu.memory_space<vmem>>, vector<64x64xf32>
    tpu.vector_store %arg11[%c0_64, %c192_65], %158 {strides = array<i32>} : memref<64x512xf32, #tpu.memory_space<vmem>>, vector<64x64xf32>,
    %160 = vector.extract_strided_slice %104 {offsets = [4, 0], sizes = [1, 64], strides = [1, 1]} : vector<8x64xf32> to vector<1x64xf32>
    %161 = vector.broadcast %160 : vector<1x64xf32> to vector<64x64xf32>
    %162 = arith.mulf %118, %161 : vector<64x64xf32>
    %163 = math.exp %162 : vector<64x64xf32>
    %c0_66 = arith.constant 0 : index
    %c256_67 = arith.constant 256 : index
    %164 = vector.load %arg10[%c0_66, %c256_67] : memref<64x512xf32, #tpu.memory_space<vmem>>, vector<64x64xf32>
    tpu.vector_store %arg10[%c0_66, %c256_67], %163 {strides = array<i32>} : memref<64x512xf32, #tpu.memory_space<vmem>>, vector<64x64xf32>,
    %165 = vector.extract_strided_slice %5 {offsets = [0, 148], sizes = [64, 1], strides = [1, 1]} : vector<64x160xf32> to vector<64x1xf32>
    %166 = vector.shape_cast %165 : vector<64x1xf32> to vector<64x1xf32>
    %167 = vector.broadcast %166 : vector<64x1xf32> to vector<64x64xf32>
    %168 = arith.mulf %167, %119 : vector<64x64xf32>
    %c0_68 = arith.constant 0 : index
    %c256_69 = arith.constant 256 : index
    %169 = vector.load %arg11[%c0_68, %c256_69] : memref<64x512xf32, #tpu.memory_space<vmem>>, vector<64x64xf32>
    tpu.vector_store %arg11[%c0_68, %c256_69], %168 {strides = array<i32>} : memref<64x512xf32, #tpu.memory_space<vmem>>, vector<64x64xf32>,
    %170 = vector.extract_strided_slice %104 {offsets = [5, 0], sizes = [1, 64], strides = [1, 1]} : vector<8x64xf32> to vector<1x64xf32>
    %171 = vector.broadcast %170 : vector<1x64xf32> to vector<64x64xf32>
    %172 = arith.mulf %118, %171 : vector<64x64xf32>
    %173 = math.exp %172 : vector<64x64xf32>
    %c0_70 = arith.constant 0 : index
    %c320_71 = arith.constant 320 : index
    %174 = vector.load %arg10[%c0_70, %c320_71] : memref<64x512xf32, #tpu.memory_space<vmem>>, vector<64x64xf32>
    tpu.vector_store %arg10[%c0_70, %c320_71], %173 {strides = array<i32>} : memref<64x512xf32, #tpu.memory_space<vmem>>, vector<64x64xf32>,
    %175 = vector.extract_strided_slice %5 {offsets = [0, 149], sizes = [64, 1], strides = [1, 1]} : vector<64x160xf32> to vector<64x1xf32>
    %176 = vector.shape_cast %175 : vector<64x1xf32> to vector<64x1xf32>
    %177 = vector.broadcast %176 : vector<64x1xf32> to vector<64x64xf32>
    %178 = arith.mulf %177, %119 : vector<64x64xf32>
    %c0_72 = arith.constant 0 : index
    %c320_73 = arith.constant 320 : index
    %179 = vector.load %arg11[%c0_72, %c320_73] : memref<64x512xf32, #tpu.memory_space<vmem>>, vector<64x64xf32>
    tpu.vector_store %arg11[%c0_72, %c320_73], %178 {strides = array<i32>} : memref<64x512xf32, #tpu.memory_space<vmem>>, vector<64x64xf32>,
    %180 = vector.extract_strided_slice %104 {offsets = [6, 0], sizes = [1, 64], strides = [1, 1]} : vector<8x64xf32> to vector<1x64xf32>
    %181 = vector.broadcast %180 : vector<1x64xf32> to vector<64x64xf32>
    %182 = arith.mulf %118, %181 : vector<64x64xf32>
    %183 = math.exp %182 : vector<64x64xf32>
    %c0_74 = arith.constant 0 : index
    %c384_75 = arith.constant 384 : index
    %184 = vector.load %arg10[%c0_74, %c384_75] : memref<64x512xf32, #tpu.memory_space<vmem>>, vector<64x64xf32>
    tpu.vector_store %arg10[%c0_74, %c384_75], %183 {strides = array<i32>} : memref<64x512xf32, #tpu.memory_space<vmem>>, vector<64x64xf32>,
    %185 = vector.extract_strided_slice %5 {offsets = [0, 150], sizes = [64, 1], strides = [1, 1]} : vector<64x160xf32> to vector<64x1xf32>
    %186 = vector.shape_cast %185 : vector<64x1xf32> to vector<64x1xf32>
    %187 = vector.broadcast %186 : vector<64x1xf32> to vector<64x64xf32>
    %188 = arith.mulf %187, %119 : vector<64x64xf32>
    %c0_76 = arith.constant 0 : index
    %c384_77 = arith.constant 384 : index
    %189 = vector.load %arg11[%c0_76, %c384_77] : memref<64x512xf32, #tpu.memory_space<vmem>>, vector<64x64xf32>
    tpu.vector_store %arg11[%c0_76, %c384_77], %188 {strides = array<i32>} : memref<64x512xf32, #tpu.memory_space<vmem>>, vector<64x64xf32>,
    %190 = vector.extract_strided_slice %104 {offsets = [7, 0], sizes = [1, 64], strides = [1, 1]} : vector<8x64xf32> to vector<1x64xf32>
    %191 = vector.broadcast %190 : vector<1x64xf32> to vector<64x64xf32>
    %192 = arith.mulf %118, %191 : vector<64x64xf32>
    %193 = math.exp %192 : vector<64x64xf32>
    %c0_78 = arith.constant 0 : index
    %c448_79 = arith.constant 448 : index
    %194 = vector.load %arg10[%c0_78, %c448_79] : memref<64x512xf32, #tpu.memory_space<vmem>>, vector<64x64xf32>
    tpu.vector_store %arg10[%c0_78, %c448_79], %193 {strides = array<i32>} : memref<64x512xf32, #tpu.memory_space<vmem>>, vector<64x64xf32>,
    %195 = vector.extract_strided_slice %5 {offsets = [0, 151], sizes = [64, 1], strides = [1, 1]} : vector<64x160xf32> to vector<64x1xf32>
    %196 = vector.shape_cast %195 : vector<64x1xf32> to vector<64x1xf32>
    %197 = vector.broadcast %196 : vector<64x1xf32> to vector<64x64xf32>
    %198 = arith.mulf %197, %119 : vector<64x64xf32>
    %c0_80 = arith.constant 0 : index
    %c448_81 = arith.constant 448 : index
    %199 = vector.load %arg11[%c0_80, %c448_81] : memref<64x512xf32, #tpu.memory_space<vmem>>, vector<64x64xf32>
    tpu.vector_store %arg11[%c0_80, %c448_81], %198 {strides = array<i32>} : memref<64x512xf32, #tpu.memory_space<vmem>>, vector<64x64xf32>,
    %cst_82 = arith.constant 0.000000e+00 : f32
    %200 = vector.broadcast %cst_82 : f32 to vector<1x512xf32>
    %c0_i32 = arith.constant 0 : i32
    %c8_i32 = arith.constant 8 : i32
    %201 = arith.addi %c0_i32, %c8_i32 : i32
    %c1_i32 = arith.constant 1 : i32
    %202:2 = scf.for %arg12 = %c0_i32 to %201 step %c1_i32 iter_args(%arg13 = %200, %arg14 = %200) -> (vector<1x512xf32>, vector<1x512xf32>)  : i32 {
      %c8_i32_123 = arith.constant 8 : i32
      %306 = arith.muli %arg12, %c8_i32_123 : i32
      %307 = tpu.assume_multiple %306, 8 : i32
      %c7_i32 = arith.constant 7 : i32
      %308 = arith.subi %c7_i32, %arg12 : i32
      %c8_i32_124 = arith.constant 8 : i32
      %309 = arith.muli %308, %c8_i32_124 : i32
      %310 = tpu.assume_multiple %309, 8 : i32
      %c0_i32_125 = arith.constant 0 : i32
      %311 = arith.addi %307, %c0_i32_125 : i32
      %c7_i32_126 = arith.constant 7 : i32
      %312 = arith.addi %310, %c7_i32_126 : i32
      %313 = arith.index_cast %311 : i32 to index
      %c0_127 = arith.constant 0 : index
      %314 = vector.load %arg8[%313, %c0_127] : memref<64x512xf32, #tpu.memory_space<vmem>>, vector<1x512xf32>
      %315 = arith.mulf %314, %arg13 : vector<1x512xf32>
      %316 = arith.index_cast %311 : i32 to index
      %c0_128 = arith.constant 0 : index
      %317 = vector.load %arg9[%316, %c0_128] : memref<64x512xf32, #tpu.memory_space<vmem>>, vector<1x512xf32>
      %318 = arith.addf %315, %317 : vector<1x512xf32>
      %319 = arith.index_cast %312 : i32 to index
      %c0_129 = arith.constant 0 : index
      %320 = vector.load %arg10[%319, %c0_129] : memref<64x512xf32, #tpu.memory_space<vmem>>, vector<1x512xf32>
      %321 = arith.mulf %320, %arg14 : vector<1x512xf32>
      %322 = arith.index_cast %312 : i32 to index
      %c0_130 = arith.constant 0 : index
      %323 = vector.load %arg11[%322, %c0_130] : memref<64x512xf32, #tpu.memory_space<vmem>>, vector<1x512xf32>
      %324 = arith.addf %321, %323 : vector<1x512xf32>
      %c1_i32_131 = arith.constant 1 : i32
      %325 = arith.addi %307, %c1_i32_131 : i32
      %c6_i32 = arith.constant 6 : i32
      %326 = arith.addi %310, %c6_i32 : i32
      %327 = arith.index_cast %325 : i32 to index
      %c0_132 = arith.constant 0 : index
      %328 = vector.load %arg8[%327, %c0_132] : memref<64x512xf32, #tpu.memory_space<vmem>>, vector<1x512xf32>
      %329 = arith.mulf %328, %318 : vector<1x512xf32>
      %330 = arith.index_cast %325 : i32 to index
      %c0_133 = arith.constant 0 : index
      %331 = vector.load %arg9[%330, %c0_133] : memref<64x512xf32, #tpu.memory_space<vmem>>, vector<1x512xf32>
      %332 = arith.addf %329, %331 : vector<1x512xf32>
      %333 = arith.index_cast %326 : i32 to index
      %c0_134 = arith.constant 0 : index
      %334 = vector.load %arg10[%333, %c0_134] : memref<64x512xf32, #tpu.memory_space<vmem>>, vector<1x512xf32>
      %335 = arith.mulf %334, %324 : vector<1x512xf32>
      %336 = arith.index_cast %326 : i32 to index
      %c0_135 = arith.constant 0 : index
      %337 = vector.load %arg11[%336, %c0_135] : memref<64x512xf32, #tpu.memory_space<vmem>>, vector<1x512xf32>
      %338 = arith.addf %335, %337 : vector<1x512xf32>
      %c2_i32 = arith.constant 2 : i32
      %339 = arith.addi %307, %c2_i32 : i32
      %c5_i32 = arith.constant 5 : i32
      %340 = arith.addi %310, %c5_i32 : i32
      %341 = arith.index_cast %339 : i32 to index
      %c0_136 = arith.constant 0 : index
      %342 = vector.load %arg8[%341, %c0_136] : memref<64x512xf32, #tpu.memory_space<vmem>>, vector<1x512xf32>
      %343 = arith.mulf %342, %332 : vector<1x512xf32>
      %344 = arith.index_cast %339 : i32 to index
      %c0_137 = arith.constant 0 : index
      %345 = vector.load %arg9[%344, %c0_137] : memref<64x512xf32, #tpu.memory_space<vmem>>, vector<1x512xf32>
      %346 = arith.addf %343, %345 : vector<1x512xf32>
      %347 = arith.index_cast %340 : i32 to index
      %c0_138 = arith.constant 0 : index
      %348 = vector.load %arg10[%347, %c0_138] : memref<64x512xf32, #tpu.memory_space<vmem>>, vector<1x512xf32>
      %349 = arith.mulf %348, %338 : vector<1x512xf32>
      %350 = arith.index_cast %340 : i32 to index
      %c0_139 = arith.constant 0 : index
      %351 = vector.load %arg11[%350, %c0_139] : memref<64x512xf32, #tpu.memory_space<vmem>>, vector<1x512xf32>
      %352 = arith.addf %349, %351 : vector<1x512xf32>
      %c3_i32 = arith.constant 3 : i32
      %353 = arith.addi %307, %c3_i32 : i32
      %c4_i32 = arith.constant 4 : i32
      %354 = arith.addi %310, %c4_i32 : i32
      %355 = arith.index_cast %353 : i32 to index
      %c0_140 = arith.constant 0 : index
      %356 = vector.load %arg8[%355, %c0_140] : memref<64x512xf32, #tpu.memory_space<vmem>>, vector<1x512xf32>
      %357 = arith.mulf %356, %346 : vector<1x512xf32>
      %358 = arith.index_cast %353 : i32 to index
      %c0_141 = arith.constant 0 : index
      %359 = vector.load %arg9[%358, %c0_141] : memref<64x512xf32, #tpu.memory_space<vmem>>, vector<1x512xf32>
      %360 = arith.addf %357, %359 : vector<1x512xf32>
      %361 = arith.index_cast %354 : i32 to index
      %c0_142 = arith.constant 0 : index
      %362 = vector.load %arg10[%361, %c0_142] : memref<64x512xf32, #tpu.memory_space<vmem>>, vector<1x512xf32>
      %363 = arith.mulf %362, %352 : vector<1x512xf32>
      %364 = arith.index_cast %354 : i32 to index
      %c0_143 = arith.constant 0 : index
      %365 = vector.load %arg11[%364, %c0_143] : memref<64x512xf32, #tpu.memory_space<vmem>>, vector<1x512xf32>
      %366 = arith.addf %363, %365 : vector<1x512xf32>
      %c4_i32_144 = arith.constant 4 : i32
      %367 = arith.addi %307, %c4_i32_144 : i32
      %c3_i32_145 = arith.constant 3 : i32
      %368 = arith.addi %310, %c3_i32_145 : i32
      %369 = arith.index_cast %367 : i32 to index
      %c0_146 = arith.constant 0 : index
      %370 = vector.load %arg8[%369, %c0_146] : memref<64x512xf32, #tpu.memory_space<vmem>>, vector<1x512xf32>
      %371 = arith.mulf %370, %360 : vector<1x512xf32>
      %372 = arith.index_cast %367 : i32 to index
      %c0_147 = arith.constant 0 : index
      %373 = vector.load %arg9[%372, %c0_147] : memref<64x512xf32, #tpu.memory_space<vmem>>, vector<1x512xf32>
      %374 = arith.addf %371, %373 : vector<1x512xf32>
      %375 = arith.index_cast %368 : i32 to index
      %c0_148 = arith.constant 0 : index
      %376 = vector.load %arg10[%375, %c0_148] : memref<64x512xf32, #tpu.memory_space<vmem>>, vector<1x512xf32>
      %377 = arith.mulf %376, %366 : vector<1x512xf32>
      %378 = arith.index_cast %368 : i32 to index
      %c0_149 = arith.constant 0 : index
      %379 = vector.load %arg11[%378, %c0_149] : memref<64x512xf32, #tpu.memory_space<vmem>>, vector<1x512xf32>
      %380 = arith.addf %377, %379 : vector<1x512xf32>
      %c5_i32_150 = arith.constant 5 : i32
      %381 = arith.addi %307, %c5_i32_150 : i32
      %c2_i32_151 = arith.constant 2 : i32
      %382 = arith.addi %310, %c2_i32_151 : i32
      %383 = arith.index_cast %381 : i32 to index
      %c0_152 = arith.constant 0 : index
      %384 = vector.load %arg8[%383, %c0_152] : memref<64x512xf32, #tpu.memory_space<vmem>>, vector<1x512xf32>
      %385 = arith.mulf %384, %374 : vector<1x512xf32>
      %386 = arith.index_cast %381 : i32 to index
      %c0_153 = arith.constant 0 : index
      %387 = vector.load %arg9[%386, %c0_153] : memref<64x512xf32, #tpu.memory_space<vmem>>, vector<1x512xf32>
      %388 = arith.addf %385, %387 : vector<1x512xf32>
      %389 = arith.index_cast %382 : i32 to index
      %c0_154 = arith.constant 0 : index
      %390 = vector.load %arg10[%389, %c0_154] : memref<64x512xf32, #tpu.memory_space<vmem>>, vector<1x512xf32>
      %391 = arith.mulf %390, %380 : vector<1x512xf32>
      %392 = arith.index_cast %382 : i32 to index
      %c0_155 = arith.constant 0 : index
      %393 = vector.load %arg11[%392, %c0_155] : memref<64x512xf32, #tpu.memory_space<vmem>>, vector<1x512xf32>
      %394 = arith.addf %391, %393 : vector<1x512xf32>
      %c6_i32_156 = arith.constant 6 : i32
      %395 = arith.addi %307, %c6_i32_156 : i32
      %c1_i32_157 = arith.constant 1 : i32
      %396 = arith.addi %310, %c1_i32_157 : i32
      %397 = arith.index_cast %395 : i32 to index
      %c0_158 = arith.constant 0 : index
      %398 = vector.load %arg8[%397, %c0_158] : memref<64x512xf32, #tpu.memory_space<vmem>>, vector<1x512xf32>
      %399 = arith.mulf %398, %388 : vector<1x512xf32>
      %400 = arith.index_cast %395 : i32 to index
      %c0_159 = arith.constant 0 : index
      %401 = vector.load %arg9[%400, %c0_159] : memref<64x512xf32, #tpu.memory_space<vmem>>, vector<1x512xf32>
      %402 = arith.addf %399, %401 : vector<1x512xf32>
      %403 = arith.index_cast %396 : i32 to index
      %c0_160 = arith.constant 0 : index
      %404 = vector.load %arg10[%403, %c0_160] : memref<64x512xf32, #tpu.memory_space<vmem>>, vector<1x512xf32>
      %405 = arith.mulf %404, %394 : vector<1x512xf32>
      %406 = arith.index_cast %396 : i32 to index
      %c0_161 = arith.constant 0 : index
      %407 = vector.load %arg11[%406, %c0_161] : memref<64x512xf32, #tpu.memory_space<vmem>>, vector<1x512xf32>
      %408 = arith.addf %405, %407 : vector<1x512xf32>
      %c7_i32_162 = arith.constant 7 : i32
      %409 = arith.addi %307, %c7_i32_162 : i32
      %c0_i32_163 = arith.constant 0 : i32
      %410 = arith.addi %310, %c0_i32_163 : i32
      %411 = arith.index_cast %409 : i32 to index
      %c0_164 = arith.constant 0 : index
      %412 = vector.load %arg8[%411, %c0_164] : memref<64x512xf32, #tpu.memory_space<vmem>>, vector<1x512xf32>
      %413 = arith.mulf %412, %402 : vector<1x512xf32>
      %414 = arith.index_cast %409 : i32 to index
      %c0_165 = arith.constant 0 : index
      %415 = vector.load %arg9[%414, %c0_165] : memref<64x512xf32, #tpu.memory_space<vmem>>, vector<1x512xf32>
      %416 = arith.addf %413, %415 : vector<1x512xf32>
      %417 = arith.index_cast %410 : i32 to index
      %c0_166 = arith.constant 0 : index
      %418 = vector.load %arg10[%417, %c0_166] : memref<64x512xf32, #tpu.memory_space<vmem>>, vector<1x512xf32>
      %419 = arith.mulf %418, %408 : vector<1x512xf32>
      %420 = arith.index_cast %410 : i32 to index
      %c0_167 = arith.constant 0 : index
      %421 = vector.load %arg11[%420, %c0_167] : memref<64x512xf32, #tpu.memory_space<vmem>>, vector<1x512xf32>
      %422 = arith.addf %419, %421 : vector<1x512xf32>
      %423 = tpu.concatenate %318, %332, %346, %360, %374, %388, %402, %416 in 0 : vector<1x512xf32>, vector<1x512xf32>, vector<1x512xf32>, vector<1x512xf32>, vector<1x512xf32>, vector<1x512xf32>, vector<1x512xf32>, vector<1x512xf32> -> vector<8x512xf32>
      %424 = arith.index_cast %307 : i32 to index
      %c0_168 = arith.constant 0 : index
      %425 = vector.load %arg9[%424, %c0_168] : memref<64x512xf32, #tpu.memory_space<vmem>>, vector<8x512xf32>
      tpu.vector_store %arg9[%424, %c0_168], %423 {strides = array<i32>} : memref<64x512xf32, #tpu.memory_space<vmem>>, vector<8x512xf32>,
      %426 = tpu.concatenate %422, %408, %394, %380, %366, %352, %338, %324 in 0 : vector<1x512xf32>, vector<1x512xf32>, vector<1x512xf32>, vector<1x512xf32>, vector<1x512xf32>, vector<1x512xf32>, vector<1x512xf32>, vector<1x512xf32> -> vector<8x512xf32>
      %427 = arith.index_cast %310 : i32 to index
      %c0_169 = arith.constant 0 : index
      %428 = vector.load %arg11[%427, %c0_169] : memref<64x512xf32, #tpu.memory_space<vmem>>, vector<8x512xf32>
      tpu.vector_store %arg11[%427, %c0_169], %426 {strides = array<i32>} : memref<64x512xf32, #tpu.memory_space<vmem>>, vector<8x512xf32>,
      scf.yield %416, %422 : vector<1x512xf32>, vector<1x512xf32>
    }
    %c8_i32_83 = arith.constant 8 : i32
    %c0_84 = arith.constant 0 : index
    %c0_85 = arith.constant 0 : index
    %c0_86 = arith.constant 0 : index
    %203 = vector.load %arg6[%c0_84, %c0_85, %c0_86] : memref<1x1x64xf32, #tpu.memory_space<vmem>>, vector<1x1x64xf32>
    %204 = vector.shape_cast %203 : vector<1x1x64xf32> to vector<1x64xf32>
    %205 = vector.broadcast %204 : vector<1x64xf32> to vector<64x64xf32>
    %206 = arith.mulf %205, %2 : vector<64x64xf32>
    %207 = vector.extract_strided_slice %5 {offsets = [0, 72], sizes = [64, 1], strides = [1, 1]} : vector<64x160xf32> to vector<64x1xf32>
    %208 = vector.shape_cast %207 : vector<64x1xf32> to vector<64x1xf32>
    %209 = vector.broadcast %208 : vector<64x1xf32> to vector<64x64xf32>
    %c0_87 = arith.constant 0 : index
    %c0_88 = arith.constant 0 : index
    %210 = vector.load %arg9[%c0_87, %c0_88] : memref<64x512xf32, #tpu.memory_space<vmem>>, vector<64x64xf32>
    %211 = arith.mulf %209, %210 : vector<64x64xf32>
    %212 = arith.addf %206, %211 : vector<64x64xf32>
    %213 = vector.extract_strided_slice %5 {offsets = [0, 73], sizes = [64, 1], strides = [1, 1]} : vector<64x160xf32> to vector<64x1xf32>
    %214 = vector.shape_cast %213 : vector<64x1xf32> to vector<64x1xf32>
    %215 = vector.broadcast %214 : vector<64x1xf32> to vector<64x64xf32>
    %c0_89 = arith.constant 0 : index
    %c64_90 = arith.constant 64 : index
    %216 = vector.load %arg9[%c0_89, %c64_90] : memref<64x512xf32, #tpu.memory_space<vmem>>, vector<64x64xf32>
    %217 = arith.mulf %215, %216 : vector<64x64xf32>
    %218 = arith.addf %212, %217 : vector<64x64xf32>
    %219 = vector.extract_strided_slice %5 {offsets = [0, 74], sizes = [64, 1], strides = [1, 1]} : vector<64x160xf32> to vector<64x1xf32>
    %220 = vector.shape_cast %219 : vector<64x1xf32> to vector<64x1xf32>
    %221 = vector.broadcast %220 : vector<64x1xf32> to vector<64x64xf32>
    %c0_91 = arith.constant 0 : index
    %c128_92 = arith.constant 128 : index
    %222 = vector.load %arg9[%c0_91, %c128_92] : memref<64x512xf32, #tpu.memory_space<vmem>>, vector<64x64xf32>
    %223 = arith.mulf %221, %222 : vector<64x64xf32>
    %224 = arith.addf %218, %223 : vector<64x64xf32>
    %225 = vector.extract_strided_slice %5 {offsets = [0, 75], sizes = [64, 1], strides = [1, 1]} : vector<64x160xf32> to vector<64x1xf32>
    %226 = vector.shape_cast %225 : vector<64x1xf32> to vector<64x1xf32>
    %227 = vector.broadcast %226 : vector<64x1xf32> to vector<64x64xf32>
    %c0_93 = arith.constant 0 : index
    %c192_94 = arith.constant 192 : index
    %228 = vector.load %arg9[%c0_93, %c192_94] : memref<64x512xf32, #tpu.memory_space<vmem>>, vector<64x64xf32>
    %229 = arith.mulf %227, %228 : vector<64x64xf32>
    %230 = arith.addf %224, %229 : vector<64x64xf32>
    %231 = vector.extract_strided_slice %5 {offsets = [0, 76], sizes = [64, 1], strides = [1, 1]} : vector<64x160xf32> to vector<64x1xf32>
    %232 = vector.shape_cast %231 : vector<64x1xf32> to vector<64x1xf32>
    %233 = vector.broadcast %232 : vector<64x1xf32> to vector<64x64xf32>
    %c0_95 = arith.constant 0 : index
    %c256_96 = arith.constant 256 : index
    %234 = vector.load %arg9[%c0_95, %c256_96] : memref<64x512xf32, #tpu.memory_space<vmem>>, vector<64x64xf32>
    %235 = arith.mulf %233, %234 : vector<64x64xf32>
    %236 = arith.addf %230, %235 : vector<64x64xf32>
    %237 = vector.extract_strided_slice %5 {offsets = [0, 77], sizes = [64, 1], strides = [1, 1]} : vector<64x160xf32> to vector<64x1xf32>
    %238 = vector.shape_cast %237 : vector<64x1xf32> to vector<64x1xf32>
    %239 = vector.broadcast %238 : vector<64x1xf32> to vector<64x64xf32>
    %c0_97 = arith.constant 0 : index
    %c320_98 = arith.constant 320 : index
    %240 = vector.load %arg9[%c0_97, %c320_98] : memref<64x512xf32, #tpu.memory_space<vmem>>, vector<64x64xf32>
    %241 = arith.mulf %239, %240 : vector<64x64xf32>
    %242 = arith.addf %236, %241 : vector<64x64xf32>
    %243 = vector.extract_strided_slice %5 {offsets = [0, 78], sizes = [64, 1], strides = [1, 1]} : vector<64x160xf32> to vector<64x1xf32>
    %244 = vector.shape_cast %243 : vector<64x1xf32> to vector<64x1xf32>
    %245 = vector.broadcast %244 : vector<64x1xf32> to vector<64x64xf32>
    %c0_99 = arith.constant 0 : index
    %c384_100 = arith.constant 384 : index
    %246 = vector.load %arg9[%c0_99, %c384_100] : memref<64x512xf32, #tpu.memory_space<vmem>>, vector<64x64xf32>
    %247 = arith.mulf %245, %246 : vector<64x64xf32>
    %248 = arith.addf %242, %247 : vector<64x64xf32>
    %249 = vector.extract_strided_slice %5 {offsets = [0, 79], sizes = [64, 1], strides = [1, 1]} : vector<64x160xf32> to vector<64x1xf32>
    %250 = vector.shape_cast %249 : vector<64x1xf32> to vector<64x1xf32>
    %251 = vector.broadcast %250 : vector<64x1xf32> to vector<64x64xf32>
    %c0_101 = arith.constant 0 : index
    %c448_102 = arith.constant 448 : index
    %252 = vector.load %arg9[%c0_101, %c448_102] : memref<64x512xf32, #tpu.memory_space<vmem>>, vector<64x64xf32>
    %253 = arith.mulf %251, %252 : vector<64x64xf32>
    %254 = arith.addf %248, %253 : vector<64x64xf32>
    %255 = vector.extract_strided_slice %5 {offsets = [0, 152], sizes = [64, 1], strides = [1, 1]} : vector<64x160xf32> to vector<64x1xf32>
    %256 = vector.shape_cast %255 : vector<64x1xf32> to vector<64x1xf32>
    %257 = vector.broadcast %256 : vector<64x1xf32> to vector<64x64xf32>
    %c0_103 = arith.constant 0 : index
    %c0_104 = arith.constant 0 : index
    %258 = vector.load %arg11[%c0_103, %c0_104] : memref<64x512xf32, #tpu.memory_space<vmem>>, vector<64x64xf32>
    %259 = arith.mulf %257, %258 : vector<64x64xf32>
    %260 = arith.addf %254, %259 : vector<64x64xf32>
    %261 = vector.extract_strided_slice %5 {offsets = [0, 153], sizes = [64, 1], strides = [1, 1]} : vector<64x160xf32> to vector<64x1xf32>
    %262 = vector.shape_cast %261 : vector<64x1xf32> to vector<64x1xf32>
    %263 = vector.broadcast %262 : vector<64x1xf32> to vector<64x64xf32>
    %c0_105 = arith.constant 0 : index
    %c64_106 = arith.constant 64 : index
    %264 = vector.load %arg11[%c0_105, %c64_106] : memref<64x512xf32, #tpu.memory_space<vmem>>, vector<64x64xf32>
    %265 = arith.mulf %263, %264 : vector<64x64xf32>
    %266 = arith.addf %260, %265 : vector<64x64xf32>
    %267 = vector.extract_strided_slice %5 {offsets = [0, 154], sizes = [64, 1], strides = [1, 1]} : vector<64x160xf32> to vector<64x1xf32>
    %268 = vector.shape_cast %267 : vector<64x1xf32> to vector<64x1xf32>
    %269 = vector.broadcast %268 : vector<64x1xf32> to vector<64x64xf32>
    %c0_107 = arith.constant 0 : index
    %c128_108 = arith.constant 128 : index
    %270 = vector.load %arg11[%c0_107, %c128_108] : memref<64x512xf32, #tpu.memory_space<vmem>>, vector<64x64xf32>
    %271 = arith.mulf %269, %270 : vector<64x64xf32>
    %272 = arith.addf %266, %271 : vector<64x64xf32>
    %273 = vector.extract_strided_slice %5 {offsets = [0, 155], sizes = [64, 1], strides = [1, 1]} : vector<64x160xf32> to vector<64x1xf32>
    %274 = vector.shape_cast %273 : vector<64x1xf32> to vector<64x1xf32>
    %275 = vector.broadcast %274 : vector<64x1xf32> to vector<64x64xf32>
    %c0_109 = arith.constant 0 : index
    %c192_110 = arith.constant 192 : index
    %276 = vector.load %arg11[%c0_109, %c192_110] : memref<64x512xf32, #tpu.memory_space<vmem>>, vector<64x64xf32>
    %277 = arith.mulf %275, %276 : vector<64x64xf32>
    %278 = arith.addf %272, %277 : vector<64x64xf32>
    %279 = vector.extract_strided_slice %5 {offsets = [0, 156], sizes = [64, 1], strides = [1, 1]} : vector<64x160xf32> to vector<64x1xf32>
    %280 = vector.shape_cast %279 : vector<64x1xf32> to vector<64x1xf32>
    %281 = vector.broadcast %280 : vector<64x1xf32> to vector<64x64xf32>
    %c0_111 = arith.constant 0 : index
    %c256_112 = arith.constant 256 : index
    %282 = vector.load %arg11[%c0_111, %c256_112] : memref<64x512xf32, #tpu.memory_space<vmem>>, vector<64x64xf32>
    %283 = arith.mulf %281, %282 : vector<64x64xf32>
    %284 = arith.addf %278, %283 : vector<64x64xf32>
    %285 = vector.extract_strided_slice %5 {offsets = [0, 157], sizes = [64, 1], strides = [1, 1]} : vector<64x160xf32> to vector<64x1xf32>
    %286 = vector.shape_cast %285 : vector<64x1xf32> to vector<64x1xf32>
    %287 = vector.broadcast %286 : vector<64x1xf32> to vector<64x64xf32>
    %c0_113 = arith.constant 0 : index
    %c320_114 = arith.constant 320 : index
    %288 = vector.load %arg11[%c0_113, %c320_114] : memref<64x512xf32, #tpu.memory_space<vmem>>, vector<64x64xf32>
    %289 = arith.mulf %287, %288 : vector<64x64xf32>
    %290 = arith.addf %284, %289 : vector<64x64xf32>
    %291 = vector.extract_strided_slice %5 {offsets = [0, 158], sizes = [64, 1], strides = [1, 1]} : vector<64x160xf32> to vector<64x1xf32>
    %292 = vector.shape_cast %291 : vector<64x1xf32> to vector<64x1xf32>
    %293 = vector.broadcast %292 : vector<64x1xf32> to vector<64x64xf32>
    %c0_115 = arith.constant 0 : index
    %c384_116 = arith.constant 384 : index
    %294 = vector.load %arg11[%c0_115, %c384_116] : memref<64x512xf32, #tpu.memory_space<vmem>>, vector<64x64xf32>
    %295 = arith.mulf %293, %294 : vector<64x64xf32>
    %296 = arith.addf %290, %295 : vector<64x64xf32>
    %297 = vector.extract_strided_slice %5 {offsets = [0, 159], sizes = [64, 1], strides = [1, 1]} : vector<64x160xf32> to vector<64x1xf32>
    %298 = vector.shape_cast %297 : vector<64x1xf32> to vector<64x1xf32>
    %299 = vector.broadcast %298 : vector<64x1xf32> to vector<64x64xf32>
    %c0_117 = arith.constant 0 : index
    %c448_118 = arith.constant 448 : index
    %300 = vector.load %arg11[%c0_117, %c448_118] : memref<64x512xf32, #tpu.memory_space<vmem>>, vector<64x64xf32>
    %301 = arith.mulf %299, %300 : vector<64x64xf32>
    %302 = arith.addf %296, %301 : vector<64x64xf32>
    %c0_119 = arith.constant 0 : index
    %c0_120 = arith.constant 0 : index
    %c0_121 = arith.constant 0 : index
    %c0_122 = arith.constant 0 : index
    %303 = vector.load %arg7[%c0_119, %c0_120, %c0_121, %c0_122] : memref<1x1x64x64xf32, #tpu.memory_space<vmem>>, vector<1x1x64x64xf32>
    %304 = vector.shape_cast %303 : vector<1x1x64x64xf32> to vector<64x64xf32>
    %305 = vector.shape_cast %302 : vector<64x64xf32> to vector<1x1x64x64xf32>
    tpu.vector_store %arg7[%c0_119, %c0_120, %c0_121, %c0_122], %305 {strides = array<i32>} : memref<1x1x64x64xf32, #tpu.memory_space<vmem>>, vector<1x1x64x64xf32>,
    return
  }
  func.func @transform_0(%arg0: i32, %arg1: i32) -> (i32, i32, i32, i32) {
    %c0_i32 = arith.constant 0 : i32
    %c0_i32_0 = arith.constant 0 : i32
    %c0_i32_1 = arith.constant 0 : i32
    return %arg0, %arg1, %c0_i32, %c0_i32_0 : i32, i32, i32, i32
  }
  func.func @transform_1(%arg0: i32, %arg1: i32) -> (i32, i32, i32) {
    %c0_i32 = arith.constant 0 : i32
    %c0_i32_0 = arith.constant 0 : i32
    %c0_i32_1 = arith.constant 0 : i32
    return %arg0, %c0_i32, %c0_i32_0 : i32, i32, i32
  }
  func.func @transform_2(%arg0: i32, %arg1: i32) -> (i32, i32, i32) {
    %c0_i32 = arith.constant 0 : i32
    %c0_i32_0 = arith.constant 0 : i32
    %c0_i32_1 = arith.constant 0 : i32
    return %arg0, %c0_i32, %c0_i32_0 : i32, i32, i32
  }
  func.func @transform_3(%arg0: i32, %arg1: i32) -> (i32, i32, i32, i32) {
    %c0_i32 = arith.constant 0 : i32
    %c0_i32_0 = arith.constant 0 : i32
    %c0_i32_1 = arith.constant 0 : i32
    %c0_i32_2 = arith.constant 0 : i32
    return %arg0, %c0_i32, %c0_i32_0, %c0_i32_1 : i32, i32, i32, i32
  }
  func.func @transform_4(%arg0: i32, %arg1: i32) -> (i32, i32, i32) {
    %c0_i32 = arith.constant 0 : i32
    %c0_i32_0 = arith.constant 0 : i32
    %c0_i32_1 = arith.constant 0 : i32
    return %arg0, %c0_i32, %c0_i32_0 : i32, i32, i32
  }
  func.func @transform_5(%arg0: i32, %arg1: i32) -> (i32, i32, i32, i32) {
    %c0_i32 = arith.constant 0 : i32
    %c0_i32_0 = arith.constant 0 : i32
    %c0_i32_1 = arith.constant 0 : i32
    return %arg0, %arg1, %c0_i32, %c0_i32_0 : i32, i32, i32, i32
  }
}

module attributes {stable_mosaic.version = 11 : i64} {
  func.func @_ln_gate_proj_kernel(%arg0: i32, %arg1: memref<128x64xf32, #tpu.memory_space<vmem>>, %arg2: memref<128x64xf32, #tpu.memory_space<vmem>>, %arg3: memref<1x64xf32, #tpu.memory_space<vmem>>, %arg4: memref<1x64xf32, #tpu.memory_space<vmem>>, %arg5: memref<64x32xbf16, #tpu.memory_space<vmem>>, %arg6: memref<128x32xf32, #tpu.memory_space<vmem>>) attributes {dimension_semantics = [#tpu.dimension_semantics<parallel>], iteration_bounds = array<i64: 1>, scalar_prefetch = 0 : i64, scratch_operands = 0 : i64, tpu.core_type = #tpu.core_type<tc>, window_params = [{transform_indices = @transform_0, window_bounds = array<i64: 128, 64>}, {transform_indices = @transform_1, window_bounds = array<i64: 128, 64>}, {pipeline_mode = #tpu.pipeline_mode<synchronous>, transform_indices = @transform_2, window_bounds = array<i64: 1, 64>}, {pipeline_mode = #tpu.pipeline_mode<synchronous>, transform_indices = @transform_3, window_bounds = array<i64: 1, 64>}, {pipeline_mode = #tpu.pipeline_mode<synchronous>, transform_indices = @transform_4, window_bounds = array<i64: 64, 32>}, {transform_indices = @transform_5, window_bounds = array<i64: 128, 32>}]} {
    %c0 = arith.constant 0 : index
    %c0_0 = arith.constant 0 : index
    %0 = vector.load %arg1[%c0, %c0_0] : memref<128x64xf32, #tpu.memory_space<vmem>>, vector<128x64xf32>
    %cst = arith.constant dense<0.000000e+00> : vector<128xf32>
    %1 = vector.multi_reduction <add>, %0, %cst [1] : vector<128x64xf32> to vector<128xf32>
    %2 = vector.shape_cast %1 : vector<128xf32> to vector<128x1xf32>
    %cst_1 = arith.constant 6.400000e+01 : f32
    %3 = vector.broadcast %cst_1 : f32 to vector<128x1xf32>
    %4 = arith.divf %2, %3 : vector<128x1xf32>
    %5 = vector.broadcast %4 : vector<128x1xf32> to vector<128x64xf32>
    %6 = arith.subf %0, %5 : vector<128x64xf32>
    %7 = arith.mulf %6, %6 : vector<128x64xf32>
    %cst_2 = arith.constant dense<0.000000e+00> : vector<128xf32>
    %8 = vector.multi_reduction <add>, %7, %cst_2 [1] : vector<128x64xf32> to vector<128xf32>
    %9 = vector.shape_cast %8 : vector<128xf32> to vector<128x1xf32>
    %cst_3 = arith.constant 6.400000e+01 : f32
    %10 = vector.broadcast %cst_3 : f32 to vector<128x1xf32>
    %11 = arith.divf %9, %10 : vector<128x1xf32>
    %12 = vector.broadcast %4 : vector<128x1xf32> to vector<128x64xf32>
    %13 = arith.subf %0, %12 : vector<128x64xf32>
    %cst_4 = arith.constant 9.99999974E-6 : f32
    %14 = vector.broadcast %cst_4 : f32 to vector<128x1xf32>
    %15 = arith.addf %11, %14 : vector<128x1xf32>
    %16 = math.rsqrt %15 : vector<128x1xf32>
    %17 = vector.broadcast %16 : vector<128x1xf32> to vector<128x64xf32>
    %18 = arith.mulf %13, %17 : vector<128x64xf32>
    %c0_5 = arith.constant 0 : index
    %c0_6 = arith.constant 0 : index
    %19 = vector.load %arg3[%c0_5, %c0_6] : memref<1x64xf32, #tpu.memory_space<vmem>>, vector<1x64xf32>
    %20 = vector.broadcast %19 : vector<1x64xf32> to vector<128x64xf32>
    %21 = arith.mulf %18, %20 : vector<128x64xf32>
    %c0_7 = arith.constant 0 : index
    %c0_8 = arith.constant 0 : index
    %22 = vector.load %arg4[%c0_7, %c0_8] : memref<1x64xf32, #tpu.memory_space<vmem>>, vector<1x64xf32>
    %23 = vector.broadcast %22 : vector<1x64xf32> to vector<128x64xf32>
    %24 = arith.addf %21, %23 : vector<128x64xf32>
    %c0_9 = arith.constant 0 : index
    %c0_10 = arith.constant 0 : index
    %25 = vector.load %arg2[%c0_9, %c0_10] : memref<128x64xf32, #tpu.memory_space<vmem>>, vector<128x64xf32>
    %cst_11 = arith.constant 0.000000e+00 : f32
    %26 = vector.broadcast %cst_11 : f32 to vector<128x64xf32>
    %27 = arith.subf %26, %25 : vector<128x64xf32>
    %28 = math.exp %27 : vector<128x64xf32>
    %cst_12 = arith.constant 1.000000e+00 : f32
    %29 = vector.broadcast %cst_12 : f32 to vector<128x64xf32>
    %30 = arith.addf %29, %28 : vector<128x64xf32>
    %cst_13 = arith.constant 1.000000e+00 : f32
    %31 = vector.broadcast %cst_13 : f32 to vector<128x64xf32>
    %32 = arith.divf %31, %30 : vector<128x64xf32>
    %33 = arith.mulf %25, %32 : vector<128x64xf32>
    %34 = arith.mulf %24, %33 : vector<128x64xf32>
    %35 = arith.truncf %34 : vector<128x64xf32> to vector<128x64xbf16>
    %c0_14 = arith.constant 0 : index
    %c0_15 = arith.constant 0 : index
    %36 = vector.load %arg5[%c0_14, %c0_15] : memref<64x32xbf16, #tpu.memory_space<vmem>>, vector<64x32xbf16>
    %cst_16 = arith.constant dense<0.000000e+00> : vector<128x32xf32>
    %37 = tpu.matmul %35, %36, %cst_16 {dimension_numbers = #tpu.dot_dimension_numbers<[1], [0], [0], [1], [0, 0, 1, 1], [], []>} : vector<128x64xbf16>, vector<64x32xbf16>, vector<128x32xf32> -> vector<128x32xf32>
    %c0_17 = arith.constant 0 : index
    %c0_18 = arith.constant 0 : index
    %38 = vector.load %arg6[%c0_17, %c0_18] : memref<128x32xf32, #tpu.memory_space<vmem>>, vector<128x32xf32>
    tpu.vector_store %arg6[%c0_17, %c0_18], %37 {strides = array<i32>} : memref<128x32xf32, #tpu.memory_space<vmem>>, vector<128x32xf32>,
    return
  }
  func.func @transform_0(%arg0: i32) -> (i32, i32) {
    %c0_i32 = arith.constant 0 : i32
    %c0_i32_0 = arith.constant 0 : i32
    return %arg0, %c0_i32 : i32, i32
  }
  func.func @transform_1(%arg0: i32) -> (i32, i32) {
    %c0_i32 = arith.constant 0 : i32
    %c0_i32_0 = arith.constant 0 : i32
    return %arg0, %c0_i32 : i32, i32
  }
  func.func @transform_2(%arg0: i32) -> (i32, i32) {
    %c0_i32 = arith.constant 0 : i32
    %c0_i32_0 = arith.constant 0 : i32
    %c0_i32_1 = arith.constant 0 : i32
    return %c0_i32, %c0_i32_0 : i32, i32
  }
  func.func @transform_3(%arg0: i32) -> (i32, i32) {
    %c0_i32 = arith.constant 0 : i32
    %c0_i32_0 = arith.constant 0 : i32
    %c0_i32_1 = arith.constant 0 : i32
    return %c0_i32, %c0_i32_0 : i32, i32
  }
  func.func @transform_4(%arg0: i32) -> (i32, i32) {
    %c0_i32 = arith.constant 0 : i32
    %c0_i32_0 = arith.constant 0 : i32
    %c0_i32_1 = arith.constant 0 : i32
    return %c0_i32, %c0_i32_0 : i32, i32
  }
  func.func @transform_5(%arg0: i32) -> (i32, i32) {
    %c0_i32 = arith.constant 0 : i32
    %c0_i32_0 = arith.constant 0 : i32
    return %arg0, %c0_i32 : i32, i32
  }
}

</mosaic_0001>

<bundles_post_ra>
// kernel: ss2d_forward.4
= control target key start
LH: loop header
LB: loop body
LE: loop exit
PB: predicated region body
PF: predicated region fallthrough
CT: control target
= control target key end

     0   :  { %vm86_vm0 = vcmask 261120   ;;  %vm208_vm1 = vcmask 523264   ;;  %s376_s8 = smov 64   ;;  %s579_s1 = inlined_call_operand.vmem [shape: bf16[32,128], index: 1, kind: input, shape index: {}]   ;;  %s580_s0 = inlined_call_operand.vmem [shape: bf16[128,32], index: 0, kind: input, shape index: {}]   ;;  %s581_s2 = inlined_call_operand.vmem [shape: f32[128,64], index: 2, kind: output, shape index: {0}]   ;;  %s582_s3 = inlined_call_operand.vmem [shape: f32[128,64], index: 3, kind: output, shape index: {1}]  }
   0x1   :  { %v366_v0 = vld [vmem:[%s579_s1] sm:$0xff]   ;;  %v367_v1 = vld [vmem:[%s579_s1 + $0x8] sm:$0xff]   ;;  %v372_v6 = vld [vmem:[%s580_s0 + $0x10] sm:$0xff]  }
   0x2   :  { %341 = vmatprep.subr.bf16.mxu0 %v366_v0  ;;  %361 = vmatprep.subr.bf16.mxu1 %v366_v0  ;;  %v368_v2 = vld [vmem:[%s580_s0] sm:$0xff]   ;;  %v370_v4 = vld [vmem:[%s580_s0 + $0x8] sm:$0xff]   ;;  %v374_v7 = vld [vmem:[%s580_s0 + $0x30] sm:$0xff]  }
   0x3   :  { %342 = vmatpush3.bf16.msra.mxu0 %v366_v0  ;;  %363 = vmatpush3.bf16.msra.mxu1 %v366_v0  ;;  %v369_v3 = vld [vmem:[%s580_s0 + $0x20] sm:$0xff]   ;;  %v371_v5 = vld [vmem:[%s580_s0 + $0x28] sm:$0xff]   ;;  %v373_v8 = vld [vmem:[%s580_s0 + $0x18] sm:$0xff]  }
   0x4   :  { %343 = vmatprep.subr.bf16.mxu0 %v367_v1  ;;  %362 = vmatprep.subr.bf16.mxu1 %v367_v1  ;;  %v375_v9 = vld [vmem:[%s580_s0 + $0x38] sm:$0xff]  }
   0x5   :  { %345 = vmatprep.mubr.msk.bf16.mxu0 %vm86_vm0, %v368_v2  ;;  %353 = vmatprep.mubr.msk.bf16.mxu1 %vm86_vm0, %v369_v3 }
   0x7   :  { %344 = vmatpush3.bf16.msra.mxu0 %v367_v1  ;;  %364 = vmatpush3.bf16.msra.mxu1 %v367_v1 }
   0xa   :  { %346 = vmatmul.mubr.msk.bf16.vlgmr.msra.gmra.mrb[0].mxu0 %vm86_vm0, %v370_v4  ;;  %354 = vmatmul.mubr.msk.bf16.vlgmr.msra.gmra.mrb[0].mxu1 %vm86_vm0, %v371_v5 }
   0xb   :  { %349 = vmatprep.mubr.msk.bf16.mxu0 %vm86_vm0, %v372_v6  ;;  %357 = vmatprep.mubr.msk.bf16.mxu1 %vm86_vm0, %v374_v7 }
  0x12   :  { %350 = vmatmul.mubr.msk.bf16.gmra.mrb[4].mxu0 %vm86_vm0, %v373_v8  ;;  %358 = vmatmul.mubr.msk.bf16.gmra.mrb[4].mxu1 %vm86_vm0, %v375_v9 }
  0xdd   :  { %v347_v10 = vpop.f32.mrb[0].mxu0  ;;  %v355_v11 = vpop.f32.mrb[0].mxu1 }
  0xde   :  { %211 = vst.msk [vmem:[%s581_s2 + $0x10] sm:$0xff] %vm208_vm1, %v347_v10  ;;  %219 = vst.msk [vmem:[%s581_s2 + $0x50] sm:$0xff] %vm208_vm1, %v355_v11  ;;  %261 = vrot.lane.b32.xlu0 %v355_v11, %s376_s8  ;;  %v177_v12 = vpop.f32.mrb[1].mxu1  ;;  %245 = vrot.lane.b32.xlu1 %v347_v10, %s376_s8  ;;  %v145_v13 = vpop.f32.mrb[1].mxu0 }
  0xdf   :  { %217 = vst.msk [vmem:[%s581_s2 + $0x40] sm:$0xff] %vm208_vm1, %v177_v12  ;;  %209 = vst.msk [vmem:[%s581_s2] sm:$0xff] %vm208_vm1, %v145_v13  ;;  %v348_v14 = vpop.f32.mrb[2].mxu0  ;;  %v356_v15 = vpop.f32.mrb[2].mxu1 }
  0xe0   :  { %212 = vst.msk [vmem:[%s581_s2 + $0x18] sm:$0xff] %vm208_vm1, %v348_v14  ;;  %220 = vst.msk [vmem:[%s581_s2 + $0x58] sm:$0xff] %vm208_vm1, %v356_v15  ;;  %v148_v16 = vpop.f32.mrb[3].mxu0  ;;  %v180_v17 = vpop.f32.mrb[3].mxu1 }
  0xe1   :  { %210 = vst.msk [vmem:[%s581_s2 + $0x8] sm:$0xff] %vm208_vm1, %v148_v16  ;;  %218 = vst.msk [vmem:[%s581_s2 + $0x48] sm:$0xff] %vm208_vm1, %v180_v17 }
  0xe2   :  { %241 = vrot.lane.b32.xlu0 %v145_v13, %s376_s8  ;;  %247 = vrot.lane.b32.xlu1 %v348_v14, %s376_s8 }
  0xe5   :  { %v351_v18 = vpop.f32.mrb[4].mxu0  ;;  %v359_v19 = vpop.f32.mrb[4].mxu1 }
  0xe6   :  { %257 = vrot.lane.b32.xlu0 %v177_v12, %s376_s8  ;;  %263 = vrot.lane.b32.xlu1 %v356_v15, %s376_s8  ;;  %215 = vst.msk [vmem:[%s581_s2 + $0x30] sm:$0xff] %vm208_vm1, %v351_v18  ;;  %v161_v20 = vpop.f32.mrb[5].mxu0  ;;  %223 = vst.msk [vmem:[%s581_s2 + $0x70] sm:$0xff] %vm208_vm1, %v359_v19  ;;  %v193_v21 = vpop.f32.mrb[5].mxu1 }
  0xe7   :  { %213 = vst.msk [vmem:[%s581_s2 + $0x20] sm:$0xff] %vm208_vm1, %v161_v20  ;;  %v352_v22 = vpop.f32.mrb[6].mxu0  ;;  %221 = vst.msk [vmem:[%s581_s2 + $0x60] sm:$0xff] %vm208_vm1, %v193_v21  ;;  %v360_v23 = vpop.f32.mrb[6].mxu1 }
  0xe8   :  { %216 = vst.msk [vmem:[%s581_s2 + $0x38] sm:$0xff] %vm208_vm1, %v352_v22  ;;  %v164_v24 = vpop.f32.mrb[7].mxu0  ;;  %224 = vst.msk [vmem:[%s581_s2 + $0x78] sm:$0xff] %vm208_vm1, %v360_v23  ;;  %v196_v25 = vpop.f32.mrb[7].mxu1 }
  0xe9   :  { %214 = vst.msk [vmem:[%s581_s2 + $0x28] sm:$0xff] %vm208_vm1, %v164_v24  ;;  %222 = vst.msk [vmem:[%s581_s2 + $0x68] sm:$0xff] %vm208_vm1, %v196_v25 }
  0xea   :  { %259 = vrot.lane.b32.xlu1 %v180_v17, %s376_s8  ;;  %243 = vrot.lane.b32.xlu0 %v148_v16, %s376_s8 }
  0xee   :  { %253 = vrot.lane.b32.xlu0 %v351_v18, %s376_s8  ;;  %255 = vrot.lane.b32.xlu1 %v352_v22, %s376_s8 }
  0xf2   :  { %249 = vrot.lane.b32.xlu0 %v161_v20, %s376_s8  ;;  %251 = vrot.lane.b32.xlu1 %v164_v24, %s376_s8 }
  0xf6   :  { %265 = vrot.lane.b32.xlu0 %v193_v21, %s376_s8  ;;  %267 = vrot.lane.b32.xlu1 %v196_v25, %s376_s8 }
  0xfa   :  { %269 = vrot.lane.b32.xlu0 %v359_v19, %s376_s8  ;;  %271 = vrot.lane.b32.xlu1 %v360_v23, %s376_s8 }
 0x150   :  { %v262_v26 = vpop.permute.xlu0 %261  ;;  %v246_v27 = vpop.permute.xlu1 %245 }
 0x151   :  { %299 = vst.msk [vmem:[%s582_s3 + $0x50] sm:$0xff] %vm208_vm1, %v262_v26  ;;  %291 = vst.msk [vmem:[%s582_s3 + $0x10] sm:$0xff] %vm208_vm1, %v246_v27 }
 0x154   :  { %v242_v28 = vpop.permute.xlu0 %241  ;;  %v248_v29 = vpop.permute.xlu1 %247 }
 0x155   :  { %289 = vst.msk [vmem:[%s582_s3] sm:$0xff] %vm208_vm1, %v242_v28  ;;  %292 = vst.msk [vmem:[%s582_s3 + $0x18] sm:$0xff] %vm208_vm1, %v248_v29 }
 0x158   :  { %v258_v30 = vpop.permute.xlu0 %257  ;;  %v264_v31 = vpop.permute.xlu1 %263 }
 0x159   :  { %297 = vst.msk [vmem:[%s582_s3 + $0x40] sm:$0xff] %vm208_vm1, %v258_v30  ;;  %300 = vst.msk [vmem:[%s582_s3 + $0x58] sm:$0xff] %vm208_vm1, %v264_v31 }
 0x15c   :  { %v260_v32 = vpop.permute.xlu1 %259  ;;  %v244_v33 = vpop.permute.xlu0 %243 }
 0x15d   :  { %298 = vst.msk [vmem:[%s582_s3 + $0x48] sm:$0xff] %vm208_vm1, %v260_v32  ;;  %290 = vst.msk [vmem:[%s582_s3 + $0x8] sm:$0xff] %vm208_vm1, %v244_v33 }
 0x160   :  { %v254_v34 = vpop.permute.xlu0 %253  ;;  %v256_v35 = vpop.permute.xlu1 %255 }
 0x161   :  { %295 = vst.msk [vmem:[%s582_s3 + $0x30] sm:$0xff] %vm208_vm1, %v254_v34  ;;  %296 = vst.msk [vmem:[%s582_s3 + $0x38] sm:$0xff] %vm208_vm1, %v256_v35 }
 0x164   :  { %v250_v36 = vpop.permute.xlu0 %249  ;;  %v252_v37 = vpop.permute.xlu1 %251 }
 0x165   :  { %293 = vst.msk [vmem:[%s582_s3 + $0x20] sm:$0xff] %vm208_vm1, %v250_v36  ;;  %294 = vst.msk [vmem:[%s582_s3 + $0x28] sm:$0xff] %vm208_vm1, %v252_v37 }
 0x168   :  { %v266_v38 = vpop.permute.xlu0 %265  ;;  %v268_v39 = vpop.permute.xlu1 %267 }
 0x169   :  { %301 = vst.msk [vmem:[%s582_s3 + $0x60] sm:$0xff] %vm208_vm1, %v266_v38  ;;  %302 = vst.msk [vmem:[%s582_s3 + $0x68] sm:$0xff] %vm208_vm1, %v268_v39 }
 0x16c   :  { %v270_v40 = vpop.permute.xlu0 %269  ;;  %v272_v41 = vpop.permute.xlu1 %271 }
 0x16d   :  { %303 = vst.msk [vmem:[%s582_s3 + $0x70] sm:$0xff] %vm208_vm1, %v270_v40  ;;  %304 = vst.msk [vmem:[%s582_s3 + $0x78] sm:$0xff] %vm208_vm1, %v272_v41 }

// kernel: ss2d_forward.5
= control target key start
LH: loop header
LB: loop body
LE: loop exit
PB: predicated region body
PF: predicated region fallthrough
CT: control target
= control target key end

     0   :  { %s1001_s12 = smov 0   ;;  %s1461_s0 = inlined_call_operand.vmem [shape: f32[2,8,8,64], index: 0, kind: input, shape index: {}]   ;;  %s1462_s1 = inlined_call_operand.vmem [shape: f32[3,3,64], index: 1, kind: input, shape index: {}]   ;;  %s1463_s2 = inlined_call_operand.vmem [shape: f32[1,1,64], index: 2, kind: input, shape index: {}]   ;;  %s1464_s3 = inlined_call_operand.vmem [shape: bf16[2,8,8,64], index: 3, kind: output, shape index: {}]  }
   0x1 LB: > { %s902_s13 = sadd.s32 4294967295, %s978_s12   ;;  %p906_p0 = scmp.ge.s32.totalorder %s978_s12, 1  ;;  %s978_s12 = sphi %s1001_s12, %s13_s12  }
   0x2   : > { %p137_p1 = scmp.lt.s32.totalorder %s978_s12, 3 }
   0x4   : > { %p138_p2 = pnand %p906_p0, %p137_p1 }
   0x5   : > { %vm171_vm0 = vcmask (!%p138_p2), 523264   ;;  %vm173_vm1 = vcmask (!%p138_p2), 517120   ;;  %p1009_p3 = scmp.lt.s32.totalorder (!%p138_p2), %s902_s13, 1  ;;  %v980_v0 = vmov (!%p138_p2), 0.0   ;;  %v1044_v1 = vld [vmem:[%s1462_s1 + $0x1] ss:$0 sm:$0xff] (!%p138_p2) }
   0x6   : > { %141 = sbr.rel (%p138_p2) target bundleno = 158 (0x9e), region = 32  ;;  %172 = vst.msk [vmem:[#allocation2] sm:$0xff] (!%p138_p2), %vm171_vm0, %v980_v0  ;;  %175 = vst.msk [vmem:[#allocation2 + $0x10] sm:$0xff] (!%p138_p2), %vm171_vm0, %v980_v0  ;;  %v1049_v2 = vld [vmem:[%s1462_s1 + $0x2] ss:$0 sm:$0xff] (!%p138_p2)  ;;  %vm288_vm2 = vcmask (!%p138_p2), 1046528  }
   0x7   : > { %177 = vst.msk [vmem:[#allocation2 + $0x20] sm:$0xff] (!%p138_p2), %vm171_vm0, %v980_v0  ;;  %179 = vst.msk [vmem:[#allocation2 + $0x30] sm:$0xff] (!%p138_p2), %vm171_vm0, %v980_v0  ;;  %v1054_v6 = vld [vmem:[%s1462_s1] ss:$0 sm:$0xff] (!%p138_p2)  ;;  %vm366_vm3 = vcmask (!%p138_p2), 1045504   ;;  %vm838_vm4 = vcmask (!%p138_p2), 519168  }
   0x8   : > { %181 = vst.msk [vmem:[#allocation2 + $0x40] sm:$0xff] (!%p138_p2), %vm171_vm0, %v980_v0  ;;  %183 = vst.msk [vmem:[#allocation2 + $0x50] sm:$0xff] (!%p138_p2), %vm171_vm0, %v980_v0  ;;  %v1072_v21 = vld [vmem:[%s1462_s1 + $0x4] ss:$0 sm:$0xff] (!%p138_p2)  ;;  %v1077_v22 = vld [vmem:[%s1462_s1 + $0x5] ss:$0 sm:$0xff] (!%p138_p2) }
   0x9   : > { %185 = vst.msk [vmem:[#allocation2 + $0x60] sm:$0xff] (!%p138_p2), %vm171_vm0, %v980_v0  ;;  %187 = vst.msk [vmem:[#allocation2 + $0x70] sm:$0xff] (!%p138_p2), %vm171_vm0, %v980_v0  ;;  %v1082_v25 = vld [vmem:[%s1462_s1 + $0x6] ss:$0 sm:$0xff] (!%p138_p2)  ;;  %v1087_v26 = vld [vmem:[%s1462_s1 + $0x8] ss:$0 sm:$0xff] (!%p138_p2) }
   0xa   : > { %189 = vst.msk [vmem:[#allocation2 + $0x80] sm:$0xff] (!%p138_p2), %vm171_vm0, %v980_v0  ;;  %191 = vst.msk [vmem:[#allocation2 + $0x90] sm:$0xff] (!%p138_p2), %vm171_vm0, %v980_v0  ;;  %v1092_v27 = vld [vmem:[%s1462_s1 + $0x9] ss:$0 sm:$0xff] (!%p138_p2)  ;;  %v1097_v28 = vld [vmem:[%s1462_s1 + $0xa] ss:$0 sm:$0xff] (!%p138_p2) }
   0xb   : > { %174 = vst.msk [vmem:[#allocation2 + $0x8] sm:$0x3] (!%p138_p2), %vm173_vm1, %v980_v0  ;;  %176 = vst.msk [vmem:[#allocation2 + $0x18] sm:$0x3] (!%p138_p2), %vm173_vm1, %v980_v0 }
   0xc   : > { %178 = vst.msk [vmem:[#allocation2 + $0x28] sm:$0x3] (!%p138_p2), %vm173_vm1, %v980_v0  ;;  %180 = vst.msk [vmem:[#allocation2 + $0x38] sm:$0x3] (!%p138_p2), %vm173_vm1, %v980_v0 }
   0xd   : > { %182 = vst.msk [vmem:[#allocation2 + $0x48] sm:$0x3] %vm173_vm1, %v980_v0  ;;  %184 = vst.msk [vmem:[#allocation2 + $0x58] sm:$0x3] %vm173_vm1, %v980_v0  ;;  %s1467_s13 = smov (!%p1009_p3, %s902_s13), 1  ;;  %v210_v12 = vld [vmem:[#allocation2] sm:$0xff] }
   0xe   : > { %186 = vst.msk [vmem:[#allocation2 + $0x68] sm:$0x3] %vm173_vm1, %v980_v0  ;;  %188 = vst.msk [vmem:[#allocation2 + $0x78] sm:$0x3] %vm173_vm1, %v980_v0  ;;  %s929_s15 = sshll.u32 %s1467_s13, 6  ;;  %v256_v14 = vmul.f32 %v1044_v1, %v210_v12  ;;  %v334_v15 = vmul.f32 %v1049_v2, %v210_v12  ;;  %v235_v18 = vmul.f32 %v1054_v6, %v210_v12  ;;  %s930_s14 = sshll.u32 %s1467_s13, 5 }
   0xf   : > { %190 = vst.msk [vmem:[#allocation2 + $0x88] sm:$0x3] %vm173_vm1, %v980_v0  ;;  %192 = vst.msk [vmem:[#allocation2 + $0x98] sm:$0x3] %vm173_vm1, %v980_v0  ;;  %s165_s18 = scalar_lea.vmem %s1461_s0, %s929_s15  ;;  %s1293_s16 = scalar_lea.vmem %s1464_s3, %s930_s14 }
  0x10   : > { %v193_v3 = vld [vmem:[%s165_s18] sm:$0xff]  ;;  %v194_v4 = vld [vmem:[%s165_s18 + $0x8] sm:$0xff]  ;;  %v195_v5 = vld [vmem:[%s165_s18 + $0x10] sm:$0xff]  ;;  %v289_v19 = vrot.slane %v256_v14, 1  ;;  %v367_v20 = vrot.slane %v334_v15, 2 }
  0x11   : > { %202 = vst.msk [vmem:[#allocation2 + $0x11] sm:$0xff] %vm171_vm0, %v193_v3  ;;  %203 = vst.msk [vmem:[#allocation2 + $0x21] sm:$0xff] %vm171_vm0, %v194_v4  ;;  %v196_v7 = vld [vmem:[%s165_s18 + $0x18] sm:$0xff]  ;;  %v197_v8 = vld [vmem:[%s165_s18 + $0x20] sm:$0xff] }
  0x12   : > { %204 = vst.msk [vmem:[#allocation2 + $0x31] sm:$0xff] %vm171_vm0, %v195_v5  ;;  %v198_v9 = vld [vmem:[%s165_s18 + $0x28] sm:$0xff]  ;;  %205 = vst.msk [vmem:[#allocation2 + $0x41] sm:$0xff] %vm171_vm0, %v196_v7  ;;  %v199_v10 = vld [vmem:[%s165_s18 + $0x30] sm:$0xff] }
  0x13   : > { %206 = vst.msk [vmem:[#allocation2 + $0x51] sm:$0xff] %vm171_vm0, %v197_v8  ;;  %207 = vst.msk [vmem:[#allocation2 + $0x61] sm:$0xff] %vm171_vm0, %v198_v9  ;;  %v200_v11 = vld [vmem:[%s165_s18 + $0x38] sm:$0xff]  ;;  %v211_v13 = vld [vmem:[#allocation2 + $0x8] sm:$0x3] }
  0x14   : > { %208 = vst.msk [vmem:[#allocation2 + $0x71] sm:$0xff] %vm171_vm0, %v199_v10  ;;  %209 = vst.msk [vmem:[#allocation2 + $0x81] sm:$0xff] %vm171_vm0, %v200_v11  ;;  %v257_v16 = vmul.f32 %v1044_v1, %v211_v13  ;;  %v335_v17 = vmul.f32 %v1049_v2, %v211_v13  ;;  %v1099_v29 = vld [vmem:[#allocation2 + $0x90] sm:$0xff] }
  0x15   : > { %v1118_v43 = vmul.f32 %v1092_v27, %v1099_v29 }
  0x16   : > { %v290_v23 = vrot.slane %v257_v16, 1  ;;  %v368_v24 = vrot.slane %v335_v17, 2 }
  0x18   : > { %v1101_v30 = vld [vmem:[#allocation2 + $0x20] sm:$0xff]  ;;  %v212_v31 = vld [vmem:[#allocation2 + $0x10] sm:$0xff]  ;;  %v291_v32 = vsel %vm288_vm2, %v289_v19, %v290_v23  ;;  %v369_v33 = vsel %vm366_vm3, %v367_v20, %v368_v24  ;;  %v213_v38 = vld [vmem:[#allocation2 + $0x18] sm:$0x3] }
  0x19   : > { %v321_v34 = vadd.f32 %v291_v32, %v235_v18  ;;  %v413_v35 = vmul.f32 %v1072_v21, %v212_v31  ;;  %v434_v36 = vmul.f32 %v1077_v22, %v212_v31  ;;  %v511_v37 = vmul.f32 %v1082_v25, %v212_v31  ;;  %v1108_v39 = vld [vmem:[#allocation2 + $0x28] sm:$0x3]  ;;  %v1135_v11 = vld [vmem:[#allocation2 + $0x30] sm:$0xff]  ;;  %v1137_v13 = vld [vmem:[#allocation2 + $0x38] sm:$0x3] }
  0x1a   : > { %v589_v40 = vmul.f32 %v1087_v26, %v1101_v30  ;;  %v610_v41 = vmul.f32 %v1092_v27, %v1101_v30  ;;  %v687_v42 = vmul.f32 %v1097_v28, %v1101_v30  ;;  %v435_v45 = vmul.f32 %v1077_v22, %v213_v38 }
  0x1b   : > { %v399_v44 = vadd.f32 %v369_v33, %v321_v34  ;;  %v466_v46 = vrot.slane %v434_v36, 1  ;;  %v512_v47 = vmul.f32 %v1082_v25, %v213_v38  ;;  %v543_v48 = vrot.slane %v511_v37, 2 }
  0x1c   : > { %v611_v49 = vmul.f32 %v1092_v27, %v1108_v39  ;;  %v642_v50 = vrot.slane %v610_v41, 1  ;;  %v688_v51 = vmul.f32 %v1097_v28, %v1108_v39  ;;  %v467_v53 = vrot.slane %v435_v45, 1 }
  0x1d   : > { %v421_v52 = vadd.f32 %v413_v35, %v399_v44  ;;  %v544_v54 = vrot.slane %v512_v47, 2  ;;  %v719_v55 = vrot.slane %v687_v42, 2  ;;  %v258_v58 = vmul.f32 %v1044_v1, %v212_v31 }
  0x1e   : > { %v643_v56 = vrot.slane %v611_v49, 1  ;;  %v720_v57 = vrot.slane %v688_v51, 2  ;;  %v259_v59 = vmul.f32 %v1044_v1, %v213_v38  ;;  %v468_v60 = vsel %vm288_vm2, %v466_v46, %v467_v53 }
  0x1f   : > { %v236_v61 = vmul.f32 %v1054_v6, %v212_v31  ;;  %v336_v62 = vmul.f32 %v1049_v2, %v212_v31  ;;  %v337_v63 = vmul.f32 %v1049_v2, %v213_v38  ;;  %v498_v0 = vadd.f32 %v468_v60, %v421_v52 }
  0x20   : > { %v545_v3 = vsel %vm366_vm3, %v543_v48, %v544_v54  ;;  %v644_v4 = vsel %vm288_vm2, %v642_v50, %v643_v56  ;;  %v292_v5 = vrot.slane %v258_v58, 1  ;;  %v721_v7 = vsel %vm366_vm3, %v719_v55, %v720_v57 }
  0x21   : > { %v293_v8 = vrot.slane %v259_v59, 1  ;;  %v370_v9 = vrot.slane %v336_v62, 2  ;;  %v371_v10 = vrot.slane %v337_v63, 2  ;;  %v575_v12 = vadd.f32 %v545_v3, %v498_v0 }
  0x22   : > { %v436_v14 = vmul.f32 %v1077_v22, %v1101_v30  ;;  %v437_v15 = vmul.f32 %v1077_v22, %v1108_v39  ;;  %v513_v16 = vmul.f32 %v1082_v25, %v1101_v30  ;;  %v414_v19 = vmul.f32 %v1072_v21, %v1101_v30 }
  0x23   : > { %v294_v17 = vsel %vm288_vm2, %v292_v5, %v293_v8  ;;  %v372_v18 = vsel %vm366_vm3, %v370_v9, %v371_v10  ;;  %v514_v20 = vmul.f32 %v1082_v25, %v1108_v39  ;;  %v597_v23 = vadd.f32 %v589_v40, %v575_v12  ;;  %v1162_v40 = vld [vmem:[%s1463_s2] ss:$0 sm:$0xff] }
  0x24   : > { %v322_v24 = vadd.f32 %v294_v17, %v236_v61  ;;  %v469_v31 = vrot.slane %v436_v14, 1  ;;  %v470_v32 = vrot.slane %v437_v15, 1  ;;  %v546_v33 = vrot.slane %v513_v16, 2  ;;  %v1191_v9 = vld [vmem:[#allocation2 + $0x40] sm:$0xff]  ;;  %v1193_v14 = vld [vmem:[#allocation2 + $0x48] sm:$0x3] }
  0x25   : > { %v547_v34 = vrot.slane %v514_v20, 2  ;;  %v612_v35 = vmul.f32 %v1092_v27, %v1135_v11  ;;  %v613_v36 = vmul.f32 %v1092_v27, %v1137_v13  ;;  %v674_v37 = vadd.f32 %v644_v4, %v597_v23 }
  0x26   : > { %v400_v38 = vadd.f32 %v372_v18, %v322_v24  ;;  %v590_v41 = vmul.f32 %v1087_v26, %v1135_v11  ;;  %v689_v42 = vmul.f32 %v1097_v28, %v1135_v11  ;;  %v471_v44 = vsel %vm288_vm2, %v469_v31, %v470_v32 }
  0x27   : > { %v645_v45 = vrot.slane %v612_v35, 1  ;;  %v646_v46 = vrot.slane %v613_v36, 1  ;;  %v690_v47 = vmul.f32 %v1097_v28, %v1137_v13  ;;  %v751_v48 = vadd.f32 %v721_v7, %v674_v37 }
  0x28   : > { %v422_v49 = vadd.f32 %v414_v19, %v400_v38  ;;  %v548_v50 = vsel %vm366_vm3, %v546_v33, %v547_v34  ;;  %v722_v51 = vrot.slane %v689_v42, 2  ;;  %v237_v53 = vmul.f32 %v1054_v6, %v1101_v30 }
  0x29   : > { %v723_v52 = vrot.slane %v690_v47, 2  ;;  %v260_v54 = vmul.f32 %v1044_v1, %v1101_v30  ;;  %v261_v55 = vmul.f32 %v1044_v1, %v1108_v39  ;;  %v1175_v56 = vadd.f32 %v1162_v40, %v751_v48 }
  0x2a   : > { %v499_v57 = vadd.f32 %v471_v44, %v422_v49  ;;  %v338_v58 = vmul.f32 %v1049_v2, %v1101_v30  ;;  %v339_v59 = vmul.f32 %v1049_v2, %v1108_v39  ;;  %v647_v60 = vsel %vm288_vm2, %v645_v45, %v646_v46 }
  0x2b   : > { %v724_v61 = vsel %vm366_vm3, %v722_v51, %v723_v52  ;;  %v295_v62 = vrot.slane %v260_v54, 1  ;;  %v296_v63 = vrot.slane %v261_v55, 1  ;;  %v774_v0 = vsub.f32 0.0, %v1175_v56 }
  0x2c   : > { %v576_v3 = vadd.f32 %v548_v50, %v499_v57  ;;  %v373_v4 = vrot.slane %v338_v58, 2  ;;  %v374_v5 = vrot.slane %v339_v59, 2  ;;  %v438_v8 = vmul.f32 %v1077_v22, %v1135_v11 }
  0x2d   : > { %v297_v7 = vsel %vm288_vm2, %v295_v62, %v296_v63  ;;  %v439_v30 = vmul.f32 %v1077_v22, %v1137_v13  ;;  %v515_v39 = vmul.f32 %v1082_v25, %v1135_v11  ;;  %v782_v10 = vmul.f32 1.442695, %v774_v0 }
  0x2e   : > { %v598_v12 = vadd.f32 %v590_v41, %v576_v3  ;;  %v323_v15 = vadd.f32 %v297_v7, %v237_v53  ;;  %v375_v16 = vsel %vm366_vm3, %v373_v4, %v374_v5  ;;  %v472_v17 = vrot.slane %v438_v8, 1 }
  0x2f   : > { %v473_v18 = vrot.slane %v439_v30, 1  ;;  %v516_v19 = vmul.f32 %v1082_v25, %v1137_v13  ;;  %v549_v20 = vrot.slane %v515_v39, 2  ;;  %940 = vpow2.f32 %v782_v10  ;;  %v1237_v39 = vld [vmem:[#allocation2 + $0x50] sm:$0xff] }
  0x30   : > { %v675_v23 = vadd.f32 %v647_v60, %v598_v12  ;;  %v401_v24 = vadd.f32 %v375_v16, %v323_v15  ;;  %v415_v31 = vmul.f32 %v1072_v21, %v1135_v11  ;;  %v591_v33 = vmul.f32 %v1087_v26, %v1191_v9  ;;  %v1239_v12 = vld [vmem:[#allocation2 + $0x58] sm:$0x3] }
  0x31   : > { %v550_v32 = vrot.slane %v516_v19, 2  ;;  %v614_v34 = vmul.f32 %v1092_v27, %v1191_v9  ;;  %v615_v35 = vmul.f32 %v1092_v27, %v1193_v14  ;;  %v691_v38 = vmul.f32 %v1097_v28, %v1191_v9 }
  0x32   : > { %v752_v36 = vadd.f32 %v724_v61, %v675_v23  ;;  %v423_v37 = vadd.f32 %v415_v31, %v401_v24  ;;  %v692_v41 = vmul.f32 %v1097_v28, %v1193_v14  ;;  %v474_v42 = vsel %vm288_vm2, %v472_v17, %v473_v18 }
  0x33   : > { %v551_v44 = vsel %vm366_vm3, %v549_v20, %v550_v32  ;;  %v648_v45 = vrot.slane %v614_v34, 1  ;;  %v649_v46 = vrot.slane %v615_v35, 1  ;;  %v725_v49 = vrot.slane %v691_v38, 2 }
  0x34   : > { %v1213_v47 = vadd.f32 %v1162_v40, %v752_v36  ;;  %v500_v48 = vadd.f32 %v474_v42, %v423_v37  ;;  %v726_v50 = vrot.slane %v692_v41, 2  ;;  %v238_v51 = vmul.f32 %v1054_v6, %v1135_v11 }
  0x35   : > { %v262_v52 = vmul.f32 %v1044_v1, %v1135_v11  ;;  %v263_v53 = vmul.f32 %v1044_v1, %v1137_v13  ;;  %v340_v54 = vmul.f32 %v1049_v2, %v1135_v11  ;;  %v650_v58 = vsel %vm288_vm2, %v648_v45, %v649_v46 }
  0x36   : > { %v775_v55 = vsub.f32 0.0, %v1213_v47  ;;  %v577_v57 = vadd.f32 %v551_v44, %v500_v48  ;;  %v341_v59 = vmul.f32 %v1049_v2, %v1137_v13  ;;  %v727_v60 = vsel %vm366_vm3, %v725_v49, %v726_v50 }
  0x37   : > { %v298_v61 = vrot.slane %v262_v52, 1  ;;  %v299_v62 = vrot.slane %v263_v53, 1  ;;  %v376_v63 = vrot.slane %v340_v54, 2  ;;  %v440_v5 = vmul.f32 %v1077_v22, %v1191_v9 }
  0x38   : > { %v784_v0 = vmul.f32 1.442695, %v775_v55  ;;  %v599_v3 = vadd.f32 %v591_v33, %v577_v57  ;;  %v377_v4 = vrot.slane %v341_v59, 2  ;;  %v441_v7 = vmul.f32 %v1077_v22, %v1193_v14 }
  0x39   : > { %v300_v11 = vsel %vm288_vm2, %v298_v61, %v299_v62  ;;  %v517_v8 = vmul.f32 %v1082_v25, %v1191_v9  ;;  %v518_v13 = vmul.f32 %v1082_v25, %v1193_v14  ;;  %v941_v30 = vpop.eup %940  ;;  %v475_v18 = vrot.slane %v440_v5, 1 }
  0x3a   : > { %942 = vpow2.f32 %v784_v0  ;;  %v676_v10 = vadd.f32 %v650_v58, %v599_v3  ;;  %v324_v15 = vadd.f32 %v300_v11, %v238_v51  ;;  %v378_v16 = vsel %vm366_vm3, %v376_v63, %v377_v4 }
  0x3b   : > { %v798_v17 = vadd.f32 1.0, %v941_v30  ;;  %v476_v19 = vrot.slane %v441_v7, 1  ;;  %v552_v20 = vrot.slane %v517_v8, 2  ;;  %v416_v31 = vmul.f32 %v1072_v21, %v1191_v9 }
  0x3c   : > { %v753_v23 = vadd.f32 %v727_v60, %v676_v10  ;;  %v402_v24 = vadd.f32 %v378_v16, %v324_v15  ;;  %v553_v32 = vrot.slane %v518_v13, 2  ;;  %v592_v33 = vmul.f32 %v1087_v26, %v1237_v39  ;;  %v1279_v13 = vld [vmem:[#allocation2 + $0x60] sm:$0xff]  ;;  %v1282_v10 = vld [vmem:[#allocation2 + $0x68] sm:$0x3] }
  0x3d   : > { %944 = vrcp.f32 %v798_v17  ;;  %v616_v34 = vmul.f32 %v1092_v27, %v1237_v39  ;;  %v617_v35 = vmul.f32 %v1092_v27, %v1239_v12  ;;  %v477_v38 = vsel %vm288_vm2, %v475_v18, %v476_v19 }
  0x3e   : > { %v1251_v36 = vadd.f32 %v1162_v40, %v753_v23  ;;  %v424_v37 = vadd.f32 %v416_v31, %v402_v24  ;;  %v693_v41 = vmul.f32 %v1097_v28, %v1237_v39  ;;  %v554_v42 = vsel %vm366_vm3, %v552_v20, %v553_v32 }
  0x3f   : > { %v651_v44 = vrot.slane %v616_v34, 1  ;;  %v652_v45 = vrot.slane %v617_v35, 1  ;;  %v694_v46 = vmul.f32 %v1097_v28, %v1239_v12  ;;  %v264_v51 = vmul.f32 %v1044_v1, %v1191_v9 }
  0x40   : > { %v776_v48 = vsub.f32 0.0, %v1251_v36  ;;  %v501_v49 = vadd.f32 %v477_v38, %v424_v37  ;;  %v728_v50 = vrot.slane %v693_v41, 2  ;;  %v239_v53 = vmul.f32 %v1054_v6, %v1191_v9 }
  0x41   : > { %v729_v52 = vrot.slane %v694_v46, 2  ;;  %v265_v54 = vmul.f32 %v1044_v1, %v1193_v14  ;;  %v342_v55 = vmul.f32 %v1049_v2, %v1191_v9  ;;  %v301_v59 = vrot.slane %v264_v51, 1 }
  0x42   : > { %v786_v57 = vmul.f32 1.442695, %v776_v48  ;;  %v578_v58 = vadd.f32 %v554_v42, %v501_v49  ;;  %v343_v60 = vmul.f32 %v1049_v2, %v1193_v14  ;;  %v653_v61 = vsel %vm288_vm2, %v651_v44, %v652_v45 }
  0x43   : > { %v730_v62 = vsel %vm366_vm3, %v728_v50, %v729_v52  ;;  %v302_v63 = vrot.slane %v265_v54, 1  ;;  %v379_v0 = vrot.slane %v342_v55, 2  ;;  %v442_v9 = vmul.f32 %v1077_v22, %v1237_v39 }
  0x44   : > { %v943_v3 = vpop.eup %942  ;;  %946 = vpow2.f32 %v786_v57  ;;  %v600_v4 = vadd.f32 %v592_v33, %v578_v58  ;;  %v380_v5 = vrot.slane %v343_v60, 2  ;;  %v443_v8 = vmul.f32 %v1077_v22, %v1239_v12 }
  0x45   : > { %v799_v11 = vadd.f32 1.0, %v943_v3  ;;  %v303_v7 = vsel %vm288_vm2, %v301_v59, %v302_v63  ;;  %v519_v14 = vmul.f32 %v1082_v25, %v1237_v39  ;;  %v417_v17 = vmul.f32 %v1072_v21, %v1237_v39 }
  0x46   : > { %v677_v30 = vadd.f32 %v653_v61, %v600_v4  ;;  %v325_v15 = vadd.f32 %v303_v7, %v239_v53  ;;  %v381_v16 = vsel %vm366_vm3, %v379_v0, %v380_v5  ;;  %v478_v19 = vrot.slane %v442_v9, 1 }
  0x47   : > { %v945_v18 = vpop.eup %944  ;;  %948 = vrcp.f32 %v799_v11  ;;  %v479_v20 = vrot.slane %v443_v8, 1  ;;  %v520_v23 = vmul.f32 %v1082_v25, %v1239_v12  ;;  %v555_v33 = vrot.slane %v519_v14, 2 }
  0x48   : > { %v822_v24 = vmul.f32 %v945_v18, %v1175_v56  ;;  %v754_v31 = vadd.f32 %v730_v62, %v677_v30  ;;  %v403_v32 = vadd.f32 %v381_v16, %v325_v15  ;;  %v593_v35 = vmul.f32 %v1087_v26, %v1279_v13  ;;  %v1328_v15 = vld [vmem:[#allocation2 + $0x70] sm:$0xff] }
  0x49   : > { %v556_v34 = vrot.slane %v520_v23, 2  ;;  %v618_v37 = vmul.f32 %v1092_v27, %v1279_v13  ;;  %v619_v38 = vmul.f32 %v1092_v27, %v1282_v10  ;;  %v695_v44 = vmul.f32 %v1097_v28, %v1279_v13 }
  0x4a   : > { %v830_v56 = vpack.c.bf16 %v822_v24, %v822_v24  ;;  %v1302_v41 = vadd.f32 %v1162_v40, %v754_v31  ;;  %v425_v42 = vadd.f32 %v417_v17, %v403_v32  ;;  %v480_v45 = vsel %vm288_vm2, %v478_v19, %v479_v20  ;;  %v1332_v19 = vld [vmem:[#allocation2 + $0x78] sm:$0x3] }
  0x4b   : > { %v654_v46 = vrot.slane %v618_v37, 1  ;;  %v655_v48 = vrot.slane %v619_v38, 1  ;;  %v696_v49 = vmul.f32 %v1097_v28, %v1282_v10  ;;  %v557_v52 = vsel %vm366_vm3, %v555_v33, %v556_v34 }
  0x4c   : > { %839 = vst.msk [vmem:[%s1293_s16] sm:$0xf] %vm838_vm4, %v830_v56  ;;  %v777_v50 = vsub.f32 0.0, %v1302_v41  ;;  %v502_v51 = vadd.f32 %v480_v45, %v425_v42  ;;  %v731_v53 = vrot.slane %v695_v44, 2  ;;  %v240_v55 = vmul.f32 %v1054_v6, %v1237_v39 }
  0x4d   : > { %v732_v54 = vrot.slane %v696_v49, 2  ;;  %v266_v57 = vmul.f32 %v1044_v1, %v1237_v39  ;;  %v267_v58 = vmul.f32 %v1044_v1, %v1239_v12  ;;  %v344_v62 = vmul.f32 %v1049_v2, %v1237_v39 }
  0x4e   : > { %v947_v59 = vpop.eup %946  ;;  %v788_v60 = vmul.f32 1.442695, %v777_v50  ;;  %v579_v61 = vadd.f32 %v557_v52, %v502_v51  ;;  %v345_v63 = vmul.f32 %v1049_v2, %v1239_v12  ;;  %v656_v3 = vsel %vm288_vm2, %v654_v46, %v655_v48 }
  0x4f   : > { %v800_v0 = vadd.f32 1.0, %v947_v59  ;;  %v304_v4 = vrot.slane %v266_v57, 1  ;;  %v305_v5 = vrot.slane %v267_v58, 1  ;;  %v382_v11 = vrot.slane %v344_v62, 2 }
  0x50   : > { %950 = vpow2.f32 %v788_v60  ;;  %v601_v9 = vadd.f32 %v593_v35, %v579_v61  ;;  %v383_v7 = vrot.slane %v345_v63, 2  ;;  %v733_v14 = vsel %vm366_vm3, %v731_v53, %v732_v54 }
  0x51   : > { %v949_v8 = vpop.eup %948  ;;  %952 = vrcp.f32 %v800_v0  ;;  %v306_v30 = vsel %vm288_vm2, %v304_v4, %v305_v5  ;;  %v444_v39 = vmul.f32 %v1077_v22, %v1279_v13  ;;  %v445_v20 = vmul.f32 %v1077_v22, %v1282_v10 }
  0x52   : > { %v823_v12 = vmul.f32 %v949_v8, %v1213_v47  ;;  %v678_v16 = vadd.f32 %v656_v3, %v601_v9  ;;  %v326_v17 = vadd.f32 %v306_v30, %v240_v55  ;;  %v384_v18 = vsel %vm366_vm3, %v382_v11, %v383_v7 }
  0x53   : > { %v481_v23 = vrot.slane %v444_v39, 1  ;;  %v521_v24 = vmul.f32 %v1082_v25, %v1279_v13  ;;  %v522_v31 = vmul.f32 %v1082_v25, %v1282_v10  ;;  %v418_v34 = vmul.f32 %v1072_v21, %v1279_v13 }
  0x54   : > { %v831_v32 = vpack.c.bf16 %v823_v12, %v823_v12  ;;  %v755_v33 = vadd.f32 %v733_v14, %v678_v16  ;;  %v404_v47 = vadd.f32 %v384_v18, %v326_v17  ;;  %v482_v35 = vrot.slane %v445_v20, 1  ;;  %v1373_v12 = vld [vmem:[#allocation2 + $0x80] sm:$0xff] }
  0x55   : > { %v558_v37 = vrot.slane %v521_v24, 2  ;;  %v559_v38 = vrot.slane %v522_v31, 2  ;;  %v620_v56 = vmul.f32 %v1092_v27, %v1328_v15  ;;  %v621_v45 = vmul.f32 %v1092_v27, %v1332_v19  ;;  %v227_v24 = vld [vmem:[#allocation2 + $0x88] sm:$0x3] }
  0x56   : > { %840 = vst.msk [vmem:[%s1293_s16 + $0x4] sm:$0xf] %vm838_vm4, %v831_v32  ;;  %v1347_v42 = vadd.f32 %v1162_v40, %v755_v33  ;;  %v426_v44 = vadd.f32 %v418_v34, %v404_v47  ;;  %v697_v46 = vmul.f32 %v1097_v28, %v1328_v15  ;;  %v483_v48 = vsel %vm288_vm2, %v481_v23, %v482_v35  ;;  %v1384_v33 = vld [vmem:[#allocation2 + $0x98] sm:$0x3] }
  0x57   : > { %v594_v49 = vmul.f32 %v1087_v26, %v1328_v15  ;;  %v657_v50 = vrot.slane %v620_v56, 1  ;;  %v698_v51 = vmul.f32 %v1097_v28, %v1332_v19  ;;  %v560_v54 = vsel %vm366_vm3, %v558_v37, %v559_v38 }
  0x58   : > { %v778_v52 = vsub.f32 0.0, %v1347_v42  ;;  %v503_v53 = vadd.f32 %v483_v48, %v426_v44  ;;  %v658_v55 = vrot.slane %v621_v45, 1  ;;  %v734_v57 = vrot.slane %v697_v46, 2 }
  0x59   : > { %v735_v58 = vrot.slane %v698_v51, 2  ;;  %v268_v59 = vmul.f32 %v1044_v1, %v1279_v13  ;;  %v269_v60 = vmul.f32 %v1044_v1, %v1282_v10  ;;  %v241_v0 = vmul.f32 %v1054_v6, %v1279_v13 }
  0x5a   : > { %v951_v61 = vpop.eup %950  ;;  %v790_v62 = vmul.f32 1.442695, %v778_v52  ;;  %v580_v63 = vadd.f32 %v560_v54, %v503_v53  ;;  %v346_v3 = vmul.f32 %v1049_v2, %v1279_v13  ;;  %v659_v9 = vsel %vm288_vm2, %v657_v50, %v658_v55 }
  0x5b   : > { %v953_v4 = vpop.eup %952  ;;  %v801_v5 = vadd.f32 1.0, %v951_v61  ;;  %v307_v11 = vrot.slane %v268_v59, 1  ;;  %v308_v7 = vrot.slane %v269_v60, 1  ;;  %v347_v30 = vmul.f32 %v1049_v2, %v1282_v10 }
  0x5c   : > { %v824_v8 = vmul.f32 %v953_v4, %v1251_v36  ;;  %954 = vpow2.f32 %v790_v62  ;;  %v602_v14 = vadd.f32 %v594_v49, %v580_v63  ;;  %v736_v39 = vsel %vm366_vm3, %v734_v57, %v735_v58 }
  0x5d   : > { %956 = vrcp.f32 %v801_v5  ;;  %v309_v13 = vsel %vm288_vm2, %v307_v11, %v308_v7  ;;  %v385_v16 = vrot.slane %v346_v3, 2  ;;  %v386_v23 = vrot.slane %v347_v30, 2 }
  0x5e   : > { %v832_v17 = vpack.c.bf16 %v824_v8, %v824_v8  ;;  %v679_v18 = vadd.f32 %v659_v9, %v602_v14  ;;  %v327_v20 = vadd.f32 %v309_v13, %v241_v0  ;;  %v446_v36 = vmul.f32 %v1077_v22, %v1328_v15 }
  0x5f   : > { %v447_v10 = vmul.f32 %v1077_v22, %v1332_v19  ;;  %v523_v31 = vmul.f32 %v1082_v25, %v1328_v15  ;;  %v524_v32 = vmul.f32 %v1082_v25, %v1332_v19  ;;  %v387_v34 = vsel %vm366_vm3, %v385_v16, %v386_v23 }
  0x60   : > { %841 = vst.msk [vmem:[%s1293_s16 + $0x8] sm:$0xf] %vm838_vm4, %v832_v17  ;;  %v756_v47 = vadd.f32 %v736_v39, %v679_v18  ;;  %v419_v35 = vmul.f32 %v1072_v21, %v1328_v15  ;;  %v622_v37 = vmul.f32 %v1092_v27, %v1373_v12  ;;  %v405_v38 = vadd.f32 %v387_v34, %v327_v20 }
  0x61   : > { %v484_v56 = vrot.slane %v446_v36, 1  ;;  %v485_v44 = vrot.slane %v447_v10, 1  ;;  %v561_v45 = vrot.slane %v523_v31, 2  ;;  %v562_v48 = vrot.slane %v524_v32, 2 }
  0x62   : > { %v1394_v46 = vadd.f32 %v1162_v40, %v756_v47  ;;  %v623_v49 = vmul.f32 %v1092_v27, %v227_v24  ;;  %v1399_v50 = vmul.f32 %v1092_v27, %v1384_v33  ;;  %v427_v51 = vadd.f32 %v419_v35, %v405_v38 }
  0x63   : > { %v595_v52 = vmul.f32 %v1087_v26, %v1373_v12  ;;  %v699_v53 = vmul.f32 %v1097_v28, %v1373_v12  ;;  %v700_v54 = vmul.f32 %v1097_v28, %v227_v24  ;;  %v486_v57 = vsel %vm288_vm2, %v484_v56, %v485_v44 }
  0x64   : > { %v779_v55 = vsub.f32 0.0, %v1394_v46  ;;  %v563_v58 = vsel %vm366_vm3, %v561_v45, %v562_v48  ;;  %v660_v59 = vrot.slane %v622_v37, 1  ;;  %v504_v60 = vadd.f32 %v486_v57, %v427_v51 }
  0x65   : > { %v661_v61 = vrot.slane %v623_v49, 1  ;;  %v242_v27 = vmul.f32 %v1054_v6, %v1328_v15  ;;  %v270_v62 = vmul.f32 %v1044_v1, %v1328_v15  ;;  %v737_v3 = vrot.slane %v699_v53, 2 }
  0x66   : > { %v955_v63 = vpop.eup %954  ;;  %v792_v0 = vmul.f32 1.442695, %v779_v55  ;;  %v271_v4 = vmul.f32 %v1044_v1, %v1332_v19  ;;  %v348_v5 = vmul.f32 %v1049_v2, %v1328_v15  ;;  %v581_v7 = vadd.f32 %v563_v58, %v504_v60 }
  0x67   : > { %v957_v9 = vpop.eup %956  ;;  %v802_v11 = vadd.f32 1.0, %v955_v63  ;;  %v738_v8 = vrot.slane %v700_v54, 2  ;;  %v310_v14 = vrot.slane %v270_v62, 1  ;;  %v349_v39 = vmul.f32 %v1049_v2, %v1332_v19 }
  0x68   : > { %v825_v30 = vmul.f32 %v957_v9, %v1302_v41  ;;  %958 = vpow2.f32 %v792_v0  ;;  %v311_v6 = vrot.slane %v271_v4, 1  ;;  %v603_v13 = vadd.f32 %v595_v52, %v581_v7 }
  0x69   : > { %960 = vrcp.f32 %v802_v11  ;;  %v662_v1 = vsel %vm288_vm2, %v660_v59, %v661_v61  ;;  %v388_v16 = vrot.slane %v348_v5, 2  ;;  %v389_v18 = vrot.slane %v349_v39, 2 }
  0x6a   : > { %v833_v17 = vpack.c.bf16 %v825_v30, %v825_v30  ;;  %v312_v15 = vsel %vm288_vm2, %v310_v14, %v311_v6  ;;  %v448_v20 = vmul.f32 %v1077_v22, %v1373_v12  ;;  %v680_v23 = vadd.f32 %v662_v1, %v603_v13 }
  0x6b   : > { %v328_v41 = vadd.f32 %v312_v15, %v242_v27  ;;  %v449_v36 = vmul.f32 %v1077_v22, %v227_v24  ;;  %v525_v10 = vmul.f32 %v1082_v25, %v1373_v12  ;;  %v739_v2 = vsel %vm366_vm3, %v737_v3, %v738_v8 }
  0x6c   : > { %842 = vst.msk [vmem:[%s1293_s16 + $0xc] sm:$0xf] %vm838_vm4, %v833_v17  ;;  %v390_v19 = vsel %vm366_vm3, %v388_v16, %v389_v18  ;;  %v487_v31 = vrot.slane %v448_v20, 1  ;;  %v526_v32 = vmul.f32 %v1082_v25, %v227_v24  ;;  %v757_v47 = vadd.f32 %v739_v2, %v680_v23 }
  0x6d   : > { %v406_v34 = vadd.f32 %v390_v19, %v328_v41  ;;  %v420_v35 = vmul.f32 %v1072_v21, %v1373_v12  ;;  %v488_v37 = vrot.slane %v449_v36, 1  ;;  %v564_v38 = vrot.slane %v525_v10, 2 }
  0x6e   : > { %v565_v22 = vrot.slane %v526_v32, 2  ;;  %v772_v56 = vadd.f32 %v1162_v40, %v757_v47  ;;  %v663_v48 = vrot.slane %v1118_v43, 1  ;;  %v664_v49 = vrot.slane %v1399_v50, 1 }
  0x6f   : > { %v428_v44 = vadd.f32 %v420_v35, %v406_v34  ;;  %v489_v45 = vsel %vm288_vm2, %v487_v31, %v488_v37  ;;  %v701_v25 = vmul.f32 %v1097_v28, %v1099_v29  ;;  %v702_v24 = vmul.f32 %v1097_v28, %v1384_v33 }
  0x70   : > { %v780_v51 = vsub.f32 0.0, %v772_v56  ;;  %v596_v12 = vmul.f32 %v1087_v26, %v1099_v29  ;;  %v566_v53 = vsel %vm366_vm3, %v564_v38, %v565_v22  ;;  %v665_v58 = vsel %vm288_vm2, %v663_v48, %v664_v49 }
  0x71   : > { %v505_v21 = vadd.f32 %v489_v45, %v428_v44  ;;  %v740_v59 = vrot.slane %v701_v25, 2  ;;  %v741_v60 = vrot.slane %v702_v24, 2 }
  0x72   : > { %v959_v52 = vpop.eup %958  ;;  %v794_v43 = vmul.f32 1.442695, %v780_v51 }
  0x73   : > { %v961_v54 = vpop.eup %960  ;;  %v803_v55 = vadd.f32 1.0, %v959_v52  ;;  %v582_v57 = vadd.f32 %v566_v53, %v505_v21  ;;  %v742_v29 = vsel %vm366_vm3, %v740_v59, %v741_v60 }
  0x74   : > { %v826_v50 = vmul.f32 %v961_v54, %v1347_v42 }
  0x75   : > { %962 = vrcp.f32 %v803_v55  ;;  %v604_v28 = vadd.f32 %v596_v12, %v582_v57 }
  0x76   : > { %v834_v33 = vpack.c.bf16 %v826_v50, %v826_v50  ;;  %964 = vpow2.f32 %v794_v43 }
  0x77   : > { %v681_v26 = vadd.f32 %v665_v58, %v604_v28 }
  0x78   : > { %843 = vst.msk [vmem:[%s1293_s16 + $0x10] sm:$0xf] %vm838_vm4, %v834_v33 }
  0x79   : > { %v758_v61 = vadd.f32 %v742_v29, %v681_v26 }
  0x7b   : > { %v773_v27 = vadd.f32 %v1162_v40, %v758_v61 }
  0x7d   : > { %v781_v62 = vsub.f32 0.0, %v773_v27 }
  0x7f   : > { %v963_v42 = vpop.eup %962  ;;  %v796_v63 = vmul.f32 1.442695, %v781_v62 }
  0x80   : > { %v965_v0 = vpop.eup %964  ;;  %v827_v3 = vmul.f32 %v963_v42, %v1394_v46 }
  0x81   : > { %v804_v4 = vadd.f32 1.0, %v965_v0  ;;  %966 = vpow2.f32 %v796_v63 }
  0x82   : > { %v835_v5 = vpack.c.bf16 %v827_v3, %v827_v3 }
  0x83   : > { %968 = vrcp.f32 %v804_v4 }
  0x84   : > { %844 = vst.msk [vmem:[%s1293_s16 + $0x14] sm:$0xf] %vm838_vm4, %v835_v5 }
  0x8b   : > { %v967_v9 = vpop.eup %966 }
  0x8c   : > { %v805_v11 = vadd.f32 1.0, %v967_v9 }
  0x8d   : > { %v969_v7 = vpop.eup %968 }
  0x8e   : > { %v828_v8 = vmul.f32 %v969_v7, %v772_v56  ;;  %970 = vrcp.f32 %v805_v11 }
  0x90   : > { %v836_v40 = vpack.c.bf16 %v828_v8, %v828_v8 }
  0x92   : > { %845 = vst.msk [vmem:[%s1293_s16 + $0x18] sm:$0xf] %vm838_vm4, %v836_v40 }
  0x98   : > { %v971_v14 = vpop.eup %970 }
  0x99   : > { %v829_v30 = vmul.f32 %v971_v14, %v773_v27 }
  0x9b   : > { %v837_v6 = vpack.c.bf16 %v829_v30, %v829_v30 }
  0x9d   : > { %846 = vst.msk [vmem:[%s1293_s16 + $0x1c] sm:$0xf] %vm838_vm4, %v837_v6 }
  0x9e PF: > { %s13_s12 = sadd.s32 1, %s978_s12  }
  0x9f   : > { %p10_p4 = scmp.ge.s32.totalorder %s13_s12, 4  }
  0xa1   :  { %12 = sbr.rel (!%p10_p4) target bundleno = 1 (0x1), region = 65 }

// kernel: ss2d_forward.7
= control target key start
LH: loop header
LB: loop body
LE: loop exit
PB: predicated region body
PF: predicated region fallthrough
CT: control target
= control target key end

     0   :  { %vm38_vm0 = vcmask 523264   ;;  %s1286_s0 = inlined_call_operand.vmem [shape: f32[128,64], index: 0, kind: input, shape index: {}]   ;;  %s1287_s1 = inlined_call_operand.vmem [shape: f32[128,64], index: 1, kind: input, shape index: {}]   ;;  %s1288_s2 = inlined_call_operand.vmem [shape: f32[1,64], index: 2, kind: input, shape index: {}]   ;;  %s1289_s3 = inlined_call_operand.vmem [shape: f32[1,64], index: 3, kind: input, shape index: {}]   ;;  %s1290_s4 = inlined_call_operand.vmem [shape: bf16[64,32], index: 4, kind: input, shape index: {}]   ;;  %s1291_s5 = inlined_call_operand.hbm [shape: f32[128,32], index: 5, kind: output, shape index: {}]  }
   0x1   :  { %v22_v0 = vld [vmem:[%s1286_s0] sm:$0xff]  ;;  %v23_v2 = vld [vmem:[%s1286_s0 + $0x8] sm:$0xff]  ;;  %v867_v6 = vld [vmem:[%s1286_s0 + $0x10] sm:$0xff] }
   0x2   :  { %v30_v1 = vld [vmem:[%s1286_s0 + $0x40] sm:$0xff]  ;;  %v39_v3 = vsel %vm38_vm0, %v22_v0, 0.0  ;;  %v31_v5 = vld [vmem:[%s1286_s0 + $0x48] sm:$0xff]  ;;  %v42_v7 = vsel %vm38_vm0, %v23_v2, 0.0  ;;  %v25_v9 = vld [vmem:[%s1286_s0 + $0x18] sm:$0xff]  ;;  %v45_v10 = vsel %vm38_vm0, %v867_v6, 0.0 }
   0x3   :  { %v63_v4 = vsel %vm38_vm0, %v30_v1, 0.0  ;;  %40 = vadd.xlane.f32.xlu0 %v39_v3  ;;  %v66_v8 = vsel %vm38_vm0, %v31_v5, 0.0  ;;  %v48_v11 = vsel %vm38_vm0, %v25_v9, 0.0  ;;  %v880_v12 = vld [vmem:[%s1286_s0 + $0x50] sm:$0xff]  ;;  %v885_v13 = vld [vmem:[%s1286_s0 + $0x58] sm:$0xff] }
   0x4   :  { %64 = vadd.xlane.f32.xlu1 %v63_v4 }
   0x7   :  { %43 = vadd.xlane.f32.xlu0 %v42_v7 }
   0x8   :  { %67 = vadd.xlane.f32.xlu1 %v66_v8 }
   0x9   :  { %10 = vsyncpa [#allocation3], 0  ;;  %v69_v14 = vsel %vm38_vm0, %v880_v12, 0.0  ;;  %v72_v15 = vsel %vm38_vm0, %v885_v13, 0.0  ;;  %v894_v16 = vld [vmem:[%s1286_s0 + $0x20] sm:$0xff]  ;;  %v899_v17 = vld [vmem:[%s1286_s0 + $0x28] sm:$0xff] }
   0xa   :  { %v51_v18 = vsel %vm38_vm0, %v894_v16, 0.0  ;;  %v54_v19 = vsel %vm38_vm0, %v899_v17, 0.0  ;;  %v908_v20 = vld [vmem:[%s1286_s0 + $0x60] sm:$0xff]  ;;  %v913_v21 = vld [vmem:[%s1286_s0 + $0x68] sm:$0xff]  ;;  %v922_v24 = vld [vmem:[%s1286_s0 + $0x30] sm:$0xff]  ;;  %vm599_vm1 = vcmask 261120  }
   0xb   :  { %46 = vadd.xlane.f32.xlu0 %v45_v10  ;;  %v75_v22 = vsel %vm38_vm0, %v908_v20, 0.0  ;;  %v78_v23 = vsel %vm38_vm0, %v913_v21, 0.0  ;;  %v927_v25 = vld [vmem:[%s1286_s0 + $0x38] sm:$0xff]  ;;  %v57_v26 = vsel %vm38_vm0, %v922_v24, 0.0  ;;  %v936_v28 = vld [vmem:[%s1286_s0 + $0x70] sm:$0xff] }
   0xc   :  { %49 = vadd.xlane.f32.xlu1 %v48_v11  ;;  %v60_v27 = vsel %vm38_vm0, %v927_v25, 0.0  ;;  %v941_v29 = vld [vmem:[%s1286_s0 + $0x78] sm:$0xff]  ;;  %v81_v30 = vsel %vm38_vm0, %v936_v28, 0.0 }
   0xd   :  { %v84_v31 = vsel %vm38_vm0, %v941_v29, 0.0 }
   0xf   :  { %70 = vadd.xlane.f32.xlu0 %v69_v14 }
  0x10   :  { %73 = vadd.xlane.f32.xlu1 %v72_v15 }
  0x13   :  { %52 = vadd.xlane.f32.xlu0 %v51_v18 }
  0x14   :  { %55 = vadd.xlane.f32.xlu1 %v54_v19 }
  0x17   :  { %76 = vadd.xlane.f32.xlu0 %v75_v22 }
  0x18   :  { %79 = vadd.xlane.f32.xlu1 %v78_v23 }
  0x1b   :  { %58 = vadd.xlane.f32.xlu0 %v57_v26 }
  0x1c   :  { %61 = vadd.xlane.f32.xlu1 %v60_v27 }
  0x1f   :  { %82 = vadd.xlane.f32.xlu0 %v81_v30 }
  0x20   :  { %85 = vadd.xlane.f32.xlu1 %v84_v31 }
  0x90   :  { %v41_v32 = vpop.xlane.xlu0 %40 }
  0x91   :  { %v65_v33 = vpop.xlane.xlu1 %64  ;;  %v88_v34 = vmul.f32 0.015625, %v41_v32 }
  0x92   :  { %v96_v35 = vmul.f32 0.015625, %v65_v33 }
  0x93   :  { %v947_v36 = vsub.f32 %v22_v0, %v88_v34 }
  0x94   :  { %v949_v37 = vsub.f32 %v30_v1, %v96_v35  ;;  %v44_v38 = vpop.xlane.xlu0 %43 }
  0x95   :  { %v68_v39 = vpop.xlane.xlu1 %67  ;;  %v89_v40 = vmul.f32 0.015625, %v44_v38  ;;  %v120_v42 = vmul.f32 %v947_v36, %v947_v36 }
  0x96   :  { %v97_v41 = vmul.f32 0.015625, %v68_v39  ;;  %v128_v43 = vmul.f32 %v949_v37, %v949_v37 }
  0x97   :  { %v955_v44 = vsub.f32 %v23_v2, %v89_v40  ;;  %v136_v46 = vsel %vm38_vm0, %v120_v42, 0.0 }
  0x98   :  { %v957_v45 = vsub.f32 %v31_v5, %v97_v41  ;;  %137 = vadd.xlane.f32.xlu0 %v136_v46  ;;  %v47_v47 = vpop.xlane.xlu0 %46  ;;  %v160_v49 = vsel %vm38_vm0, %v128_v43, 0.0 }
  0x99   :  { %v50_v48 = vpop.xlane.xlu1 %49  ;;  %v90_v50 = vmul.f32 0.015625, %v47_v47  ;;  %v121_v52 = vmul.f32 %v955_v44, %v955_v44 }
  0x9a   :  { %v91_v51 = vmul.f32 0.015625, %v50_v48  ;;  %v129_v53 = vmul.f32 %v957_v45, %v957_v45 }
  0x9b   :  { %v966_v54 = vsub.f32 %v867_v6, %v90_v50  ;;  %v139_v56 = vsel %vm38_vm0, %v121_v52, 0.0 }
  0x9c   :  { %v968_v55 = vsub.f32 %v25_v9, %v91_v51  ;;  %161 = vadd.xlane.f32.xlu0 %v160_v49  ;;  %140 = vadd.xlane.f32.xlu1 %v139_v56  ;;  %v71_v57 = vpop.xlane.xlu0 %70  ;;  %v163_v59 = vsel %vm38_vm0, %v129_v53, 0.0  ;;  %v694_v53 = vld [vmem:[%s1290_s4 + $0x8] sm:$0xff]   ;;  %v695_v56 = vld [vmem:[%s1290_s4 + $0x10] sm:$0xff]  }
  0x9d   :  { %v74_v58 = vpop.xlane.xlu1 %73  ;;  %v98_v60 = vmul.f32 0.015625, %v71_v57  ;;  %v122_v62 = vmul.f32 %v966_v54, %v966_v54  ;;  %v696_v57 = vld [vmem:[%s1290_s4 + $0x18] sm:$0xff]  }
  0x9e   :  { %v99_v61 = vmul.f32 0.015625, %v74_v58  ;;  %v123_v63 = vmul.f32 %v968_v55, %v968_v55  ;;  %v1053_v58 = vld [vmem:[%s1287_s1] sm:$0xff] }
  0x9f   :  { %v977_v0 = vsub.f32 %v880_v12, %v98_v60  ;;  %v142_v2 = vsel %vm38_vm0, %v122_v62, 0.0  ;;  %v310_v60 = vsub.f32 0.0, %v1053_v58 }
  0xa0   :  { %v980_v1 = vsub.f32 %v885_v13, %v99_v61  ;;  %164 = vadd.xlane.f32.xlu1 %v163_v59  ;;  %143 = vadd.xlane.f32.xlu0 %v142_v2  ;;  %v53_v3 = vpop.xlane.xlu0 %52  ;;  %v145_v5 = vsel %vm38_vm0, %v123_v63, 0.0  ;;  %v1058_v59 = vld [vmem:[%s1287_s1 + $0x8] sm:$0xff]  ;;  %v1064_v61 = vld [vmem:[%s1287_s1 + $0x40] sm:$0xff] }
  0xa1   :  { %v56_v4 = vpop.xlane.xlu1 %55  ;;  %v92_v6 = vmul.f32 0.015625, %v53_v3  ;;  %v130_v8 = vmul.f32 %v977_v0, %v977_v0  ;;  %v311_v62 = vsub.f32 0.0, %v1058_v59  ;;  %v1070_v63 = vld [vmem:[%s1287_s1 + $0x48] sm:$0xff]  ;;  %v318_v2 = vsub.f32 0.0, %v1064_v61 }
  0xa2   :  { %v93_v7 = vmul.f32 0.015625, %v56_v4  ;;  %v131_v9 = vmul.f32 %v980_v1, %v980_v1  ;;  %v326_v3 = vmul.f32 1.442695, %v310_v60  ;;  %v1076_v4 = vld [vmem:[%s1287_s1 + $0x10] sm:$0xff] }
  0xa3   :  { %v989_v10 = vsub.f32 %v894_v16, %v92_v6  ;;  %v166_v12 = vsel %vm38_vm0, %v130_v8, 0.0  ;;  %v328_v6 = vmul.f32 1.442695, %v311_v62  ;;  %v1082_v8 = vld [vmem:[%s1287_s1 + $0x18] sm:$0xff] }
  0xa4   :  { %v992_v11 = vsub.f32 %v899_v17, %v93_v7  ;;  %146 = vadd.xlane.f32.xlu1 %v145_v5  ;;  %167 = vadd.xlane.f32.xlu0 %v166_v12  ;;  %v77_v13 = vpop.xlane.xlu0 %76  ;;  %v169_v15 = vsel %vm38_vm0, %v131_v9, 0.0  ;;  %v319_v5 = vsub.f32 0.0, %v1070_v63  ;;  %v342_v7 = vmul.f32 1.442695, %v318_v2  ;;  %v1088_v12 = vld [vmem:[%s1287_s1 + $0x50] sm:$0xff] }
  0xa5   :  { %v80_v14 = vpop.xlane.xlu1 %79  ;;  %v100_v18 = vmul.f32 0.015625, %v77_v13  ;;  %v124_v22 = vmul.f32 %v989_v10, %v989_v10  ;;  %v312_v9 = vsub.f32 0.0, %v1076_v4  ;;  %697 = vpow2.f32 %v326_v3  ;;  %v1136_v3 = vld [vmem:[%s1287_s1 + $0x70] sm:$0xff] }
  0xa6   :  { %v101_v19 = vmul.f32 0.015625, %v80_v14  ;;  %v125_v16 = vmul.f32 %v992_v11, %v992_v11  ;;  %v344_v13 = vmul.f32 1.442695, %v319_v5  ;;  %699 = vpow2.f32 %v328_v6 }
  0xa7   :  { %v1001_v23 = vsub.f32 %v908_v20, %v100_v18  ;;  %v148_v26 = vsel %vm38_vm0, %v124_v22, 0.0  ;;  %v313_v14 = vsub.f32 0.0, %v1082_v8  ;;  %701 = vpow2.f32 %v342_v7  ;;  %v1094_v18 = vld [vmem:[%s1287_s1 + $0x58] sm:$0xff] }
  0xa8   :  { %v1004_v17 = vsub.f32 %v913_v21, %v101_v19  ;;  %170 = vadd.xlane.f32.xlu1 %v169_v15  ;;  %149 = vadd.xlane.f32.xlu0 %v148_v26  ;;  %v59_v27 = vpop.xlane.xlu0 %58  ;;  %v151_v31 = vsel %vm38_vm0, %v125_v16, 0.0  ;;  %v330_v15 = vmul.f32 1.442695, %v312_v9  ;;  %v320_v19 = vsub.f32 0.0, %v1088_v12 }
  0xa9   :  { %v62_v30 = vpop.xlane.xlu1 %61  ;;  %v94_v32 = vmul.f32 0.015625, %v59_v27  ;;  %v132_v34 = vmul.f32 %v1001_v23, %v1001_v23  ;;  %703 = vpow2.f32 %v344_v13  ;;  %v332_v22 = vmul.f32 1.442695, %v313_v14  ;;  %v1101_v27 = vld [vmem:[%s1287_s1 + $0x20] sm:$0xff] }
  0xaa   :  { %v95_v33 = vmul.f32 0.015625, %v62_v30  ;;  %v133_v20 = vmul.f32 %v1004_v17, %v1004_v17  ;;  %v321_v16 = vsub.f32 0.0, %v1094_v18  ;;  %705 = vpow2.f32 %v330_v15 }
  0xab   :  { %v1013_v35 = vsub.f32 %v922_v24, %v94_v32  ;;  %v172_v38 = vsel %vm38_vm0, %v132_v34, 0.0  ;;  %v346_v26 = vmul.f32 1.442695, %v320_v19  ;;  %707 = vpow2.f32 %v332_v22  ;;  %v1106_v32 = vld [vmem:[%s1287_s1 + $0x28] sm:$0xff]  ;;  %v1143_v22 = vld [vmem:[%s1287_s1 + $0x78] sm:$0xff] }
  0xac   :  { %v1016_v21 = vsub.f32 %v927_v25, %v95_v33  ;;  %152 = vadd.xlane.f32.xlu1 %v151_v31  ;;  %173 = vadd.xlane.f32.xlu0 %v172_v38  ;;  %v83_v39 = vpop.xlane.xlu0 %82  ;;  %v175_v41 = vsel %vm38_vm0, %v133_v20, 0.0  ;;  %v348_v31 = vmul.f32 1.442695, %v321_v16  ;;  %v314_v33 = vsub.f32 0.0, %v1101_v27  ;;  %v1112_v20 = vld [vmem:[%s1287_s1 + $0x60] sm:$0xff] }
  0xad   :  { %v86_v40 = vpop.xlane.xlu1 %85  ;;  %v102_v42 = vmul.f32 0.015625, %v83_v39  ;;  %v126_v46 = vmul.f32 %v1013_v35, %v1013_v35  ;;  %709 = vpow2.f32 %v346_v26  ;;  %v324_v15 = vsub.f32 0.0, %v1136_v3 }
  0xae   :  { %v103_v43 = vmul.f32 0.015625, %v86_v40  ;;  %v127_v24 = vmul.f32 %v1016_v21, %v1016_v21  ;;  %v315_v40 = vsub.f32 0.0, %v1106_v32  ;;  %711 = vpow2.f32 %v348_v31 }
  0xaf   :  { %v1025_v47 = vsub.f32 %v936_v28, %v102_v42  ;;  %v154_v48 = vsel %vm38_vm0, %v126_v46, 0.0  ;;  %v698_v30 = vpop.eup %697  ;;  %v1118_v42 = vld [vmem:[%s1287_s1 + $0x68] sm:$0xff] }
  0xb0   :  { %v1028_v25 = vsub.f32 %v941_v29, %v103_v43  ;;  %176 = vadd.xlane.f32.xlu1 %v175_v41  ;;  %155 = vadd.xlane.f32.xlu0 %v154_v48  ;;  %v157_v49 = vsel %vm38_vm0, %v127_v24, 0.0  ;;  %v693_v29 = vld [vmem:[%s1290_s4] sm:$0xff]   ;;  %v700_v34 = vpop.eup %699  ;;  %v358_v39 = vadd.f32 1.0, %v698_v30  ;;  %v334_v41 = vmul.f32 1.442695, %v314_v33  ;;  %v1124_v48 = vld [vmem:[%s1287_s1 + $0x30] sm:$0xff] }
  0xb1   :  { %v134_v50 = vmul.f32 %v1025_v47, %v1025_v47  ;;  %658 = vmatprep.subr.bf16.mxu0 %v693_v29  ;;  %682 = vmatprep.subr.bf16.mxu1 %v693_v29  ;;  %v702_v38 = vpop.eup %701  ;;  %v359_v46 = vadd.f32 1.0, %v700_v34  ;;  %v322_v24 = vsub.f32 0.0, %v1112_v20 }
  0xb2   :  { %v135_v51 = vmul.f32 %v1028_v25, %v1028_v25  ;;  %659 = vmatpush3.bf16.msra.mxu0 %v693_v29  ;;  %686 = vmatpush3.bf16.msra.mxu1 %v693_v29  ;;  %713 = vrcp.f32 %v358_v39  ;;  %v316_v29 = vsub.f32 0.0, %v1124_v48  ;;  %v325_v39 = vsub.f32 0.0, %v1143_v22 }
  0xb3   :  { %v178_v52 = vsel %vm38_vm0, %v134_v50, 0.0  ;;  %660 = vmatprep.subr.bf16.mxu0 %v694_v53  ;;  %683 = vmatprep.subr.bf16.mxu1 %v694_v53  ;;  %v704_v43 = vpop.eup %703  ;;  %715 = vpow2.f32 %v334_v41 }
  0xb4   :  { %158 = vadd.xlane.f32.xlu1 %v157_v49  ;;  %179 = vadd.xlane.f32.xlu0 %v178_v52  ;;  %v181_v28 = vsel %vm38_vm0, %v135_v51, 0.0  ;;  %v366_v49 = vadd.f32 1.0, %v702_v38  ;;  %v706_v50 = vpop.eup %705  ;;  %v336_v51 = vmul.f32 1.442695, %v315_v40  ;;  %v323_v52 = vsub.f32 0.0, %v1118_v42 }
  0xb5   :  { %717 = vrcp.f32 %v359_v46  ;;  %v360_v60 = vadd.f32 1.0, %v706_v50  ;;  %v338_v6 = vmul.f32 1.442695, %v316_v29  ;;  %v354_v40 = vmul.f32 1.442695, %v324_v15 }
  0xb6   :  { %661 = vmatpush3.bf16.msra.mxu0 %v694_v53  ;;  %687 = vmatpush3.bf16.msra.mxu1 %v694_v53  ;;  %v350_v53 = vmul.f32 1.442695, %v322_v24  ;;  %719 = vrcp.f32 %v366_v49  ;;  %v352_v2 = vmul.f32 1.442695, %v323_v52 }
  0xb7   :  { %662 = vmatprep.subr.bf16.mxu0 %v695_v56  ;;  %684 = vmatprep.subr.bf16.mxu1 %v695_v56  ;;  %721 = vpow2.f32 %v336_v51 }
  0xb8   :  { %182 = vadd.xlane.f32.xlu1 %v181_v28  ;;  %v367_v28 = vadd.f32 1.0, %v704_v43 }
  0xba   :  { %663 = vmatpush3.bf16.msra.mxu0 %v695_v56  ;;  %688 = vmatpush3.bf16.msra.mxu1 %v695_v56  ;;  %v1131_v56 = vld [vmem:[%s1287_s1 + $0x38] sm:$0xff]  ;;  %723 = vrcp.f32 %v367_v28 }
  0xbb   :  { %664 = vmatprep.subr.bf16.mxu0 %v696_v57  ;;  %685 = vmatprep.subr.bf16.mxu1 %v696_v57  ;;  %v317_v5 = vsub.f32 0.0, %v1131_v56  ;;  %725 = vpow2.f32 %v350_v53 }
  0xbc   :  { %727 = vrcp.f32 %v360_v60 }
  0xbd   :  { %729 = vpow2.f32 %v352_v2  ;;  %v340_v16 = vmul.f32 1.442695, %v317_v5 }
  0xbe   :  { %665 = vmatpush3.bf16.msra.mxu0 %v696_v57  ;;  %689 = vmatpush3.bf16.msra.mxu1 %v696_v57  ;;  %v708_v57 = vpop.eup %707  ;;  %731 = vpow2.f32 %v338_v6 }
  0xbf   :  { %v710_v62 = vpop.eup %709  ;;  %v361_v7 = vadd.f32 1.0, %v708_v57  ;;  %v356_v57 = vmul.f32 1.442695, %v325_v39 }
  0xc0   :  { %v712_v9 = vpop.eup %711  ;;  %v368_v14 = vadd.f32 1.0, %v710_v62 }
  0xc1   :  { %v1145_v26 = vpop.eup %713  ;;  %733 = vrcp.f32 %v361_v7  ;;  %v369_v31 = vadd.f32 1.0, %v712_v9 }
  0xc2   :  { %v716_v33 = vpop.eup %715  ;;  %735 = vrcp.f32 %v368_v14 }
  0xc3   :  { %v718_v41 = vpop.eup %717  ;;  %v362_v52 = vadd.f32 1.0, %v716_v33 }
  0xc4   :  { %v720_v24 = vpop.eup %719 }
  0xc5   :  { %v722_v49 = vpop.eup %721 }
  0xc6   :  { %v724_v28 = vpop.eup %723 }
  0xc7   :  { %v726_v60 = vpop.eup %725 }
  0xc8   :  { %v728_v5 = vpop.eup %727 }
  0xc9   :  { %v730_v6 = vpop.eup %729 }
  0xca   :  { %v732_v14 = vpop.eup %731 }
 0x125   :  { %v138_v13 = vpop.xlane.xlu0 %137 }
 0x126   :  { %v184_v19 = vmul.f32 0.015625, %v138_v13  ;;  %v363_v13 = vadd.f32 1.0, %v722_v49 }
 0x128   :  { %v200_v30 = vadd.f32 1e-05, %v184_v19 }
 0x129   :  { %v141_v34 = vpop.xlane.xlu1 %140  ;;  %v162_v38 = vpop.xlane.xlu0 %161 }
 0x12a   :  { %737 = vrsqrt.f32 %v200_v30  ;;  %v185_v43 = vmul.f32 0.015625, %v141_v34  ;;  %v192_v46 = vmul.f32 0.015625, %v162_v38  ;;  %v734_v30 = vpop.eup %733  ;;  %v1151_v38 = vld [vmem:[%s1288_s2] ss:$0 sm:$0xff]  ;;  %s817_s2 = smov [#allocation2]  }
 0x12b   :  { %739 = vpow2.f32 %v340_v16  ;;  %v370_v16 = vadd.f32 1.0, %v726_v60  ;;  %v736_v34 = vpop.eup %735 }
 0x12c   :  { %v201_v50 = vadd.f32 1e-05, %v185_v43  ;;  %v208_v51 = vadd.f32 1e-05, %v192_v46  ;;  %741 = vrcp.f32 %v369_v31  ;;  %v371_v46 = vadd.f32 1.0, %v730_v6 }
 0x12d   :  { %v165_v29 = vpop.xlane.xlu1 %164  ;;  %v144_v53 = vpop.xlane.xlu0 %143  ;;  %743 = vpow2.f32 %v354_v40 }
 0x12e   :  { %745 = vrsqrt.f32 %v201_v50  ;;  %v193_v62 = vmul.f32 0.015625, %v165_v29  ;;  %v186_v2 = vmul.f32 0.015625, %v144_v53  ;;  %v364_v29 = vadd.f32 1.0, %v732_v14 }
 0x12f   :  { %747 = vrsqrt.f32 %v208_v51 }
 0x130   :  { %v209_v7 = vadd.f32 1e-05, %v193_v62  ;;  %v202_v9 = vadd.f32 1e-05, %v186_v2  ;;  %749 = vrcp.f32 %v362_v52  ;;  %v1157_v62 = vld [vmem:[%s1289_s3] ss:$0 sm:$0xff]  ;;  %v406_v2 = vmul.f32 %v1145_v26, %v1053_v58 }
 0x131   :  { %v147_v15 = vpop.xlane.xlu1 %146  ;;  %v168_v19 = vpop.xlane.xlu0 %167  ;;  %751 = vpow2.f32 %v356_v57  ;;  %s621_s3 = sshll.u32 %s817_s2, 4  ;;  %s622_s3 = int_to_ptr.vmem [resolvable:$true] %s621_s3 }
 0x132   :  { %753 = vrsqrt.f32 %v209_v7  ;;  %v187_v31 = vmul.f32 0.015625, %v147_v15  ;;  %v194_v33 = vmul.f32 0.015625, %v168_v19  ;;  %v415_v19 = vmul.f32 %v724_v28, %v1070_v63  ;;  %s793_s14 = scalar_lea.vmem %s622_s3, 2048  ;;  %p798_p1 = scmp.lt.s32.totalorder %s622_s3, %s622_s3 }
 0x133   :  { %755 = vrsqrt.f32 %v202_v9  ;;  %v414_v9 = vmul.f32 %v720_v24, %v1064_v61  ;;  %p794_p0 = scmp.ne.s32.totalorder %s622_s3, %s793_s14  ;;  %p799_p2 = scmp.lt.s32.totalorder %s793_s14, %s793_s14 }
 0x134   :  { %v738_v39 = vpop.eup %737  ;;  %v203_v40 = vadd.f32 1e-05, %v187_v31  ;;  %v210_v43 = vadd.f32 1e-05, %v194_v33  ;;  %757 = vrcp.f32 %v363_v13 }
 0x135   :  { %v740_v49 = vpop.eup %739  ;;  %v171_v50 = vpop.xlane.xlu1 %170  ;;  %v232_v52 = vmul.f32 %v738_v39, %v947_v36  ;;  %759 = vrcp.f32 %v370_v16  ;;  %v407_v36 = vmul.f32 %v718_v41, %v1058_v59  ;;  %v1170_v39 = vmul.f32 %v728_v5, %v1076_v4  ;;  %p800_p3 = por %p799_p2, %p798_p1 }
 0x136   :  { %v150_v51 = vpop.xlane.xlu0 %149  ;;  %v742_v53 = vpop.eup %741  ;;  %761 = vrsqrt.f32 %v203_v40  ;;  %v195_v57 = vmul.f32 0.015625, %v171_v50  ;;  %v1177_v40 = vmul.f32 %v734_v30, %v1082_v8  ;;  %v365_v50 = vadd.f32 1.0, %v740_v49 }
 0x137   :  { %v188_v60 = vmul.f32 0.015625, %v150_v51  ;;  %v1161_v6 = vpop.eup %743  ;;  %763 = vrsqrt.f32 %v210_v43  ;;  %v255_v7 = vmul.f32 %v1151_v38, %v232_v52  ;;  %v1186_v8 = vmul.f32 %v742_v53, %v1094_v18  ;;  %p801_p4 = pnand %p800_p3, %p794_p0 }
 0x138   :  { %v746_v13 = vpop.eup %745  ;;  %v211_v14 = vadd.f32 1e-05, %v195_v57  ;;  %765 = vrcp.f32 %v371_v46 }
 0x139   :  { %v204_v15 = vadd.f32 1e-05, %v188_v60  ;;  %v748_v16 = vpop.eup %747  ;;  %v153_v31 = vpop.xlane.xlu1 %152  ;;  %v233_v58 = vmul.f32 %v746_v13, %v955_v44  ;;  %v278_v26 = vadd.f32 %v1157_v62, %v255_v7  ;;  %767 = vrcp.f32 %v364_v29 }
 0x13a   :  { %v174_v33 = vpop.xlane.xlu0 %173  ;;  %v1172_v59 = vpop.eup %749  ;;  %769 = vrsqrt.f32 %v211_v14  ;;  %v189_v61 = vmul.f32 0.015625, %v153_v31  ;;  %v240_v24 = vmul.f32 %v748_v16, %v949_v37  ;;  %v1180_v44 = vmul.f32 %v736_v34, %v1088_v12 }
 0x13b   :  { %v196_v41 = vmul.f32 0.015625, %v174_v33  ;;  %v752_v63 = vpop.eup %751  ;;  %771 = vrsqrt.f32 %v204_v15  ;;  %v256_v28 = vmul.f32 %v1151_v38, %v233_v58  ;;  %v422_v57 = vmul.f32 %v406_v2, %v278_v26 }
 0x13c   :  { %v754_v4 = vpop.eup %753  ;;  %v205_v5 = vadd.f32 1e-05, %v189_v61  ;;  %v263_v46 = vmul.f32 %v1151_v38, %v240_v24 }
 0x13d   :  { %v212_v43 = vadd.f32 1e-05, %v196_v41  ;;  %v756_v51 = vpop.eup %755  ;;  %v177_v52 = vpop.xlane.xlu1 %176  ;;  %v279_v37 = vadd.f32 %v1157_v62, %v256_v28  ;;  %v241_v60 = vmul.f32 %v754_v4, %v957_v45 }
 0x13e   :  { %v156_v29 = vpop.xlane.xlu0 %155  ;;  %v1188_v30 = vpop.eup %757  ;;  %v234_v12 = vmul.f32 %v756_v51, %v966_v54  ;;  %773 = vrsqrt.f32 %v205_v5  ;;  %v197_v34 = vmul.f32 0.015625, %v177_v52  ;;  %v286_v2 = vadd.f32 %v1157_v62, %v263_v46 }
 0x13f   :  { %v190_v7 = vmul.f32 0.015625, %v156_v29  ;;  %v1191_v13 = vpop.eup %759  ;;  %775 = vrsqrt.f32 %v212_v43  ;;  %v423_v49 = vmul.f32 %v407_v36, %v279_v37  ;;  %v264_v14 = vmul.f32 %v1151_v38, %v241_v60 }
 0x140   :  { %v762_v15 = vpop.eup %761  ;;  %v213_v45 = vadd.f32 1e-05, %v197_v34  ;;  %v257_v18 = vmul.f32 %v1151_v38, %v234_v12  ;;  %777 = vrcp.f32 %v365_v50  ;;  %v430_v61 = vmul.f32 %v414_v9, %v286_v2 }
 0x141   :  { %v206_v16 = vadd.f32 1e-05, %v190_v7  ;;  %v764_v53 = vpop.eup %763  ;;  %v235_v54 = vmul.f32 %v762_v15, %v968_v55  ;;  %v159_v31 = vpop.xlane.xlu1 %158  ;;  %v438_v58 = vpack.c.bf16 %v423_v49, %v422_v57  ;;  %v287_v26 = vadd.f32 %v1157_v62, %v264_v14 }
 0x142   :  { %v180_v33 = vpop.xlane.xlu0 %179  ;;  %v766_v36 = vpop.eup %765  ;;  %v242_v41 = vmul.f32 %v764_v53, %v977_v0  ;;  %779 = vrsqrt.f32 %v213_v45  ;;  %v191_v24 = vmul.f32 0.015625, %v159_v31  ;;  %v280_v43 = vadd.f32 %v1157_v62, %v257_v18 }
 0x143   :  { %v198_v28 = vmul.f32 0.015625, %v180_v33  ;;  %v1199_v4 = vpop.eup %767  ;;  %781 = vrsqrt.f32 %v206_v16  ;;  %666 = vmatprep.mubr.msk.bf16.mxu0 %vm38_vm0, %v438_v58  ;;  %v431_v5 = vmul.f32 %v415_v19, %v287_v26  ;;  %v258_v55 = vmul.f32 %v1151_v38, %v235_v54 }
 0x144   :  { %v770_v46 = vpop.eup %769  ;;  %v207_v50 = vadd.f32 1e-05, %v191_v24  ;;  %v265_v9 = vmul.f32 %v1151_v38, %v242_v41  ;;  %v372_v0 = vadd.f32 1.0, %v1161_v6  ;;  %v373_v12 = vadd.f32 1.0, %v752_v63 }
 0x145   :  { %v214_v51 = vadd.f32 1e-05, %v198_v28  ;;  %v772_v52 = vpop.eup %771  ;;  %v243_v29 = vmul.f32 %v770_v46, %v980_v1  ;;  %v183_v37 = vpop.xlane.xlu1 %182  ;;  %v442_v57 = vpack.c.bf16 %v431_v5, %v430_v61  ;;  %v281_v60 = vadd.f32 %v1157_v62, %v258_v55 }
 0x146   :  { %v236_v19 = vmul.f32 %v772_v52, %v989_v10  ;;  %783 = vrsqrt.f32 %v207_v50  ;;  %v199_v34 = vmul.f32 0.015625, %v183_v37  ;;  %v424_v7 = vmul.f32 %v1170_v39, %v280_v43 }
 0x147   :  { %785 = vrsqrt.f32 %v214_v51  ;;  %674 = vmatprep.mubr.msk.bf16.mxu1 %vm38_vm0, %v442_v57  ;;  %v425_v49 = vmul.f32 %v1177_v40, %v281_v60  ;;  %v266_v6 = vmul.f32 %v1151_v38, %v243_v29  ;;  %v288_v1 = vadd.f32 %v1157_v62, %v265_v9 }
 0x148   :  { %v774_v14 = vpop.eup %773  ;;  %v215_v2 = vadd.f32 1e-05, %v199_v34  ;;  %v259_v15 = vmul.f32 %v1151_v38, %v236_v19  ;;  %787 = vrcp.f32 %v372_v0  ;;  %v410_v40 = vmul.f32 %v1172_v59, %v1101_v27 }
 0x149   :  { %v776_v63 = vpop.eup %775  ;;  %v237_v10 = vmul.f32 %v774_v14, %v992_v11  ;;  %v439_v45 = vpack.c.bf16 %v425_v49, %v424_v7  ;;  %v289_v39 = vadd.f32 %v1157_v62, %v266_v6  ;;  %789 = vrcp.f32 %v373_v12 }
 0x14a   :  { %v778_v16 = vpop.eup %777  ;;  %v244_v18 = vmul.f32 %v776_v63, %v1001_v23  ;;  %791 = vrsqrt.f32 %v215_v2  ;;  %v411_v53 = vmul.f32 %v1188_v30, %v1106_v32  ;;  %v432_v54 = vmul.f32 %v1180_v44, %v288_v1 }
 0x14b   :  { %667 = vmatmul.mubr.msk.bf16.vlgmr.msra.gmra.mrb[0].mxu0 %vm38_vm0, %v439_v45  ;;  %v433_v11 = vmul.f32 %v1186_v8, %v289_v39  ;;  %v260_v31 = vmul.f32 %v1151_v38, %v237_v10  ;;  %v282_v33 = vadd.f32 %v1157_v62, %v259_v15  ;;  %v418_v44 = vmul.f32 %v1191_v13, %v1112_v20 }
 0x14c   :  { %v780_v58 = vpop.eup %779  ;;  %v267_v23 = vmul.f32 %v1151_v38, %v244_v18  ;;  %v419_v8 = vmul.f32 %v766_v36, %v1118_v42  ;;  %v412_v13 = vmul.f32 %v1199_v4, %v1124_v48  ;;  %v413_v36 = vmul.f32 %v778_v16, %v1131_v56 }
 0x14d   :  { %v782_v26 = vpop.eup %781  ;;  %v245_v61 = vmul.f32 %v780_v58, %v1004_v17  ;;  %v443_v27 = vpack.c.bf16 %v433_v11, %v432_v54  ;;  %v283_v59 = vadd.f32 %v1157_v62, %v260_v31  ;;  %v426_v30 = vmul.f32 %v410_v40, %v282_v33 }
 0x14e   :  { %v238_v32 = vmul.f32 %v782_v26, %v1013_v35  ;;  %v290_v28 = vadd.f32 %v1157_v62, %v267_v23 }
 0x14f   :  { %675 = vmatmul.mubr.msk.bf16.vlgmr.msra.gmra.mrb[0].mxu1 %vm38_vm0, %v443_v27  ;;  %v427_v41 = vmul.f32 %v411_v53, %v283_v59  ;;  %v268_v24 = vmul.f32 %v1151_v38, %v245_v61 }
 0x150   :  { %v784_v5 = vpop.eup %783  ;;  %v261_v17 = vmul.f32 %v1151_v38, %v238_v32  ;;  %v434_v51 = vmul.f32 %v418_v44, %v290_v28 }
 0x151   :  { %v786_v55 = vpop.eup %785  ;;  %v239_v43 = vmul.f32 %v784_v5, %v1016_v21  ;;  %v440_v35 = vpack.c.bf16 %v427_v41, %v426_v30  ;;  %v291_v46 = vadd.f32 %v1157_v62, %v268_v24 }
 0x152   :  { %v788_v20 = vpop.eup %787  ;;  %v246_v42 = vmul.f32 %v786_v55, %v1025_v47  ;;  %v284_v21 = vadd.f32 %v1157_v62, %v261_v17 }
 0x153   :  { %v790_v50 = vpop.eup %789  ;;  %670 = vmatprep.mubr.msk.bf16.mxu0 %vm38_vm0, %v440_v35  ;;  %v435_v9 = vmul.f32 %v419_v8, %v291_v46  ;;  %v262_v0 = vmul.f32 %v1151_v38, %v239_v43  ;;  %v420_v48 = vmul.f32 %v788_v20, %v1136_v3 }
 0x154   :  { %v792_v52 = vpop.eup %791  ;;  %v269_v29 = vmul.f32 %v1151_v38, %v246_v42  ;;  %v421_v56 = vmul.f32 %v790_v50, %v1143_v22  ;;  %v428_v4 = vmul.f32 %v412_v13, %v284_v21 }
 0x155   :  { %v247_v37 = vmul.f32 %v792_v52, %v1028_v25  ;;  %v444_v47 = vpack.c.bf16 %v435_v9, %v434_v51  ;;  %v285_v57 = vadd.f32 %v1157_v62, %v262_v0 }
 0x156   :  { %v292_v19 = vadd.f32 %v1157_v62, %v269_v29 }
 0x157   :  { %678 = vmatprep.mubr.msk.bf16.mxu1 %vm38_vm0, %v444_v47  ;;  %v429_v60 = vmul.f32 %v413_v36, %v285_v57  ;;  %v270_v12 = vmul.f32 %v1151_v38, %v247_v37 }
 0x158   :  { %v436_v25 = vmul.f32 %v420_v48, %v292_v19 }
 0x159   :  { %v441_v34 = vpack.c.bf16 %v429_v60, %v428_v4  ;;  %v293_v7 = vadd.f32 %v1157_v62, %v270_v12 }
 0x15b   :  { %671 = vmatmul.mubr.msk.bf16.gmra.mrb[4].mxu0 %vm38_vm0, %v441_v34  ;;  %v437_v49 = vmul.f32 %v421_v56, %v293_v7 }
 0x15d   :  { %v445_v6 = vpack.c.bf16 %v437_v49, %v436_v25 }
 0x15f   :  { %679 = vmatmul.mubr.msk.bf16.gmra.mrb[4].mxu1 %vm38_vm0, %v445_v6 }
 0x21e   :  { %v668_v3 = vpop.f32.mrb[0].mxu0 }
 0x21f   :  { %602 = vst.msk [vmem:[#allocation2 + $0x10] sm:$0xff] %vm599_vm1, %v668_v3  ;;  %v536_v22 = vpop.f32.mrb[1].mxu0 }
 0x220   :  { %600 = vst.msk [vmem:[#allocation2] sm:$0xff] %vm599_vm1, %v536_v22  ;;  %v669_v38 = vpop.f32.mrb[2].mxu0 }
 0x221   :  { %603 = vst.msk [vmem:[#allocation2 + $0x18] sm:$0xff] %vm599_vm1, %v669_v38  ;;  %v539_v1 = vpop.f32.mrb[3].mxu0 }
 0x222   :  { %601 = vst.msk [vmem:[#allocation2 + $0x8] sm:$0xff] %vm599_vm1, %v539_v1  ;;  %v676_v62 = vpop.f32.mrb[0].mxu1 }
 0x223   :  { %610 = vst.msk [vmem:[#allocation2 + $0x50] sm:$0xff] %vm599_vm1, %v676_v62  ;;  %v568_v14 = vpop.f32.mrb[1].mxu1 }
 0x224   :  { %608 = vst.msk [vmem:[#allocation2 + $0x40] sm:$0xff] %vm599_vm1, %v568_v14  ;;  %v677_v2 = vpop.f32.mrb[2].mxu1 }
 0x225   :  { %611 = vst.msk [vmem:[#allocation2 + $0x58] sm:$0xff] %vm599_vm1, %v677_v2  ;;  %v571_v15 = vpop.f32.mrb[3].mxu1 }
 0x226   :  { %609 = vst.msk [vmem:[#allocation2 + $0x48] sm:$0xff] %vm599_vm1, %v571_v15 }
 0x22e   :  { %v672_v63 = vpop.f32.mrb[4].mxu0 }
 0x22f   :  { %606 = vst.msk [vmem:[#allocation2 + $0x30] sm:$0xff] %vm599_vm1, %v672_v63  ;;  %v552_v10 = vpop.f32.mrb[5].mxu0 }
 0x230   :  { %604 = vst.msk [vmem:[#allocation2 + $0x20] sm:$0xff] %vm599_vm1, %v552_v10  ;;  %v673_v45 = vpop.f32.mrb[6].mxu0 }
 0x231   :  { %607 = vst.msk [vmem:[#allocation2 + $0x38] sm:$0xff] %vm599_vm1, %v673_v45  ;;  %v555_v39 = vpop.f32.mrb[7].mxu0 }
 0x232   :  { %605 = vst.msk [vmem:[#allocation2 + $0x28] sm:$0xff] %vm599_vm1, %v555_v39  ;;  %v680_v16 = vpop.f32.mrb[4].mxu1 }
 0x233   :  { %614 = vst.msk [vmem:[#allocation2 + $0x70] sm:$0xff] %vm599_vm1, %v680_v16  ;;  %v584_v18 = vpop.f32.mrb[5].mxu1 }
 0x234   :  { %612 = vst.msk [vmem:[#allocation2 + $0x60] sm:$0xff] %vm599_vm1, %v584_v18  ;;  %v681_v40 = vpop.f32.mrb[6].mxu1 }
 0x235   :  { %615 = vst.msk [vmem:[#allocation2 + $0x78] sm:$0xff] %vm599_vm1, %v681_v40  ;;  %v587_v53 = vpop.f32.mrb[7].mxu1 }
 0x236   :  { %613 = vst.msk [vmem:[#allocation2 + $0x68] sm:$0xff] %vm599_vm1, %v587_v53 }
 0x237   :  { %804 = shalt.err (!%p801_p4)
}
 0x238   :  { %s805_s17 = scalar_lea.hbm %s1291_s5, 2048 }
 0x239   :  { %p806_p5 = scmp.ne.s32.totalorder %s1291_s5, %s805_s17  ;;  %p809_p6 = scmp.lt.u32.totalorder %s805_s17, %s1291_s5 }
 0x23b   :  { %p811_p7 = pnand %p809_p6, %p806_p5 }
 0x23d   :  { %814 = shalt.err (!%p811_p7)
}
 0x23e   :  { %s818_s22 = smov 128   ;;  %s819_s23 = smov 8  }
 0x23f   :  { %627 = dma.vmem_to_hbm [thread:$0]  %s622_s3, 2048, %s1291_s5, [#allocation3], %s818_s22, %s818_s22, %s819_s23  }
 0x240   :  { %815 = dma.done.wait [#allocation3], 2048  }
 0x241   :  { %816 = vsyncadd [#allocation3], 4294965248 }
 0x242   :  { %631 = vsyncpa [#allocation3], 1 }

// kernel: ss2d_forward.6
= control target key start
LH: loop header
LB: loop body
LE: loop exit
PB: predicated region body
PF: predicated region fallthrough
CT: control target
= control target key end

     0   :  { %s6674_s18 = smov 0   ;;  %s6676_s19 = smov 0   ;;  %s9768_s0 = inlined_call_operand.vmem [shape: bf16[2,2,64,64], index: 0, kind: input, shape index: {}]   ;;  %s9769_s1 = inlined_call_operand.vmem [shape: bf16[2,64,160], index: 1, kind: input, shape index: {}]   ;;  %s9770_s2 = inlined_call_operand.vmem [shape: f32[2,2,64], index: 2, kind: input, shape index: {}]   ;;  %s9771_s3 = inlined_call_operand.vmem [shape: f32[2,2,8,64], index: 3, kind: input, shape index: {}]   ;;  %s9772_s4 = inlined_call_operand.vmem [shape: f32[2,1,64], index: 4, kind: input, shape index: {}]   ;;  %s9773_s5 = inlined_call_operand.vmem [shape: f32[2,2,64,64], index: 5, kind: output, shape index: {}]  }
   0x1   :  { %s6678_s20 = smov 0   ;;  %s6680_s21 = smov 0  }
   0x2   :  { %s6682_s22 = smov 0  }
   0x3 LB: > { %s24_s23 = sadd.s32 1, %s6585_s20  ;;  %s27_s24 = sadd.s32 1, %s6589_s21  ;;  %s6593_s22 = sphi %s6682_s22, %s15_s22   ;;  %s6589_s21 = sphi %s6680_s21, %s10101_s21   ;;  %s6585_s20 = sphi %s6678_s20, %s10100_s20   ;;  %s6581_s19 = sphi %s6676_s19, %s10099_s19   ;;  %s6577_s18 = sphi %s6674_s18, %s10098_s18  }
   0x4   : > { %p25_p0 = scmp.ge.s32.totalorder %s24_s23, 2  ;;  %p5717_p1 = scmp.ge.s32.totalorder %s6593_s22, 1 }
   0x5   : > { %p244_p2 = scmp.lt.s32.totalorder %s6593_s22, 5 }
   0x6   : > { %s10103_s23 = smov (%p25_p0, %s24_s23), 0  ;;  %s10105_s24 = smov (!%p25_p0, %s27_s24), %s6589_s21 }
   0x7   : > { %p245_p3 = pnand %p5717_p1, %p244_p2  ;;  %p29_p4 = scmp.ge.s32.totalorder %s10105_s24, 2 }
   0x9   : > { %s10107_s24 = smov (%p29_p4, %s10105_s24), 0  ;;  %248 = sbr.rel (%p245_p3) target bundleno = 3898 (0xf3a), region = 40 }
  0x10   : > { %p297_p5 = scmp.lt.s32.totalorder %s6581_s19, 1  ;;  %p299_p6 = scmp.lt.s32.totalorder %s6577_s18, 1  ;;  %v6607_v0 = vmov 0   ;;  %v9778_v1 = vmov 65   ;;  %v9780_v2 = vmov 64   ;;  %v589_v3 = vlaneseq }
  0x11   : > { %462 = vmatprep.mubr.bf16.mxu0 %v6607_v0  ;;  %482 = vmatprep.mubr.bf16.mxu1 %v6607_v0  ;;  %vm417_vm0 = vcmask 523264   ;;  %v9784_v52 = vmov 66   ;;  %v9790_v60 = vmov 67  }
  0x12   : > { %s10109_s19 = smov (!%p297_p5, %s6581_s19), 1  ;;  %5938 = vset.pattern.permute.xlu1 %v9778_v1  ;;  %5936 = vset.pattern.permute.xlu0 %v9780_v2  ;;  %s10111_s18 = smov (!%p299_p6, %s6577_s18), 1  ;;  %v6730_v7 = vshrl.u32 %v589_v3, 7  ;;  %v9788_v3 = vmov 68  }
  0x13   : > { %s5787_s25 = sshll.u32 %s10109_s19, 6  ;;  %s5718_s7 = sshll.u32 %s10111_s18, 3 }
  0x14   : > { %s6718_s6 = scalar_lea.vmem %s9769_s1, %s5787_s25  ;;  %s5719_s8 = sshll.u32 %s10109_s19, 4  ;;  %9890 = vst [vmem:[#allocation6_spill] sm:$0xff] %v6730_v7  ;;  %v6757_v15 = vsub.s32 0, %v6730_v7  ;;  %v6776_v24 = vsub.s32 1, %v6730_v7 }
  0x15   : > { %v6008_v4 = vld [vmem:[%s6718_s6 + $0x4] ss:$8 sps:$4 sm:$0xff]   ;;  %s5723_s9 = sshll.u32 %s10109_s19, 1  ;;  %v6010_v5 = vld [vmem:[%s6718_s6] ss:$8 sps:$4 sm:$0xff]   ;;  %s303_s10 = sadd.s32 %s5719_s8, %s5718_s7 }
  0x16   : > { %430 = vmatprep.subr.bf16.mxu0 %v6008_v4  ;;  %5807 = vmatprep.subr.bf16.mxu1 %v6008_v4  ;;  %v6011_v6 = vld [vmem:[%s6718_s6 + $0x14] ss:$8 sps:$4 sm:$0xff]   ;;  %s5720_s11 = sshll.u32 %s303_s10, 2  ;;  %s6728_s14 = scalar_lea.vmem %s9770_s2, %s5723_s9  ;;  %v6013_v8 = vld [vmem:[%s6718_s6 + $0x10] ss:$8 sps:$4 sm:$0xff]   ;;  %9893 = vst [vmem:[#allocation9_spill] sm:$0xff] %v6757_v15 }
  0x17   : > { %431 = vmatpush1.bf16.msra.mxu0 %v6010_v5  ;;  %5811 = vmatpush1.bf16.msra.mxu1 %v6010_v5  ;;  %s6736_s17 = scalar_lea.vmem %s9768_s0, %s5720_s11  ;;  %s5728_s18 = sshll.u32 %s303_s10, 3  ;;  %v6014_v9 = vld [vmem:[%s6718_s6 + $0x24] ss:$8 sps:$4 sm:$0xff]   ;;  %v5747_v12 = vld [vmem:[%s6728_s14 + $0x1] ss:$0 sm:$0xff]  ;;  %9896 = vst [vmem:[#allocation12_spill] sm:$0xff] %v6776_v24 }
  0x18   : > { %432 = vmatprep.subr.bf16.mxu0 %v6011_v6  ;;  %5808 = vmatprep.subr.bf16.mxu1 %v6011_v6  ;;  %s6742_s27 = scalar_lea.vmem %s9773_s5, %s5728_s18  ;;  %v333_v10 = vld [vmem:[%s6736_s17] sm:$0xff]   ;;  %v337_v11 = vld [vmem:[%s6736_s17 + $0x10] sm:$0xff]   ;;  %s6754_s7 = scalar_lea.vmem %s9771_s3, %s5719_s8  ;;  %v335_v17 = vld [vmem:[%s6736_s17 + $0x8] sm:$0xff]  }
  0x19   : > { %v6747_v13 = vunpack.c.l.bf16 %v333_v10  ;;  %v6749_v14 = vunpack.c.h.bf16 %v333_v10  ;;  %v6016_v16 = vld [vmem:[%s6718_s6 + $0x20] ss:$8 sps:$4 sm:$0xff]   ;;  %v6761_v18 = vunpack.c.l.bf16 %v337_v11  ;;  %v6763_v19 = vunpack.c.h.bf16 %v337_v11  ;;  %v6017_v21 = vld [vmem:[%s6718_s6 + $0x34] ss:$8 sps:$4 sm:$0xff]   ;;  %s6610_s8 = smov 80   ;;  %s6619_s9 = smov 48  }
  0x1a   : > { %v6766_v20 = vld [vmem:[%s6754_s7] sm:$0xff]  ;;  %v6778_v25 = vunpack.c.l.bf16 %v335_v17  ;;  %1534 = vrot.lane.b32.xlu1 %v5747_v12, %s6610_s8  ;;  %v6788_v28 = vunpack.c.h.bf16 %v335_v17  ;;  %v6019_v29 = vld [vmem:[%s6718_s6 + $0x30] ss:$8 sps:$4 sm:$0xff]   ;;  %v5746_v34 = vld [vmem:[%s6754_s7 + $0x8] sm:$0xff]  ;;  %s9882_s6 = smov 64   ;;  %s6620_s10 = smov 112  }
  0x1b   : > { %9891 = vst [vmem:[#allocation7_spill] sm:$0xff] %v6747_v13  ;;  %9892 = vst [vmem:[#allocation8_spill] sm:$0xff] %v6749_v14  ;;  %433 = vmatpush1.bf16.msra.mxu0 %v6013_v8  ;;  %5812 = vmatpush1.bf16.msra.mxu1 %v6013_v8  ;;  %v5916_v22 = vpack.i.bf16 %v6749_v14, %v6747_v13  ;;  %v6773_v23 = vrot.slane %v6766_v20, %v6757_v15  ;;  %v339_v30 = vld [vmem:[%s6736_s17 + $0x18] sm:$0xff]   ;;  %v6815_v38 = vld [vmem:[%s6728_s14] ss:$0 sm:$0xff]  ;;  %v9792_v8 = vmov 69  }
  0x1c   : > { %9894 = vst [vmem:[#allocation10_spill] sm:$0xff] %v6761_v18  ;;  %9895 = vst [vmem:[#allocation11_spill] sm:$0xff] %v6763_v19  ;;  %434 = vmatprep.subr.bf16.mxu0 %v6014_v9  ;;  %5809 = vmatprep.subr.bf16.mxu1 %v6014_v9  ;;  %v5926_v26 = vpack.i.bf16 %v6763_v19, %v6761_v18  ;;  %v6786_v27 = vrot.slane %v6766_v20, %v6776_v24  ;;  %v6794_v32 = vunpack.c.l.bf16 %v339_v30  ;;  %s8992_s11 = smov 0  }
  0x1d   : > { %9897 = vst [vmem:[#allocation13_spill] sm:$0xff] %v6778_v25  ;;  %5917 = vrot.lane.b32.xlu0 %v5916_v22, %s6610_s8  ;;  %9898 = vst [vmem:[#allocation14_spill] sm:$0xff] %v6788_v28  ;;  %v5921_v31 = vpack.i.bf16 %v6788_v28, %v6778_v25  ;;  %v6796_v33 = vunpack.c.h.bf16 %v339_v30  ;;  %v1732_v35 = vrot.slane %v5746_v34, %v6757_v15 }
  0x1e   : > { %9899 = vst [vmem:[#allocation15_spill] sm:$0xff] %v6794_v32  ;;  %v1989_v37 = vrot.slane %v5746_v34, %v6776_v24 }
  0x1f   : > { %435 = vmatpush1.bf16.msra.mxu0 %v6016_v16  ;;  %5813 = vmatpush1.bf16.msra.mxu1 %v6016_v16  ;;  %9900 = vst [vmem:[#allocation16_spill] sm:$0xff] %v6796_v33  ;;  %v5931_v36 = vpack.i.bf16 %v6796_v33, %v6794_v32  ;;  %v9940_v33 = vmov 16  }
  0x20   : > { %436 = vmatprep.subr.bf16.mxu0 %v6017_v21  ;;  %5810 = vmatprep.subr.bf16.mxu1 %v6017_v21 }
  0x21   : > { %5927 = vrot.lane.b32.xlu0 %v5926_v26, %s6610_s8  ;;  %5922 = vrot.lane.b32.xlu1 %v5921_v31, %s6610_s8  ;;  %v9782_v31 = vmov 71  }
  0x23   : > { %437 = vmatpush1.bf16.msra.mxu0 %v6019_v29  ;;  %5814 = vmatpush1.bf16.msra.mxu1 %v6019_v29 }
  0x25   : > { %1734 = vrot.lane.b32.xlu0 %v1732_v35, %s6610_s8  ;;  %5932 = vrot.lane.b32.xlu1 %v5931_v36, %s6610_s8 }
  0x26   : > { %5741 = vmatmul.mubr.msk.bf16.vlgmr.msra.gmra.mrb[0].mxu0 %vm417_vm0, %v333_v10  ;;  %5743 = vmatmul.mubr.msk.bf16.vlgmr.msra.gmra.mrb[0].mxu1 %vm417_vm0, %v337_v11 }
  0x27   : > { %472 = vmatprep.mubr.bf16.mxu0 %v6607_v0  ;;  %492 = vmatprep.mubr.bf16.mxu1 %v6607_v0 }
  0x29   : > { %1991 = vrot.lane.b32.xlu0 %v1989_v37, %s6610_s8  ;;  %v9775_v37 = vmov 16  }
  0x2e   : > { %5742 = vmatmul.mubr.msk.bf16.gmra.mrb[4].mxu0 %vm417_vm0, %v335_v17  ;;  %5744 = vmatmul.mubr.msk.bf16.gmra.mrb[4].mxu1 %vm417_vm0, %v339_v30  ;;  %v9786_v17 = vmov 70  }
  0xf9   : > { %v6817_v39 = vpop.f32.mrb[0].mxu0  ;;  %v6819_v40 = vpop.f32.mrb[0].mxu1 }
  0xfa   : > { %9901 = vst [vmem:[#allocation17_spill] sm:$0xff] %v6817_v39  ;;  %9902 = vst [vmem:[#allocation18_spill] sm:$0xff] %v6819_v40  ;;  %v6823_v41 = vadd.f32 %v6815_v38, %v6817_v39  ;;  %v6827_v42 = vadd.f32 %v6815_v38, %v6819_v40  ;;  %v6829_v43 = vpop.f32.mrb[1].mxu1  ;;  %767 = vperm.xlu1 %5938, %v6819_v40   ;;  %v6832_v44 = vpop.f32.mrb[1].mxu0  ;;  %627 = vperm.xlu0 %5936, %v6817_v39  }
  0xfb   : > { %9903 = vst [vmem:[#allocation19_spill] sm:$0xff] %v6829_v43  ;;  %9904 = vst [vmem:[#allocation20_spill] sm:$0xff] %v6832_v44  ;;  %v6835_v45 = vpop.f32.mrb[2].mxu0  ;;  %v6837_v46 = vpop.f32.mrb[2].mxu1 }
  0xfc   : > { %9905 = vst [vmem:[#allocation21_spill] sm:$0xff] %v6835_v45  ;;  %9906 = vst [vmem:[#allocation22_spill] sm:$0xff] %v6837_v46  ;;  %v517_v47 = vmin.f32 %v6823_v41, 20.0  ;;  %v521_v48 = vmin.f32 %v6827_v42, 20.0  ;;  %v6841_v49 = vpop.f32.mrb[3].mxu0  ;;  %v6843_v50 = vpop.f32.mrb[3].mxu1  ;;  %v6847_v51 = vadd.f32 %v6815_v38, %v6835_v45  ;;  %v6854_v55 = vadd.f32 %v6815_v38, %v6837_v46 }
  0xfd   : > { %9907 = vst [vmem:[#allocation23_spill] sm:$0xff] %v6841_v49  ;;  %9908 = vst [vmem:[#allocation24_spill] sm:$0xff] %v6843_v50  ;;  %vm565_vm1 = vcmp.gt.f32.partialorder %v6823_v41, 20.0  ;;  %vm569_vm2 = vcmp.gt.f32.partialorder %v6827_v42, 20.0 }
  0xfe   : > { %5939 = vset.pattern.permute.xlu1 %v9784_v52  ;;  %v525_v53 = vmul.f32 1.442695, %v517_v47  ;;  %647 = vperm.xlu0 %5936, %v6819_v40   ;;  %v533_v54 = vmul.f32 1.442695, %v521_v48  ;;  %v518_v16 = vmin.f32 %v6847_v51, 20.0  ;;  %v522_v21 = vmin.f32 %v6854_v55, 20.0 }
  0xff   : > { %867 = vperm.xlu1 %5939, %v6817_v39   ;;  %v6919_v48 = vsub.s32 3, %v6730_v7  ;;  %vm566_vm4 = vcmp.gt.f32.partialorder %v6847_v51, 20.0  ;;  %vm570_vm5 = vcmp.gt.f32.partialorder %v6854_v55, 20.0 }
 0x100   : > { %6028 = vpow2.f32 %v525_v53  ;;  %v527_v29 = vmul.f32 1.442695, %v518_v16  ;;  %v535_v30 = vmul.f32 1.442695, %v522_v21 }
 0x101   : > { %v6856_v56 = vpop.f32.mrb[4].mxu0  ;;  %v6858_v57 = vpop.f32.mrb[4].mxu1  ;;  %6030 = vpow2.f32 %v533_v54  ;;  %9917 = vst [vmem:[#allocation33_spill] sm:$0xff] %v6919_v48  ;;  %v6928_v16 = vrot.slane %v6766_v20, %v6919_v48 }
 0x102   : > { %9909 = vst [vmem:[#allocation25_spill] sm:$0xff] %v6856_v56  ;;  %9910 = vst [vmem:[#allocation26_spill] sm:$0xff] %v6858_v57  ;;  %v6860_v58 = vpop.f32.mrb[5].mxu0  ;;  %v6862_v59 = vpop.f32.mrb[5].mxu1  ;;  %5937 = vset.pattern.permute.xlu0 %v9778_v1  ;;  %v6880_v4 = vadd.f32 %v6815_v38, %v6856_v56  ;;  %v6894_v10 = vadd.f32 %v6815_v38, %v6858_v57 }
 0x103   : > { %9911 = vst [vmem:[#allocation27_spill] sm:$0xff] %v6860_v58  ;;  %9912 = vst [vmem:[#allocation28_spill] sm:$0xff] %v6862_v59  ;;  %5942 = vset.pattern.permute.xlu1 %v9790_v60  ;;  %v6866_v61 = vpop.f32.mrb[6].mxu0  ;;  %v6868_v62 = vpop.f32.mrb[6].mxu1  ;;  %751 = vperm.xlu0 %5937, %v6817_v39  }
 0x104   : > { %9913 = vst [vmem:[#allocation29_spill] sm:$0xff] %v6866_v61  ;;  %9914 = vst [vmem:[#allocation30_spill] sm:$0xff] %v6868_v62  ;;  %999 = vperm.xlu1 %5942, %v6819_v40   ;;  %v6872_v63 = vpop.f32.mrb[7].mxu0  ;;  %v6874_v0 = vpop.f32.mrb[7].mxu1  ;;  %v6886_v5 = vadd.f32 %v6815_v38, %v6866_v61  ;;  %v519_v22 = vmin.f32 %v6880_v4, 20.0  ;;  %v6905_v26 = vadd.f32 %v6815_v38, %v6868_v62  ;;  %v523_v34 = vmin.f32 %v6894_v10, 20.0 }
 0x105   : > { %9915 = vst [vmem:[#allocation31_spill] sm:$0xff] %v6872_v63  ;;  %9916 = vst [vmem:[#allocation32_spill] sm:$0xff] %v6874_v0  ;;  %vm567_vm3 = vcmp.gt.f32.partialorder %v6880_v4, 20.0  ;;  %vm571_vm6 = vcmp.gt.f32.partialorder %v6894_v10, 20.0 }
 0x106   : > { %v529_v35 = vmul.f32 1.442695, %v519_v22  ;;  %v537_v36 = vmul.f32 1.442695, %v523_v34  ;;  %vm568_vm7 = vcmp.gt.f32.partialorder %v6886_v5, 20.0  ;;  %vm572_vm8 = vcmp.gt.f32.partialorder %v6905_v26, 20.0 }
 0x107   : > { %5940 = vset.pattern.permute.xlu0 %v9784_v52 }
 0x108   : > { %5943 = vset.pattern.permute.xlu1 %v9788_v3  ;;  %883 = vperm.xlu0 %5940, %v6819_v40  }
 0x109   : > { %1099 = vperm.xlu1 %5943, %v6817_v39  }
 0x10a   : > { %v6029_v6 = vpop.eup %6028 }
 0x10b   : > { %v6031_v9 = vpop.eup %6030  ;;  %v541_v11 = vadd.f32 1.0, %v6029_v6 }
 0x10c   : > { %5941 = vset.pattern.permute.xlu0 %v9790_v60  ;;  %v545_v12 = vadd.f32 1.0, %v6031_v9 }
 0x10d   : > { %5946 = vset.pattern.permute.xlu1 %v9792_v8  ;;  %983 = vperm.xlu0 %5941, %v6817_v39   ;;  %6032 = vlog2.f32 %v541_v11  ;;  %v9774_v11 = vsub.s32 5, %v6730_v7 }
 0x10e   : > { %1231 = vperm.xlu1 %5946, %v6819_v40   ;;  %6034 = vlog2.f32 %v545_v12 }
 0x10f   : > { %6036 = vpow2.f32 %v527_v29  ;;  %v520_v29 = vmin.f32 %v6886_v5, 20.0 }
 0x110   : > { %6038 = vpow2.f32 %v535_v30  ;;  %v9777_v30 = vsub.s32 7, %v6730_v7 }
 0x111   : > { %5944 = vset.pattern.permute.xlu0 %v9788_v3  ;;  %6040 = vpow2.f32 %v529_v35  ;;  %v524_v35 = vmin.f32 %v6905_v26, 20.0 }
 0x112   : > { %5947 = vset.pattern.permute.xlu1 %v9786_v17  ;;  %1115 = vperm.xlu0 %5944, %v6819_v40   ;;  %6042 = vpow2.f32 %v537_v36 }
 0x113   : > { %1331 = vperm.xlu1 %5947, %v6817_v39  }
 0x116   : > { %5945 = vset.pattern.permute.xlu0 %v9792_v8 }
 0x117   : > { %5950 = vset.pattern.permute.xlu1 %v9782_v31  ;;  %1215 = vperm.xlu0 %5945, %v6817_v39   ;;  %v6033_v38 = vpop.eup %6032 }
 0x118   : > { %1463 = vperm.xlu1 %5950, %v6819_v40   ;;  %v6035_v47 = vpop.eup %6034  ;;  %v550_v53 = vmul.f32 0.6931472, %v6033_v38 }
 0x119   : > { %v558_v54 = vmul.f32 0.6931472, %v6035_v47  ;;  %v6037_v6 = vpop.eup %6036 }
 0x11a   : > { %v6039_v9 = vpop.eup %6038  ;;  %v6931_v21 = vsel %vm565_vm1, %v6823_v41, %v550_v53  ;;  %v542_v34 = vadd.f32 1.0, %v6037_v6 }
 0x11b   : > { %5948 = vset.pattern.permute.xlu0 %v9786_v17  ;;  %v6041_v12 = vpop.eup %6040  ;;  %v6934_v22 = vsel %vm569_vm2, %v6827_v42, %v558_v54  ;;  %v546_v41 = vadd.f32 1.0, %v6039_v9  ;;  %v6946_v42 = vrot.slane %v6766_v20, %v9774_v11  ;;  %v6950_v47 = vmul.f32 %v6786_v27, %v6931_v21 }
 0x11c   : > { %5951 = vset.pattern.permute.xlu1 %v9775_v37  ;;  %1347 = vperm.xlu0 %5948, %v6819_v40   ;;  %v6043_v36 = vpop.eup %6042  ;;  %v543_v38 = vadd.f32 1.0, %v6041_v12  ;;  %v6954_v53 = vmul.f32 %v6786_v27, %v6934_v22  ;;  %v531_v54 = vmul.f32 1.442695, %v520_v29  ;;  %v6958_v6 = vmul.f32 %v6928_v16, %v6931_v21 }
 0x11d   : > { %1860 = vperm.xlu1 %5951, %v6832_v44   ;;  %v6962_v9 = vmul.f32 %v6928_v16, %v6934_v22  ;;  %v6967_v12 = vrot.slane %v6766_v20, %v9777_v30  ;;  %6044 = vlog2.f32 %v542_v34  ;;  %v539_v11 = vmul.f32 1.442695, %v524_v35 }
 0x11e   : > { %6046 = vlog2.f32 %v546_v41  ;;  %v547_v29 = vadd.f32 1.0, %v6043_v36  ;;  %v6979_v34 = vmul.f32 %v6946_v42, %v6934_v22 }
 0x11f   : > { %6048 = vlog2.f32 %v543_v38  ;;  %v6983_v35 = vmul.f32 %v6967_v12, %v6931_v21  ;;  %v6989_v41 = vmul.f32 %v6967_v12, %v6934_v22 }
 0x120   : > { %5949 = vset.pattern.permute.xlu0 %v9782_v31  ;;  %6050 = vpow2.f32 %v531_v54  ;;  %9919 = vst [vmem:[#allocation35_spill] sm:$0xff] %v6979_v34 }
 0x121   : > { %5954 = vset.pattern.permute.xlu1 %v9780_v2  ;;  %1447 = vperm.xlu0 %5949, %v6817_v39   ;;  %6052 = vpow2.f32 %v539_v11  ;;  %9920 = vst [vmem:[#allocation36_spill] sm:$0xff] %v6983_v35  ;;  %9921 = vst [vmem:[#allocation37_spill] sm:$0xff] %v6989_v41  ;;  %v7229_v41 = vpop.permute.xlu0 %5917 }
 0x122   : > { %652 = vperm.xlu1 %5954, %v6837_v46   ;;  %6054 = vlog2.f32 %v547_v29  ;;  %9963 = vst [vmem:[#allocation69_spill] sm:$0xff] %v7229_v41 }
 0x125   : > { %5952 = vset.pattern.permute.xlu0 %v9775_v37  ;;  %v6975_v37 = vmul.f32 %v6946_v42, %v6931_v21 }
 0x126   : > { %5955 = vset.pattern.permute.xlu1 %v9778_v1  ;;  %1880 = vperm.xlu0 %5952, %v6829_v43  }
 0x127   : > { %755 = vperm.xlu1 %5955, %v6835_v45   ;;  %9918 = vst [vmem:[#allocation34_spill] sm:$0xff] %v6975_v37  ;;  %v6045_v36 = vpop.eup %6044  ;;  %v7268_v37 = vpop.permute.xlu0 %5927 }
 0x128   : > { %v6047_v11 = vpop.eup %6046  ;;  %v552_v30 = vmul.f32 0.6931472, %v6045_v36 }
 0x129   : > { %v6049_v38 = vpop.eup %6048 }
 0x12a   : > { %5953 = vset.pattern.permute.xlu0 %v9780_v2  ;;  %v6051_v54 = vpop.eup %6050  ;;  %v560_v2 = vmul.f32 0.6931472, %v6047_v11  ;;  %v554_v31 = vmul.f32 0.6931472, %v6049_v38 }
 0x12b   : > { %5958 = vset.pattern.permute.xlu1 %v9784_v52  ;;  %632 = vperm.xlu0 %5953, %v6835_v45   ;;  %v6053_v29 = vpop.eup %6052 }
 0x12c   : > { %887 = vperm.xlu1 %5958, %v6837_v46   ;;  %v548_v17 = vadd.f32 1.0, %v6053_v29  ;;  %v7008_v11 = vsel %vm570_vm5, %v6854_v55, %v560_v2  ;;  %v7011_v38 = vsel %vm567_vm3, %v6880_v4, %v554_v31  ;;  %v9930_v4 = vmov 71  }
 0x12d   : > { %9923 = vst [vmem:[#allocation39_spill] sm:$0xff] %v7008_v11  ;;  %v7049_v31 = vmul.f32 %v6928_v16, %v7011_v38  ;;  %v7059_v29 = vmul.f32 %v6946_v42, %v7008_v11  ;;  %v7071_v24 = vmul.f32 %v6946_v42, %v7011_v38  ;;  %v7075_v15 = vmul.f32 %v6967_v12, %v7008_v11 }
 0x12f   : > { %5956 = vset.pattern.permute.xlu0 %v9778_v1  ;;  %v6055_v1 = vpop.eup %6054  ;;  %9933 = vst [vmem:[#allocation46_spill] sm:$0xff] %v7049_v31  ;;  %9935 = vst [vmem:[#allocation48_spill] sm:$0xff] %v7059_v29 }
 0x130   : > { %5959 = vset.pattern.permute.xlu1 %v9790_v60  ;;  %771 = vperm.xlu0 %5956, %v6837_v46   ;;  %v562_v36 = vmul.f32 0.6931472, %v6055_v1  ;;  %9938 = vst [vmem:[#allocation51_spill] sm:$0xff] %v7071_v24  ;;  %9939 = vst [vmem:[#allocation52_spill] sm:$0xff] %v7075_v15  ;;  %v7087_v24 = vmul.f32 %v6967_v12, %v7011_v38 }
 0x131   : > { %987 = vperm.xlu1 %5959, %v6835_v45  }
 0x132   : > { %v7023_v2 = vsel %vm571_vm6, %v6894_v10, %v562_v36  ;;  %9942 = vst [vmem:[#allocation54_spill] sm:$0xff] %v7087_v24 }
 0x133   : > { %v7041_v10 = vmul.f32 %v6786_v27, %v7023_v2  ;;  %v7063_v36 = vmul.f32 %v6928_v16, %v7023_v2  ;;  %v7081_v28 = vmul.f32 %v6946_v42, %v7023_v2  ;;  %v7091_v15 = vmul.f32 %v6967_v12, %v7023_v2 }
 0x134   : > { %5957 = vset.pattern.permute.xlu0 %v9784_v52  ;;  %v544_v52 = vadd.f32 1.0, %v6051_v54  ;;  %v9924_v54 = vmov 68   ;;  %v7222_v63 = vmul.f32 %v6773_v23, %v7023_v2 }
 0x135   : > { %5962 = vset.pattern.permute.xlu1 %v9788_v3  ;;  %871 = vperm.xlu0 %5957, %v6835_v45   ;;  %v7004_v3 = vsel %vm566_vm4, %v6847_v51, %v552_v30  ;;  %v7027_v51 = vmul.f32 %v6786_v27, %v7008_v11  ;;  %9931 = vst [vmem:[#allocation44_spill] sm:$0xff] %v7041_v10  ;;  %9936 = vst [vmem:[#allocation49_spill] sm:$0xff] %v7063_v36 }
 0x136   : > { %1119 = vperm.xlu1 %5962, %v6837_v46   ;;  %9922 = vst [vmem:[#allocation38_spill] sm:$0xff] %v7004_v3  ;;  %6056 = vlog2.f32 %v544_v52  ;;  %v7020_v1 = vmul.f32 %v6786_v27, %v7004_v3  ;;  %v7031_v52 = vmul.f32 %v6786_v27, %v7011_v38  ;;  %v7035_v55 = vmul.f32 %v6928_v16, %v7004_v3 }
 0x137   : > { %6058 = vlog2.f32 %v548_v17  ;;  %9927 = vst [vmem:[#allocation41_spill] sm:$0xff] %v7027_v51  ;;  %v7045_v17 = vmul.f32 %v6928_v16, %v7008_v11  ;;  %v7055_v30 = vmul.f32 %v6946_v42, %v7004_v3  ;;  %9941 = vst [vmem:[#allocation53_spill] sm:$0xff] %v7081_v28  ;;  %v9944_v28 = vmov 64  }
 0x138   : > { %9926 = vst [vmem:[#allocation40_spill] sm:$0xff] %v7020_v1  ;;  %9928 = vst [vmem:[#allocation42_spill] sm:$0xff] %v7031_v52  ;;  %v594_v10 = vmul.f32 %v6773_v23, %v7004_v3 }
 0x139   : > { %5960 = vset.pattern.permute.xlu0 %v9790_v60  ;;  %v9925_v60 = vmov 70   ;;  %9929 = vst [vmem:[#allocation43_spill] sm:$0xff] %v7035_v55  ;;  %9932 = vst [vmem:[#allocation45_spill] sm:$0xff] %v7045_v17  ;;  %v9960_v17 = vmov 67  }
 0x13a   : > { %5963 = vset.pattern.permute.xlu1 %v9792_v8  ;;  %1003 = vperm.xlu0 %5960, %v6837_v46   ;;  %9934 = vst [vmem:[#allocation47_spill] sm:$0xff] %v7055_v30  ;;  %9943 = vst [vmem:[#allocation55_spill] sm:$0xff] %v7091_v15  ;;  %v7106_v15 = vsub.s32 2, %v6730_v7 }
 0x13b   : > { %1219 = vperm.xlu1 %5963, %v6835_v45  }
 0x13c   : > { %9945 = vst [vmem:[#allocation56_spill] sm:$0xff] %v7106_v15  ;;  %v7135_v29 = vrot.slane %v6766_v20, %v7106_v15  ;;  %v597_v15 = vmul.f32 %v6773_v23, %v6934_v22 }
 0x13e   : > { %5961 = vset.pattern.permute.xlu0 %v9924_v54  ;;  %v7202_v52 = vmul.f32 %v7135_v29, %v7004_v3  ;;  %v7218_v0 = vmul.f32 %v7135_v29, %v7008_v11 }
 0x13f   : > { %5966 = vset.pattern.permute.xlu1 %v9925_v60  ;;  %1103 = vperm.xlu0 %5961, %v6835_v45  }
 0x140   : > { %1351 = vperm.xlu1 %5966, %v6837_v46   ;;  %v6057_v48 = vpop.eup %6056 }
 0x141   : > { %v6059_v32 = vpop.eup %6058 }
 0x142   : > { %v564_v25 = vmul.f32 0.6931472, %v6059_v32  ;;  %v9946_v32 = vmov 65  }
 0x143   : > { %5964 = vset.pattern.permute.xlu0 %v9792_v8  ;;  %v7067_v8 = vmul.f32 %v6967_v12, %v7004_v3 }
 0x144   : > { %5967 = vset.pattern.permute.xlu1 %v9930_v4  ;;  %1235 = vperm.xlu0 %5964, %v6837_v46  }
 0x145   : > { %1451 = vperm.xlu1 %5967, %v6835_v45   ;;  %9937 = vst [vmem:[#allocation50_spill] sm:$0xff] %v7067_v8  ;;  %v556_v8 = vmul.f32 0.6931472, %v6057_v48  ;;  %v7103_v48 = vsel %vm572_vm8, %v6905_v26, %v564_v25 }
 0x146   : > { %v7127_v26 = vmul.f32 %v6928_v16, %v7103_v48 }
 0x147   : > { %v7100_v24 = vsel %vm568_vm7, %v6886_v5, %v556_v8  ;;  %v7118_v5 = vmul.f32 %v6786_v27, %v7103_v48  ;;  %v7160_v8 = vmul.f32 %v6967_v12, %v7103_v48 }
 0x148   : > { %5965 = vset.pattern.permute.xlu0 %v9925_v60  ;;  %v7112_v36 = vmul.f32 %v6786_v27, %v7100_v24  ;;  %v7122_v25 = vmul.f32 %v6928_v16, %v7100_v24  ;;  %9950 = vst [vmem:[#allocation60_spill] sm:$0xff] %v7127_v26  ;;  %v7139_v27 = vmul.f32 %v6946_v42, %v7103_v48  ;;  %v7164_v26 = vpop.permute.xlu1 %1534 }
 0x149   : > { %5970 = vset.pattern.permute.xlu1 %v9940_v33  ;;  %1335 = vperm.xlu0 %5965, %v6835_v45   ;;  %9948 = vst [vmem:[#allocation58_spill] sm:$0xff] %v7118_v5  ;;  %v7148_v16 = vmul.f32 %v6967_v12, %v7100_v24  ;;  %9955 = vst [vmem:[#allocation64_spill] sm:$0xff] %v7160_v8  ;;  %v9956_v5 = vsub.s32 6, %v6730_v7  ;;  %v7180_v12 = vadd.f32 %v7164_v26, %v6817_v39 }
 0x14a   : > { %1885 = vperm.xlu1 %5970, %v6843_v50   ;;  %9947 = vst [vmem:[#allocation57_spill] sm:$0xff] %v7112_v36  ;;  %9949 = vst [vmem:[#allocation59_spill] sm:$0xff] %v7122_v25  ;;  %v7131_v36 = vmul.f32 %v6946_v42, %v7100_v24  ;;  %v593_v25 = vmul.f32 %v6773_v23, %v6931_v21  ;;  %v7191_v8 = vadd.f32 %v7164_v26, %v6819_v40 }
 0x14b   : > { %9952 = vst [vmem:[#allocation62_spill] sm:$0xff] %v7139_v27  ;;  %9953 = vst [vmem:[#allocation63_spill] sm:$0xff] %v7148_v16  ;;  %v834_v27 = vmul.f32 %v7135_v29, %v6931_v21  ;;  %v838_v16 = vmul.f32 %v7135_v29, %v6934_v22  ;;  %v7171_v31 = vrot.slane %v6766_v20, %v9956_v5  ;;  %v1553_v55 = vmin.f32 %v7180_v12, 20.0 }
 0x14c   : > { %9951 = vst [vmem:[#allocation61_spill] sm:$0xff] %v7131_v36  ;;  %v9954_v36 = vsub.s32 4, %v6730_v7  ;;  %9958 = vst [vmem:[#allocation65_spill] sm:$0xff] %v7180_v12  ;;  %v7197_v39 = vmul.f32 %v6773_v23, %v7008_v11  ;;  %v7207_v51 = vadd.f32 %v7164_v26, %v6829_v43  ;;  %v7213_v40 = vmul.f32 %v6773_v23, %v7011_v38 }
 0x14d   : > { %5968 = vset.pattern.permute.xlu0 %v9930_v4  ;;  %v1302_v5 = vmul.f32 %v7171_v31, %v6934_v22  ;;  %9959 = vst [vmem:[#allocation66_spill] sm:$0xff] %v7191_v8  ;;  %v601_v1 = vmul.f32 1.442695, %v593_v25  ;;  %v1561_v43 = vmin.f32 %v7191_v8, 20.0  ;;  %v7227_v14 = vadd.f32 %v7164_v26, %v6832_v44 }
 0x14e   : > { %5971 = vset.pattern.permute.xlu1 %v9944_v28  ;;  %1467 = vperm.xlu0 %5968, %v6837_v46   ;;  %v7155_v42 = vrot.slane %v6766_v20, %v9954_v36  ;;  %v9957_v36 = vmov 66   ;;  %v1298_v20 = vmul.f32 %v7171_v31, %v6931_v21  ;;  %9961 = vst [vmem:[#allocation67_spill] sm:$0xff] %v7207_v51  ;;  %v609_v12 = vmul.f32 1.442695, %v597_v15 }
 0x14f   : > { %637 = vperm.xlu1 %5971, %v6856_v56   ;;  %9962 = vst [vmem:[#allocation68_spill] sm:$0xff] %v7227_v14  ;;  %v7237_v25 = vmul.f32 %v7135_v29, %v7011_v38  ;;  %v1569_v8 = vmul.f32 1.442695, %v1553_v55  ;;  %v1562_v45 = vmin.f32 %v7207_v51, 20.0  ;;  %v7247_v44 = vmul.f32 %v7135_v29, %v7023_v2 }
 0x150   : > { %v1066_v30 = vmul.f32 %v7155_v42, %v6931_v21  ;;  %v1070_v7 = vmul.f32 %v7155_v42, %v6934_v22  ;;  %v7233_v19 = vmul.f32 %v7155_v42, %v7004_v3  ;;  %v7241_v46 = vmul.f32 %v7155_v42, %v7008_v11 }
 0x151   : > { %6060 = vpow2.f32 %v601_v1  ;;  %v842_v41 = vmul.f32 1.442695, %v834_v27  ;;  %v7252_v15 = vmul.f32 %v7171_v31, %v7004_v3  ;;  %v7256_v35 = vmul.f32 %v7155_v42, %v7011_v38 }
 0x152   : > { %5969 = vset.pattern.permute.xlu0 %v9940_v33  ;;  %v1585_v55 = vmul.f32 1.442695, %v1561_v43  ;;  %v1554_v51 = vmin.f32 %v7227_v14, 20.0  ;;  %v7262_v34 = vmul.f32 %v7171_v31, %v7008_v11  ;;  %v7266_v1 = vmul.f32 %v7155_v42, %v7023_v2 }
 0x153   : > { %5973 = vset.pattern.permute.xlu1 %v9946_v32  ;;  %1865 = vperm.xlu0 %5969, %v6841_v49   ;;  %6062 = vpow2.f32 %v609_v12  ;;  %v850_v27 = vmul.f32 1.442695, %v838_v16  ;;  %v1587_v3 = vmul.f32 1.442695, %v1562_v45  ;;  %v7273_v43 = vmul.f32 %v7171_v31, %v7011_v38 }
 0x154   : > { %759 = vperm.xlu1 %5973, %v6856_v56   ;;  %6064 = vpow2.f32 %v1569_v8  ;;  %v1074_v11 = vmul.f32 1.442695, %v1066_v30  ;;  %v7278_v14 = vmul.f32 %v7171_v31, %v7023_v2  ;;  %v1571_v16 = vmul.f32 1.442695, %v1554_v51 }
 0x155   : > { %6066 = vpow2.f32 %v842_v41  ;;  %v1082_v45 = vmul.f32 1.442695, %v1070_v7  ;;  %v1306_v8 = vmul.f32 1.442695, %v1298_v20  ;;  %v7284_v12 = vmul.f32 %v6773_v23, %v7100_v24  ;;  %v7295_v7 = vpop.permute.xlu0 %1734 }
 0x156   : > { %6068 = vpow2.f32 %v1585_v55  ;;  %v9964_v41 = vmov 69   ;;  %v1314_v30 = vmul.f32 1.442695, %v1302_v5  ;;  %v7289_v55 = vmul.f32 %v6773_v23, %v7103_v48  ;;  %v7302_v5 = vpop.permute.xlu1 %5922 }
 0x157   : > { %5972 = vset.pattern.permute.xlu0 %v9944_v28  ;;  %6070 = vpow2.f32 %v850_v27  ;;  %v7293_v51 = vmul.f32 %v7135_v29, %v7100_v24  ;;  %v7300_v20 = vmul.f32 %v7135_v29, %v7103_v48  ;;  %v611_v23 = vmul.f32 1.442695, %v7197_v39 }
 0x158   : > { %775 = vperm.xlu1 %5973, %v6858_v57   ;;  %657 = vperm.xlu0 %5972, %v6858_v57   ;;  %6072 = vpow2.f32 %v1587_v3  ;;  %v603_v3 = vmul.f32 1.442695, %v594_v10  ;;  %v7308_v27 = vmul.f32 %v7155_v42, %v7100_v24  ;;  %v844_v10 = vmul.f32 1.442695, %v7202_v52 }
 0x159   : > { %6074 = vpow2.f32 %v1074_v11  ;;  %v7325_v52 = vmul.f32 %v7171_v31, %v7100_v24 }
 0x15a   : > { %6076 = vpow2.f32 %v1571_v16  ;;  %v605_v16 = vmul.f32 1.442695, %v7213_v40  ;;  %v613_v40 = vmul.f32 1.442695, %v7222_v63 }
 0x15b   : > { %v6061_v11 = vpop.eup %6060  ;;  %6078 = vpow2.f32 %v1082_v45  ;;  %v852_v45 = vmul.f32 1.442695, %v7218_v0  ;;  %v7340_v0 = vpop.permute.xlu0 %1991 }
 0x15c   : > { %5974 = vset.pattern.permute.xlu1 %v9957_v36  ;;  %5975 = vset.pattern.permute.xlu0 %v9957_v36  ;;  %617 = vst.msk [vmem:[#allocation2] sm:$0xff] %vm417_vm0, %v6061_v11  ;;  %6080 = vpow2.f32 %v1306_v8 }
 0x15d   : > { %875 = vperm.xlu1 %5974, %v6856_v56   ;;  %891 = vperm.xlu0 %5975, %v6858_v57   ;;  %v6063_v29 = vpop.eup %6062  ;;  %6082 = vpow2.f32 %v1314_v30  ;;  %v7327_v30 = vpop.permute.xlu1 %5932 }
 0x15e   : > { %v7318_v39 = vpop.eup %6064  ;;  %621 = vst.msk [vmem:[#allocation2 + $0x80] sm:$0xff] %vm417_vm0, %v6063_v29  ;;  %6084 = vpow2.f32 %v603_v3  ;;  %9965 = vst [vmem:[#allocation70_spill] sm:$0xff] %v7327_v30  ;;  %v7338_v3 = vadd.f32 %v7164_v26, %v6841_v49  ;;  %v7350_v30 = vadd.f32 %v7164_v26, %v6843_v50 }
 0x15f   : > { %v6067_v8 = vpop.eup %6066  ;;  %6086 = vpow2.f32 %v611_v23  ;;  %v1076_v23 = vmul.f32 1.442695, %v7233_v19  ;;  %v7360_v19 = vmul.f32 %v6931_v21, %v6747_v13  ;;  %v1078_v21 = vmul.f32 1.442695, %v7256_v35 }
 0x160   : > { %v7334_v11 = vpop.eup %6068  ;;  %858 = vst.msk [vmem:[#allocation2 + $0x8] sm:$0xff] %vm417_vm0, %v6067_v8  ;;  %6088 = vpow2.f32 %v844_v10  ;;  %v1084_v8 = vmul.f32 1.442695, %v7241_v46  ;;  %v1556_v50 = vmin.f32 %v7338_v3, 20.0  ;;  %v1308_v46 = vmul.f32 1.442695, %v7252_v15 }
 0x161   : > { %5976 = vset.pattern.permute.xlu1 %v9960_v17  ;;  %5978 = vset.pattern.permute.xlu0 %v9924_v54  ;;  %v6071_v63 = vpop.eup %6070  ;;  %6090 = vpow2.f32 %v605_v16  ;;  %v7375_v15 = vmul.f32 %v6934_v22, %v6761_v18  ;;  %v1086_v35 = vmul.f32 1.442695, %v7266_v1  ;;  %v1310_v1 = vmul.f32 1.442695, %v7273_v43 }
 0x162   : > { %991 = vperm.xlu1 %5976, %v6856_v56   ;;  %1123 = vperm.xlu0 %5978, %v6858_v57   ;;  %v7346_v29 = vpop.eup %6072  ;;  %862 = vst.msk [vmem:[#allocation2 + $0x88] sm:$0xff] %vm417_vm0, %v6071_v63  ;;  %6092 = vpow2.f32 %v852_v45  ;;  %vm1652_vm13 = vcmp.gt.f32.partialorder %v7338_v3, 20.0  ;;  %vm1660_vm14 = vcmp.gt.f32.partialorder %v7350_v30, 20.0 }
 0x163   : > { %v6075_v10 = vpop.eup %6074  ;;  %6094 = vpow2.f32 %v613_v40  ;;  %v1564_v40 = vmin.f32 %v7350_v30, 20.0 }
 0x164   : > { %v6077_v16 = vpop.eup %6076  ;;  %1090 = vst.msk [vmem:[#allocation2 + $0x10] sm:$0xff] %vm417_vm0, %v6075_v10  ;;  %6096 = vpow2.f32 %v1076_v23 }
 0x165   : > { %v6079_v63 = vpop.eup %6078 }
 0x166   : > { %1007 = vperm.xlu1 %5976, %v6858_v57   ;;  %5981 = vset.pattern.permute.xlu0 %v9925_v60  ;;  %1094 = vst.msk [vmem:[#allocation2 + $0x90] sm:$0xff] %vm417_vm0, %v6079_v63 }
 0x167   : > { %1355 = vperm.xlu0 %5981, %v6858_v57  }
 0x16a   : > { %5977 = vset.pattern.permute.xlu1 %v9924_v54 }
 0x16b   : > { %1107 = vperm.xlu1 %5977, %v6856_v56   ;;  %5984 = vset.pattern.permute.xlu0 %v9940_v33 }
 0x16c   : > { %1890 = vperm.xlu0 %5984, %v6862_v59  }
 0x16f   : > { %5979 = vset.pattern.permute.xlu1 %v9964_v41 }
 0x170   : > { %1223 = vperm.xlu1 %5979, %v6856_v56   ;;  %5986 = vset.pattern.permute.xlu0 %v9946_v32  ;;  %v7316_v32 = vmul.f32 %v7155_v42, %v7103_v48  ;;  %v7332_v42 = vmul.f32 %v7171_v31, %v7103_v48  ;;  %v846_v31 = vmul.f32 1.442695, %v7237_v25  ;;  %v854_v25 = vmul.f32 1.442695, %v7247_v44  ;;  %v6081_v44 = vpop.eup %6080 }
 0x171   : > { %763 = vperm.xlu0 %5986, %v6866_v61   ;;  %v6083_v10 = vpop.eup %6082  ;;  %1322 = vst.msk [vmem:[#allocation2 + $0x18] sm:$0xff] %vm417_vm0, %v6081_v44 }
 0x172   : > { %6098 = vpow2.f32 %v846_v31  ;;  %v6085_v23 = vpop.eup %6084  ;;  %v1575_v31 = vmul.f32 1.442695, %v1556_v50  ;;  %1326 = vst.msk [vmem:[#allocation2 + $0x98] sm:$0xff] %vm417_vm0, %v6083_v10 }
 0x173   : > { %6100 = vpow2.f32 %v1084_v8  ;;  %v6087_v22 = vpop.eup %6086  ;;  %618 = vst.msk [vmem:[#allocation2 + $0x20] sm:$0xff] %vm417_vm0, %v6085_v23  ;;  %v615_v23 = vmul.f32 1.442695, %v7289_v55 }
 0x174   : > { %1239 = vperm.xlu1 %5979, %v6858_v57   ;;  %6102 = vpow2.f32 %v854_v25  ;;  %v6089_v50 = vpop.eup %6088  ;;  %v1591_v25 = vmul.f32 1.442695, %v1564_v40  ;;  %622 = vst.msk [vmem:[#allocation2 + $0xa0] sm:$0xff] %vm417_vm0, %v6087_v22  ;;  %v1602_v40 = vadd.f32 1.0, %v6077_v16  ;;  %v856_v22 = vmul.f32 1.442695, %v7300_v20 }
 0x175   : > { %779 = vperm.xlu0 %5986, %v6868_v62   ;;  %6104 = vpow2.f32 %v1308_v46  ;;  %v6091_v63 = vpop.eup %6090  ;;  %859 = vst.msk [vmem:[#allocation2 + $0x28] sm:$0xff] %vm417_vm0, %v6089_v50  ;;  %v1318_v46 = vmul.f32 1.442695, %v7278_v14  ;;  %v1080_v50 = vmul.f32 1.442695, %v7308_v27 }
 0x176   : > { %6106 = vpow2.f32 %v1078_v21  ;;  %v6093_v44 = vpop.eup %6092  ;;  %v1601_v21 = vadd.f32 1.0, %v7318_v39  ;;  %619 = vst.msk [vmem:[#allocation2 + $0x40] sm:$0xff] %vm417_vm0, %v6091_v63  ;;  %v693_v39 = vmul.f32 1.442695, %v6950_v47  ;;  %v848_v47 = vmul.f32 1.442695, %v7293_v51 }
 0x177   : > { %v6095_v43 = vpop.eup %6094  ;;  %863 = vst.msk [vmem:[#allocation2 + $0xa8] sm:$0xff] %vm417_vm0, %v6093_v44  ;;  %v1610_v63 = vadd.f32 1.0, %v7346_v29  ;;  %v1088_v20 = vmul.f32 1.442695, %v7316_v32 }
 0x178   : > { %5980 = vset.pattern.permute.xlu1 %v9925_v60  ;;  %v6097_v14 = vpop.eup %6096  ;;  %623 = vst.msk [vmem:[#allocation2 + $0xc0] sm:$0xff] %vm417_vm0, %v6095_v43  ;;  %v1609_v43 = vadd.f32 1.0, %v7334_v11 }
 0x179   : > { %v7355_v49 = vpop.permute.xlu1 %767  ;;  %1339 = vperm.xlu1 %5980, %v6856_v56   ;;  %5988 = vset.pattern.permute.xlu0 %v9960_v17  ;;  %v628_v45 = vpop.permute.xlu0 %627  ;;  %v1316_v17 = vmul.f32 1.442695, %v7262_v34  ;;  %1091 = vst.msk [vmem:[#allocation2 + $0x30] sm:$0xff] %vm417_vm0, %v6097_v14 }
 0x17a   : > { %9966 = vst [vmem:[#allocation71_spill] sm:$0xff] %v7355_v49  ;;  %v665_v49 = vmul.f32 %v628_v45, %v7360_v19  ;;  %995 = vperm.xlu0 %5988, %v6866_v61  }
 0x17b   : > { %6108 = vpow2.f32 %v1316_v17 }
 0x17c   : > { %673 = vst.msk [vmem:[#allocation3] sm:$0xff] %vm417_vm0, %v665_v49  ;;  %6110 = vpow2.f32 %v1086_v35  ;;  %v6099_v35 = vpop.eup %6098 }
 0x17d   : > { %5982 = vset.pattern.permute.xlu1 %v9930_v4  ;;  %v648_v45 = vpop.permute.xlu0 %647  ;;  %6112 = vpow2.f32 %v1575_v31  ;;  %v6101_v16 = vpop.eup %6100  ;;  %860 = vst.msk [vmem:[#allocation2 + $0x48] sm:$0xff] %vm417_vm0, %v6099_v35 }
 0x17e   : > { %v868_v8 = vpop.permute.xlu1 %867  ;;  %1455 = vperm.xlu1 %5982, %v6856_v56   ;;  %v669_v34 = vmul.f32 %v648_v45, %v7375_v15  ;;  %1011 = vperm.xlu0 %5988, %v6868_v62   ;;  %6114 = vpow2.f32 %v1310_v1  ;;  %v6103_v31 = vpop.eup %6102  ;;  %1095 = vst.msk [vmem:[#allocation2 + $0xb0] sm:$0xff] %vm417_vm0, %v6101_v16  ;;  %v701_v1 = vmul.f32 1.442695, %v6954_v53 }
 0x17f   : > { %v898_v49 = vmul.f32 %v868_v8, %v7360_v19  ;;  %6116 = vpow2.f32 %v1591_v25  ;;  %v6105_v45 = vpop.eup %6104  ;;  %864 = vst.msk [vmem:[#allocation2 + $0xc8] sm:$0xff] %vm417_vm0, %v6103_v31 }
 0x180   : > { %677 = vst.msk [vmem:[#allocation3 + $0x80] sm:$0xff] %vm417_vm0, %v669_v34  ;;  %6118 = vpow2.f32 %v1318_v46  ;;  %v6107_v34 = vpop.eup %6106  ;;  %1323 = vst.msk [vmem:[#allocation2 + $0x38] sm:$0xff] %vm417_vm0, %v6105_v45 }
 0x181   : > { %906 = vst.msk [vmem:[#allocation3 + $0x8] sm:$0xff] %vm417_vm0, %v898_v49  ;;  %6120 = vlog2.f32 %v1601_v21  ;;  %1092 = vst.msk [vmem:[#allocation2 + $0x50] sm:$0xff] %vm417_vm0, %v6107_v34 }
 0x182   : > { %1471 = vperm.xlu1 %5982, %v6858_v57   ;;  %5990 = vset.pattern.permute.xlu0 %v9964_v41  ;;  %v7397_v17 = vpop.permute.xlu0 %751  ;;  %v607_v41 = vmul.f32 1.442695, %v7284_v12  ;;  %6122 = vlog2.f32 %v1602_v40  ;;  %v1320_v40 = vmul.f32 1.442695, %v7332_v42 }
 0x183   : > { %v7399_v10 = vpop.permute.xlu1 %999  ;;  %1227 = vperm.xlu0 %5990, %v6866_v61   ;;  %6124 = vpow2.f32 %v693_v39 }
 0x184   : > { %6126 = vpow2.f32 %v607_v41 }
 0x185   : > { %v6109_v51 = vpop.eup %6108  ;;  %6128 = vpow2.f32 %v615_v23 }
 0x186   : > { %5983 = vset.pattern.permute.xlu1 %v9940_v33  ;;  %v6111_v25 = vpop.eup %6110  ;;  %1327 = vst.msk [vmem:[#allocation2 + $0xb8] sm:$0xff] %vm417_vm0, %v6109_v51  ;;  %6130 = vpow2.f32 %v848_v47  ;;  %v9967_v47 = vld [vmem:[#allocation34_spill] sm:$0xff] }
 0x187   : > { %1870 = vperm.xlu1 %5983, %v6860_v58   ;;  %1243 = vperm.xlu0 %5990, %v6868_v62   ;;  %v884_v12 = vpop.permute.xlu0 %883  ;;  %v6113_v53 = vpop.eup %6112  ;;  %1096 = vst.msk [vmem:[#allocation2 + $0xd0] sm:$0xff] %vm417_vm0, %v6111_v25  ;;  %6132 = vpow2.f32 %v856_v22 }
 0x188   : > { %v1100_v8 = vpop.permute.xlu1 %1099  ;;  %v902_v55 = vmul.f32 %v884_v12, %v7375_v15  ;;  %v6115_v27 = vpop.eup %6114  ;;  %6134 = vpow2.f32 %v701_v1  ;;  %v1604_v31 = vadd.f32 1.0, %v6113_v53  ;;  %v9968_v1 = vld [vmem:[#allocation35_spill] sm:$0xff] }
 0x189   : > { %v1130_v49 = vmul.f32 %v1100_v8, %v7360_v19  ;;  %v6117_v44 = vpop.eup %6116  ;;  %1324 = vst.msk [vmem:[#allocation2 + $0x58] sm:$0xff] %vm417_vm0, %v6115_v27  ;;  %6136 = vpow2.f32 %v1080_v50  ;;  %v1166_v51 = vmul.f32 1.442695, %v9968_v1 }
 0x18a   : > { %910 = vst.msk [vmem:[#allocation3 + $0x88] sm:$0xff] %vm417_vm0, %v902_v55  ;;  %v6119_v21 = vpop.eup %6118  ;;  %6138 = vlog2.f32 %v1610_v63  ;;  %v1612_v34 = vadd.f32 1.0, %v6117_v44 }
 0x18b   : > { %1138 = vst.msk [vmem:[#allocation3 + $0x10] sm:$0xff] %vm417_vm0, %v1130_v49  ;;  %5985 = vset.pattern.permute.xlu1 %v9944_v28  ;;  %5992 = vset.pattern.permute.xlu0 %v9930_v4  ;;  %v926_v28 = vmul.f32 1.442695, %v6958_v6  ;;  %v1312_v4 = vmul.f32 1.442695, %v7325_v52  ;;  %v6121_v32 = vpop.eup %6120  ;;  %1328 = vst.msk [vmem:[#allocation2 + $0xd8] sm:$0xff] %vm417_vm0, %v6119_v21  ;;  %6140 = vpow2.f32 %v1088_v20 }
 0x18c   : > { %642 = vperm.xlu1 %5985, %v6866_v61   ;;  %1459 = vperm.xlu0 %5992, %v6866_v61   ;;  %v7432_v29 = vpop.permute.xlu0 %983  ;;  %v6123_v14 = vpop.eup %6122  ;;  %v934_v52 = vmul.f32 1.442695, %v6962_v9  ;;  %v9969_v21 = vld [vmem:[#allocation68_spill] sm:$0xff] }
 0x18d   : > { %v7434_v46 = vpop.permute.xlu1 %1231  ;;  %6142 = vpow2.f32 %v926_v28  ;;  %v6125_v6 = vpop.eup %6124  ;;  %v1620_v25 = vmul.f32 0.6931472, %v6123_v14  ;;  %v1618_v28 = vmul.f32 0.6931472, %v6121_v32  ;;  %vm1650_vm9 = vcmp.gt.f32.partialorder %v9969_v21, 20.0  ;;  %v9971_v14 = vld [vmem:[#allocation21_spill] sm:$0xff] }
 0x18e   : > { %6144 = vpow2.f32 %v1312_v4  ;;  %v6127_v11 = vpop.eup %6126 }
 0x18f   : > { %6146 = vlog2.f32 %v1609_v43  ;;  %v6129_v23 = vpop.eup %6128  ;;  %620 = vst.msk [vmem:[#allocation2 + $0x60] sm:$0xff] %vm417_vm0, %v6127_v11  ;;  %v9970_v43 = vld [vmem:[#allocation36_spill] sm:$0xff]  ;;  %v7480_v32 = vsel %vm1650_vm9, %v9969_v21, %v1620_v25  ;;  %v9973_v11 = vld [vmem:[#allocation65_spill] sm:$0xff] }
 0x190   : > { %662 = vperm.xlu1 %5985, %v6868_v62   ;;  %1475 = vperm.xlu0 %5992, %v6868_v62   ;;  %6148 = vpow2.f32 %v1320_v40  ;;  %v6131_v42 = vpop.eup %6130  ;;  %624 = vst.msk [vmem:[#allocation2 + $0xe0] sm:$0xff] %vm417_vm0, %v6129_v23  ;;  %v1390_v40 = vmul.f32 1.442695, %v9970_v43  ;;  %vm1649_vm10 = vcmp.gt.f32.partialorder %v9973_v11, 20.0 }
 0x191   : > { %v1116_v39 = vpop.permute.xlu0 %1115  ;;  %v6133_v9 = vpop.eup %6132  ;;  %6150 = vpow2.f32 %v934_v52  ;;  %861 = vst.msk [vmem:[#allocation2 + $0x68] sm:$0xff] %vm417_vm0, %v6131_v42  ;;  %v7494_v42 = vsel %vm1649_vm10, %v9973_v11, %v1618_v28  ;;  %v7532_v11 = vadd.f32 %v7164_v26, %v6856_v56  ;;  %vm741_vm10 = vcmask 1048064  }
 0x192   : > { %v1332_v35 = vpop.permute.xlu1 %1331  ;;  %v1134_v41 = vmul.f32 %v1116_v39, %v7375_v15  ;;  %v6135_v45 = vpop.eup %6134  ;;  %865 = vst.msk [vmem:[#allocation2 + $0xe8] sm:$0xff] %vm417_vm0, %v6133_v9  ;;  %6152 = vlog2.f32 %v1604_v31  ;;  %9976 = vst [vmem:[#allocation34_spill] sm:$0xff] %v7494_v42  ;;  %v9977_v9 = vld [vmem:[#allocation67_spill] sm:$0xff] }
 0x193   : > { %v1362_v16 = vmul.f32 %v1332_v35, %v7360_v19  ;;  %v6137_v22 = vpop.eup %6136  ;;  %v9972_v35 = vld [vmem:[#allocation22_spill] sm:$0xff]  ;;  %vm1658_vm11 = vcmp.gt.f32.partialorder %v9977_v9, 20.0  ;;  %vm1653_vm3 = vcmp.gt.f32.partialorder %v7532_v11, 20.0 }
 0x194   : > { %5987 = vset.pattern.permute.xlu1 %v9957_v36  ;;  %1142 = vst.msk [vmem:[#allocation3 + $0x90] sm:$0xff] %vm417_vm0, %v1134_v41  ;;  %717 = vrot.lane.b32.xlu0 %v6125_v6, %s9882_s6  ;;  %v1158_v36 = vmul.f32 1.442695, %v9967_v47  ;;  %v6139_v55 = vpop.eup %6138  ;;  %1093 = vst.msk [vmem:[#allocation2 + $0x70] sm:$0xff] %vm417_vm0, %v6137_v22  ;;  %v7477_v6 = vadd.f32 %v7164_v26, %v9971_v14  ;;  %v7486_v52 = vadd.f32 %v7164_v26, %v9972_v35  ;;  %v9974_v41 = vld [vmem:[#allocation11_spill] sm:$0xff]  ;;  %v9978_v22 = vld [vmem:[#allocation37_spill] sm:$0xff] }
 0x195   : > { %1370 = vst.msk [vmem:[#allocation3 + $0x18] sm:$0xff] %vm417_vm0, %v1362_v16  ;;  %879 = vperm.xlu1 %5987, %v6866_v61   ;;  %v6141_v49 = vpop.eup %6140  ;;  %v1636_v39 = vmul.f32 0.6931472, %v6139_v55  ;;  %v9975_v16 = vld [vmem:[#allocation39_spill] sm:$0xff]  ;;  %v1738_v55 = vmul.f32 %v7295_v7, %v7480_v32 }
 0x196   : > { %v7456_v12 = vpop.permute.xlu0 %1215  ;;  %6154 = vpow2.f32 %v1158_v36  ;;  %1097 = vst.msk [vmem:[#allocation2 + $0xf0] sm:$0xff] %vm417_vm0, %v6141_v49  ;;  %v7491_v23 = vmul.f32 %v9975_v16, %v9974_v41  ;;  %v1555_v1 = vmin.f32 %v7477_v6, 20.0  ;;  %v1563_v25 = vmin.f32 %v7486_v52, 20.0 }
 0x197   : > { %v7458_v8 = vpop.permute.xlu1 %1463  ;;  %v6143_v50 = vpop.eup %6142  ;;  %6156 = vlog2.f32 %v1612_v34  ;;  %v1398_v34 = vmul.f32 1.442695, %v9978_v22  ;;  %v1755_v21 = vmul.f32 1.442695, %v1738_v55  ;;  %v1995_v22 = vmul.f32 %v7340_v0, %v7480_v32 }
 0x198   : > { %725 = vrot.lane.b32.xlu0 %v6135_v45, %s9882_s6  ;;  %v6145_v63 = vpop.eup %6144  ;;  %6158 = vpow2.f32 %v1166_v51  ;;  %v7507_v51 = vsel %vm1658_vm11, %v9977_v9, %v1636_v39  ;;  %v7527_v39 = vadd.f32 %v7164_v26, %v6860_v58  ;;  %v1589_v35 = vmul.f32 1.442695, %v1563_v25  ;;  %v9983_v9 = vld [vmem:[#allocation38_spill] sm:$0xff] }
 0x199   : > { %895 = vperm.xlu1 %5987, %v6868_v62   ;;  %v6147_v27 = vpop.eup %6146  ;;  %1325 = vst.msk [vmem:[#allocation2 + $0x78] sm:$0xff] %vm417_vm0, %v6145_v63  ;;  %6160 = vpow2.f32 %v1390_v40  ;;  %9979 = vst [vmem:[#allocation35_spill] sm:$0xff] %v7507_v51  ;;  %v9980_v63 = vld [vmem:[#allocation66_spill] sm:$0xff]  ;;  %v1746_v43 = vmul.f32 %v7295_v7, %v7507_v51  ;;  %v1573_v40 = vmul.f32 1.442695, %v1555_v1  ;;  %vm1651_vm15 = vcmp.gt.f32.partialorder %v7477_v6, 20.0 }
 0x19a   : > { %v6149_v4 = vpop.eup %6148  ;;  %v1634_v31 = vmul.f32 0.6931472, %v6147_v27  ;;  %vm1657_vm12 = vcmp.gt.f32.partialorder %v9980_v63, 20.0  ;;  %6162 = vpow2.f32 %v1398_v34  ;;  %v1558_v55 = vmin.f32 %v7527_v39, 20.0 }
 0x19b   : > { %v1348_v53 = vpop.permute.xlu0 %1347  ;;  %1329 = vst.msk [vmem:[#allocation2 + $0xf8] sm:$0xff] %vm417_vm0, %v6149_v4  ;;  %6164 = vpow2.f32 %v1755_v21  ;;  %vm1659_vm1 = vcmp.gt.f32.partialorder %v7486_v52, 20.0  ;;  %vm1654_vm2 = vcmp.gt.f32.partialorder %v7527_v39, 20.0  ;;  %vm1833_vm11 = vcmask 392192  }
 0x19c   : > { %v7466_v20 = vpop.permute.xlu1 %1860  ;;  %v1366_v44 = vmul.f32 %v1348_v53, %v7375_v15  ;;  %950 = vrot.lane.b32.xlu0 %v6143_v50, %s9882_s6  ;;  %v1737_v53 = vmul.f32 %v7295_v7, %v7494_v42  ;;  %v7516_v28 = vsel %vm1657_vm12, %v9980_v63, %v1634_v31  ;;  %v9982_v31 = vld [vmem:[#allocation8_spill] sm:$0xff]  ;;  %6166 = vpow2.f32 %v1573_v40 }
 0x19d   : > { %5989 = vset.pattern.permute.xlu1 %v9924_v54  ;;  %v6151_v54 = vpop.eup %6150  ;;  %9981 = vst [vmem:[#allocation68_spill] sm:$0xff] %v7516_v28  ;;  %v1745_v16 = vmul.f32 %v7295_v7, %v7516_v28  ;;  %v1557_v63 = vmin.f32 %v7532_v11, 20.0  ;;  %vm2090_vm12 = vcmask 916480  }
 0x19e   : > { %1111 = vperm.xlu1 %5989, %v6866_v61   ;;  %1374 = vst.msk [vmem:[#allocation3 + $0x98] sm:$0xff] %vm417_vm0, %v1366_v44  ;;  %v6153_v49 = vpop.eup %6152  ;;  %v1753_v41 = vmul.f32 1.442695, %v1737_v53  ;;  %v7556_v53 = vadd.f32 %v7164_v26, %v6858_v57 }
 0x19f   : > { %v1624_v14 = vmul.f32 0.6931472, %v6153_v49  ;;  %v7550_v49 = vadd.f32 %v7164_v26, %v6862_v59  ;;  %v1769_v21 = vmul.f32 1.442695, %v1745_v16 }
 0x1a0   : > { %958 = vrot.lane.b32.xlu0 %v6151_v54, %s9882_s6  ;;  %v7498_v47 = vpop.permute.xlu0 %1447  ;;  %v6155_v50 = vpop.eup %6154  ;;  %6168 = vpow2.f32 %v1753_v41  ;;  %vm1661_vm4 = vcmp.gt.f32.partialorder %v7556_v53, 20.0 }
 0x1a1   : > { %v653_v36 = vpop.permute.xlu1 %652  ;;  %v6157_v27 = vpop.eup %6156  ;;  %v7545_v34 = vsel %vm1652_vm13, %v7338_v3, %v1624_v14  ;;  %v2012_v14 = vmul.f32 1.442695, %v1995_v22  ;;  %v1566_v41 = vmin.f32 %v7550_v49, 20.0  ;;  %vm1662_vm5 = vcmp.gt.f32.partialorder %v7550_v49, 20.0 }
 0x1a2   : > { %v670_v45 = vmul.f32 %v653_v36, %v7491_v23  ;;  %1127 = vperm.xlu1 %5989, %v6868_v62   ;;  %v6159_v54 = vpop.eup %6158  ;;  %v7540_v36 = vmul.f32 %v9983_v9, %v9982_v31  ;;  %9984 = vst [vmem:[#allocation36_spill] sm:$0xff] %v7545_v34  ;;  %v1579_v31 = vmul.f32 1.442695, %v1558_v55  ;;  %v1577_v9 = vmul.f32 1.442695, %v1557_v63 }
 0x1a3   : > { %v6161_v25 = vpop.eup %6160  ;;  %v1595_v55 = vmul.f32 1.442695, %v1566_v41  ;;  %v1997_v41 = vmul.f32 %v7340_v0, %v7545_v34 }
 0x1a4   : > { %678 = vst.msk [vmem:[#allocation3 + $0xa0] sm:$0xff] %vm417_vm0, %v670_v45  ;;  %1182 = vrot.lane.b32.xlu0 %v6155_v50, %s9882_s6  ;;  %v1771_v45 = vmul.f32 1.442695, %v1746_v43  ;;  %v1994_v43 = vmul.f32 %v7340_v0, %v7494_v42  ;;  %v6163_v16 = vpop.eup %6162 }
 0x1a5   : > { %v7518_v44 = vpop.permute.xlu0 %1880  ;;  %v2016_v13 = vmul.f32 1.442695, %v1997_v41 }
 0x1a6   : > { %v7520_v4 = vpop.permute.xlu1 %755  ;;  %5991 = vset.pattern.permute.xlu1 %v9925_v60  ;;  %v1640_v60 = vmul.f32 0.6931472, %v6157_v27  ;;  %6170 = vpow2.f32 %v1771_v45  ;;  %v2010_v45 = vmul.f32 1.442695, %v1994_v43 }
 0x1a7   : > { %1343 = vperm.xlu1 %5991, %v6866_v61   ;;  %6172 = vpow2.f32 %v1589_v35 }
 0x1a8   : > { %1190 = vrot.lane.b32.xlu0 %v6159_v54, %s9882_s6  ;;  %v7565_v40 = vsel %vm1660_vm14, %v7350_v30, %v1640_v60  ;;  %v1740_v54 = vmul.f32 %v7295_v7, %v7545_v34  ;;  %v1565_v30 = vmin.f32 %v7556_v53, 20.0  ;;  %6174 = vpow2.f32 %v1769_v21 }
 0x1a9   : > { %9985 = vst [vmem:[#allocation65_spill] sm:$0xff] %v7565_v40  ;;  %v1748_v35 = vmul.f32 %v7295_v7, %v7565_v40  ;;  %6176 = vpow2.f32 %v2012_v14 }
 0x1aa   : > { %v633_v1 = vpop.permute.xlu0 %632  ;;  %v1759_v22 = vmul.f32 1.442695, %v1740_v54  ;;  %6178 = vpow2.f32 %v1579_v31  ;;  %v1593_v63 = vmul.f32 1.442695, %v1565_v30  ;;  %v9988_v54 = vld [vmem:[#allocation40_spill] sm:$0xff] }
 0x1ab   : > { %v888_v50 = vpop.permute.xlu1 %887  ;;  %1359 = vperm.xlu1 %5991, %v6868_v62   ;;  %v666_v3 = vmul.f32 %v633_v1, %v7540_v36  ;;  %6180 = vpow2.f32 %v1577_v9  ;;  %v1775_v14 = vmul.f32 1.442695, %v1748_v35  ;;  %v695_v31 = vmul.f32 1.442695, %v9988_v54 }
 0x1ac   : > { %v903_v27 = vmul.f32 %v888_v50, %v7491_v23  ;;  %1414 = vrot.lane.b32.xlu0 %v6161_v25, %s9882_s6  ;;  %v9986_v50 = vld [vmem:[#allocation31_spill] sm:$0xff]  ;;  %v6165_v25 = vpop.eup %6164  ;;  %6182 = vpow2.f32 %v2010_v45 }
 0x1ad   : > { %674 = vst.msk [vmem:[#allocation3 + $0x20] sm:$0xff] %vm417_vm0, %v666_v3  ;;  %v9987_v3 = vld [vmem:[#allocation32_spill] sm:$0xff]  ;;  %6184 = vpow2.f32 %v1759_v22 }
 0x1ae   : > { %911 = vst.msk [vmem:[#allocation3 + $0xa8] sm:$0xff] %vm417_vm0, %v903_v27  ;;  %v6167_v27 = vpop.eup %6166  ;;  %6186 = vpow2.f32 %v1595_v55 }
 0x1af   : > { %5993 = vset.pattern.permute.xlu1 %v9940_v33  ;;  %v7574_v60 = vpop.permute.xlu0 %771  ;;  %v7584_v33 = vadd.f32 %v7164_v26, %v9986_v50  ;;  %v6169_v9 = vpop.eup %6168  ;;  %v1603_v35 = vadd.f32 1.0, %v6167_v27  ;;  %6188 = vpow2.f32 %v1593_v63 }
 0x1b0   : > { %v7576_v1 = vpop.permute.xlu1 %987  ;;  %1875 = vperm.xlu1 %5993, %v9986_v50   ;;  %1422 = vrot.lane.b32.xlu0 %v6163_v16, %s9882_s6  ;;  %v6171_v45 = vpop.eup %6170  ;;  %6190 = vpow2.f32 %v695_v31  ;;  %v9990_v31 = vld [vmem:[#allocation43_spill] sm:$0xff] }
 0x1b1   : > { %v1560_v30 = vmin.f32 %v7584_v33, 20.0  ;;  %v6173_v22 = vpop.eup %6172  ;;  %6192 = vpow2.f32 %v1775_v14  ;;  %v9991_v14 = vld [vmem:[#allocation42_spill] sm:$0xff]  ;;  %vm1656_vm6 = vcmp.gt.f32.partialorder %v7584_v33, 20.0 }
 0x1b2   : > { %v6175_v27 = vpop.eup %6174  ;;  %6194 = vlog2.f32 %v1603_v35  ;;  %v697_v41 = vmul.f32 1.442695, %v9991_v14 }
 0x1b3   : > { %v1583_v63 = vmul.f32 1.442695, %v1560_v30  ;;  %v6177_v57 = vpop.eup %6176 }
 0x1b4   : > { %1895 = vperm.xlu1 %5993, %v9987_v3   ;;  %1803 = vrot.lane.b32.xlu0 %v6165_v25, %s6619_s9  ;;  %v872_v21 = vpop.permute.xlu0 %871  ;;  %v7596_v25 = vadd.f32 %v7164_v26, %v9987_v3 }
 0x1b5   : > { %v1120_v43 = vpop.permute.xlu1 %1119  ;;  %v899_v16 = vmul.f32 %v872_v21, %v7540_v36  ;;  %v9989_v21 = vld [vmem:[#allocation41_spill] sm:$0xff] }
 0x1b6   : > { %v1135_v18 = vmul.f32 %v1120_v43, %v7491_v23  ;;  %v703_v43 = vmul.f32 1.442695, %v9989_v21  ;;  %vm1664_vm7 = vcmp.gt.f32.partialorder %v7596_v25, 20.0 }
 0x1b7   : > { %907 = vst.msk [vmem:[#allocation3 + $0x28] sm:$0xff] %vm417_vm0, %v899_v16  ;;  %v1568_v16 = vmin.f32 %v7596_v25, 20.0 }
 0x1b8   : > { %1143 = vst.msk [vmem:[#allocation3 + $0xb0] sm:$0xff] %vm417_vm0, %v1135_v18  ;;  %1801 = vrot.lane.b32.xlu1 %v6169_v9, %s6619_s9  ;;  %1819 = vrot.lane.b32.xlu0 %v6171_v45, %s6619_s9  ;;  %v1611_v18 = vadd.f32 1.0, %v6173_v22  ;;  %v6179_v9 = vpop.eup %6178  ;;  %6196 = vpow2.f32 %v703_v43  ;;  %v928_v45 = vmul.f32 1.442695, %v9990_v31 }
 0x1b9   : > { %v7603_v55 = vpop.permute.xlu0 %1003  ;;  %v6181_v21 = vpop.eup %6180  ;;  %6198 = vpow2.f32 %v2016_v13  ;;  %v1599_v30 = vmul.f32 1.442695, %v1568_v16  ;;  %v1606_v22 = vadd.f32 1.0, %v6179_v9  ;;  %v9992_v13 = vld [vmem:[#allocation45_spill] sm:$0xff] }
 0x1ba   : > { %v7605_v54 = vpop.permute.xlu1 %1219  ;;  %v6183_v56 = vpop.eup %6182  ;;  %6200 = vpow2.f32 %v1583_v63  ;;  %v936_v43 = vmul.f32 1.442695, %v9992_v13  ;;  %v9993_v63 = vld [vmem:[#allocation44_spill] sm:$0xff] }
 0x1bb   : > { %v6185_v35 = vpop.eup %6184  ;;  %6202 = vlog2.f32 %v1611_v18  ;;  %v705_v16 = vmul.f32 1.442695, %v9993_v63 }
 0x1bc   : > { %1817 = vrot.lane.b32.xlu1 %v6175_v27, %s6619_s9  ;;  %2060 = vrot.lane.b32.xlu0 %v6177_v57, %s6620_s10  ;;  %v6187_v57 = vpop.eup %6186  ;;  %6204 = vpow2.f32 %v928_v45  ;;  %v9994_v45 = vld [vmem:[#allocation47_spill] sm:$0xff] }
 0x1bd   : > { %v6189_v31 = vpop.eup %6188  ;;  %6206 = vpow2.f32 %v697_v41  ;;  %v1614_v9 = vadd.f32 1.0, %v6187_v57 }
 0x1be   : > { %v1104_v3 = vpop.permute.xlu0 %1103  ;;  %v6191_v18 = vpop.eup %6190  ;;  %6208 = vpow2.f32 %v1599_v30 }
 0x1bf   : > { %v1352_v50 = vpop.permute.xlu1 %1351  ;;  %v1131_v27 = vmul.f32 %v1104_v3, %v7540_v36  ;;  %v1605_v3 = vadd.f32 1.0, %v6181_v21  ;;  %6210 = vlog2.f32 %v1606_v22  ;;  %v1613_v21 = vadd.f32 1.0, %v6189_v31 }
 0x1c0   : > { %v1367_v58 = vmul.f32 %v1352_v50, %v7491_v23  ;;  %2058 = vrot.lane.b32.xlu1 %v6183_v56, %s6620_s10  ;;  %1807 = vrot.lane.b32.xlu0 %v6185_v35, %s6619_s9  ;;  %v6193_v50 = vpop.eup %6192  ;;  %6212 = vpow2.f32 %v936_v43  ;;  %v9995_v35 = vld [vmem:[#allocation46_spill] sm:$0xff]  ;;  %v9996_v43 = vld [vmem:[#allocation48_spill] sm:$0xff] }
 0x1c1   : > { %1139 = vst.msk [vmem:[#allocation3 + $0x30] sm:$0xff] %vm417_vm0, %v1131_v27  ;;  %v6195_v41 = vpop.eup %6194  ;;  %6214 = vpow2.f32 %v705_v16  ;;  %v930_v27 = vmul.f32 1.442695, %v9995_v35 }
 0x1c2   : > { %1375 = vst.msk [vmem:[#allocation3 + $0xb8] sm:$0xff] %vm417_vm0, %v1367_v58  ;;  %v1160_v58 = vmul.f32 1.442695, %v9994_v45  ;;  %v6197_v30 = vpop.eup %6196  ;;  %6216 = vlog2.f32 %v1605_v3  ;;  %v1622_v16 = vmul.f32 0.6931472, %v6195_v41  ;;  %v9997_v3 = vld [vmem:[#allocation49_spill] sm:$0xff] }
 0x1c3   : > { %v7620_v56 = vpop.permute.xlu0 %1235  ;;  %v6199_v57 = vpop.eup %6198  ;;  %6218 = vlog2.f32 %v1614_v9  ;;  %v938_v31 = vmul.f32 1.442695, %v9997_v3 }
 0x1c4   : > { %v7622_v14 = vpop.permute.xlu1 %1451  ;;  %719 = vrot.lane.b32.xlu1 %v6191_v18, %s9882_s6  ;;  %1823 = vrot.lane.b32.xlu0 %v6193_v50, %s6619_s9  ;;  %v6201_v22 = vpop.eup %6200  ;;  %6220 = vpow2.f32 %v1160_v58  ;;  %v1168_v18 = vmul.f32 1.442695, %v9996_v43  ;;  %v9998_v58 = vld [vmem:[#allocation13_spill] sm:$0xff] }
 0x1c5   : > { %v6203_v50 = vpop.eup %6202  ;;  %6222 = vpow2.f32 %v930_v27  ;;  %v7641_v41 = vmul.f32 %v7011_v38, %v9998_v58  ;;  %v9999_v27 = vld [vmem:[#allocation50_spill] sm:$0xff] }
 0x1c6   : > { %v6205_v35 = vpop.eup %6204  ;;  %6224 = vlog2.f32 %v1613_v21  ;;  %v7645_v21 = vsel %vm1651_vm15, %v7477_v6, %v1622_v16  ;;  %v10001_v6 = vld [vmem:[#allocation52_spill] sm:$0xff] }
 0x1c7   : > { %v6207_v9 = vpop.eup %6206  ;;  %6226 = vpow2.f32 %v1168_v18  ;;  %v1739_v16 = vmul.f32 %v7295_v7, %v7645_v21 }
 0x1c8   : > { %727 = vrot.lane.b32.xlu1 %v6197_v30, %s9882_s6  ;;  %2064 = vrot.lane.b32.xlu0 %v6199_v57, %s6620_s10  ;;  %v1336_v13 = vpop.permute.xlu0 %1335  ;;  %v1608_v30 = vadd.f32 1.0, %v6201_v22  ;;  %v6209_v57 = vpop.eup %6208  ;;  %v1638_v22 = vmul.f32 0.6931472, %v6203_v50  ;;  %6228 = vpow2.f32 %v938_v31  ;;  %v1400_v50 = vmul.f32 1.442695, %v10001_v6 }
 0x1c9   : > { %v7630_v63 = vpop.permute.xlu1 %1885  ;;  %v1363_v45 = vmul.f32 %v1336_v13, %v7540_v36  ;;  %v1392_v13 = vmul.f32 1.442695, %v9999_v27  ;;  %v6211_v43 = vpop.eup %6210  ;;  %v1616_v38 = vadd.f32 1.0, %v6209_v57 }
 0x1ca   : > { %v6213_v40 = vpop.eup %6212  ;;  %6230 = vlog2.f32 %v1608_v30  ;;  %v7659_v58 = vsel %vm1659_vm1, %v7486_v52, %v1638_v22  ;;  %v10002_v30 = vld [vmem:[#allocation53_spill] sm:$0xff]  ;;  %v1628_v27 = vmul.f32 0.6931472, %v6211_v43  ;;  %v1757_v52 = vmul.f32 1.442695, %v1739_v16 }
 0x1cb   : > { %1371 = vst.msk [vmem:[#allocation3 + $0x38] sm:$0xff] %vm417_vm0, %v1363_v45  ;;  %v6215_v34 = vpop.eup %6214  ;;  %6232 = vpow2.f32 %v1392_v13  ;;  %v7673_v43 = vadd.f32 %v7164_v26, %v6866_v61 }
 0x1cc   : > { %952 = vrot.lane.b32.xlu1 %v6205_v35, %s9882_s6  ;;  %721 = vrot.lane.b32.xlu0 %v6207_v9, %s9882_s6  ;;  %v10000_v35 = vld [vmem:[#allocation51_spill] sm:$0xff]  ;;  %v6217_v18 = vpop.eup %6216 }
 0x1cd   : > { %v7647_v45 = vpop.permute.xlu0 %1467  ;;  %v1162_v59 = vmul.f32 1.442695, %v10000_v35  ;;  %v6219_v31 = vpop.eup %6218  ;;  %v1626_v22 = vmul.f32 0.6931472, %v6217_v18  ;;  %v7688_v18 = vadd.f32 %v7164_v26, %v6868_v62  ;;  %vm1655_vm8 = vcmp.gt.f32.partialorder %v7673_v43, 20.0 }
 0x1ce   : > { %v638_v3 = vpop.permute.xlu1 %637  ;;  %v6221_v57 = vpop.eup %6220 }
 0x1cf   : > { %v667_v9 = vmul.f32 %v638_v3, %v7641_v41  ;;  %6234 = vpow2.f32 %v1162_v59  ;;  %v1747_v59 = vmul.f32 %v7295_v7, %v7659_v58  ;;  %v7700_v26 = vsel %vm1653_vm3, %v7532_v11, %v1626_v22 }
 0x1d0   : > { %960 = vrot.lane.b32.xlu1 %v6213_v40, %s9882_s6  ;;  %729 = vrot.lane.b32.xlu0 %v6215_v34, %s9882_s6  ;;  %v1170_v40 = vmul.f32 1.442695, %v10002_v30  ;;  %v6223_v34 = vpop.eup %6222  ;;  %6236 = vlog2.f32 %v1616_v38  ;;  %v7678_v30 = vsel %vm1654_vm2, %v7527_v39, %v1628_v27  ;;  %v1567_v62 = vmin.f32 %v7688_v18, 20.0 }
 0x1d1   : > { %675 = vst.msk [vmem:[#allocation3 + $0x40] sm:$0xff] %vm417_vm0, %v667_v9  ;;  %v6225_v13 = vpop.eup %6224  ;;  %6238 = vpow2.f32 %v1400_v50  ;;  %v10004_v9 = vld [vmem:[#allocation54_spill] sm:$0xff]  ;;  %10005 = vst [vmem:[#allocation67_spill] sm:$0xff] %v7678_v30  ;;  %v10006_v50 = vld [vmem:[#allocation15_spill] sm:$0xff]  ;;  %vm1663_vm9 = vcmp.gt.f32.partialorder %v7688_v18, 20.0 }
 0x1d2   : > { %v7662_v3 = vpop.permute.xlu0 %1865  ;;  %6240 = vpow2.f32 %v1170_v40  ;;  %v1394_v38 = vmul.f32 1.442695, %v10004_v9  ;;  %v6227_v6 = vpop.eup %6226  ;;  %v7682_v16 = vmul.f32 %v7023_v2, %v10006_v50  ;;  %v1642_v40 = vmul.f32 0.6931472, %v6225_v13  ;;  %v10008_v13 = vld [vmem:[#allocation55_spill] sm:$0xff] }
 0x1d3   : > { %v7664_v35 = vpop.permute.xlu1 %759  ;;  %6242 = vpow2.f32 %v1757_v52  ;;  %v1773_v2 = vmul.f32 1.442695, %v1747_v59  ;;  %v1402_v50 = vmul.f32 1.442695, %v10008_v13 }
 0x1d4   : > { %10003 = vst [vmem:[#allocation39_spill] sm:$0xff] %v7664_v35  ;;  %1184 = vrot.lane.b32.xlu1 %v6221_v57, %s9882_s6  ;;  %954 = vrot.lane.b32.xlu0 %v6223_v34, %s9882_s6  ;;  %v1644_v57 = vmul.f32 0.6931472, %v6219_v31  ;;  %v6229_v35 = vpop.eup %6228  ;;  %v1996_v31 = vmul.f32 %v7340_v0, %v7645_v21  ;;  %6244 = vpow2.f32 %v1394_v38  ;;  %v7714_v11 = vsel %vm1661_vm4, %v7556_v53, %v1642_v40 }
 0x1d5   : > { %v6231_v27 = vpop.eup %6230  ;;  %6246 = vpow2.f32 %v1773_v2 }
 0x1d6   : > { %v7707_v52 = vsel %vm1662_vm5, %v7550_v49, %v1644_v57  ;;  %v2014_v49 = vmul.f32 1.442695, %v1996_v31  ;;  %v1741_v57 = vmul.f32 %v7295_v7, %v7700_v26  ;;  %6248 = vpow2.f32 %v1402_v50 }
 0x1d7   : > { %v7684_v34 = vpop.permute.xlu1 %775  ;;  %v658_v9 = vpop.permute.xlu0 %657  ;;  %v1750_v53 = vmul.f32 %v7295_v7, %v7707_v52  ;;  %v1632_v51 = vmul.f32 0.6931472, %v6231_v27  ;;  %v1749_v50 = vmul.f32 %v7295_v7, %v7714_v11 }
 0x1d8   : > { %10007 = vst [vmem:[#allocation37_spill] sm:$0xff] %v7684_v34  ;;  %1192 = vrot.lane.b32.xlu1 %v6227_v6, %s9882_s6  ;;  %v671_v39 = vmul.f32 %v658_v9, %v7682_v16  ;;  %962 = vrot.lane.b32.xlu0 %v6229_v35, %s9882_s6  ;;  %v1742_v6 = vmul.f32 %v7295_v7, %v7678_v30  ;;  %v6233_v9 = vpop.eup %6232  ;;  %v1559_v35 = vmin.f32 %v7673_v43, 20.0  ;;  %6250 = vpow2.f32 %v2014_v49 }
 0x1d9   : > { %v6235_v59 = vpop.eup %6234  ;;  %v1761_v31 = vmul.f32 1.442695, %v1741_v57 }
 0x1da   : > { %679 = vst.msk [vmem:[#allocation3 + $0xc0] sm:$0xff] %vm417_vm0, %v671_v39  ;;  %v6237_v39 = vpop.eup %6236  ;;  %v1763_v34 = vmul.f32 1.442695, %v1742_v6  ;;  %v1597_v6 = vmul.f32 1.442695, %v1567_v62 }
 0x1db   : > { %v6239_v40 = vpop.eup %6238 }
 0x1dc   : > { %v876_v22 = vpop.permute.xlu1 %875  ;;  %1416 = vrot.lane.b32.xlu1 %v6233_v9, %s9882_s6  ;;  %1186 = vrot.lane.b32.xlu0 %v6235_v59, %s9882_s6  ;;  %v892_v13 = vpop.permute.xlu0 %891  ;;  %v1581_v9 = vmul.f32 1.442695, %v1559_v35  ;;  %6252 = vpow2.f32 %v1763_v34  ;;  %v1779_v35 = vmul.f32 1.442695, %v1750_v53  ;;  %v1777_v34 = vmul.f32 1.442695, %v1749_v50 }
 0x1dd   : > { %v900_v38 = vmul.f32 %v876_v22, %v7641_v41  ;;  %v904_v61 = vmul.f32 %v892_v13, %v7682_v16  ;;  %v6241_v59 = vpop.eup %6240  ;;  %v1999_v22 = vmul.f32 %v7340_v0, %v7678_v30  ;;  %v1648_v13 = vmul.f32 0.6931472, %v6237_v39 }
 0x1de   : > { %6254 = vpow2.f32 %v1581_v9 }
 0x1df   : > { %908 = vst.msk [vmem:[#allocation3 + $0x48] sm:$0xff] %vm417_vm0, %v900_v38  ;;  %912 = vst.msk [vmem:[#allocation3 + $0xc8] sm:$0xff] %vm417_vm0, %v904_v61  ;;  %v6243_v38 = vpop.eup %6242  ;;  %v7736_v61 = vsel %vm1656_vm6, %v7584_v33, %v1632_v51  ;;  %6256 = vpow2.f32 %v1761_v31  ;;  %v1998_v51 = vmul.f32 %v7340_v0, %v7700_v26  ;;  %v2020_v33 = vmul.f32 1.442695, %v1999_v22 }
 0x1e0   : > { %1424 = vrot.lane.b32.xlu1 %v6239_v40, %s9882_s6  ;;  %1194 = vrot.lane.b32.xlu0 %v6241_v59, %s9882_s6  ;;  %v6245_v49 = vpop.eup %6244  ;;  %6258 = vpow2.f32 %v1779_v35  ;;  %v1744_v57 = vmul.f32 %v7295_v7, %v7736_v61  ;;  %v7750_v53 = vsel %vm1664_vm7, %v7596_v25, %v1648_v13 }
 0x1e1   : > { %v7729_v2 = vpop.permute.xlu1 %991  ;;  %v1124_v27 = vpop.permute.xlu0 %1123  ;;  %6260 = vpow2.f32 %v1597_v6  ;;  %v2018_v31 = vmul.f32 1.442695, %v1998_v51  ;;  %v1752_v6 = vmul.f32 %v7295_v7, %v7750_v53 }
 0x1e2   : > { %v1136_v40 = vmul.f32 %v1124_v27, %v7682_v16  ;;  %v6247_v39 = vpop.eup %6246  ;;  %6262 = vpow2.f32 %v1777_v34  ;;  %v1767_v35 = vmul.f32 1.442695, %v1744_v57 }
 0x1e3   : > { %v6249_v59 = vpop.eup %6248  ;;  %6264 = vpow2.f32 %v2020_v33  ;;  %v1783_v51 = vmul.f32 1.442695, %v1752_v6 }
 0x1e4   : > { %1805 = vrot.lane.b32.xlu1 %v6243_v38, %s6619_s9  ;;  %1144 = vst.msk [vmem:[#allocation3 + $0xd0] sm:$0xff] %vm417_vm0, %v1136_v40  ;;  %1418 = vrot.lane.b32.xlu0 %v6245_v49, %s9882_s6  ;;  %v6251_v25 = vpop.eup %6250  ;;  %6266 = vpow2.f32 %v2018_v31  ;;  %v10009_v49 = vld [vmem:[#allocation57_spill] sm:$0xff]  ;;  %v6621_v31 = vmov 17  }
 0x1e5   : > { %v7743_v62 = vpop.permute.xlu1 %1007  ;;  %v699_v34 = vmul.f32 1.442695, %v10009_v49  ;;  %6268 = vpow2.f32 %v1767_v35  ;;  %5995 = vset.pattern.permute.xlu0 %v6621_v31  ;;  %5994 = vset.pattern.permute.xlu1 %v6621_v31  ;;  %v10013_v49 = vld [vmem:[#allocation59_spill] sm:$0xff] }
 0x1e6   : > { %v1356_v9 = vpop.permute.xlu0 %1355  ;;  %v6253_v38 = vpop.eup %6252 }
 0x1e7   : > { %v1368_v27 = vmul.f32 %v1356_v9, %v7682_v16  ;;  %6270 = vpow2.f32 %v699_v34  ;;  %v932_v34 = vmul.f32 1.442695, %v10013_v49 }
 0x1e8   : > { %1821 = vrot.lane.b32.xlu1 %v6247_v39, %s6619_s9  ;;  %1426 = vrot.lane.b32.xlu0 %v6249_v59, %s9882_s6  ;;  %v6255_v40 = vpop.eup %6254  ;;  %6272 = vpow2.f32 %v1783_v51 }
 0x1e9   : > { %1376 = vst.msk [vmem:[#allocation3 + $0xd8] sm:$0xff] %vm417_vm0, %v1368_v27  ;;  %v6257_v33 = vpop.eup %6256  ;;  %v1607_v9 = vadd.f32 1.0, %v6255_v40 }
 0x1ea   : > { %v1108_v50 = vpop.permute.xlu1 %1107  ;;  %v6259_v39 = vpop.eup %6258 }
 0x1eb   : > { %v1132_v22 = vmul.f32 %v1108_v50, %v7641_v41  ;;  %v7759_v13 = vpop.permute.xlu0 %1890  ;;  %v6261_v59 = vpop.eup %6260  ;;  %v10011_v50 = vld [vmem:[#allocation58_spill] sm:$0xff]  ;;  %6274 = vlog2.f32 %v1607_v9 }
 0x1ec   : > { %2062 = vrot.lane.b32.xlu1 %v6251_v25, %s6620_s10  ;;  %1811 = vrot.lane.b32.xlu0 %v6253_v38, %s6619_s9  ;;  %v707_v25 = vmul.f32 1.442695, %v10011_v50  ;;  %v6263_v35 = vpop.eup %6262  ;;  %v1615_v38 = vadd.f32 1.0, %v6261_v59  ;;  %v10014_v50 = vld [vmem:[#allocation69_spill] sm:$0xff]  ;;  %v10015_v59 = vld [vmem:[#allocation60_spill] sm:$0xff] }
 0x1ed   : > { %1140 = vst.msk [vmem:[#allocation3 + $0x50] sm:$0xff] %vm417_vm0, %v1132_v22  ;;  %v6265_v22 = vpop.eup %6264  ;;  %v9872_v31 = vunpack.i.l.bf16 %v10014_v50 }
 0x1ee   : > { %6276 = vpow2.f32 %v707_v25 }
 0x1ef   : > { %v7765_v57 = vpop.permute.xlu1 %1223  ;;  %6278 = vlog2.f32 %v1615_v38  ;;  %v7791_v38 = vmul.f32 %v9872_v31, %v7494_v42 }
 0x1f0   : > { %10010 = vst [vmem:[#allocation66_spill] sm:$0xff] %v7765_v57  ;;  %1809 = vrot.lane.b32.xlu1 %v6257_v33, %s6619_s9  ;;  %1827 = vrot.lane.b32.xlu0 %v6259_v39, %s6619_s9  ;;  %v7769_v27 = vpop.permute.xlu0 %763  ;;  %v6267_v33 = vpop.eup %6266  ;;  %6280 = vpow2.f32 %v932_v34 }
 0x1f1   : > { %v6269_v51 = vpop.eup %6268  ;;  %10016 = vst [vmem:[#allocation40_spill] sm:$0xff] %v7791_v38 }
 0x1f2   : > { %v6271_v25 = vpop.eup %6270 }
 0x1f3   : > { %v7772_v6 = vpop.permute.xlu1 %1239  ;;  %v6273_v49 = vpop.eup %6272 }
 0x1f4   : > { %10012 = vst [vmem:[#allocation38_spill] sm:$0xff] %v7772_v6  ;;  %1825 = vrot.lane.b32.xlu1 %v6263_v35, %s6619_s9  ;;  %2068 = vrot.lane.b32.xlu0 %v6265_v22, %s6620_s10  ;;  %v7776_v40 = vpop.permute.xlu0 %779  ;;  %v940_v35 = vmul.f32 1.442695, %v10015_v59 }
 0x1f5   : > { %v6275_v59 = vpop.eup %6274 }
 0x1f6   : > { %6282 = vpow2.f32 %v940_v35  ;;  %v10021_v35 = vld [vmem:[#allocation62_spill] sm:$0xff] }
 0x1f8   : > { %v1340_v39 = vpop.permute.xlu1 %1339  ;;  %2066 = vrot.lane.b32.xlu1 %v6267_v33, %s6620_s10  ;;  %1815 = vrot.lane.b32.xlu0 %v6269_v51, %s6619_s9  ;;  %v9877_v33 = vunpack.i.l.bf16 %v7268_v37  ;;  %v10018_v51 = vld [vmem:[#allocation61_spill] sm:$0xff] }
 0x1f9   : > { %v1364_v9 = vmul.f32 %v1340_v39, %v7641_v41  ;;  %v7784_v22 = vpop.permute.xlu0 %995  ;;  %v1164_v39 = vmul.f32 1.442695, %v10018_v51  ;;  %v1172_v51 = vmul.f32 1.442695, %v10021_v35 }
 0x1fa   : > { %v7806_v31 = vmul.f32 %v9877_v33, %v7516_v28 }
 0x1fb   : > { %1372 = vst.msk [vmem:[#allocation3 + $0x58] sm:$0xff] %vm417_vm0, %v1364_v9  ;;  %v6277_v9 = vpop.eup %6276  ;;  %6284 = vpow2.f32 %v1164_v39 }
 0x1fc   : > { %723 = vrot.lane.b32.xlu1 %v6271_v25, %s9882_s6  ;;  %1831 = vrot.lane.b32.xlu0 %v6273_v49, %s6619_s9  ;;  %v1898_v25 = vmul.f32 %v7466_v20, %v7791_v38  ;;  %10019 = vst [vmem:[#allocation43_spill] sm:$0xff] %v7806_v31  ;;  %v6279_v42 = vpop.eup %6278  ;;  %6286 = vpow2.f32 %v1172_v51 }
 0x1fd   : > { %v7795_v34 = vpop.permute.xlu1 %1455  ;;  %v7798_v30 = vpop.permute.xlu0 %1011  ;;  %v1646_v35 = vmul.f32 0.6931472, %v6279_v42 }
 0x1fe   : > { %10017 = vst [vmem:[#allocation41_spill] sm:$0xff] %v7795_v34  ;;  %v1630_v34 = vmul.f32 0.6931472, %v6275_v59  ;;  %v6281_v6 = vpop.eup %6280 }
 0x200   : > { %731 = vrot.lane.b32.xlu1 %v6277_v9, %s9882_s6  ;;  %1930 = vrot.lane.b32.xlu0 %v1898_v25, %s6619_s9  ;;  %v1906_v9 = vmul.f32 %v7518_v44, %v7806_v31  ;;  %v10022_v25 = vld [vmem:[#allocation63_spill] sm:$0xff]  ;;  %v7821_v39 = vsel %vm1655_vm8, %v7673_v43, %v1630_v34  ;;  %v6283_v28 = vpop.eup %6282  ;;  %v783_v31 = vmul.f32 %v7520_v4, %v7540_v36  ;;  %v10024_v34 = vld [vmem:[#allocation14_spill] sm:$0xff] }
 0x201   : > { %v7809_v49 = vpop.permute.xlu1 %1471  ;;  %v1396_v33 = vmul.f32 1.442695, %v10022_v25  ;;  %v1743_v42 = vmul.f32 %v7295_v7, %v7821_v39  ;;  %v7836_v43 = vsel %vm1663_vm9, %v7688_v18, %v1646_v35  ;;  %v787_v25 = vmul.f32 %v7574_v60, %v7491_v23 }
 0x202   : > { %10020 = vst [vmem:[#allocation42_spill] sm:$0xff] %v7809_v49  ;;  %v7815_v38 = vpop.permute.xlu0 %1227  ;;  %v1751_v35 = vmul.f32 %v7295_v7, %v7836_v43 }
 0x203   : > { %6288 = vpow2.f32 %v1396_v33  ;;  %v1765_v18 = vmul.f32 1.442695, %v1743_v42 }
 0x204   : > { %956 = vrot.lane.b32.xlu1 %v6281_v6, %s9882_s6  ;;  %1946 = vrot.lane.b32.xlu0 %v1906_v9, %s6619_s9  ;;  %v10023_v6 = vld [vmem:[#allocation64_spill] sm:$0xff]  ;;  %v7840_v9 = vmul.f32 %v7100_v24, %v10024_v34  ;;  %v1015_v34 = vmul.f32 %v7576_v1, %v7540_v36  ;;  %v1781_v7 = vmul.f32 1.442695, %v1751_v35  ;;  %v1019_v1 = vmul.f32 %v7603_v55, %v7491_v23 }
 0x205   : > { %v1404_v51 = vmul.f32 1.442695, %v10023_v6  ;;  %v6285_v4 = vpop.eup %6284  ;;  %v10025_v24 = vld [vmem:[#allocation16_spill] sm:$0xff] }
 0x206   : > { %v7823_v59 = vpop.permute.xlu1 %1870  ;;  %v7828_v49 = vpop.permute.xlu0 %1243  ;;  %v7853_v6 = vmul.f32 %v7103_v48, %v10025_v24  ;;  %v2000_v48 = vmul.f32 %v7340_v0, %v7821_v39  ;;  %v1247_v24 = vmul.f32 %v7605_v54, %v7540_v36 }
 0x207   : > { %6290 = vpow2.f32 %v1404_v51  ;;  %v6287_v60 = vpop.eup %6286 }
 0x208   : > { %964 = vrot.lane.b32.xlu1 %v6283_v28, %s9882_s6  ;;  %800 = vrot.lane.b32.xlu0 %v783_v31, %s9882_s6  ;;  %6292 = vpow2.f32 %v1765_v18  ;;  %v2022_v18 = vmul.f32 1.442695, %v2000_v48 }
 0x209   : > { %6294 = vpow2.f32 %v1781_v7 }
 0x20a   : > { %6296 = vpow2.f32 %v2022_v18 }
 0x20b   : > { %v643_v28 = vpop.permute.xlu1 %642  ;;  %v7845_v33 = vpop.permute.xlu0 %1459 }
 0x20c   : > { %v668_v31 = vmul.f32 %v643_v28, %v7840_v9  ;;  %1188 = vrot.lane.b32.xlu1 %v6285_v4, %s9882_s6  ;;  %808 = vrot.lane.b32.xlu0 %v787_v25, %s9882_s6 }
 0x20d   : > { %v6289_v51 = vpop.eup %6288 }
 0x20e   : > { %676 = vst.msk [vmem:[#allocation3 + $0x60] sm:$0xff] %vm417_vm0, %v668_v31 }
 0x20f   : > { %v663_v28 = vpop.permute.xlu1 %662  ;;  %v7859_v57 = vpop.permute.xlu0 %1475 }
 0x210   : > { %v672_v4 = vmul.f32 %v663_v28, %v7853_v6  ;;  %1196 = vrot.lane.b32.xlu1 %v6287_v60, %s9882_s6  ;;  %1032 = vrot.lane.b32.xlu0 %v1015_v34, %s9882_s6 }
 0x211   : > { %v6291_v35 = vpop.eup %6290 }
 0x212   : > { %680 = vst.msk [vmem:[#allocation3 + $0xe0] sm:$0xff] %vm417_vm0, %v672_v4  ;;  %v6293_v28 = vpop.eup %6292  ;;  %v1251_v4 = vmul.f32 %v7620_v56, %v7491_v23  ;;  %v5920_v56 = vunpack.i.h.bf16 %v10014_v50 }
 0x213   : > { %v718_v42 = vpop.permute.xlu0 %717 }
 0x214   : > { %v880_v25 = vpop.permute.xlu1 %879  ;;  %1420 = vrot.lane.b32.xlu1 %v6289_v51, %s9882_s6  ;;  %742 = vst.msk [vmem:[#allocation2] sm:$0xff] %vm741_vm10, %v718_v42  ;;  %1040 = vrot.lane.b32.xlu0 %v1019_v1, %s9882_s6  ;;  %v6295_v51 = vpop.eup %6294  ;;  %v1479_v1 = vmul.f32 %v7622_v14, %v7540_v36  ;;  %v7901_v14 = vmul.f32 %v5920_v56, %v7645_v21 }
 0x215   : > { %v901_v31 = vmul.f32 %v880_v25, %v7840_v9  ;;  %v6297_v18 = vpop.eup %6296 }
 0x217   : > { %909 = vst.msk [vmem:[#allocation3 + $0x68] sm:$0xff] %vm417_vm0, %v901_v31  ;;  %v726_v60 = vpop.permute.xlu0 %725 }
 0x218   : > { %v896_v55 = vpop.permute.xlu1 %895  ;;  %1428 = vrot.lane.b32.xlu1 %v6291_v35, %s9882_s6  ;;  %746 = vst.msk [vmem:[#allocation2 + $0x80] sm:$0xff] %vm741_vm10, %v726_v60  ;;  %1264 = vrot.lane.b32.xlu0 %v1247_v24, %s9882_s6  ;;  %v1483_v35 = vmul.f32 %v7647_v45, %v7491_v23  ;;  %v5930_v24 = vunpack.i.h.bf16 %v7268_v37  ;;  %v782_v60 = vmul.f32 %v7397_v17, %v7360_v19  ;;  %v10026_v17 = vld [vmem:[#allocation71_spill] sm:$0xff] }
 0x219   : > { %v905_v34 = vmul.f32 %v896_v55, %v7853_v6  ;;  %v1900_v45 = vmul.f32 %v7662_v3, %v7901_v14 }
 0x21b   : > { %913 = vst.msk [vmem:[#allocation3 + $0xe8] sm:$0xff] %vm417_vm0, %v905_v34  ;;  %v951_v54 = vpop.permute.xlu0 %950 }
 0x21c   : > { %1813 = vrot.lane.b32.xlu1 %v6293_v28, %s6619_s9  ;;  %974 = vst.msk [vmem:[#allocation2 + $0x8] sm:$0xff] %vm741_vm10, %v951_v54  ;;  %1272 = vrot.lane.b32.xlu0 %v1251_v4, %s9882_s6  ;;  %v7915_v28 = vmul.f32 %v5930_v24, %v7659_v58  ;;  %v5924_v4 = vunpack.i.l.bf16 %v7302_v5  ;;  %v786_v54 = vmul.f32 %v10026_v17, %v7375_v15 }
 0x21d   : > { %v1112_v7 = vpop.permute.xlu1 %1111  ;;  %v1246_v17 = vmul.f32 %v7456_v12, %v7360_v19 }
 0x21e   : > { %v1133_v48 = vmul.f32 %v1112_v7, %v7840_v9 }
 0x21f   : > { %v959_v42 = vpop.permute.xlu0 %958 }
 0x220   : > { %1141 = vst.msk [vmem:[#allocation3 + $0x70] sm:$0xff] %vm417_vm0, %v1133_v48  ;;  %1829 = vrot.lane.b32.xlu1 %v6295_v51, %s6619_s9  ;;  %1496 = vrot.lane.b32.xlu0 %v1479_v1, %s9882_s6  ;;  %v1908_v48 = vmul.f32 %v7630_v63, %v7915_v28 }
 0x221   : > { %978 = vst.msk [vmem:[#allocation2 + $0x88] sm:$0xff] %vm741_vm10, %v959_v42  ;;  %v1128_v25 = vpop.permute.xlu1 %1127  ;;  %v7930_v42 = vmul.f32 %v5924_v4, %v7700_v26 }
 0x222   : > { %v1137_v31 = vmul.f32 %v1128_v25, %v7853_v6  ;;  %v10027_v25 = vld [vmem:[#allocation70_spill] sm:$0xff] }
 0x223   : > { %v1183_v36 = vpop.permute.xlu0 %1182 }
 0x224   : > { %1145 = vst.msk [vmem:[#allocation3 + $0xf0] sm:$0xff] %vm417_vm0, %v1137_v31  ;;  %2070 = vrot.lane.b32.xlu1 %v6297_v18, %s6620_s10  ;;  %1504 = vrot.lane.b32.xlu0 %v1483_v35, %s9882_s6  ;;  %v5934_v31 = vunpack.i.l.bf16 %v10027_v25  ;;  %v1014_v18 = vmul.f32 %v7432_v29, %v7360_v19  ;;  %v1902_v35 = vmul.f32 %v7823_v59, %v7930_v42 }
 0x225   : > { %1206 = vst.msk [vmem:[#allocation2 + $0x10] sm:$0xff] %vm741_vm10, %v1183_v36  ;;  %v1018_v29 = vmul.f32 %v7399_v10, %v7375_v15 }
 0x226   : > { %v1344_v23 = vpop.permute.xlu1 %1343 }
 0x227   : > { %v1365_v55 = vmul.f32 %v1344_v23, %v7840_v9  ;;  %v1191_v34 = vpop.permute.xlu0 %1190  ;;  %v7946_v23 = vmul.f32 %v5934_v31, %v7714_v11 }
 0x228   : > { %798 = vrot.lane.b32.xlu1 %v782_v60, %s9882_s6  ;;  %1210 = vst.msk [vmem:[#allocation2 + $0x90] sm:$0xff] %vm741_vm10, %v1191_v34  ;;  %1934 = vrot.lane.b32.xlu0 %v1900_v45, %s6619_s9 }
 0x229   : > { %1373 = vst.msk [vmem:[#allocation3 + $0x78] sm:$0xff] %vm417_vm0, %v1365_v55  ;;  %v1910_v45 = vmul.f32 %v7759_v13, %v7946_v23 }
 0x22a   : > { %v1360_v7 = vpop.permute.xlu1 %1359 }
 0x22b   : > { %v1369_v51 = vmul.f32 %v1360_v7, %v7853_v6  ;;  %v1415_v1 = vpop.permute.xlu0 %1414 }
 0x22c   : > { %806 = vrot.lane.b32.xlu1 %v786_v54, %s9882_s6  ;;  %1438 = vst.msk [vmem:[#allocation2 + $0x18] sm:$0xff] %vm741_vm10, %v1415_v1  ;;  %1950 = vrot.lane.b32.xlu0 %v1908_v48, %s6619_s9  ;;  %v785_v54 = vmul.f32 %v7769_v27, %v7840_v9  ;;  %v789_v1 = vmul.f32 %v7776_v40, %v7853_v6 }
 0x22d   : > { %1377 = vst.msk [vmem:[#allocation3 + $0xf8] sm:$0xff] %vm417_vm0, %v1369_v51  ;;  %v1250_v51 = vmul.f32 %v7434_v46, %v7375_v15  ;;  %v1017_v46 = vmul.f32 %v7784_v22, %v7840_v9  ;;  %v10028_v22 = vunpack.i.l.bf16 %v10014_v50  ;;  %v1481_v50 = vmul.f32 %v7845_v33, %v7840_v9 }
 0x22e   : > { %v1485_v33 = vmul.f32 %v7859_v57, %v7853_v6 }
 0x22f   : > { %v7940_v36 = vpop.permute.xlu1 %1875  ;;  %v1423_v60 = vpop.permute.xlu0 %1422 }
 0x230   : > { %1030 = vrot.lane.b32.xlu1 %v1014_v18, %s9882_s6  ;;  %1442 = vst.msk [vmem:[#allocation2 + $0x98] sm:$0xff] %vm741_vm10, %v1423_v60  ;;  %1938 = vrot.lane.b32.xlu0 %v1902_v35, %s6619_s9  ;;  %v1478_v35 = vmul.f32 %v7498_v47, %v7360_v19  ;;  %v1021_v19 = vmul.f32 %v7798_v30, %v7853_v6 }
 0x233   : > { %v7954_v55 = vpop.permute.xlu1 %1895  ;;  %v1804_v34 = vpop.permute.xlu0 %1803 }
 0x234   : > { %1038 = vrot.lane.b32.xlu1 %v1018_v29, %s9882_s6  ;;  %1954 = vrot.lane.b32.xlu0 %v1910_v45, %s6619_s9  ;;  %v1482_v45 = vmul.f32 %v7458_v8, %v7375_v15  ;;  %v1249_v8 = vmul.f32 %v7815_v38, %v7840_v9  ;;  %v1253_v38 = vmul.f32 %v7828_v49, %v7853_v6 }
 0x235   : > { %v2001_v49 = vmul.f32 %v7340_v0, %v7736_v61 }
 0x237   : > { %v1802_v7 = vpop.permute.xlu1 %1801  ;;  %v1820_v48 = vpop.permute.xlu0 %1819  ;;  %v2024_v9 = vmul.f32 1.442695, %v2001_v49 }
 0x238   : > { %v1834_v10 = vsel %vm1833_vm11, %v1802_v7, %v1804_v34  ;;  %1262 = vrot.lane.b32.xlu1 %v1246_v17, %s9882_s6  ;;  %804 = vrot.lane.b32.xlu0 %v785_v54, %s9882_s6  ;;  %v7991_v34 = vmul.f32 %v10028_v22, %v7480_v32  ;;  %v10029_v54 = vld [vmem:[#allocation35_spill] sm:$0xff]  ;;  %v10030_v7 = vunpack.i.l.bf16 %v7268_v37 }
 0x239   : > { %1850 = vst.msk [vmem:[#allocation4] sm:$0xff] %vm417_vm0, %v1834_v10  ;;  %v2003_v37 = vmul.f32 %v7340_v0, %v10029_v54  ;;  %6298 = vpow2.f32 %v2024_v9 }
 0x23a   : > { %v1899_v15 = vmul.f32 %v7466_v20, %v7991_v34  ;;  %v8005_v10 = vmul.f32 %v10030_v7, %v10029_v54  ;;  %v10034_v7 = vld [vmem:[#allocation37_spill] sm:$0xff] }
 0x23b   : > { %v1818_v12 = vpop.permute.xlu1 %1817  ;;  %v2061_v27 = vpop.permute.xlu0 %2060  ;;  %v2028_v6 = vmul.f32 1.442695, %v2003_v37 }
 0x23c   : > { %v1838_v18 = vsel %vm1833_vm11, %v1818_v12, %v1820_v48  ;;  %1270 = vrot.lane.b32.xlu1 %v1250_v51, %s9882_s6  ;;  %812 = vrot.lane.b32.xlu0 %v789_v1, %s9882_s6  ;;  %v1907_v20 = vmul.f32 %v7518_v44, %v8005_v10  ;;  %v10031_v1 = vld [vmem:[#allocation36_spill] sm:$0xff] }
 0x23d   : > { %1854 = vst.msk [vmem:[#allocation4 + $0x80] sm:$0xff] %vm417_vm0, %v1838_v18  ;;  %v8019_v12 = vmul.f32 %v5920_v56, %v10031_v1  ;;  %6300 = vpow2.f32 %v2028_v6  ;;  %v10035_v6 = vld [vmem:[#allocation66_spill] sm:$0xff] }
 0x23f   : > { %v2059_v60 = vpop.permute.xlu1 %2058  ;;  %v7979_v29 = vpop.permute.xlu0 %1807  ;;  %v1901_v44 = vmul.f32 %v7662_v3, %v8019_v12 }
 0x240   : > { %v2091_v40 = vsel %vm2090_vm12, %v2059_v60, %v2061_v27  ;;  %1494 = vrot.lane.b32.xlu1 %v1478_v35, %s9882_s6  ;;  %1036 = vrot.lane.b32.xlu0 %v1017_v46, %s9882_s6  ;;  %v10032_v27 = vld [vmem:[#allocation65_spill] sm:$0xff]  ;;  %v5925_v60 = vunpack.i.h.bf16 %v7302_v5 }
 0x241   : > { %2107 = vst.msk [vmem:[#allocation4] sm:$0xff] %vm741_vm10, %v2091_v40  ;;  %v8034_v35 = vmul.f32 %v5930_v24, %v10032_v27 }
 0x243   : > { %v720_v47 = vpop.permute.xlu1 %719  ;;  %v7994_v17 = vpop.permute.xlu0 %1823  ;;  %v1909_v3 = vmul.f32 %v7630_v63, %v8034_v35  ;;  %v5935_v63 = vunpack.i.h.bf16 %v10027_v25 }
 0x244   : > { %743 = vst.msk [vmem:[#allocation2 + $0x20] sm:$0xff] %vm741_vm10, %v720_v47  ;;  %1502 = vrot.lane.b32.xlu1 %v1482_v45, %s9882_s6  ;;  %1044 = vrot.lane.b32.xlu0 %v1021_v19, %s9882_s6  ;;  %v8052_v45 = vmul.f32 %v5925_v60, %v7821_v39  ;;  %v10033_v19 = vld [vmem:[#allocation39_spill] sm:$0xff]  ;;  %v2005_v47 = vmul.f32 %v7340_v0, %v10032_v27  ;;  %v6299_v9 = vpop.eup %6298 }
 0x245   : > { %v784_v57 = vmul.f32 %v10033_v19, %v7641_v41  ;;  %v8164_v5 = vmul.f32 %v5935_v63, %v7750_v53 }
 0x246   : > { %v1904_v22 = vmul.f32 %v7940_v36, %v8052_v45 }
 0x247   : > { %v728_v30 = vpop.permute.xlu1 %727  ;;  %v8008_v48 = vpop.permute.xlu0 %2064 }
 0x248   : > { %747 = vst.msk [vmem:[#allocation2 + $0xa0] sm:$0xff] %vm741_vm10, %v728_v30  ;;  %1932 = vrot.lane.b32.xlu1 %v1899_v15, %s6619_s9  ;;  %1268 = vrot.lane.b32.xlu0 %v1249_v8, %s9882_s6  ;;  %v8068_v30 = vmul.f32 %v5935_v63, %v7836_v43 }
 0x24b   : > { %v953_v51 = vpop.permute.xlu1 %952  ;;  %v722_v18 = vpop.permute.xlu0 %721 }
 0x24c   : > { %975 = vst.msk [vmem:[#allocation2 + $0x28] sm:$0xff] %vm741_vm10, %v953_v51  ;;  %1948 = vrot.lane.b32.xlu1 %v1907_v20, %s6619_s9  ;;  %744 = vst.msk [vmem:[#allocation2 + $0x40] sm:$0xff] %vm741_vm10, %v722_v18  ;;  %1276 = vrot.lane.b32.xlu0 %v1253_v38, %s9882_s6  ;;  %v788_v20 = vmul.f32 %v10034_v7, %v7682_v16  ;;  %v2032_v38 = vmul.f32 1.442695, %v2005_v47  ;;  %v2007_v51 = vmul.f32 %v7340_v0, %v7707_v52 }
 0x24d   : > { %v1912_v18 = vmul.f32 %v7954_v55, %v8068_v30  ;;  %v1248_v47 = vmul.f32 %v10035_v6, %v7641_v41 }
 0x24e   : > { %6302 = vpow2.f32 %v2032_v38 }
 0x24f   : > { %v961_v56 = vpop.permute.xlu1 %960  ;;  %v730_v46 = vpop.permute.xlu0 %729 }
 0x250   : > { %979 = vst.msk [vmem:[#allocation2 + $0xa8] sm:$0xff] %vm741_vm10, %v961_v56  ;;  %1936 = vrot.lane.b32.xlu1 %v1901_v44, %s6619_s9  ;;  %748 = vst.msk [vmem:[#allocation2 + $0xc0] sm:$0xff] %vm741_vm10, %v730_v46  ;;  %1500 = vrot.lane.b32.xlu0 %v1481_v50, %s9882_s6  ;;  %v1016_v50 = vmul.f32 %v7729_v2, %v7641_v41  ;;  %v2036_v56 = vmul.f32 1.442695, %v2007_v51  ;;  %v2009_v46 = vmul.f32 %v7340_v0, %v7750_v53 }
 0x252   : > { %6304 = vpow2.f32 %v2036_v56  ;;  %v2040_v2 = vmul.f32 1.442695, %v2009_v46 }
 0x253   : > { %v1185_v24 = vpop.permute.xlu1 %1184  ;;  %v955_v40 = vpop.permute.xlu0 %954 }
 0x254   : > { %1207 = vst.msk [vmem:[#allocation2 + $0x30] sm:$0xff] %vm741_vm10, %v1185_v24  ;;  %1952 = vrot.lane.b32.xlu1 %v1909_v3, %s6619_s9  ;;  %976 = vst.msk [vmem:[#allocation2 + $0x48] sm:$0xff] %vm741_vm10, %v955_v40  ;;  %1508 = vrot.lane.b32.xlu0 %v1485_v33, %s9882_s6  ;;  %v1020_v33 = vmul.f32 %v7743_v62, %v7682_v16  ;;  %v6301_v40 = vpop.eup %6300  ;;  %6306 = vpow2.f32 %v2040_v2 }
 0x257   : > { %v1193_v15 = vpop.permute.xlu1 %1192  ;;  %v963_v8 = vpop.permute.xlu0 %962 }
 0x258   : > { %1211 = vst.msk [vmem:[#allocation2 + $0xb0] sm:$0xff] %vm741_vm10, %v1193_v15  ;;  %802 = vrot.lane.b32.xlu1 %v784_v57, %s9882_s6  ;;  %980 = vst.msk [vmem:[#allocation2 + $0xc8] sm:$0xff] %vm741_vm10, %v963_v8  ;;  %1942 = vrot.lane.b32.xlu0 %v1904_v22, %s6619_s9  ;;  %v6303_v22 = vpop.eup %6302 }
 0x25b   : > { %v1417_v44 = vpop.permute.xlu1 %1416  ;;  %v1187_v49 = vpop.permute.xlu0 %1186 }
 0x25c   : > { %1439 = vst.msk [vmem:[#allocation2 + $0x38] sm:$0xff] %vm741_vm10, %v1417_v44  ;;  %810 = vrot.lane.b32.xlu1 %v788_v20, %s9882_s6  ;;  %1208 = vst.msk [vmem:[#allocation2 + $0x50] sm:$0xff] %vm741_vm10, %v1187_v49  ;;  %1958 = vrot.lane.b32.xlu0 %v1912_v18, %s6619_s9  ;;  %v6305_v38 = vpop.eup %6304 }
 0x25f   : > { %v1425_v3 = vpop.permute.xlu1 %1424  ;;  %v1195_v37 = vpop.permute.xlu0 %1194 }
 0x260   : > { %1443 = vst.msk [vmem:[#allocation2 + $0xb8] sm:$0xff] %vm741_vm10, %v1425_v3  ;;  %1034 = vrot.lane.b32.xlu1 %v1016_v50, %s9882_s6  ;;  %1212 = vst.msk [vmem:[#allocation2 + $0xd0] sm:$0xff] %vm741_vm10, %v1195_v37  ;;  %2072 = vrot.lane.b32.xlu0 %v6299_v9, %s6620_s10  ;;  %v6307_v50 = vpop.eup %6306  ;;  %v10039_v37 = vld [vmem:[#allocation67_spill] sm:$0xff] }
 0x263   : > { %v1806_v24 = vpop.permute.xlu1 %1805  ;;  %v1419_v57 = vpop.permute.xlu0 %1418 }
 0x264   : > { %v1835_v19 = vsel %vm1833_vm11, %v1806_v24, %v7979_v29  ;;  %1042 = vrot.lane.b32.xlu1 %v1020_v33, %s9882_s6  ;;  %1440 = vst.msk [vmem:[#allocation2 + $0x58] sm:$0xff] %vm741_vm10, %v1419_v57  ;;  %2076 = vrot.lane.b32.xlu0 %v6301_v40, %s6620_s10  ;;  %v10036_v29 = vld [vmem:[#allocation38_spill] sm:$0xff]  ;;  %v8124_v33 = vmul.f32 %v5924_v4, %v10039_v37  ;;  %v10040_v24 = vld [vmem:[#allocation23_spill] sm:$0xff]  ;;  %v10041_v40 = vld [vmem:[#allocation68_spill] sm:$0xff] }
 0x265   : > { %1851 = vst.msk [vmem:[#allocation4 + $0x20] sm:$0xff] %vm417_vm0, %v1835_v19  ;;  %v1252_v7 = vmul.f32 %v10036_v29, %v7682_v16  ;;  %v2002_v19 = vmul.f32 %v7340_v0, %v10041_v40  ;;  %v8137_v4 = vmul.f32 %v5934_v31, %v7707_v52  ;;  %v8152_v31 = vmul.f32 %v5925_v60, %v7736_v61 }
 0x267   : > { %v1822_v62 = vpop.permute.xlu1 %1821  ;;  %v1427_v8 = vpop.permute.xlu0 %1426 }
 0x268   : > { %v1839_v15 = vsel %vm1833_vm11, %v1822_v62, %v7994_v17  ;;  %1266 = vrot.lane.b32.xlu1 %v1248_v47, %s9882_s6  ;;  %1444 = vst.msk [vmem:[#allocation2 + $0xd8] sm:$0xff] %vm741_vm10, %v1427_v8  ;;  %2080 = vrot.lane.b32.xlu0 %v6303_v22, %s6620_s10  ;;  %v10037_v17 = vld [vmem:[#allocation41_spill] sm:$0xff]  ;;  %v10042_v62 = vld [vmem:[#allocation19_spill] sm:$0xff]  ;;  %v2026_v22 = vmul.f32 1.442695, %v2002_v19 }
 0x269   : > { %1855 = vst.msk [vmem:[#allocation4 + $0xa0] sm:$0xff] %vm417_vm0, %v1839_v15  ;;  %v1480_v44 = vmul.f32 %v10037_v17, %v7641_v41  ;;  %v1911_v15 = vmul.f32 %v7759_v13, %v8137_v4  ;;  %v1905_v13 = vmul.f32 %v7940_v36, %v8152_v31  ;;  %v2008_v17 = vmul.f32 %v7340_v0, %v7836_v43 }
 0x26a   : > { %6308 = vpow2.f32 %v2026_v22  ;;  %v1913_v36 = vmul.f32 %v7954_v55, %v8164_v5 }
 0x26b   : > { %v2063_v20 = vpop.permute.xlu1 %2062  ;;  %v1812_v18 = vpop.permute.xlu0 %1811  ;;  %v2038_v63 = vmul.f32 1.442695, %v2008_v17  ;;  %v10047_v17 = vld [vmem:[#allocation24_spill] sm:$0xff] }
 0x26c   : > { %v2092_v51 = vsel %vm2090_vm12, %v2063_v20, %v8008_v48  ;;  %1274 = vrot.lane.b32.xlu1 %v1252_v7, %s9882_s6  ;;  %2084 = vrot.lane.b32.xlu0 %v6305_v38, %s6620_s10  ;;  %v10038_v48 = vld [vmem:[#allocation42_spill] sm:$0xff]  ;;  %v10043_v7 = vld [vmem:[#allocation28_spill] sm:$0xff]  ;;  %v2006_v38 = vmul.f32 %v7340_v0, %v7714_v11 }
 0x26d   : > { %2108 = vst.msk [vmem:[#allocation4 + $0x20] sm:$0xff] %vm741_vm10, %v2092_v51  ;;  %v1484_v3 = vmul.f32 %v10038_v48, %v7682_v16  ;;  %v1903_v16 = vmul.f32 %v7823_v59, %v8124_v33  ;;  %v2004_v59 = vmul.f32 %v7340_v0, %v7659_v58 }
 0x26f   : > { %v1810_v49 = vpop.permute.xlu1 %1809  ;;  %v1828_v46 = vpop.permute.xlu0 %1827  ;;  %v2030_v20 = vmul.f32 1.442695, %v2004_v59 }
 0x270   : > { %v1836_v56 = vsel %vm1833_vm11, %v1810_v49, %v1812_v18  ;;  %1498 = vrot.lane.b32.xlu1 %v1480_v44, %s9882_s6  ;;  %2088 = vrot.lane.b32.xlu0 %v6307_v50, %s6620_s10  ;;  %v2034_v18 = vmul.f32 1.442695, %v2006_v38 }
 0x271   : > { %1852 = vst.msk [vmem:[#allocation4 + $0x40] sm:$0xff] %vm417_vm0, %v1836_v56  ;;  %6310 = vpow2.f32 %v2030_v20 }
 0x272   : > { %6312 = vpow2.f32 %v2034_v18 }
 0x273   : > { %v1826_v9 = vpop.permute.xlu1 %1825  ;;  %v2069_v2 = vpop.permute.xlu0 %2068  ;;  %6314 = vpow2.f32 %v2038_v63  ;;  %v10048_v63 = vld [vmem:[#allocation32_spill] sm:$0xff] }
 0x274   : > { %v1840_v41 = vsel %vm1833_vm11, %v1826_v9, %v1828_v46  ;;  %1506 = vrot.lane.b32.xlu1 %v1484_v3, %s9882_s6  ;;  %2120 = vperm.xlu0 %5995, %v10040_v24   ;;  %v6309_v49 = vpop.eup %6308 }
 0x275   : > { %1856 = vst.msk [vmem:[#allocation4 + $0xc0] sm:$0xff] %vm417_vm0, %v1840_v41 }
 0x277   : > { %v2067_v57 = vpop.permute.xlu1 %2066  ;;  %v8140_v47 = vpop.permute.xlu0 %1815 }
 0x278   : > { %v2093_v6 = vsel %vm2090_vm12, %v2067_v57, %v2069_v2  ;;  %1940 = vrot.lane.b32.xlu1 %v1903_v16, %s6619_s9  ;;  %2132 = vperm.xlu0 %5995, %v10042_v62  }
 0x279   : > { %2109 = vst.msk [vmem:[#allocation4 + $0x40] sm:$0xff] %vm741_vm10, %v2093_v6  ;;  %v10044_v6 = vld [vmem:[#allocation20_spill] sm:$0xff] }
 0x27b   : > { %v724_v8 = vpop.permute.xlu1 %723  ;;  %v1832_v29 = vpop.permute.xlu0 %1831 }
 0x27c   : > { %745 = vst.msk [vmem:[#allocation2 + $0x60] sm:$0xff] %vm741_vm10, %v724_v8  ;;  %1956 = vrot.lane.b32.xlu1 %v1911_v15, %s6619_s9  ;;  %2140 = vperm.xlu0 %5995, %v10043_v7   ;;  %v6311_v0 = vpop.eup %6310  ;;  %v10045_v8 = vld [vmem:[#allocation27_spill] sm:$0xff] }
 0x27d   : > { %v6313_v48 = vpop.eup %6312 }
 0x27e   : > { %v6315_v41 = vpop.eup %6314 }
 0x27f   : > { %v732_v51 = vpop.permute.xlu1 %731  ;;  %v8167_v60 = vpop.permute.xlu0 %1930 }
 0x280   : > { %749 = vst.msk [vmem:[#allocation2 + $0xe0] sm:$0xff] %vm741_vm10, %v732_v51  ;;  %1944 = vrot.lane.b32.xlu1 %v1905_v13, %s6619_s9  ;;  %v10046_v51 = vld [vmem:[#allocation31_spill] sm:$0xff] }
 0x283   : > { %v957_v44 = vpop.permute.xlu1 %956  ;;  %v8175_v25 = vpop.permute.xlu0 %1946 }
 0x284   : > { %977 = vst.msk [vmem:[#allocation2 + $0x68] sm:$0xff] %vm741_vm10, %v957_v44  ;;  %1960 = vrot.lane.b32.xlu1 %v1913_v36, %s6619_s9 }
 0x287   : > { %v965_v50 = vpop.permute.xlu1 %964  ;;  %v801_v56 = vpop.permute.xlu0 %800 }
 0x288   : > { %981 = vst.msk [vmem:[#allocation2 + $0xe8] sm:$0xff] %vm741_vm10, %v965_v50  ;;  %2074 = vrot.lane.b32.xlu1 %v6309_v49, %s6620_s10  ;;  %823 = vst.msk [vmem:[#allocation3 + $0x20] sm:$0xff] %vm741_vm10, %v801_v56 }
 0x28b   : > { %v1189_v55 = vpop.permute.xlu1 %1188  ;;  %v809_v46 = vpop.permute.xlu0 %808 }
 0x28c   : > { %1209 = vst.msk [vmem:[#allocation2 + $0x70] sm:$0xff] %vm741_vm10, %v1189_v55  ;;  %2078 = vrot.lane.b32.xlu1 %v6311_v0, %s6620_s10  ;;  %827 = vst.msk [vmem:[#allocation3 + $0xa0] sm:$0xff] %vm741_vm10, %v809_v46 }
 0x28f   : > { %v1197_v3 = vpop.permute.xlu1 %1196  ;;  %v1033_v9 = vpop.permute.xlu0 %1032 }
 0x290   : > { %1213 = vst.msk [vmem:[#allocation2 + $0xf0] sm:$0xff] %vm741_vm10, %v1197_v3  ;;  %2082 = vrot.lane.b32.xlu1 %v6313_v48, %s6620_s10  ;;  %1055 = vst.msk [vmem:[#allocation3 + $0x28] sm:$0xff] %vm741_vm10, %v1033_v9 }
 0x293   : > { %v1421_v2 = vpop.permute.xlu1 %1420  ;;  %v1041_v19 = vpop.permute.xlu0 %1040 }
 0x294   : > { %1441 = vst.msk [vmem:[#allocation2 + $0x78] sm:$0xff] %vm741_vm10, %v1421_v2  ;;  %2086 = vrot.lane.b32.xlu1 %v6315_v41, %s6620_s10  ;;  %1059 = vst.msk [vmem:[#allocation3 + $0xa8] sm:$0xff] %vm741_vm10, %v1041_v19 }
 0x297   : > { %v1429_v16 = vpop.permute.xlu1 %1428  ;;  %v1265_v57 = vpop.permute.xlu0 %1264 }
 0x298   : > { %1445 = vst.msk [vmem:[#allocation2 + $0xf8] sm:$0xff] %vm741_vm10, %v1429_v16  ;;  %2116 = vperm.xlu1 %5994, %v10044_v6   ;;  %1287 = vst.msk [vmem:[#allocation3 + $0x30] sm:$0xff] %vm741_vm10, %v1265_v57 }
 0x29b   : > { %v1814_v22 = vpop.permute.xlu1 %1813  ;;  %v1273_v15 = vpop.permute.xlu0 %1272 }
 0x29c   : > { %v1837_v59 = vsel %vm1833_vm11, %v1814_v22, %v8140_v47  ;;  %2124 = vperm.xlu1 %5994, %v10045_v8   ;;  %1291 = vst.msk [vmem:[#allocation3 + $0xb0] sm:$0xff] %vm741_vm10, %v1273_v15 }
 0x29d   : > { %1853 = vst.msk [vmem:[#allocation4 + $0x60] sm:$0xff] %vm417_vm0, %v1837_v59 }
 0x29f   : > { %v1830_v20 = vpop.permute.xlu1 %1829  ;;  %v1497_v13 = vpop.permute.xlu0 %1496 }
 0x2a0   : > { %v1841_v38 = vsel %vm1833_vm11, %v1830_v20, %v1832_v29  ;;  %2128 = vperm.xlu1 %5994, %v10046_v51   ;;  %1519 = vst.msk [vmem:[#allocation3 + $0x38] sm:$0xff] %vm741_vm10, %v1497_v13 }
 0x2a1   : > { %1857 = vst.msk [vmem:[#allocation4 + $0xe0] sm:$0xff] %vm417_vm0, %v1841_v38 }
 0x2a3   : > { %v8202_v18 = vpop.permute.xlu1 %2070  ;;  %v1505_v47 = vpop.permute.xlu0 %1504 }
 0x2a4   : > { %2136 = vperm.xlu1 %5994, %v10047_v17   ;;  %1523 = vst.msk [vmem:[#allocation3 + $0xb8] sm:$0xff] %vm741_vm10, %v1505_v47 }
 0x2a7   : > { %v799_v36 = vpop.permute.xlu1 %798  ;;  %v1935_v44 = vpop.permute.xlu0 %1934 }
 0x2a8   : > { %822 = vst.msk [vmem:[#allocation3] sm:$0xff] %vm741_vm10, %v799_v36  ;;  %2144 = vperm.xlu1 %5994, %v10048_v63  }
 0x2ab   : > { %v807_v29 = vpop.permute.xlu1 %806  ;;  %v1951_v49 = vpop.permute.xlu0 %1950 }
 0x2ac   : > { %826 = vst.msk [vmem:[#allocation3 + $0x80] sm:$0xff] %vm741_vm10, %v807_v29 }
 0x2af   : > { %v1031_v50 = vpop.permute.xlu1 %1030  ;;  %v8209_v56 = vpop.permute.xlu0 %1938 }
 0x2b0   : > { %1054 = vst.msk [vmem:[#allocation3 + $0x8] sm:$0xff] %vm741_vm10, %v1031_v50 }
 0x2b3   : > { %v1039_v0 = vpop.permute.xlu1 %1038  ;;  %v8212_v55 = vpop.permute.xlu0 %1954 }
 0x2b4   : > { %1058 = vst.msk [vmem:[#allocation3 + $0x88] sm:$0xff] %vm741_vm10, %v1039_v0 }
 0x2b7   : > { %v1263_v46 = vpop.permute.xlu1 %1262  ;;  %v805_v48 = vpop.permute.xlu0 %804 }
 0x2b8   : > { %1286 = vst.msk [vmem:[#allocation3 + $0x10] sm:$0xff] %vm741_vm10, %v1263_v46  ;;  %825 = vst.msk [vmem:[#allocation3 + $0x60] sm:$0xff] %vm741_vm10, %v805_v48 }
 0x2bb   : > { %v1271_v3 = vpop.permute.xlu1 %1270  ;;  %v813_v9 = vpop.permute.xlu0 %812 }
 0x2bc   : > { %1290 = vst.msk [vmem:[#allocation3 + $0x90] sm:$0xff] %vm741_vm10, %v1271_v3  ;;  %829 = vst.msk [vmem:[#allocation3 + $0xe0] sm:$0xff] %vm741_vm10, %v813_v9 }
 0x2bf   : > { %v1495_v41 = vpop.permute.xlu1 %1494  ;;  %v1037_v2 = vpop.permute.xlu0 %1036 }
 0x2c0   : > { %1518 = vst.msk [vmem:[#allocation3 + $0x18] sm:$0xff] %vm741_vm10, %v1495_v41  ;;  %1057 = vst.msk [vmem:[#allocation3 + $0x68] sm:$0xff] %vm741_vm10, %v1037_v2 }
 0x2c3   : > { %v1503_v19 = vpop.permute.xlu1 %1502  ;;  %v1045_v16 = vpop.permute.xlu0 %1044 }
 0x2c4   : > { %1522 = vst.msk [vmem:[#allocation3 + $0x98] sm:$0xff] %vm741_vm10, %v1503_v19  ;;  %1061 = vst.msk [vmem:[#allocation3 + $0xe8] sm:$0xff] %vm741_vm10, %v1045_v16 }
 0x2c7   : > { %v1933_v57 = vpop.permute.xlu1 %1932  ;;  %v1269_v22 = vpop.permute.xlu0 %1268 }
 0x2c8   : > { %v1962_v59 = vsel %vm1833_vm11, %v8167_v60, %v1933_v57  ;;  %1289 = vst.msk [vmem:[#allocation3 + $0x70] sm:$0xff] %vm741_vm10, %v1269_v22 }
 0x2c9   : > { %1978 = vst.msk [vmem:[#allocation5] sm:$0xff] %vm417_vm0, %v1962_v59 }
 0x2cb   : > { %v1949_v15 = vpop.permute.xlu1 %1948  ;;  %v1277_v20 = vpop.permute.xlu0 %1276 }
 0x2cc   : > { %v1966_v38 = vsel %vm1833_vm11, %v8175_v25, %v1949_v15  ;;  %1293 = vst.msk [vmem:[#allocation3 + $0xf0] sm:$0xff] %vm741_vm10, %v1277_v20 }
 0x2cd   : > { %1982 = vst.msk [vmem:[#allocation5 + $0x80] sm:$0xff] %vm417_vm0, %v1966_v38 }
 0x2cf   : > { %v1937_v13 = vpop.permute.xlu1 %1936  ;;  %v1501_v47 = vpop.permute.xlu0 %1500 }
 0x2d0   : > { %v1963_v36 = vsel %vm1833_vm11, %v1935_v44, %v1937_v13  ;;  %1521 = vst.msk [vmem:[#allocation3 + $0x78] sm:$0xff] %vm741_vm10, %v1501_v47 }
 0x2d1   : > { %1979 = vst.msk [vmem:[#allocation5 + $0x20] sm:$0xff] %vm417_vm0, %v1963_v36 }
 0x2d3   : > { %v1953_v60 = vpop.permute.xlu1 %1952  ;;  %v1509_v29 = vpop.permute.xlu0 %1508 }
 0x2d4   : > { %v1967_v50 = vsel %vm1833_vm11, %v1951_v49, %v1953_v60  ;;  %1525 = vst.msk [vmem:[#allocation3 + $0xf8] sm:$0xff] %vm741_vm10, %v1509_v29 }
 0x2d5   : > { %1983 = vst.msk [vmem:[#allocation5 + $0xa0] sm:$0xff] %vm417_vm0, %v1967_v50 }
 0x2d7   : > { %v803_v25 = vpop.permute.xlu1 %802  ;;  %v1943_v0 = vpop.permute.xlu0 %1942 }
 0x2d8   : > { %824 = vst.msk [vmem:[#allocation3 + $0x40] sm:$0xff] %vm741_vm10, %v803_v25 }
 0x2db   : > { %v811_v46 = vpop.permute.xlu1 %810  ;;  %v1959_v48 = vpop.permute.xlu0 %1958 }
 0x2dc   : > { %828 = vst.msk [vmem:[#allocation3 + $0xc0] sm:$0xff] %vm741_vm10, %v811_v46 }
 0x2df   : > { %v1035_v44 = vpop.permute.xlu1 %1034  ;;  %v2073_v3 = vpop.permute.xlu0 %2072 }
 0x2e0   : > { %1056 = vst.msk [vmem:[#allocation3 + $0x48] sm:$0xff] %vm741_vm10, %v1035_v44  ;;  %v2094_v9 = vsel %vm2090_vm12, %v8202_v18, %v2073_v3 }
 0x2e1   : > { %2110 = vst.msk [vmem:[#allocation4 + $0x60] sm:$0xff] %vm741_vm10, %v2094_v9  ;;  %v10049_v9 = vld [vmem:[#allocation40_spill] sm:$0xff] }
 0x2e3   : > { %v1043_v49 = vpop.permute.xlu1 %1042  ;;  %v2077_v38 = vpop.permute.xlu0 %2076 }
 0x2e4   : > { %1060 = vst.msk [vmem:[#allocation3 + $0xc8] sm:$0xff] %vm741_vm10, %v1043_v49 }
 0x2e7   : > { %v1267_v41 = vpop.permute.xlu1 %1266 }
 0x2e8   : > { %1288 = vst.msk [vmem:[#allocation3 + $0x50] sm:$0xff] %vm741_vm10, %v1267_v41 }
 0x2eb   : > { %v1275_v2 = vpop.permute.xlu1 %1274 }
 0x2ec   : > { %1292 = vst.msk [vmem:[#allocation3 + $0xd0] sm:$0xff] %vm741_vm10, %v1275_v2 }
 0x2ef   : > { %v1499_v19 = vpop.permute.xlu1 %1498 }
 0x2f0   : > { %1520 = vst.msk [vmem:[#allocation3 + $0x58] sm:$0xff] %vm741_vm10, %v1499_v19 }
 0x2f3   : > { %v1507_v16 = vpop.permute.xlu1 %1506 }
 0x2f4   : > { %1524 = vst.msk [vmem:[#allocation3 + $0xd8] sm:$0xff] %vm741_vm10, %v1507_v16 }
 0x2f7   : > { %v1941_v57 = vpop.permute.xlu1 %1940 }
 0x2f8   : > { %v1964_v18 = vsel %vm1833_vm11, %v8209_v56, %v1941_v57  ;;  %v2081_v56 = vpop.permute.xlu0 %2080 }
 0x2f9   : > { %1980 = vst.msk [vmem:[#allocation5 + $0x40] sm:$0xff] %vm417_vm0, %v1964_v18 }
 0x2fb   : > { %v1957_v22 = vpop.permute.xlu1 %1956 }
 0x2fc   : > { %v1968_v59 = vsel %vm1833_vm11, %v8212_v55, %v1957_v22  ;;  %v2085_v50 = vpop.permute.xlu0 %2084 }
 0x2fd   : > { %1984 = vst.msk [vmem:[#allocation5 + $0xc0] sm:$0xff] %vm417_vm0, %v1968_v59 }
 0x2ff   : > { %v1945_v15 = vpop.permute.xlu1 %1944 }
 0x300   : > { %v1965_v20 = vsel %vm1833_vm11, %v1943_v0, %v1945_v15  ;;  %v2089_v46 = vpop.permute.xlu0 %2088 }
 0x301   : > { %1981 = vst.msk [vmem:[#allocation5 + $0x60] sm:$0xff] %vm417_vm0, %v1965_v20 }
 0x303   : > { %v1961_v13 = vpop.permute.xlu1 %1960 }
 0x304   : > { %v1969_v47 = vsel %vm1833_vm11, %v1959_v48, %v1961_v13  ;;  %v2121_v2 = vpop.permute.xlu0 %2120  ;;  %v10050_v13 = vld [vmem:[#allocation43_spill] sm:$0xff] }
 0x305   : > { %1985 = vst.msk [vmem:[#allocation5 + $0xe0] sm:$0xff] %vm417_vm0, %v1969_v47  ;;  %v2149_v16 = vmul.f32 %v2121_v2, %v7901_v14  ;;  %v2150_v57 = vmul.f32 %v2121_v2, %v8019_v12 }
 0x307   : > { %v2075_v36 = vpop.permute.xlu1 %2074 }
 0x308   : > { %v2095_v60 = vsel %vm2090_vm12, %v2075_v36, %v2077_v38  ;;  %v2133_v38 = vpop.permute.xlu0 %2132 }
 0x309   : > { %2111 = vst.msk [vmem:[#allocation4 + $0x80] sm:$0xff] %vm741_vm10, %v2095_v60  ;;  %v2155_v47 = vmul.f32 %v2133_v38, %v10050_v13 }
 0x30b   : > { %v2079_v55 = vpop.permute.xlu1 %2078 }
 0x30c   : > { %v2096_v29 = vsel %vm2090_vm12, %v2079_v55, %v2081_v56  ;;  %v2156_v56 = vmul.f32 %v2133_v38, %v8005_v10 }
 0x30d   : > { %2112 = vst.msk [vmem:[#allocation4 + $0xa0] sm:$0xff] %vm741_vm10, %v2096_v29  ;;  %v2141_v29 = vpop.permute.xlu0 %2140 }
 0x30f   : > { %v2083_v25 = vpop.permute.xlu1 %2082 }
 0x310   : > { %v2097_v0 = vsel %vm2090_vm12, %v2083_v25, %v2085_v50  ;;  %v2159_v50 = vmul.f32 %v2141_v29, %v7946_v23  ;;  %v2160_v25 = vmul.f32 %v2141_v29, %v8137_v4 }
 0x311   : > { %2113 = vst.msk [vmem:[#allocation4 + $0xc0] sm:$0xff] %vm741_vm10, %v2097_v0 }
 0x313   : > { %v2087_v48 = vpop.permute.xlu1 %2086 }
 0x314   : > { %v2098_v44 = vsel %vm2090_vm12, %v2087_v48, %v2089_v46 }
 0x315   : > { %2114 = vst.msk [vmem:[#allocation4 + $0xe0] sm:$0xff] %vm741_vm10, %v2098_v44  ;;  %v8299_v44 = vld [vmem:[%s6754_s7 + $0x8] sm:$0xff] }
 0x317   : > { %v2117_v3 = vpop.permute.xlu1 %2116 }
 0x318   : > { %v2147_v49 = vmul.f32 %v2117_v3, %v10049_v9  ;;  %v2148_v41 = vmul.f32 %v2117_v3, %v7991_v34  ;;  %v10051_v3 = vld [vmem:[#allocation56_spill] sm:$0xff] }
 0x31a   : > { %2181 = vrot.lane.b32.xlu1 %v2148_v41, %s6620_s10  ;;  %2179 = vrot.lane.b32.xlu0 %v2147_v49, %s6620_s10  ;;  %v2238_v49 = vrot.slane %v8299_v44, %v10051_v3  ;;  %v6622_v41 = vmov 18  }
 0x31b   : > { %v2125_v19 = vpop.permute.xlu1 %2124  ;;  %5997 = vset.pattern.permute.xlu0 %v6622_v41  ;;  %5996 = vset.pattern.permute.xlu1 %v6622_v41 }
 0x31c   : > { %v2151_v18 = vmul.f32 %v2125_v19, %v7930_v42  ;;  %v2152_v22 = vmul.f32 %v2125_v19, %v8124_v33 }
 0x31e   : > { %2185 = vrot.lane.b32.xlu1 %v2150_v57, %s6620_s10  ;;  %2183 = vrot.lane.b32.xlu0 %v2149_v16, %s6620_s10 }
 0x31f   : > { %v2129_v59 = vpop.permute.xlu1 %2128 }
 0x320   : > { %v2153_v15 = vmul.f32 %v2129_v59, %v8052_v45  ;;  %v2154_v20 = vmul.f32 %v2129_v59, %v8152_v31 }
 0x322   : > { %2189 = vrot.lane.b32.xlu1 %v2152_v22, %s6620_s10  ;;  %2187 = vrot.lane.b32.xlu0 %v2151_v18, %s6620_s10 }
 0x323   : > { %v2137_v36 = vpop.permute.xlu1 %2136 }
 0x324   : > { %v2157_v60 = vmul.f32 %v2137_v36, %v7915_v28  ;;  %v2158_v55 = vmul.f32 %v2137_v36, %v8034_v35 }
 0x326   : > { %2193 = vrot.lane.b32.xlu1 %v2154_v20, %s6620_s10  ;;  %2191 = vrot.lane.b32.xlu0 %v2153_v15, %s6620_s10 }
 0x327   : > { %v2145_v0 = vpop.permute.xlu1 %2144 }
 0x328   : > { %v2161_v46 = vmul.f32 %v2145_v0, %v8068_v30  ;;  %v2162_v48 = vmul.f32 %v2145_v0, %v8164_v5 }
 0x32a   : > { %2197 = vrot.lane.b32.xlu1 %v2156_v56, %s6620_s10  ;;  %2195 = vrot.lane.b32.xlu0 %v2155_v47, %s6620_s10 }
 0x32e   : > { %2201 = vrot.lane.b32.xlu1 %v2158_v55, %s6620_s10  ;;  %2199 = vrot.lane.b32.xlu0 %v2157_v60, %s6620_s10 }
 0x332   : > { %2205 = vrot.lane.b32.xlu1 %v2160_v25, %s6620_s10  ;;  %2203 = vrot.lane.b32.xlu0 %v2159_v50, %s6620_s10 }
 0x336   : > { %2209 = vrot.lane.b32.xlu1 %v2162_v48, %s6620_s10  ;;  %2207 = vrot.lane.b32.xlu0 %v2161_v46, %s6620_s10 }
 0x33a   : > { %2240 = vrot.lane.b32.xlu0 %v2238_v49, %s6610_s8 }
 0x38c   : > { %v2180_v2 = vpop.permute.xlu0 %2179  ;;  %v2182_v19 = vpop.permute.xlu1 %2181 }
 0x38d   : > { %v2211_v16 = vsel %vm2090_vm12, %v2180_v2, %v2182_v19 }
 0x38e   : > { %2227 = vst.msk [vmem:[#allocation5] sm:$0xff] %vm741_vm10, %v2211_v16  ;;  %v10052_v16 = vld [vmem:[#allocation34_spill] sm:$0xff] }
 0x390   : > { %v2184_v57 = vpop.permute.xlu0 %2183  ;;  %v2186_v18 = vpop.permute.xlu1 %2185 }
 0x391   : > { %v2212_v22 = vsel %vm2090_vm12, %v2184_v57, %v2186_v18 }
 0x392   : > { %2228 = vst.msk [vmem:[#allocation5 + $0x20] sm:$0xff] %vm741_vm10, %v2212_v22 }
 0x394   : > { %v2188_v59 = vpop.permute.xlu0 %2187  ;;  %v2190_v15 = vpop.permute.xlu1 %2189 }
 0x395   : > { %v2213_v20 = vsel %vm2090_vm12, %v2188_v59, %v2190_v15 }
 0x396   : > { %2229 = vst.msk [vmem:[#allocation5 + $0x40] sm:$0xff] %vm741_vm10, %v2213_v20 }
 0x398   : > { %v2192_v38 = vpop.permute.xlu0 %2191  ;;  %v2194_v47 = vpop.permute.xlu1 %2193 }
 0x399   : > { %v2214_v56 = vsel %vm2090_vm12, %v2192_v38, %v2194_v47 }
 0x39a   : > { %2230 = vst.msk [vmem:[#allocation5 + $0x60] sm:$0xff] %vm741_vm10, %v2214_v56 }
 0x39c   : > { %v2196_v36 = vpop.permute.xlu0 %2195  ;;  %v2198_v60 = vpop.permute.xlu1 %2197 }
 0x39d   : > { %v2215_v55 = vsel %vm2090_vm12, %v2196_v36, %v2198_v60 }
 0x39e   : > { %2231 = vst.msk [vmem:[#allocation5 + $0x80] sm:$0xff] %vm741_vm10, %v2215_v55 }
 0x3a0   : > { %v2200_v29 = vpop.permute.xlu0 %2199  ;;  %v2202_v50 = vpop.permute.xlu1 %2201 }
 0x3a1   : > { %v2216_v25 = vsel %vm2090_vm12, %v2200_v29, %v2202_v50 }
 0x3a2   : > { %2232 = vst.msk [vmem:[#allocation5 + $0xa0] sm:$0xff] %vm741_vm10, %v2216_v25 }
 0x3a4   : > { %v2204_v0 = vpop.permute.xlu0 %2203  ;;  %v2206_v46 = vpop.permute.xlu1 %2205 }
 0x3a5   : > { %v2217_v48 = vsel %vm2090_vm12, %v2204_v0, %v2206_v46 }
 0x3a6   : > { %2233 = vst.msk [vmem:[#allocation5 + $0xc0] sm:$0xff] %vm741_vm10, %v2217_v48 }
 0x3a8   : > { %v2208_v3 = vpop.permute.xlu0 %2207  ;;  %v2210_v49 = vpop.permute.xlu1 %2209 }
 0x3a9   : > { %v2218_v41 = vsel %vm2090_vm12, %v2208_v3, %v2210_v49 }
 0x3aa   : > { %2234 = vst.msk [vmem:[#allocation5 + $0xe0] sm:$0xff] %vm741_vm10, %v2218_v41 }
 0x3ac   : > { %v2241_v2 = vpop.permute.xlu0 %2240 }
 0x3ad   : > { %v2244_v19 = vmul.f32 %v2241_v2, %v7480_v32  ;;  %v2243_v57 = vmul.f32 %v2241_v2, %v10052_v16  ;;  %v2246_v18 = vmul.f32 %v2241_v2, %v10031_v1  ;;  %v2245_v22 = vmul.f32 %v2241_v2, %v7645_v21 }
 0x3ae   : > { %v2248_v38 = vmul.f32 %v2241_v2, %v10039_v37  ;;  %v2247_v56 = vmul.f32 %v2241_v2, %v7700_v26  ;;  %v2250_v60 = vmul.f32 %v2241_v2, %v7736_v61  ;;  %v2249_v29 = vmul.f32 %v2241_v2, %v7821_v39 }
 0x3af   : > { %v2261_v59 = vmul.f32 1.442695, %v2244_v19  ;;  %v2259_v15 = vmul.f32 1.442695, %v2243_v57  ;;  %v2265_v20 = vmul.f32 1.442695, %v2246_v18  ;;  %v2252_v25 = vmul.f32 %v2241_v2, %v10029_v54 }
 0x3b0   : > { %v2263_v47 = vmul.f32 1.442695, %v2245_v22  ;;  %v2269_v36 = vmul.f32 1.442695, %v2248_v38  ;;  %v2267_v55 = vmul.f32 1.442695, %v2247_v56  ;;  %v2251_v46 = vmul.f32 %v2241_v2, %v10041_v40 }
 0x3b1   : > { %6316 = vpow2.f32 %v2261_v59  ;;  %v2273_v50 = vmul.f32 1.442695, %v2250_v60  ;;  %v2271_v0 = vmul.f32 1.442695, %v2249_v29  ;;  %v2277_v49 = vmul.f32 1.442695, %v2252_v25 }
 0x3b2   : > { %6318 = vpow2.f32 %v2259_v15  ;;  %v2254_v41 = vmul.f32 %v2241_v2, %v10032_v27  ;;  %v2275_v19 = vmul.f32 1.442695, %v2251_v46  ;;  %v2253_v57 = vmul.f32 %v2241_v2, %v7659_v58 }
 0x3b3   : > { %6320 = vpow2.f32 %v2265_v20  ;;  %v2256_v15 = vmul.f32 %v2241_v2, %v7707_v52  ;;  %v2255_v38 = vmul.f32 %v2241_v2, %v7714_v11  ;;  %v2258_v60 = vmul.f32 %v2241_v2, %v7750_v53 }
 0x3b4   : > { %6322 = vpow2.f32 %v2263_v47  ;;  %v2281_v59 = vmul.f32 1.442695, %v2254_v41  ;;  %v2279_v20 = vmul.f32 1.442695, %v2253_v57  ;;  %v2257_v29 = vmul.f32 %v2241_v2, %v7836_v43 }
 0x3b5   : > { %6324 = vpow2.f32 %v2269_v36  ;;  %v2285_v36 = vmul.f32 1.442695, %v2256_v15 }
 0x3b6   : > { %6326 = vpow2.f32 %v2267_v55  ;;  %v2283_v55 = vmul.f32 1.442695, %v2255_v38  ;;  %v2287_v46 = vmul.f32 1.442695, %v2257_v29 }
 0x3b7   : > { %6328 = vpow2.f32 %v2273_v50 }
 0x3b8   : > { %6330 = vpow2.f32 %v2271_v0  ;;  %v2289_v0 = vmul.f32 1.442695, %v2258_v60 }
 0x3b9   : > { %6332 = vpow2.f32 %v2277_v49 }
 0x3ba   : > { %6334 = vpow2.f32 %v2275_v19 }
 0x3bb   : > { %v6317_v48 = vpop.eup %6316  ;;  %6336 = vpow2.f32 %v2281_v59 }
 0x3bc   : > { %v6319_v3 = vpop.eup %6318  ;;  %2309 = vrot.lane.b32.xlu0 %v6317_v48, %s6619_s9  ;;  %6338 = vpow2.f32 %v2279_v20 }
 0x3bd   : > { %2307 = vrot.lane.b32.xlu1 %v6319_v3, %s6619_s9  ;;  %v6321_v18 = vpop.eup %6320  ;;  %6340 = vpow2.f32 %v2285_v36 }
 0x3be   : > { %v6323_v22 = vpop.eup %6322  ;;  %6342 = vpow2.f32 %v2283_v55 }
 0x3bf   : > { %v6325_v47 = vpop.eup %6324  ;;  %6344 = vpow2.f32 %v2289_v0 }
 0x3c0   : > { %2313 = vrot.lane.b32.xlu0 %v6321_v18, %s6619_s9  ;;  %v6327_v56 = vpop.eup %6326  ;;  %6346 = vpow2.f32 %v2287_v46 }
 0x3c1   : > { %2311 = vrot.lane.b32.xlu1 %v6323_v22, %s6619_s9  ;;  %v6329_v50 = vpop.eup %6328 }
 0x3c2   : > { %v6331_v25 = vpop.eup %6330 }
 0x3c3   : > { %v6333_v48 = vpop.eup %6332 }
 0x3c4   : > { %2317 = vrot.lane.b32.xlu0 %v6325_v47, %s6619_s9  ;;  %v6335_v3 = vpop.eup %6334 }
 0x3c5   : > { %2315 = vrot.lane.b32.xlu1 %v6327_v56, %s6619_s9  ;;  %v6337_v49 = vpop.eup %6336 }
 0x3c6   : > { %v6339_v2 = vpop.eup %6338 }
 0x3c7   : > { %v6341_v41 = vpop.eup %6340 }
 0x3c8   : > { %2321 = vrot.lane.b32.xlu0 %v6329_v50, %s6619_s9  ;;  %v6343_v19 = vpop.eup %6342 }
 0x3c9   : > { %2319 = vrot.lane.b32.xlu1 %v6331_v25, %s6619_s9  ;;  %v6345_v57 = vpop.eup %6344 }
 0x3ca   : > { %v6347_v18 = vpop.eup %6346 }
 0x3cc   : > { %2325 = vrot.lane.b32.xlu0 %v6333_v48, %s6619_s9 }
 0x3cd   : > { %2323 = vrot.lane.b32.xlu1 %v6335_v3, %s6619_s9 }
 0x3d0   : > { %2329 = vrot.lane.b32.xlu0 %v6337_v49, %s6619_s9 }
 0x3d1   : > { %2327 = vrot.lane.b32.xlu1 %v6339_v2, %s6619_s9 }
 0x3d4   : > { %2333 = vrot.lane.b32.xlu0 %v6341_v41, %s6619_s9 }
 0x3d5   : > { %2331 = vrot.lane.b32.xlu1 %v6343_v19, %s6619_s9 }
 0x3d8   : > { %2337 = vrot.lane.b32.xlu0 %v6345_v57, %s6619_s9 }
 0x3d9   : > { %2335 = vrot.lane.b32.xlu1 %v6347_v18, %s6619_s9 }
 0x3dc   : > { %2368 = vperm.xlu0 %5997, %v10040_v24  }
 0x3dd   : > { %2364 = vperm.xlu1 %5996, %v10044_v6  }
 0x3e0   : > { %2380 = vperm.xlu0 %5997, %v10042_v62  }
 0x3e1   : > { %2372 = vperm.xlu1 %5996, %v10045_v8  }
 0x3e4   : > { %2388 = vperm.xlu0 %5997, %v10043_v7  }
 0x3e5   : > { %2376 = vperm.xlu1 %5996, %v10046_v51  }
 0x3e9   : > { %2384 = vperm.xlu1 %5996, %v10047_v17  }
 0x3ed   : > { %2392 = vperm.xlu1 %5996, %v10048_v63  }
 0x42e   : > { %v2310_v22 = vpop.permute.xlu0 %2309 }
 0x42f   : > { %v2308_v59 = vpop.permute.xlu1 %2307 }
 0x430   : > { %v2339_v15 = vsel %vm1833_vm11, %v2308_v59, %v2310_v22 }
 0x431   : > { %2355 = vst.msk [vmem:[#allocation4 + $0x8] sm:$0xff] %vm417_vm0, %v2339_v15 }
 0x432   : > { %v2314_v20 = vpop.permute.xlu0 %2313 }
 0x433   : > { %v2312_v38 = vpop.permute.xlu1 %2311 }
 0x434   : > { %v2340_v47 = vsel %vm1833_vm11, %v2312_v38, %v2314_v20 }
 0x435   : > { %2356 = vst.msk [vmem:[#allocation4 + $0x28] sm:$0xff] %vm417_vm0, %v2340_v47 }
 0x436   : > { %v2318_v56 = vpop.permute.xlu0 %2317 }
 0x437   : > { %v2316_v36 = vpop.permute.xlu1 %2315 }
 0x438   : > { %v2341_v60 = vsel %vm1833_vm11, %v2316_v36, %v2318_v56 }
 0x439   : > { %2357 = vst.msk [vmem:[#allocation4 + $0x48] sm:$0xff] %vm417_vm0, %v2341_v60 }
 0x43a   : > { %v2322_v55 = vpop.permute.xlu0 %2321 }
 0x43b   : > { %v2320_v29 = vpop.permute.xlu1 %2319 }
 0x43c   : > { %v2342_v50 = vsel %vm1833_vm11, %v2320_v29, %v2322_v55 }
 0x43d   : > { %2358 = vst.msk [vmem:[#allocation4 + $0x68] sm:$0xff] %vm417_vm0, %v2342_v50 }
 0x43e   : > { %v2326_v25 = vpop.permute.xlu0 %2325 }
 0x43f   : > { %v2324_v0 = vpop.permute.xlu1 %2323 }
 0x440   : > { %v2343_v46 = vsel %vm1833_vm11, %v2324_v0, %v2326_v25 }
 0x441   : > { %2359 = vst.msk [vmem:[#allocation4 + $0x88] sm:$0xff] %vm417_vm0, %v2343_v46 }
 0x442   : > { %v2330_v48 = vpop.permute.xlu0 %2329 }
 0x443   : > { %v2328_v3 = vpop.permute.xlu1 %2327 }
 0x444   : > { %v2344_v49 = vsel %vm1833_vm11, %v2328_v3, %v2330_v48 }
 0x445   : > { %2360 = vst.msk [vmem:[#allocation4 + $0xa8] sm:$0xff] %vm417_vm0, %v2344_v49 }
 0x446   : > { %v2334_v2 = vpop.permute.xlu0 %2333 }
 0x447   : > { %v2332_v41 = vpop.permute.xlu1 %2331 }
 0x448   : > { %v2345_v19 = vsel %vm1833_vm11, %v2332_v41, %v2334_v2 }
 0x449   : > { %2361 = vst.msk [vmem:[#allocation4 + $0xc8] sm:$0xff] %vm417_vm0, %v2345_v19 }
 0x44a   : > { %v2338_v57 = vpop.permute.xlu0 %2337 }
 0x44b   : > { %v2336_v18 = vpop.permute.xlu1 %2335 }
 0x44c   : > { %v2346_v22 = vsel %vm1833_vm11, %v2336_v18, %v2338_v57 }
 0x44d   : > { %2362 = vst.msk [vmem:[#allocation4 + $0xe8] sm:$0xff] %vm417_vm0, %v2346_v22 }
 0x45b   : > { %v2369_v38 = vpop.permute.xlu0 %2368 }
 0x45c   : > { %v2365_v59 = vpop.permute.xlu1 %2364  ;;  %v2397_v56 = vmul.f32 %v2369_v38, %v7901_v14  ;;  %v2398_v36 = vmul.f32 %v2369_v38, %v8019_v12  ;;  %v6623_v38 = vmov 19  }
 0x45d   : > { %v2395_v15 = vmul.f32 %v2365_v59, %v10049_v9  ;;  %v2396_v20 = vmul.f32 %v2365_v59, %v7991_v34  ;;  %5999 = vset.pattern.permute.xlu0 %v6623_v38  ;;  %5998 = vset.pattern.permute.xlu1 %v6623_v38 }
 0x45f   : > { %2429 = vrot.lane.b32.xlu1 %v2396_v20, %s6619_s9  ;;  %2427 = vrot.lane.b32.xlu0 %v2395_v15, %s6619_s9  ;;  %v2381_v0 = vpop.permute.xlu0 %2380  ;;  %v10053_v15 = vld [vmem:[#allocation33_spill] sm:$0xff] }
 0x460   : > { %v2373_v47 = vpop.permute.xlu1 %2372  ;;  %v2403_v46 = vmul.f32 %v2381_v0, %v10050_v13  ;;  %v2404_v48 = vmul.f32 %v2381_v0, %v8005_v10  ;;  %v2486_v20 = vrot.slane %v8299_v44, %v10053_v15 }
 0x461   : > { %v2399_v60 = vmul.f32 %v2373_v47, %v7930_v42  ;;  %v2400_v55 = vmul.f32 %v2373_v47, %v8124_v33 }
 0x463   : > { %2433 = vrot.lane.b32.xlu1 %v2398_v36, %s6619_s9  ;;  %2431 = vrot.lane.b32.xlu0 %v2397_v56, %s6619_s9  ;;  %v2389_v41 = vpop.permute.xlu0 %2388 }
 0x464   : > { %v2377_v29 = vpop.permute.xlu1 %2376  ;;  %v2407_v19 = vmul.f32 %v2389_v41, %v7946_v23  ;;  %v2408_v57 = vmul.f32 %v2389_v41, %v8137_v4 }
 0x465   : > { %v2401_v50 = vmul.f32 %v2377_v29, %v8052_v45  ;;  %v2402_v25 = vmul.f32 %v2377_v29, %v8152_v31 }
 0x467   : > { %2437 = vrot.lane.b32.xlu1 %v2400_v55, %s6619_s9  ;;  %2435 = vrot.lane.b32.xlu0 %v2399_v60, %s6619_s9 }
 0x468   : > { %v2385_v3 = vpop.permute.xlu1 %2384 }
 0x469   : > { %v2405_v49 = vmul.f32 %v2385_v3, %v7915_v28  ;;  %v2406_v2 = vmul.f32 %v2385_v3, %v8034_v35 }
 0x46b   : > { %2441 = vrot.lane.b32.xlu1 %v2402_v25, %s6619_s9  ;;  %2439 = vrot.lane.b32.xlu0 %v2401_v50, %s6619_s9 }
 0x46c   : > { %v2393_v18 = vpop.permute.xlu1 %2392 }
 0x46d   : > { %v2409_v22 = vmul.f32 %v2393_v18, %v8068_v30  ;;  %v2410_v59 = vmul.f32 %v2393_v18, %v8164_v5 }
 0x46f   : > { %2445 = vrot.lane.b32.xlu1 %v2404_v48, %s6619_s9  ;;  %2443 = vrot.lane.b32.xlu0 %v2403_v46, %s6619_s9 }
 0x473   : > { %2449 = vrot.lane.b32.xlu1 %v2406_v2, %s6619_s9  ;;  %2447 = vrot.lane.b32.xlu0 %v2405_v49, %s6619_s9 }
 0x477   : > { %2453 = vrot.lane.b32.xlu1 %v2408_v57, %s6619_s9  ;;  %2451 = vrot.lane.b32.xlu0 %v2407_v19, %s6619_s9 }
 0x47b   : > { %2457 = vrot.lane.b32.xlu1 %v2410_v59, %s6619_s9  ;;  %2455 = vrot.lane.b32.xlu0 %v2409_v22, %s6619_s9 }
 0x47f   : > { %2488 = vrot.lane.b32.xlu0 %v2486_v20, %s6610_s8 }
 0x4d1   : > { %v2428_v47 = vpop.permute.xlu0 %2427  ;;  %v2430_v56 = vpop.permute.xlu1 %2429 }
 0x4d2   : > { %v2459_v36 = vsel %vm1833_vm11, %v2428_v47, %v2430_v56 }
 0x4d3   : > { %2475 = vst.msk [vmem:[#allocation5 + $0x8] sm:$0xff] %vm417_vm0, %v2459_v36 }
 0x4d5   : > { %v2432_v60 = vpop.permute.xlu0 %2431  ;;  %v2434_v55 = vpop.permute.xlu1 %2433 }
 0x4d6   : > { %v2460_v29 = vsel %vm1833_vm11, %v2432_v60, %v2434_v55 }
 0x4d7   : > { %2476 = vst.msk [vmem:[#allocation5 + $0x28] sm:$0xff] %vm417_vm0, %v2460_v29 }
 0x4d9   : > { %v2436_v50 = vpop.permute.xlu0 %2435  ;;  %v2438_v25 = vpop.permute.xlu1 %2437 }
 0x4da   : > { %v2461_v0 = vsel %vm1833_vm11, %v2436_v50, %v2438_v25 }
 0x4db   : > { %2477 = vst.msk [vmem:[#allocation5 + $0x48] sm:$0xff] %vm417_vm0, %v2461_v0 }
 0x4dd   : > { %v2440_v46 = vpop.permute.xlu0 %2439  ;;  %v2442_v48 = vpop.permute.xlu1 %2441 }
 0x4de   : > { %v2462_v3 = vsel %vm1833_vm11, %v2440_v46, %v2442_v48 }
 0x4df   : > { %2478 = vst.msk [vmem:[#allocation5 + $0x68] sm:$0xff] %vm417_vm0, %v2462_v3 }
 0x4e1   : > { %v2444_v49 = vpop.permute.xlu0 %2443  ;;  %v2446_v2 = vpop.permute.xlu1 %2445 }
 0x4e2   : > { %v2463_v41 = vsel %vm1833_vm11, %v2444_v49, %v2446_v2 }
 0x4e3   : > { %2479 = vst.msk [vmem:[#allocation5 + $0x88] sm:$0xff] %vm417_vm0, %v2463_v41 }
 0x4e5   : > { %v2448_v19 = vpop.permute.xlu0 %2447  ;;  %v2450_v57 = vpop.permute.xlu1 %2449 }
 0x4e6   : > { %v2464_v18 = vsel %vm1833_vm11, %v2448_v19, %v2450_v57 }
 0x4e7   : > { %2480 = vst.msk [vmem:[#allocation5 + $0xa8] sm:$0xff] %vm417_vm0, %v2464_v18 }
 0x4e9   : > { %v2452_v22 = vpop.permute.xlu0 %2451  ;;  %v2454_v59 = vpop.permute.xlu1 %2453 }
 0x4ea   : > { %v2465_v15 = vsel %vm1833_vm11, %v2452_v22, %v2454_v59 }
 0x4eb   : > { %2481 = vst.msk [vmem:[#allocation5 + $0xc8] sm:$0xff] %vm417_vm0, %v2465_v15 }
 0x4ed   : > { %v2456_v20 = vpop.permute.xlu0 %2455  ;;  %v2458_v38 = vpop.permute.xlu1 %2457 }
 0x4ee   : > { %v2466_v47 = vsel %vm1833_vm11, %v2456_v20, %v2458_v38 }
 0x4ef   : > { %2482 = vst.msk [vmem:[#allocation5 + $0xe8] sm:$0xff] %vm417_vm0, %v2466_v47 }
 0x4f1   : > { %v2489_v56 = vpop.permute.xlu0 %2488 }
 0x4f2   : > { %v2492_v36 = vmul.f32 %v2489_v56, %v7480_v32  ;;  %v2491_v60 = vmul.f32 %v2489_v56, %v10052_v16  ;;  %v2494_v55 = vmul.f32 %v2489_v56, %v10031_v1  ;;  %v2493_v29 = vmul.f32 %v2489_v56, %v7645_v21 }
 0x4f3   : > { %v2496_v46 = vmul.f32 %v2489_v56, %v10039_v37  ;;  %v2495_v3 = vmul.f32 %v2489_v56, %v7700_v26  ;;  %v2498_v2 = vmul.f32 %v2489_v56, %v7736_v61  ;;  %v2497_v19 = vmul.f32 %v2489_v56, %v7821_v39 }
 0x4f4   : > { %v2509_v50 = vmul.f32 1.442695, %v2492_v36  ;;  %v2507_v25 = vmul.f32 1.442695, %v2491_v60  ;;  %v2513_v0 = vmul.f32 1.442695, %v2494_v55  ;;  %v2500_v18 = vmul.f32 %v2489_v56, %v10029_v54 }
 0x4f5   : > { %v2511_v48 = vmul.f32 1.442695, %v2493_v29  ;;  %v2517_v49 = vmul.f32 1.442695, %v2496_v46  ;;  %v2515_v41 = vmul.f32 1.442695, %v2495_v3  ;;  %v2499_v59 = vmul.f32 %v2489_v56, %v10041_v40 }
 0x4f6   : > { %6348 = vpow2.f32 %v2509_v50  ;;  %v2521_v57 = vmul.f32 1.442695, %v2498_v2  ;;  %v2519_v22 = vmul.f32 1.442695, %v2497_v19  ;;  %v2525_v38 = vmul.f32 1.442695, %v2500_v18 }
 0x4f7   : > { %6350 = vpow2.f32 %v2507_v25  ;;  %v2502_v47 = vmul.f32 %v2489_v56, %v10032_v27  ;;  %v2523_v36 = vmul.f32 1.442695, %v2499_v59  ;;  %v2501_v60 = vmul.f32 %v2489_v56, %v7659_v58 }
 0x4f8   : > { %6352 = vpow2.f32 %v2513_v0  ;;  %v2504_v25 = vmul.f32 %v2489_v56, %v7707_v52  ;;  %v2503_v46 = vmul.f32 %v2489_v56, %v7714_v11  ;;  %v2506_v2 = vmul.f32 %v2489_v56, %v7750_v53 }
 0x4f9   : > { %6354 = vpow2.f32 %v2511_v48  ;;  %v2529_v50 = vmul.f32 1.442695, %v2502_v47  ;;  %v2527_v0 = vmul.f32 1.442695, %v2501_v60  ;;  %v2505_v19 = vmul.f32 %v2489_v56, %v7836_v43 }
 0x4fa   : > { %6356 = vpow2.f32 %v2517_v49  ;;  %v2533_v49 = vmul.f32 1.442695, %v2504_v25 }
 0x4fb   : > { %6358 = vpow2.f32 %v2515_v41  ;;  %v2531_v41 = vmul.f32 1.442695, %v2503_v46  ;;  %v2535_v59 = vmul.f32 1.442695, %v2505_v19 }
 0x4fc   : > { %6360 = vpow2.f32 %v2521_v57 }
 0x4fd   : > { %6362 = vpow2.f32 %v2519_v22  ;;  %v2537_v22 = vmul.f32 1.442695, %v2506_v2 }
 0x4fe   : > { %6364 = vpow2.f32 %v2525_v38 }
 0x4ff   : > { %6366 = vpow2.f32 %v2523_v36 }
 0x500   : > { %v6349_v15 = vpop.eup %6348  ;;  %6368 = vpow2.f32 %v2529_v50 }
 0x501   : > { %v6351_v20 = vpop.eup %6350  ;;  %2557 = vrot.lane.b32.xlu0 %v6349_v15, %s6620_s10  ;;  %6370 = vpow2.f32 %v2527_v0 }
 0x502   : > { %2555 = vrot.lane.b32.xlu1 %v6351_v20, %s6620_s10  ;;  %v6353_v55 = vpop.eup %6352  ;;  %6372 = vpow2.f32 %v2533_v49 }
 0x503   : > { %v6355_v29 = vpop.eup %6354  ;;  %6374 = vpow2.f32 %v2531_v41 }
 0x504   : > { %v6357_v48 = vpop.eup %6356  ;;  %6376 = vpow2.f32 %v2537_v22 }
 0x505   : > { %2561 = vrot.lane.b32.xlu0 %v6353_v55, %s6620_s10  ;;  %v6359_v3 = vpop.eup %6358  ;;  %6378 = vpow2.f32 %v2535_v59 }
 0x506   : > { %2559 = vrot.lane.b32.xlu1 %v6355_v29, %s6620_s10  ;;  %v6361_v57 = vpop.eup %6360 }
 0x507   : > { %v6363_v18 = vpop.eup %6362 }
 0x508   : > { %v6365_v15 = vpop.eup %6364 }
 0x509   : > { %2565 = vrot.lane.b32.xlu0 %v6357_v48, %s6620_s10  ;;  %v6367_v20 = vpop.eup %6366 }
 0x50a   : > { %2563 = vrot.lane.b32.xlu1 %v6359_v3, %s6620_s10  ;;  %v6369_v38 = vpop.eup %6368 }
 0x50b   : > { %v6371_v56 = vpop.eup %6370 }
 0x50c   : > { %v6373_v47 = vpop.eup %6372 }
 0x50d   : > { %2569 = vrot.lane.b32.xlu0 %v6361_v57, %s6620_s10  ;;  %v6375_v36 = vpop.eup %6374 }
 0x50e   : > { %2567 = vrot.lane.b32.xlu1 %v6363_v18, %s6620_s10  ;;  %v6377_v60 = vpop.eup %6376 }
 0x50f   : > { %v6379_v55 = vpop.eup %6378 }
 0x511   : > { %2573 = vrot.lane.b32.xlu0 %v6365_v15, %s6620_s10 }
 0x512   : > { %2571 = vrot.lane.b32.xlu1 %v6367_v20, %s6620_s10 }
 0x515   : > { %2577 = vrot.lane.b32.xlu0 %v6369_v38, %s6620_s10 }
 0x516   : > { %2575 = vrot.lane.b32.xlu1 %v6371_v56, %s6620_s10 }
 0x519   : > { %2581 = vrot.lane.b32.xlu0 %v6373_v47, %s6620_s10 }
 0x51a   : > { %2579 = vrot.lane.b32.xlu1 %v6375_v36, %s6620_s10 }
 0x51d   : > { %2585 = vrot.lane.b32.xlu0 %v6377_v60, %s6620_s10 }
 0x51e   : > { %2583 = vrot.lane.b32.xlu1 %v6379_v55, %s6620_s10 }
 0x521   : > { %2616 = vperm.xlu0 %5999, %v10040_v24  }
 0x522   : > { %2612 = vperm.xlu1 %5998, %v10044_v6  }
 0x525   : > { %2628 = vperm.xlu0 %5999, %v10042_v62  }
 0x526   : > { %2620 = vperm.xlu1 %5998, %v10045_v8  }
 0x529   : > { %2636 = vperm.xlu0 %5999, %v10043_v7  }
 0x52a   : > { %2624 = vperm.xlu1 %5998, %v10046_v51  }
 0x52e   : > { %2632 = vperm.xlu1 %5998, %v10047_v17  }
 0x532   : > { %2640 = vperm.xlu1 %5998, %v10048_v63  }
 0x573   : > { %v2558_v29 = vpop.permute.xlu0 %2557 }
 0x574   : > { %v2556_v50 = vpop.permute.xlu1 %2555 }
 0x575   : > { %v2587_v25 = vsel %vm2090_vm12, %v2556_v50, %v2558_v29 }
 0x576   : > { %2603 = vst.msk [vmem:[#allocation4 + $0x8] sm:$0xff] %vm741_vm10, %v2587_v25 }
 0x577   : > { %v2562_v0 = vpop.permute.xlu0 %2561 }
 0x578   : > { %v2560_v46 = vpop.permute.xlu1 %2559 }
 0x579   : > { %v2588_v48 = vsel %vm2090_vm12, %v2560_v46, %v2562_v0 }
 0x57a   : > { %2604 = vst.msk [vmem:[#allocation4 + $0x28] sm:$0xff] %vm741_vm10, %v2588_v48 }
 0x57b   : > { %v2566_v3 = vpop.permute.xlu0 %2565 }
 0x57c   : > { %v2564_v49 = vpop.permute.xlu1 %2563 }
 0x57d   : > { %v2589_v2 = vsel %vm2090_vm12, %v2564_v49, %v2566_v3 }
 0x57e   : > { %2605 = vst.msk [vmem:[#allocation4 + $0x48] sm:$0xff] %vm741_vm10, %v2589_v2 }
 0x57f   : > { %v2570_v41 = vpop.permute.xlu0 %2569 }
 0x580   : > { %v2568_v19 = vpop.permute.xlu1 %2567 }
 0x581   : > { %v2590_v57 = vsel %vm2090_vm12, %v2568_v19, %v2570_v41 }
 0x582   : > { %2606 = vst.msk [vmem:[#allocation4 + $0x68] sm:$0xff] %vm741_vm10, %v2590_v57 }
 0x583   : > { %v2574_v18 = vpop.permute.xlu0 %2573 }
 0x584   : > { %v2572_v22 = vpop.permute.xlu1 %2571 }
 0x585   : > { %v2591_v59 = vsel %vm2090_vm12, %v2572_v22, %v2574_v18 }
 0x586   : > { %2607 = vst.msk [vmem:[#allocation4 + $0x88] sm:$0xff] %vm741_vm10, %v2591_v59 }
 0x587   : > { %v2578_v15 = vpop.permute.xlu0 %2577 }
 0x588   : > { %v2576_v20 = vpop.permute.xlu1 %2575 }
 0x589   : > { %v2592_v38 = vsel %vm2090_vm12, %v2576_v20, %v2578_v15 }
 0x58a   : > { %2608 = vst.msk [vmem:[#allocation4 + $0xa8] sm:$0xff] %vm741_vm10, %v2592_v38 }
 0x58b   : > { %v2582_v56 = vpop.permute.xlu0 %2581 }
 0x58c   : > { %v2580_v47 = vpop.permute.xlu1 %2579 }
 0x58d   : > { %v2593_v36 = vsel %vm2090_vm12, %v2580_v47, %v2582_v56 }
 0x58e   : > { %2609 = vst.msk [vmem:[#allocation4 + $0xc8] sm:$0xff] %vm741_vm10, %v2593_v36 }
 0x58f   : > { %v2586_v60 = vpop.permute.xlu0 %2585 }
 0x590   : > { %v2584_v55 = vpop.permute.xlu1 %2583 }
 0x591   : > { %v2594_v29 = vsel %vm2090_vm12, %v2584_v55, %v2586_v60 }
 0x592   : > { %2610 = vst.msk [vmem:[#allocation4 + $0xe8] sm:$0xff] %vm741_vm10, %v2594_v29 }
 0x5a0   : > { %v2617_v46 = vpop.permute.xlu0 %2616 }
 0x5a1   : > { %v2613_v50 = vpop.permute.xlu1 %2612  ;;  %v2645_v3 = vmul.f32 %v2617_v46, %v7901_v14  ;;  %v2646_v49 = vmul.f32 %v2617_v46, %v8019_v12 }
 0x5a2   : > { %v2643_v25 = vmul.f32 %v2613_v50, %v10049_v9  ;;  %v2644_v0 = vmul.f32 %v2613_v50, %v7991_v34 }
 0x5a4   : > { %2677 = vrot.lane.b32.xlu1 %v2644_v0, %s6620_s10  ;;  %2675 = vrot.lane.b32.xlu0 %v2643_v25, %s6620_s10  ;;  %v2629_v22 = vpop.permute.xlu0 %2628  ;;  %v10054_v25 = vld [vmem:[#allocation6_spill] sm:$0xff] }
 0x5a5   : > { %v2621_v48 = vpop.permute.xlu1 %2620  ;;  %v2651_v59 = vmul.f32 %v2629_v22, %v10050_v13  ;;  %v2652_v15 = vmul.f32 %v2629_v22, %v8005_v10  ;;  %v10055_v0 = vsub.s32 4, %v10054_v25 }
 0x5a6   : > { %v2647_v2 = vmul.f32 %v2621_v48, %v7930_v42  ;;  %v2648_v41 = vmul.f32 %v2621_v48, %v8124_v33  ;;  %v6624_v48 = vmov 20  }
 0x5a7   : > { %v2734_v46 = vrot.slane %v8299_v44, %v10055_v0  ;;  %6001 = vset.pattern.permute.xlu0 %v6624_v48  ;;  %6000 = vset.pattern.permute.xlu1 %v6624_v48 }
 0x5a8   : > { %2681 = vrot.lane.b32.xlu1 %v2646_v49, %s6620_s10  ;;  %2679 = vrot.lane.b32.xlu0 %v2645_v3, %s6620_s10  ;;  %v2637_v47 = vpop.permute.xlu0 %2636 }
 0x5a9   : > { %v2625_v19 = vpop.permute.xlu1 %2624  ;;  %v2655_v36 = vmul.f32 %v2637_v47, %v7946_v23  ;;  %v2656_v60 = vmul.f32 %v2637_v47, %v8137_v4 }
 0x5aa   : > { %v2649_v57 = vmul.f32 %v2625_v19, %v8052_v45  ;;  %v2650_v18 = vmul.f32 %v2625_v19, %v8152_v31 }
 0x5ac   : > { %2685 = vrot.lane.b32.xlu1 %v2648_v41, %s6620_s10  ;;  %2683 = vrot.lane.b32.xlu0 %v2647_v2, %s6620_s10 }
 0x5ad   : > { %v2633_v20 = vpop.permute.xlu1 %2632 }
 0x5ae   : > { %v2653_v38 = vmul.f32 %v2633_v20, %v7915_v28  ;;  %v2654_v56 = vmul.f32 %v2633_v20, %v8034_v35 }
 0x5b0   : > { %2689 = vrot.lane.b32.xlu1 %v2650_v18, %s6620_s10  ;;  %2687 = vrot.lane.b32.xlu0 %v2649_v57, %s6620_s10 }
 0x5b1   : > { %v2641_v55 = vpop.permute.xlu1 %2640 }
 0x5b2   : > { %v2657_v29 = vmul.f32 %v2641_v55, %v8068_v30  ;;  %v2658_v50 = vmul.f32 %v2641_v55, %v8164_v5 }
 0x5b4   : > { %2693 = vrot.lane.b32.xlu1 %v2652_v15, %s6620_s10  ;;  %2691 = vrot.lane.b32.xlu0 %v2651_v59, %s6620_s10 }
 0x5b8   : > { %2697 = vrot.lane.b32.xlu1 %v2654_v56, %s6620_s10  ;;  %2695 = vrot.lane.b32.xlu0 %v2653_v38, %s6620_s10 }
 0x5bc   : > { %2701 = vrot.lane.b32.xlu1 %v2656_v60, %s6620_s10  ;;  %2699 = vrot.lane.b32.xlu0 %v2655_v36, %s6620_s10 }
 0x5c0   : > { %2705 = vrot.lane.b32.xlu1 %v2658_v50, %s6620_s10  ;;  %2703 = vrot.lane.b32.xlu0 %v2657_v29, %s6620_s10 }
 0x5c4   : > { %2736 = vrot.lane.b32.xlu0 %v2734_v46, %s6610_s8 }
 0x616   : > { %v2676_v3 = vpop.permute.xlu0 %2675  ;;  %v2678_v49 = vpop.permute.xlu1 %2677 }
 0x617   : > { %v2707_v2 = vsel %vm2090_vm12, %v2676_v3, %v2678_v49 }
 0x618   : > { %2723 = vst.msk [vmem:[#allocation5 + $0x8] sm:$0xff] %vm741_vm10, %v2707_v2 }
 0x61a   : > { %v2680_v41 = vpop.permute.xlu0 %2679  ;;  %v2682_v19 = vpop.permute.xlu1 %2681 }
 0x61b   : > { %v2708_v57 = vsel %vm2090_vm12, %v2680_v41, %v2682_v19 }
 0x61c   : > { %2724 = vst.msk [vmem:[#allocation5 + $0x28] sm:$0xff] %vm741_vm10, %v2708_v57 }
 0x61e   : > { %v2684_v18 = vpop.permute.xlu0 %2683  ;;  %v2686_v22 = vpop.permute.xlu1 %2685 }
 0x61f   : > { %v2709_v44 = vsel %vm2090_vm12, %v2684_v18, %v2686_v22 }
 0x620   : > { %2725 = vst.msk [vmem:[#allocation5 + $0x48] sm:$0xff] %vm741_vm10, %v2709_v44 }
 0x622   : > { %v2688_v59 = vpop.permute.xlu0 %2687  ;;  %v2690_v15 = vpop.permute.xlu1 %2689 }
 0x623   : > { %v2710_v20 = vsel %vm2090_vm12, %v2688_v59, %v2690_v15 }
 0x624   : > { %2726 = vst.msk [vmem:[#allocation5 + $0x68] sm:$0xff] %vm741_vm10, %v2710_v20 }
 0x626   : > { %v2692_v38 = vpop.permute.xlu0 %2691  ;;  %v2694_v56 = vpop.permute.xlu1 %2693 }
 0x627   : > { %v2711_v47 = vsel %vm2090_vm12, %v2692_v38, %v2694_v56 }
 0x628   : > { %2727 = vst.msk [vmem:[#allocation5 + $0x88] sm:$0xff] %vm741_vm10, %v2711_v47 }
 0x62a   : > { %v2696_v36 = vpop.permute.xlu0 %2695  ;;  %v2698_v60 = vpop.permute.xlu1 %2697 }
 0x62b   : > { %v2712_v55 = vsel %vm2090_vm12, %v2696_v36, %v2698_v60 }
 0x62c   : > { %2728 = vst.msk [vmem:[#allocation5 + $0xa8] sm:$0xff] %vm741_vm10, %v2712_v55 }
 0x62e   : > { %v2700_v29 = vpop.permute.xlu0 %2699  ;;  %v2702_v50 = vpop.permute.xlu1 %2701 }
 0x62f   : > { %v2713_v0 = vsel %vm2090_vm12, %v2700_v29, %v2702_v50 }
 0x630   : > { %2729 = vst.msk [vmem:[#allocation5 + $0xc8] sm:$0xff] %vm741_vm10, %v2713_v0 }
 0x632   : > { %v2704_v46 = vpop.permute.xlu0 %2703  ;;  %v2706_v48 = vpop.permute.xlu1 %2705 }
 0x633   : > { %v2714_v3 = vsel %vm2090_vm12, %v2704_v46, %v2706_v48 }
 0x634   : > { %2730 = vst.msk [vmem:[#allocation5 + $0xe8] sm:$0xff] %vm741_vm10, %v2714_v3 }
 0x636   : > { %v2737_v49 = vpop.permute.xlu0 %2736 }
 0x637   : > { %v2740_v2 = vmul.f32 %v2737_v49, %v7480_v32  ;;  %v2739_v41 = vmul.f32 %v2737_v49, %v10052_v16  ;;  %v2742_v19 = vmul.f32 %v2737_v49, %v10031_v1  ;;  %v2741_v57 = vmul.f32 %v2737_v49, %v7645_v21 }
 0x638   : > { %v2744_v59 = vmul.f32 %v2737_v49, %v10039_v37  ;;  %v2743_v20 = vmul.f32 %v2737_v49, %v7700_v26  ;;  %v2746_v56 = vmul.f32 %v2737_v49, %v7736_v61  ;;  %v2745_v36 = vmul.f32 %v2737_v49, %v7821_v39 }
 0x639   : > { %v2757_v18 = vmul.f32 1.442695, %v2740_v2  ;;  %v2755_v22 = vmul.f32 1.442695, %v2739_v41  ;;  %v2761_v44 = vmul.f32 1.442695, %v2742_v19  ;;  %v2748_v55 = vmul.f32 %v2737_v49, %v10029_v54 }
 0x63a   : > { %v2759_v15 = vmul.f32 1.442695, %v2741_v57  ;;  %v2765_v38 = vmul.f32 1.442695, %v2744_v59  ;;  %v2763_v47 = vmul.f32 1.442695, %v2743_v20  ;;  %v2747_v50 = vmul.f32 %v2737_v49, %v10041_v40 }
 0x63b   : > { %6380 = vpow2.f32 %v2757_v18  ;;  %v2769_v60 = vmul.f32 1.442695, %v2746_v56  ;;  %v2767_v29 = vmul.f32 1.442695, %v2745_v36  ;;  %v2773_v48 = vmul.f32 1.442695, %v2748_v55 }
 0x63c   : > { %6382 = vpow2.f32 %v2755_v22  ;;  %v2750_v3 = vmul.f32 %v2737_v49, %v10032_v27  ;;  %v2771_v2 = vmul.f32 1.442695, %v2747_v50  ;;  %v2749_v41 = vmul.f32 %v2737_v49, %v7659_v58 }
 0x63d   : > { %6384 = vpow2.f32 %v2761_v44  ;;  %v2752_v22 = vmul.f32 %v2737_v49, %v7707_v52  ;;  %v2751_v59 = vmul.f32 %v2737_v49, %v7714_v11  ;;  %v2754_v56 = vmul.f32 %v2737_v49, %v7750_v53 }
 0x63e   : > { %6386 = vpow2.f32 %v2759_v15  ;;  %v2777_v18 = vmul.f32 1.442695, %v2750_v3  ;;  %v2775_v44 = vmul.f32 1.442695, %v2749_v41  ;;  %v2753_v36 = vmul.f32 %v2737_v49, %v7836_v43 }
 0x63f   : > { %6388 = vpow2.f32 %v2765_v38  ;;  %v2781_v38 = vmul.f32 1.442695, %v2752_v22 }
 0x640   : > { %6390 = vpow2.f32 %v2763_v47  ;;  %v2779_v47 = vmul.f32 1.442695, %v2751_v59  ;;  %v2783_v50 = vmul.f32 1.442695, %v2753_v36 }
 0x641   : > { %6392 = vpow2.f32 %v2769_v60 }
 0x642   : > { %6394 = vpow2.f32 %v2767_v29  ;;  %v2785_v29 = vmul.f32 1.442695, %v2754_v56 }
 0x643   : > { %6396 = vpow2.f32 %v2773_v48 }
 0x644   : > { %6398 = vpow2.f32 %v2771_v2 }
 0x645   : > { %v6381_v0 = vpop.eup %6380  ;;  %6400 = vpow2.f32 %v2777_v18 }
 0x646   : > { %v6383_v46 = vpop.eup %6382  ;;  %2805 = vrot.lane.b32.xlu0 %v6381_v0, %s6619_s9  ;;  %6402 = vpow2.f32 %v2775_v44 }
 0x647   : > { %2803 = vrot.lane.b32.xlu1 %v6383_v46, %s6619_s9  ;;  %v6385_v19 = vpop.eup %6384  ;;  %6404 = vpow2.f32 %v2781_v38 }
 0x648   : > { %v6387_v57 = vpop.eup %6386  ;;  %6406 = vpow2.f32 %v2779_v47 }
 0x649   : > { %v6389_v15 = vpop.eup %6388  ;;  %6408 = vpow2.f32 %v2785_v29 }
 0x64a   : > { %2809 = vrot.lane.b32.xlu0 %v6385_v19, %s6619_s9  ;;  %v6391_v20 = vpop.eup %6390  ;;  %6410 = vpow2.f32 %v2783_v50 }
 0x64b   : > { %2807 = vrot.lane.b32.xlu1 %v6387_v57, %s6619_s9  ;;  %v6393_v60 = vpop.eup %6392 }
 0x64c   : > { %v6395_v55 = vpop.eup %6394 }
 0x64d   : > { %v6397_v0 = vpop.eup %6396 }
 0x64e   : > { %2813 = vrot.lane.b32.xlu0 %v6389_v15, %s6619_s9  ;;  %v6399_v46 = vpop.eup %6398 }
 0x64f   : > { %2811 = vrot.lane.b32.xlu1 %v6391_v20, %s6619_s9  ;;  %v6401_v48 = vpop.eup %6400 }
 0x650   : > { %v6403_v49 = vpop.eup %6402 }
 0x651   : > { %v6405_v3 = vpop.eup %6404 }
 0x652   : > { %2817 = vrot.lane.b32.xlu0 %v6393_v60, %s6619_s9  ;;  %v6407_v2 = vpop.eup %6406 }
 0x653   : > { %2815 = vrot.lane.b32.xlu1 %v6395_v55, %s6619_s9  ;;  %v6409_v41 = vpop.eup %6408 }
 0x654   : > { %v6411_v19 = vpop.eup %6410 }
 0x656   : > { %2821 = vrot.lane.b32.xlu0 %v6397_v0, %s6619_s9 }
 0x657   : > { %2819 = vrot.lane.b32.xlu1 %v6399_v46, %s6619_s9 }
 0x65a   : > { %2825 = vrot.lane.b32.xlu0 %v6401_v48, %s6619_s9 }
 0x65b   : > { %2823 = vrot.lane.b32.xlu1 %v6403_v49, %s6619_s9 }
 0x65e   : > { %2829 = vrot.lane.b32.xlu0 %v6405_v3, %s6619_s9 }
 0x65f   : > { %2827 = vrot.lane.b32.xlu1 %v6407_v2, %s6619_s9 }
 0x662   : > { %2833 = vrot.lane.b32.xlu0 %v6409_v41, %s6619_s9 }
 0x663   : > { %2831 = vrot.lane.b32.xlu1 %v6411_v19, %s6619_s9 }
 0x666   : > { %2864 = vperm.xlu0 %6001, %v10040_v24  }
 0x667   : > { %2860 = vperm.xlu1 %6000, %v10044_v6  }
 0x66a   : > { %2876 = vperm.xlu0 %6001, %v10042_v62  }
 0x66b   : > { %2868 = vperm.xlu1 %6000, %v10045_v8  }
 0x66e   : > { %2884 = vperm.xlu0 %6001, %v10043_v7  }
 0x66f   : > { %2872 = vperm.xlu1 %6000, %v10046_v51  }
 0x673   : > { %2880 = vperm.xlu1 %6000, %v10047_v17  }
 0x677   : > { %2888 = vperm.xlu1 %6000, %v10048_v63  }
 0x6b8   : > { %v2806_v57 = vpop.permute.xlu0 %2805 }
 0x6b9   : > { %v2804_v18 = vpop.permute.xlu1 %2803 }
 0x6ba   : > { %v2835_v22 = vsel %vm1833_vm11, %v2804_v18, %v2806_v57 }
 0x6bb   : > { %2851 = vst.msk [vmem:[#allocation4 + $0x10] sm:$0xff] %vm417_vm0, %v2835_v22 }
 0x6bc   : > { %v2810_v44 = vpop.permute.xlu0 %2809 }
 0x6bd   : > { %v2808_v59 = vpop.permute.xlu1 %2807 }
 0x6be   : > { %v2836_v15 = vsel %vm1833_vm11, %v2808_v59, %v2810_v44 }
 0x6bf   : > { %2852 = vst.msk [vmem:[#allocation4 + $0x30] sm:$0xff] %vm417_vm0, %v2836_v15 }
 0x6c0   : > { %v2814_v20 = vpop.permute.xlu0 %2813 }
 0x6c1   : > { %v2812_v38 = vpop.permute.xlu1 %2811 }
 0x6c2   : > { %v2837_v56 = vsel %vm1833_vm11, %v2812_v38, %v2814_v20 }
 0x6c3   : > { %2853 = vst.msk [vmem:[#allocation4 + $0x50] sm:$0xff] %vm417_vm0, %v2837_v56 }
 0x6c4   : > { %v2818_v47 = vpop.permute.xlu0 %2817 }
 0x6c5   : > { %v2816_v36 = vpop.permute.xlu1 %2815 }
 0x6c6   : > { %v2838_v60 = vsel %vm1833_vm11, %v2816_v36, %v2818_v47 }
 0x6c7   : > { %2854 = vst.msk [vmem:[#allocation4 + $0x70] sm:$0xff] %vm417_vm0, %v2838_v60 }
 0x6c8   : > { %v2822_v55 = vpop.permute.xlu0 %2821 }
 0x6c9   : > { %v2820_v29 = vpop.permute.xlu1 %2819 }
 0x6ca   : > { %v2839_v50 = vsel %vm1833_vm11, %v2820_v29, %v2822_v55 }
 0x6cb   : > { %2855 = vst.msk [vmem:[#allocation4 + $0x90] sm:$0xff] %vm417_vm0, %v2839_v50 }
 0x6cc   : > { %v2826_v0 = vpop.permute.xlu0 %2825 }
 0x6cd   : > { %v2824_v46 = vpop.permute.xlu1 %2823 }
 0x6ce   : > { %v2840_v48 = vsel %vm1833_vm11, %v2824_v46, %v2826_v0 }
 0x6cf   : > { %2856 = vst.msk [vmem:[#allocation4 + $0xb0] sm:$0xff] %vm417_vm0, %v2840_v48 }
 0x6d0   : > { %v2830_v49 = vpop.permute.xlu0 %2829 }
 0x6d1   : > { %v2828_v3 = vpop.permute.xlu1 %2827 }
 0x6d2   : > { %v2841_v2 = vsel %vm1833_vm11, %v2828_v3, %v2830_v49 }
 0x6d3   : > { %2857 = vst.msk [vmem:[#allocation4 + $0xd0] sm:$0xff] %vm417_vm0, %v2841_v2 }
 0x6d4   : > { %v2834_v41 = vpop.permute.xlu0 %2833 }
 0x6d5   : > { %v2832_v19 = vpop.permute.xlu1 %2831 }
 0x6d6   : > { %v2842_v57 = vsel %vm1833_vm11, %v2832_v19, %v2834_v41 }
 0x6d7   : > { %2858 = vst.msk [vmem:[#allocation4 + $0xf0] sm:$0xff] %vm417_vm0, %v2842_v57 }
 0x6e5   : > { %v2865_v59 = vpop.permute.xlu0 %2864 }
 0x6e6   : > { %v2861_v18 = vpop.permute.xlu1 %2860  ;;  %v2893_v20 = vmul.f32 %v2865_v59, %v7901_v14  ;;  %v2894_v38 = vmul.f32 %v2865_v59, %v8019_v12 }
 0x6e7   : > { %v2891_v22 = vmul.f32 %v2861_v18, %v10049_v9  ;;  %v2892_v44 = vmul.f32 %v2861_v18, %v7991_v34 }
 0x6e9   : > { %2925 = vrot.lane.b32.xlu1 %v2892_v44, %s6619_s9  ;;  %2923 = vrot.lane.b32.xlu0 %v2891_v22, %s6619_s9  ;;  %v2877_v29 = vpop.permute.xlu0 %2876  ;;  %v8624_v22 = vld [vmem:[%s6754_s7 + $0x8] sm:$0xff]  ;;  %v10056_v44 = vsub.s32 5, %v10054_v25 }
 0x6ea   : > { %v2869_v15 = vpop.permute.xlu1 %2868  ;;  %v2899_v50 = vmul.f32 %v2877_v29, %v10050_v13  ;;  %v2900_v0 = vmul.f32 %v2877_v29, %v8005_v10 }
 0x6eb   : > { %v2895_v56 = vmul.f32 %v2869_v15, %v7930_v42  ;;  %v2896_v47 = vmul.f32 %v2869_v15, %v8124_v33  ;;  %v2982_v59 = vrot.slane %v8624_v22, %v10056_v44  ;;  %v6625_v15 = vmov 21  }
 0x6ec   : > { %6003 = vset.pattern.permute.xlu0 %v6625_v15  ;;  %6002 = vset.pattern.permute.xlu1 %v6625_v15 }
 0x6ed   : > { %2929 = vrot.lane.b32.xlu1 %v2894_v38, %s6619_s9  ;;  %2927 = vrot.lane.b32.xlu0 %v2893_v20, %s6619_s9  ;;  %v2885_v3 = vpop.permute.xlu0 %2884 }
 0x6ee   : > { %v2873_v36 = vpop.permute.xlu1 %2872  ;;  %v2903_v2 = vmul.f32 %v2885_v3, %v7946_v23  ;;  %v2904_v41 = vmul.f32 %v2885_v3, %v8137_v4 }
 0x6ef   : > { %v2897_v60 = vmul.f32 %v2873_v36, %v8052_v45  ;;  %v2898_v55 = vmul.f32 %v2873_v36, %v8152_v31 }
 0x6f1   : > { %2933 = vrot.lane.b32.xlu1 %v2896_v47, %s6619_s9  ;;  %2931 = vrot.lane.b32.xlu0 %v2895_v56, %s6619_s9 }
 0x6f2   : > { %v2881_v46 = vpop.permute.xlu1 %2880 }
 0x6f3   : > { %v2901_v48 = vmul.f32 %v2881_v46, %v7915_v28  ;;  %v2902_v49 = vmul.f32 %v2881_v46, %v8034_v35 }
 0x6f5   : > { %2937 = vrot.lane.b32.xlu1 %v2898_v55, %s6619_s9  ;;  %2935 = vrot.lane.b32.xlu0 %v2897_v60, %s6619_s9 }
 0x6f6   : > { %v2889_v19 = vpop.permute.xlu1 %2888 }
 0x6f7   : > { %v2905_v57 = vmul.f32 %v2889_v19, %v8068_v30  ;;  %v2906_v18 = vmul.f32 %v2889_v19, %v8164_v5 }
 0x6f9   : > { %2941 = vrot.lane.b32.xlu1 %v2900_v0, %s6619_s9  ;;  %2939 = vrot.lane.b32.xlu0 %v2899_v50, %s6619_s9 }
 0x6fd   : > { %2945 = vrot.lane.b32.xlu1 %v2902_v49, %s6619_s9  ;;  %2943 = vrot.lane.b32.xlu0 %v2901_v48, %s6619_s9 }
 0x701   : > { %2949 = vrot.lane.b32.xlu1 %v2904_v41, %s6619_s9  ;;  %2947 = vrot.lane.b32.xlu0 %v2903_v2, %s6619_s9 }
 0x705   : > { %2953 = vrot.lane.b32.xlu1 %v2906_v18, %s6619_s9  ;;  %2951 = vrot.lane.b32.xlu0 %v2905_v57, %s6619_s9 }
 0x709   : > { %2984 = vrot.lane.b32.xlu0 %v2982_v59, %s6610_s8 }
 0x75b   : > { %v2924_v20 = vpop.permute.xlu0 %2923  ;;  %v2926_v38 = vpop.permute.xlu1 %2925 }
 0x75c   : > { %v2955_v56 = vsel %vm1833_vm11, %v2924_v20, %v2926_v38 }
 0x75d   : > { %2971 = vst.msk [vmem:[#allocation5 + $0x10] sm:$0xff] %vm417_vm0, %v2955_v56 }
 0x75f   : > { %v2928_v47 = vpop.permute.xlu0 %2927  ;;  %v2930_v36 = vpop.permute.xlu1 %2929 }
 0x760   : > { %v2956_v60 = vsel %vm1833_vm11, %v2928_v47, %v2930_v36 }
 0x761   : > { %2972 = vst.msk [vmem:[#allocation5 + $0x30] sm:$0xff] %vm417_vm0, %v2956_v60 }
 0x763   : > { %v2932_v55 = vpop.permute.xlu0 %2931  ;;  %v2934_v29 = vpop.permute.xlu1 %2933 }
 0x764   : > { %v2957_v50 = vsel %vm1833_vm11, %v2932_v55, %v2934_v29 }
 0x765   : > { %2973 = vst.msk [vmem:[#allocation5 + $0x50] sm:$0xff] %vm417_vm0, %v2957_v50 }
 0x767   : > { %v2936_v0 = vpop.permute.xlu0 %2935  ;;  %v2938_v46 = vpop.permute.xlu1 %2937 }
 0x768   : > { %v2958_v48 = vsel %vm1833_vm11, %v2936_v0, %v2938_v46 }
 0x769   : > { %2974 = vst.msk [vmem:[#allocation5 + $0x70] sm:$0xff] %vm417_vm0, %v2958_v48 }
 0x76b   : > { %v2940_v49 = vpop.permute.xlu0 %2939  ;;  %v2942_v3 = vpop.permute.xlu1 %2941 }
 0x76c   : > { %v2959_v2 = vsel %vm1833_vm11, %v2940_v49, %v2942_v3 }
 0x76d   : > { %2975 = vst.msk [vmem:[#allocation5 + $0x90] sm:$0xff] %vm417_vm0, %v2959_v2 }
 0x76f   : > { %v2944_v41 = vpop.permute.xlu0 %2943  ;;  %v2946_v19 = vpop.permute.xlu1 %2945 }
 0x770   : > { %v2960_v57 = vsel %vm1833_vm11, %v2944_v41, %v2946_v19 }
 0x771   : > { %2976 = vst.msk [vmem:[#allocation5 + $0xb0] sm:$0xff] %vm417_vm0, %v2960_v57 }
 0x773   : > { %v2948_v18 = vpop.permute.xlu0 %2947  ;;  %v2950_v44 = vpop.permute.xlu1 %2949 }
 0x774   : > { %v2961_v59 = vsel %vm1833_vm11, %v2948_v18, %v2950_v44 }
 0x775   : > { %2977 = vst.msk [vmem:[#allocation5 + $0xd0] sm:$0xff] %vm417_vm0, %v2961_v59 }
 0x777   : > { %v2952_v15 = vpop.permute.xlu0 %2951  ;;  %v2954_v20 = vpop.permute.xlu1 %2953 }
 0x778   : > { %v2962_v38 = vsel %vm1833_vm11, %v2952_v15, %v2954_v20 }
 0x779   : > { %2978 = vst.msk [vmem:[#allocation5 + $0xf0] sm:$0xff] %vm417_vm0, %v2962_v38 }
 0x77b   : > { %v2985_v56 = vpop.permute.xlu0 %2984 }
 0x77c   : > { %v2988_v47 = vmul.f32 %v2985_v56, %v7480_v32  ;;  %v2987_v36 = vmul.f32 %v2985_v56, %v10052_v16  ;;  %v2990_v60 = vmul.f32 %v2985_v56, %v10031_v1  ;;  %v2989_v55 = vmul.f32 %v2985_v56, %v7645_v21 }
 0x77d   : > { %v2992_v46 = vmul.f32 %v2985_v56, %v10039_v37  ;;  %v2991_v49 = vmul.f32 %v2985_v56, %v7700_v26  ;;  %v2994_v2 = vmul.f32 %v2985_v56, %v7736_v61  ;;  %v2993_v19 = vmul.f32 %v2985_v56, %v7821_v39 }
 0x77e   : > { %v3005_v29 = vmul.f32 1.442695, %v2988_v47  ;;  %v3003_v50 = vmul.f32 1.442695, %v2987_v36  ;;  %v3009_v0 = vmul.f32 1.442695, %v2990_v60  ;;  %v2996_v18 = vmul.f32 %v2985_v56, %v10029_v54 }
 0x77f   : > { %v3007_v48 = vmul.f32 1.442695, %v2989_v55  ;;  %v3013_v3 = vmul.f32 1.442695, %v2992_v46  ;;  %v3011_v41 = vmul.f32 1.442695, %v2991_v49  ;;  %v2995_v59 = vmul.f32 %v2985_v56, %v10041_v40 }
 0x780   : > { %6412 = vpow2.f32 %v3005_v29  ;;  %v3017_v57 = vmul.f32 1.442695, %v2994_v2  ;;  %v3015_v44 = vmul.f32 1.442695, %v2993_v19  ;;  %v3021_v38 = vmul.f32 1.442695, %v2996_v18 }
 0x781   : > { %6414 = vpow2.f32 %v3003_v50  ;;  %v2998_v47 = vmul.f32 %v2985_v56, %v10032_v27  ;;  %v3019_v36 = vmul.f32 1.442695, %v2995_v59  ;;  %v2997_v60 = vmul.f32 %v2985_v56, %v7659_v58 }
 0x782   : > { %6416 = vpow2.f32 %v3009_v0  ;;  %v3000_v0 = vmul.f32 %v2985_v56, %v7707_v52 }
 0x783   : > { %6418 = vpow2.f32 %v3007_v48  ;;  %v3025_v50 = vmul.f32 1.442695, %v2998_v47  ;;  %v3023_v46 = vmul.f32 1.442695, %v2997_v60  ;;  %v2999_v48 = vmul.f32 %v2985_v56, %v7714_v11 }
 0x784   : > { %6420 = vpow2.f32 %v3013_v3  ;;  %v3029_v2 = vmul.f32 1.442695, %v3000_v0 }
 0x785   : > { %6422 = vpow2.f32 %v3011_v41  ;;  %v3002_v41 = vmul.f32 %v2985_v56, %v7750_v53  ;;  %v3027_v19 = vmul.f32 1.442695, %v2999_v48 }
 0x786   : > { %6424 = vpow2.f32 %v3017_v57  ;;  %v3001_v57 = vmul.f32 %v2985_v56, %v7836_v43 }
 0x787   : > { %6426 = vpow2.f32 %v3015_v44  ;;  %v3033_v59 = vmul.f32 1.442695, %v3002_v41 }
 0x788   : > { %6428 = vpow2.f32 %v3021_v38 }
 0x789   : > { %6430 = vpow2.f32 %v3019_v36 }
 0x78a   : > { %v6413_v15 = vpop.eup %6412  ;;  %6432 = vpow2.f32 %v3025_v50 }
 0x78b   : > { %v6415_v20 = vpop.eup %6414  ;;  %3053 = vrot.lane.b32.xlu0 %v6413_v15, %s6620_s10  ;;  %6434 = vpow2.f32 %v3023_v46  ;;  %v3031_v15 = vmul.f32 1.442695, %v3001_v57 }
 0x78c   : > { %3051 = vrot.lane.b32.xlu1 %v6415_v20, %s6620_s10  ;;  %v6417_v55 = vpop.eup %6416  ;;  %6436 = vpow2.f32 %v3029_v2 }
 0x78d   : > { %v6419_v29 = vpop.eup %6418  ;;  %6438 = vpow2.f32 %v3027_v19 }
 0x78e   : > { %v6421_v49 = vpop.eup %6420  ;;  %6440 = vpow2.f32 %v3033_v59 }
 0x78f   : > { %3057 = vrot.lane.b32.xlu0 %v6417_v55, %s6620_s10  ;;  %v6423_v3 = vpop.eup %6422  ;;  %6442 = vpow2.f32 %v3031_v15 }
 0x790   : > { %3055 = vrot.lane.b32.xlu1 %v6419_v29, %s6620_s10  ;;  %v6425_v18 = vpop.eup %6424 }
 0x791   : > { %v6427_v44 = vpop.eup %6426 }
 0x792   : > { %v6429_v20 = vpop.eup %6428 }
 0x793   : > { %3061 = vrot.lane.b32.xlu0 %v6421_v49, %s6620_s10  ;;  %v6431_v38 = vpop.eup %6430 }
 0x794   : > { %3059 = vrot.lane.b32.xlu1 %v6423_v3, %s6620_s10  ;;  %v6433_v47 = vpop.eup %6432 }
 0x795   : > { %v6435_v56 = vpop.eup %6434 }
 0x796   : > { %v6437_v36 = vpop.eup %6436 }
 0x797   : > { %3065 = vrot.lane.b32.xlu0 %v6425_v18, %s6620_s10  ;;  %v6439_v60 = vpop.eup %6438 }
 0x798   : > { %3063 = vrot.lane.b32.xlu1 %v6427_v44, %s6620_s10  ;;  %v6441_v55 = vpop.eup %6440 }
 0x799   : > { %v6443_v29 = vpop.eup %6442 }
 0x79b   : > { %3069 = vrot.lane.b32.xlu0 %v6429_v20, %s6620_s10 }
 0x79c   : > { %3067 = vrot.lane.b32.xlu1 %v6431_v38, %s6620_s10 }
 0x79f   : > { %3073 = vrot.lane.b32.xlu0 %v6433_v47, %s6620_s10 }
 0x7a0   : > { %3071 = vrot.lane.b32.xlu1 %v6435_v56, %s6620_s10 }
 0x7a3   : > { %3077 = vrot.lane.b32.xlu0 %v6437_v36, %s6620_s10 }
 0x7a4   : > { %3075 = vrot.lane.b32.xlu1 %v6439_v60, %s6620_s10 }
 0x7a7   : > { %3081 = vrot.lane.b32.xlu0 %v6441_v55, %s6620_s10 }
 0x7a8   : > { %3079 = vrot.lane.b32.xlu1 %v6443_v29, %s6620_s10 }
 0x7ab   : > { %3112 = vperm.xlu0 %6003, %v10040_v24  }
 0x7ac   : > { %3108 = vperm.xlu1 %6002, %v10044_v6  }
 0x7af   : > { %3124 = vperm.xlu0 %6003, %v10042_v62  }
 0x7b0   : > { %3116 = vperm.xlu1 %6002, %v10045_v8  }
 0x7b3   : > { %3132 = vperm.xlu0 %6003, %v10043_v7  }
 0x7b4   : > { %3120 = vperm.xlu1 %6002, %v10046_v51  }
 0x7b8   : > { %3128 = vperm.xlu1 %6002, %v10047_v17  }
 0x7bc   : > { %3136 = vperm.xlu1 %6002, %v10048_v63  }
 0x7fd   : > { %v3054_v50 = vpop.permute.xlu0 %3053 }
 0x7fe   : > { %v3052_v0 = vpop.permute.xlu1 %3051 }
 0x7ff   : > { %v3083_v46 = vsel %vm2090_vm12, %v3052_v0, %v3054_v50 }
 0x800   : > { %3099 = vst.msk [vmem:[#allocation4 + $0x10] sm:$0xff] %vm741_vm10, %v3083_v46 }
 0x801   : > { %v3058_v48 = vpop.permute.xlu0 %3057 }
 0x802   : > { %v3056_v49 = vpop.permute.xlu1 %3055 }
 0x803   : > { %v3084_v3 = vsel %vm2090_vm12, %v3056_v49, %v3058_v48 }
 0x804   : > { %3100 = vst.msk [vmem:[#allocation4 + $0x30] sm:$0xff] %vm741_vm10, %v3084_v3 }
 0x805   : > { %v3062_v2 = vpop.permute.xlu0 %3061 }
 0x806   : > { %v3060_v41 = vpop.permute.xlu1 %3059 }
 0x807   : > { %v3085_v19 = vsel %vm2090_vm12, %v3060_v41, %v3062_v2 }
 0x808   : > { %3101 = vst.msk [vmem:[#allocation4 + $0x50] sm:$0xff] %vm741_vm10, %v3085_v19 }
 0x809   : > { %v3066_v57 = vpop.permute.xlu0 %3065 }
 0x80a   : > { %v3064_v18 = vpop.permute.xlu1 %3063 }
 0x80b   : > { %v3086_v44 = vsel %vm2090_vm12, %v3064_v18, %v3066_v57 }
 0x80c   : > { %3102 = vst.msk [vmem:[#allocation4 + $0x70] sm:$0xff] %vm741_vm10, %v3086_v44 }
 0x80d   : > { %v3070_v59 = vpop.permute.xlu0 %3069 }
 0x80e   : > { %v3068_v15 = vpop.permute.xlu1 %3067 }
 0x80f   : > { %v3087_v20 = vsel %vm2090_vm12, %v3068_v15, %v3070_v59 }
 0x810   : > { %3103 = vst.msk [vmem:[#allocation4 + $0x90] sm:$0xff] %vm741_vm10, %v3087_v20 }
 0x811   : > { %v3074_v38 = vpop.permute.xlu0 %3073 }
 0x812   : > { %v3072_v47 = vpop.permute.xlu1 %3071 }
 0x813   : > { %v3088_v56 = vsel %vm2090_vm12, %v3072_v47, %v3074_v38 }
 0x814   : > { %3104 = vst.msk [vmem:[#allocation4 + $0xb0] sm:$0xff] %vm741_vm10, %v3088_v56 }
 0x815   : > { %v3078_v36 = vpop.permute.xlu0 %3077 }
 0x816   : > { %v3076_v60 = vpop.permute.xlu1 %3075 }
 0x817   : > { %v3089_v55 = vsel %vm2090_vm12, %v3076_v60, %v3078_v36 }
 0x818   : > { %3105 = vst.msk [vmem:[#allocation4 + $0xd0] sm:$0xff] %vm741_vm10, %v3089_v55 }
 0x819   : > { %v3082_v29 = vpop.permute.xlu0 %3081 }
 0x81a   : > { %v3080_v50 = vpop.permute.xlu1 %3079 }
 0x81b   : > { %v3090_v0 = vsel %vm2090_vm12, %v3080_v50, %v3082_v29 }
 0x81c   : > { %3106 = vst.msk [vmem:[#allocation4 + $0xf0] sm:$0xff] %vm741_vm10, %v3090_v0 }
 0x82a   : > { %v3113_v3 = vpop.permute.xlu0 %3112 }
 0x82b   : > { %v3109_v46 = vpop.permute.xlu1 %3108  ;;  %v3141_v41 = vmul.f32 %v3113_v3, %v7901_v14  ;;  %v3142_v19 = vmul.f32 %v3113_v3, %v8019_v12 }
 0x82c   : > { %v3139_v48 = vmul.f32 %v3109_v46, %v10049_v9  ;;  %v3140_v49 = vmul.f32 %v3109_v46, %v7991_v34 }
 0x82e   : > { %3173 = vrot.lane.b32.xlu1 %v3140_v49, %s6620_s10  ;;  %3171 = vrot.lane.b32.xlu0 %v3139_v48, %s6620_s10  ;;  %v3125_v20 = vpop.permute.xlu0 %3124  ;;  %v10057_v49 = vsub.s32 6, %v10054_v25 }
 0x82f   : > { %v3117_v2 = vpop.permute.xlu1 %3116  ;;  %v3147_v38 = vmul.f32 %v3125_v20, %v10050_v13  ;;  %v3148_v47 = vmul.f32 %v3125_v20, %v8005_v10 }
 0x830   : > { %v3143_v57 = vmul.f32 %v3117_v2, %v7930_v42  ;;  %v3144_v18 = vmul.f32 %v3117_v2, %v8124_v33  ;;  %v3230_v3 = vrot.slane %v8624_v22, %v10057_v49  ;;  %v6626_v2 = vmov 22  }
 0x831   : > { %6005 = vset.pattern.permute.xlu0 %v6626_v2  ;;  %6004 = vset.pattern.permute.xlu1 %v6626_v2 }
 0x832   : > { %3177 = vrot.lane.b32.xlu1 %v3142_v19, %s6620_s10  ;;  %3175 = vrot.lane.b32.xlu0 %v3141_v41, %s6620_s10  ;;  %v3133_v55 = vpop.permute.xlu0 %3132 }
 0x833   : > { %v3121_v44 = vpop.permute.xlu1 %3120  ;;  %v3151_v29 = vmul.f32 %v3133_v55, %v7946_v23  ;;  %v3152_v50 = vmul.f32 %v3133_v55, %v8137_v4 }
 0x834   : > { %v3145_v59 = vmul.f32 %v3121_v44, %v8052_v45  ;;  %v3146_v15 = vmul.f32 %v3121_v44, %v8152_v31 }
 0x836   : > { %3181 = vrot.lane.b32.xlu1 %v3144_v18, %s6620_s10  ;;  %3179 = vrot.lane.b32.xlu0 %v3143_v57, %s6620_s10 }
 0x837   : > { %v3129_v56 = vpop.permute.xlu1 %3128 }
 0x838   : > { %v3149_v36 = vmul.f32 %v3129_v56, %v7915_v28  ;;  %v3150_v60 = vmul.f32 %v3129_v56, %v8034_v35 }
 0x83a   : > { %3185 = vrot.lane.b32.xlu1 %v3146_v15, %s6620_s10  ;;  %3183 = vrot.lane.b32.xlu0 %v3145_v59, %s6620_s10 }
 0x83b   : > { %v3137_v0 = vpop.permute.xlu1 %3136 }
 0x83c   : > { %v3153_v46 = vmul.f32 %v3137_v0, %v8068_v30  ;;  %v3154_v48 = vmul.f32 %v3137_v0, %v8164_v5 }
 0x83e   : > { %3189 = vrot.lane.b32.xlu1 %v3148_v47, %s6620_s10  ;;  %3187 = vrot.lane.b32.xlu0 %v3147_v38, %s6620_s10 }
 0x842   : > { %3193 = vrot.lane.b32.xlu1 %v3150_v60, %s6620_s10  ;;  %3191 = vrot.lane.b32.xlu0 %v3149_v36, %s6620_s10 }
 0x846   : > { %3197 = vrot.lane.b32.xlu1 %v3152_v50, %s6620_s10  ;;  %3195 = vrot.lane.b32.xlu0 %v3151_v29, %s6620_s10 }
 0x84a   : > { %3201 = vrot.lane.b32.xlu1 %v3154_v48, %s6620_s10  ;;  %3199 = vrot.lane.b32.xlu0 %v3153_v46, %s6620_s10 }
 0x84e   : > { %3232 = vrot.lane.b32.xlu0 %v3230_v3, %s6610_s8 }
 0x8a0   : > { %v3172_v41 = vpop.permute.xlu0 %3171  ;;  %v3174_v19 = vpop.permute.xlu1 %3173 }
 0x8a1   : > { %v3203_v57 = vsel %vm2090_vm12, %v3172_v41, %v3174_v19 }
 0x8a2   : > { %3219 = vst.msk [vmem:[#allocation5 + $0x10] sm:$0xff] %vm741_vm10, %v3203_v57 }
 0x8a4   : > { %v3176_v18 = vpop.permute.xlu0 %3175  ;;  %v3178_v44 = vpop.permute.xlu1 %3177 }
 0x8a5   : > { %v3204_v59 = vsel %vm2090_vm12, %v3176_v18, %v3178_v44 }
 0x8a6   : > { %3220 = vst.msk [vmem:[#allocation5 + $0x30] sm:$0xff] %vm741_vm10, %v3204_v59 }
 0x8a8   : > { %v3180_v15 = vpop.permute.xlu0 %3179  ;;  %v3182_v20 = vpop.permute.xlu1 %3181 }
 0x8a9   : > { %v3205_v38 = vsel %vm2090_vm12, %v3180_v15, %v3182_v20 }
 0x8aa   : > { %3221 = vst.msk [vmem:[#allocation5 + $0x50] sm:$0xff] %vm741_vm10, %v3205_v38 }
 0x8ac   : > { %v3184_v47 = vpop.permute.xlu0 %3183  ;;  %v3186_v56 = vpop.permute.xlu1 %3185 }
 0x8ad   : > { %v3206_v36 = vsel %vm2090_vm12, %v3184_v47, %v3186_v56 }
 0x8ae   : > { %3222 = vst.msk [vmem:[#allocation5 + $0x70] sm:$0xff] %vm741_vm10, %v3206_v36 }
 0x8b0   : > { %v3188_v60 = vpop.permute.xlu0 %3187  ;;  %v3190_v55 = vpop.permute.xlu1 %3189 }
 0x8b1   : > { %v3207_v29 = vsel %vm2090_vm12, %v3188_v60, %v3190_v55 }
 0x8b2   : > { %3223 = vst.msk [vmem:[#allocation5 + $0x90] sm:$0xff] %vm741_vm10, %v3207_v29 }
 0x8b4   : > { %v3192_v50 = vpop.permute.xlu0 %3191  ;;  %v3194_v0 = vpop.permute.xlu1 %3193 }
 0x8b5   : > { %v3208_v46 = vsel %vm2090_vm12, %v3192_v50, %v3194_v0 }
 0x8b6   : > { %3224 = vst.msk [vmem:[#allocation5 + $0xb0] sm:$0xff] %vm741_vm10, %v3208_v46 }
 0x8b8   : > { %v3196_v48 = vpop.permute.xlu0 %3195  ;;  %v3198_v49 = vpop.permute.xlu1 %3197 }
 0x8b9   : > { %v3209_v3 = vsel %vm2090_vm12, %v3196_v48, %v3198_v49 }
 0x8ba   : > { %3225 = vst.msk [vmem:[#allocation5 + $0xd0] sm:$0xff] %vm741_vm10, %v3209_v3 }
 0x8bc   : > { %v3200_v2 = vpop.permute.xlu0 %3199  ;;  %v3202_v41 = vpop.permute.xlu1 %3201 }
 0x8bd   : > { %v3210_v19 = vsel %vm2090_vm12, %v3200_v2, %v3202_v41 }
 0x8be   : > { %3226 = vst.msk [vmem:[#allocation5 + $0xf0] sm:$0xff] %vm741_vm10, %v3210_v19 }
 0x8c0   : > { %v3233_v57 = vpop.permute.xlu0 %3232 }
 0x8c1   : > { %v3236_v18 = vmul.f32 %v3233_v57, %v7480_v32  ;;  %v3235_v44 = vmul.f32 %v3233_v57, %v10052_v16  ;;  %v3238_v59 = vmul.f32 %v3233_v57, %v10031_v1  ;;  %v3237_v15 = vmul.f32 %v3233_v57, %v7645_v21 }
 0x8c2   : > { %v3240_v56 = vmul.f32 %v3233_v57, %v10039_v37  ;;  %v3239_v60 = vmul.f32 %v3233_v57, %v7700_v26  ;;  %v3242_v29 = vmul.f32 %v3233_v57, %v7736_v61  ;;  %v3241_v0 = vmul.f32 %v3233_v57, %v7821_v39 }
 0x8c3   : > { %v3253_v20 = vmul.f32 1.442695, %v3236_v18  ;;  %v3251_v38 = vmul.f32 1.442695, %v3235_v44  ;;  %v3257_v47 = vmul.f32 1.442695, %v3238_v59  ;;  %v3244_v48 = vmul.f32 %v3233_v57, %v10029_v54 }
 0x8c4   : > { %v3255_v36 = vmul.f32 1.442695, %v3237_v15  ;;  %v3261_v55 = vmul.f32 1.442695, %v3240_v56  ;;  %v3259_v50 = vmul.f32 1.442695, %v3239_v60  ;;  %v3243_v3 = vmul.f32 %v3233_v57, %v10041_v40 }
 0x8c5   : > { %6444 = vpow2.f32 %v3253_v20  ;;  %v3265_v46 = vmul.f32 1.442695, %v3242_v29  ;;  %v3263_v49 = vmul.f32 1.442695, %v3241_v0  ;;  %v3269_v19 = vmul.f32 1.442695, %v3244_v48 }
 0x8c6   : > { %6446 = vpow2.f32 %v3251_v38  ;;  %v3246_v18 = vmul.f32 %v3233_v57, %v10032_v27  ;;  %v3267_v44 = vmul.f32 1.442695, %v3243_v3  ;;  %v3245_v59 = vmul.f32 %v3233_v57, %v7659_v58 }
 0x8c7   : > { %6448 = vpow2.f32 %v3257_v47  ;;  %v3248_v47 = vmul.f32 %v3233_v57, %v7707_v52 }
 0x8c8   : > { %6450 = vpow2.f32 %v3255_v36  ;;  %v3273_v38 = vmul.f32 1.442695, %v3246_v18  ;;  %v3271_v56 = vmul.f32 1.442695, %v3245_v59  ;;  %v3247_v36 = vmul.f32 %v3233_v57, %v7714_v11 }
 0x8c9   : > { %6452 = vpow2.f32 %v3261_v55  ;;  %v3277_v29 = vmul.f32 1.442695, %v3248_v47 }
 0x8ca   : > { %6454 = vpow2.f32 %v3259_v50  ;;  %v3250_v50 = vmul.f32 %v3233_v57, %v7750_v53  ;;  %v3275_v0 = vmul.f32 1.442695, %v3247_v36 }
 0x8cb   : > { %6456 = vpow2.f32 %v3265_v46  ;;  %v3249_v46 = vmul.f32 %v3233_v57, %v7836_v43 }
 0x8cc   : > { %6458 = vpow2.f32 %v3263_v49  ;;  %v3281_v3 = vmul.f32 1.442695, %v3250_v50 }
 0x8cd   : > { %6460 = vpow2.f32 %v3269_v19 }
 0x8ce   : > { %6462 = vpow2.f32 %v3267_v44 }
 0x8cf   : > { %v6445_v2 = vpop.eup %6444  ;;  %6464 = vpow2.f32 %v3273_v38  ;;  %v10058_v38 = vsub.s32 7, %v10054_v25 }
 0x8d0   : > { %v6447_v41 = vpop.eup %6446  ;;  %3301 = vrot.lane.b32.xlu0 %v6445_v2, %s6619_s9  ;;  %6466 = vpow2.f32 %v3271_v56  ;;  %v3279_v2 = vmul.f32 1.442695, %v3249_v46  ;;  %v6627_v56 = vmov 23  }
 0x8d1   : > { %3299 = vrot.lane.b32.xlu1 %v6447_v41, %s6619_s9  ;;  %v6449_v15 = vpop.eup %6448  ;;  %6468 = vpow2.f32 %v3277_v29  ;;  %v3478_v47 = vrot.slane %v8624_v22, %v10058_v38 }
 0x8d2   : > { %v6451_v20 = vpop.eup %6450  ;;  %6470 = vpow2.f32 %v3275_v0 }
 0x8d3   : > { %v6453_v60 = vpop.eup %6452  ;;  %6472 = vpow2.f32 %v3281_v3 }
 0x8d4   : > { %3305 = vrot.lane.b32.xlu0 %v6449_v15, %s6619_s9  ;;  %v6455_v55 = vpop.eup %6454  ;;  %6474 = vpow2.f32 %v3279_v2 }
 0x8d5   : > { %3303 = vrot.lane.b32.xlu1 %v6451_v20, %s6619_s9  ;;  %v6457_v48 = vpop.eup %6456 }
 0x8d6   : > { %v6459_v49 = vpop.eup %6458 }
 0x8d7   : > { %v6461_v41 = vpop.eup %6460 }
 0x8d8   : > { %3309 = vrot.lane.b32.xlu0 %v6453_v60, %s6619_s9  ;;  %v6463_v19 = vpop.eup %6462 }
 0x8d9   : > { %3307 = vrot.lane.b32.xlu1 %v6455_v55, %s6619_s9  ;;  %v6465_v18 = vpop.eup %6464 }
 0x8da   : > { %v6467_v57 = vpop.eup %6466 }
 0x8db   : > { %v6469_v44 = vpop.eup %6468 }
 0x8dc   : > { %3313 = vrot.lane.b32.xlu0 %v6457_v48, %s6619_s9  ;;  %v6471_v59 = vpop.eup %6470 }
 0x8dd   : > { %3311 = vrot.lane.b32.xlu1 %v6459_v49, %s6619_s9  ;;  %v6473_v15 = vpop.eup %6472 }
 0x8de   : > { %v6475_v20 = vpop.eup %6474 }
 0x8e0   : > { %3317 = vrot.lane.b32.xlu0 %v6461_v41, %s6619_s9 }
 0x8e1   : > { %3315 = vrot.lane.b32.xlu1 %v6463_v19, %s6619_s9 }
 0x8e4   : > { %3321 = vrot.lane.b32.xlu0 %v6465_v18, %s6619_s9 }
 0x8e5   : > { %3319 = vrot.lane.b32.xlu1 %v6467_v57, %s6619_s9 }
 0x8e8   : > { %3325 = vrot.lane.b32.xlu0 %v6469_v44, %s6619_s9 }
 0x8e9   : > { %3323 = vrot.lane.b32.xlu1 %v6471_v59, %s6619_s9 }
 0x8ec   : > { %3329 = vrot.lane.b32.xlu0 %v6473_v15, %s6619_s9 }
 0x8ed   : > { %3327 = vrot.lane.b32.xlu1 %v6475_v20, %s6619_s9 }
 0x8f0   : > { %3360 = vperm.xlu0 %6005, %v10040_v24  }
 0x8f1   : > { %3356 = vperm.xlu1 %6004, %v10044_v6  }
 0x8f4   : > { %3372 = vperm.xlu0 %6005, %v10042_v62  }
 0x8f5   : > { %3364 = vperm.xlu1 %6004, %v10045_v8  }
 0x8f8   : > { %3380 = vperm.xlu0 %6005, %v10043_v7  }
 0x8f9   : > { %3368 = vperm.xlu1 %6004, %v10046_v51  }
 0x8fc   : > { %3480 = vrot.lane.b32.xlu0 %v3478_v47, %s6610_s8 }
 0x8fd   : > { %3376 = vperm.xlu1 %6004, %v10047_v17   ;;  %6006 = vset.pattern.permute.xlu0 %v6627_v56 }
 0x900   : > { %3604 = vperm.xlu0 %6006, %v10044_v6  }
 0x901   : > { %3384 = vperm.xlu1 %6004, %v10048_v63  }
 0x904   : > { %3616 = vperm.xlu0 %6006, %v10046_v51  }
 0x905   : > { %6007 = vset.pattern.permute.xlu1 %v6627_v56 }
 0x908   : > { %3624 = vperm.xlu0 %6006, %v10047_v17  }
 0x90c   : > { %3632 = vperm.xlu0 %6006, %v10048_v63  }
 0x942   : > { %v3302_v25 = vpop.permute.xlu0 %3301 }
 0x943   : > { %v3300_v22 = vpop.permute.xlu1 %3299 }
 0x944   : > { %v3331_v36 = vsel %vm1833_vm11, %v3300_v22, %v3302_v25 }
 0x945   : > { %3347 = vst.msk [vmem:[#allocation4 + $0x18] sm:$0xff] %vm417_vm0, %v3331_v36 }
 0x946   : > { %v3306_v60 = vpop.permute.xlu0 %3305 }
 0x947   : > { %v3304_v55 = vpop.permute.xlu1 %3303 }
 0x948   : > { %v3332_v29 = vsel %vm1833_vm11, %v3304_v55, %v3306_v60 }
 0x949   : > { %3348 = vst.msk [vmem:[#allocation4 + $0x38] sm:$0xff] %vm417_vm0, %v3332_v29 }
 0x94a   : > { %v3310_v6 = vpop.permute.xlu0 %3309 }
 0x94b   : > { %v3308_v50 = vpop.permute.xlu1 %3307 }
 0x94c   : > { %v3333_v51 = vsel %vm1833_vm11, %v3308_v50, %v3310_v6 }
 0x94d   : > { %3349 = vst.msk [vmem:[#allocation4 + $0x58] sm:$0xff] %vm417_vm0, %v3333_v51 }
 0x94e   : > { %v3314_v17 = vpop.permute.xlu0 %3313 }
 0x94f   : > { %v3312_v63 = vpop.permute.xlu1 %3311 }
 0x950   : > { %v3334_v0 = vsel %vm1833_vm11, %v3312_v63, %v3314_v17 }
 0x951   : > { %3350 = vst.msk [vmem:[#allocation4 + $0x78] sm:$0xff] %vm417_vm0, %v3334_v0 }
 0x952   : > { %v3318_v46 = vpop.permute.xlu0 %3317 }
 0x953   : > { %v3316_v48 = vpop.permute.xlu1 %3315 }
 0x954   : > { %v3335_v49 = vsel %vm1833_vm11, %v3316_v48, %v3318_v46 }
 0x955   : > { %3351 = vst.msk [vmem:[#allocation4 + $0x98] sm:$0xff] %vm417_vm0, %v3335_v49 }
 0x956   : > { %v3322_v3 = vpop.permute.xlu0 %3321 }
 0x957   : > { %v3320_v2 = vpop.permute.xlu1 %3319 }
 0x958   : > { %v3336_v41 = vsel %vm1833_vm11, %v3320_v2, %v3322_v3 }
 0x959   : > { %3352 = vst.msk [vmem:[#allocation4 + $0xb8] sm:$0xff] %vm417_vm0, %v3336_v41 }
 0x95a   : > { %v3326_v19 = vpop.permute.xlu0 %3325 }
 0x95b   : > { %v3324_v18 = vpop.permute.xlu1 %3323 }
 0x95c   : > { %v3337_v57 = vsel %vm1833_vm11, %v3324_v18, %v3326_v19 }
 0x95d   : > { %3353 = vst.msk [vmem:[#allocation4 + $0xd8] sm:$0xff] %vm417_vm0, %v3337_v57 }
 0x95e   : > { %v3330_v44 = vpop.permute.xlu0 %3329 }
 0x95f   : > { %v3328_v59 = vpop.permute.xlu1 %3327 }
 0x960   : > { %v3338_v15 = vsel %vm1833_vm11, %v3328_v59, %v3330_v44 }
 0x961   : > { %3354 = vst.msk [vmem:[#allocation4 + $0xf8] sm:$0xff] %vm417_vm0, %v3338_v15 }
 0x96f   : > { %v3361_v20 = vpop.permute.xlu0 %3360 }
 0x970   : > { %v3389_v38 = vmul.f32 %v3361_v20, %v7901_v14  ;;  %v3357_v47 = vpop.permute.xlu1 %3356  ;;  %v3390_v49 = vmul.f32 %v3361_v20, %v8019_v12 }
 0x971   : > { %v3387_v56 = vmul.f32 %v3357_v47, %v10049_v9  ;;  %v3388_v46 = vmul.f32 %v3357_v47, %v7991_v34 }
 0x972   : > { %3423 = vrot.lane.b32.xlu0 %v3389_v38, %s6619_s9 }
 0x973   : > { %3419 = vrot.lane.b32.xlu1 %v3387_v56, %s6619_s9  ;;  %v3373_v25 = vpop.permute.xlu0 %3372 }
 0x974   : > { %v3365_v22 = vpop.permute.xlu1 %3364  ;;  %v3395_v51 = vmul.f32 %v3373_v25, %v10050_v13  ;;  %v3396_v20 = vmul.f32 %v3373_v25, %v8005_v10 }
 0x975   : > { %v3391_v36 = vmul.f32 %v3365_v22, %v7930_v42  ;;  %v3392_v41 = vmul.f32 %v3365_v22, %v8124_v33 }
 0x977   : > { %3608 = vperm.xlu1 %6007, %v10040_v24   ;;  %3427 = vrot.lane.b32.xlu0 %v3391_v36, %s6619_s9  ;;  %v8825_v60 = vpop.permute.xlu0 %3380 }
 0x978   : > { %v3369_v55 = vpop.permute.xlu1 %3368 }
 0x979   : > { %v3393_v29 = vmul.f32 %v3369_v55, %v8052_v45  ;;  %v3394_v57 = vmul.f32 %v3369_v55, %v8152_v31 }
 0x97b   : > { %3612 = vperm.xlu1 %6007, %v10045_v8   ;;  %3431 = vrot.lane.b32.xlu0 %v3393_v29, %s6619_s9  ;;  %v8830_v6 = vpop.permute.xlu0 %3480 }
 0x97c   : > { %v3483_v50 = vmul.f32 %v8830_v6, %v10052_v16  ;;  %v3377_v17 = vpop.permute.xlu1 %3376  ;;  %v3485_v63 = vmul.f32 %v8830_v6, %v7645_v21  ;;  %v3487_v16 = vmul.f32 %v8830_v6, %v7700_v26  ;;  %v3491_v2 = vmul.f32 %v8830_v6, %v10041_v40 }
 0x97d   : > { %v3397_v8 = vmul.f32 %v3377_v17, %v7915_v28  ;;  %v3493_v18 = vmul.f32 %v8830_v6, %v7659_v58  ;;  %v3484_v40 = vmul.f32 %v8830_v6, %v7480_v32  ;;  %v3495_v15 = vmul.f32 %v8830_v6, %v7714_v11 }
 0x97e   : > { %v3499_v24 = vmul.f32 1.442695, %v3483_v50  ;;  %v3503_v0 = vmul.f32 1.442695, %v3485_v63  ;;  %v3507_v21 = vmul.f32 1.442695, %v3487_v16  ;;  %v3486_v47 = vmul.f32 %v8830_v6, %v10031_v1 }
 0x97f   : > { %3620 = vperm.xlu1 %6007, %v10042_v62   ;;  %3435 = vrot.lane.b32.xlu0 %v3395_v51, %s6619_s9  ;;  %v3399_v62 = vmul.f32 %v8825_v60, %v7946_v23  ;;  %v3519_v59 = vmul.f32 1.442695, %v3493_v18  ;;  %v3501_v58 = vmul.f32 1.442695, %v3484_v40  ;;  %v3523_v56 = vmul.f32 1.442695, %v3495_v15 }
 0x980   : > { %6476 = vpow2.f32 %v3499_v24  ;;  %v3385_v48 = vpop.permute.xlu1 %3384  ;;  %v3497_v32 = vmul.f32 %v8830_v6, %v7836_v43  ;;  %v3398_v22 = vmul.f32 %v3377_v17, %v8034_v35  ;;  %v3505_v11 = vmul.f32 1.442695, %v3486_v47 }
 0x981   : > { %6478 = vpow2.f32 %v3503_v0  ;;  %v3401_v3 = vmul.f32 %v3385_v48, %v8068_v30  ;;  %v3488_v55 = vmul.f32 %v8830_v6, %v10039_v37  ;;  %v3400_v1 = vmul.f32 %v8825_v60, %v8137_v4 }
 0x982   : > { %6480 = vpow2.f32 %v3507_v21  ;;  %v3527_v25 = vmul.f32 1.442695, %v3497_v32  ;;  %v3490_v50 = vmul.f32 %v8830_v6, %v7736_v61  ;;  %v3402_v51 = vmul.f32 %v3385_v48, %v8164_v5 }
 0x983   : > { %3628 = vperm.xlu1 %6007, %v10043_v7   ;;  %3439 = vrot.lane.b32.xlu0 %v3397_v8, %s6619_s9  ;;  %v3489_v7 = vmul.f32 %v8830_v6, %v7821_v39  ;;  %v3515_v39 = vmul.f32 1.442695, %v3491_v2  ;;  %v3509_v43 = vmul.f32 1.442695, %v3488_v55  ;;  %v3492_v60 = vmul.f32 %v8830_v6, %v10029_v54 }
 0x984   : > { %v3513_v37 = vmul.f32 1.442695, %v3490_v50  ;;  %v3494_v8 = vmul.f32 %v8830_v6, %v10032_v27 }
 0x985   : > { %v3511_v26 = vmul.f32 1.442695, %v3489_v7  ;;  %v3517_v61 = vmul.f32 1.442695, %v3492_v60  ;;  %v3498_v7 = vmul.f32 %v8830_v6, %v7750_v53 }
 0x986   : > { %v3521_v54 = vmul.f32 1.442695, %v3494_v8 }
 0x987   : > { %3421 = vrot.lane.b32.xlu1 %v3388_v46, %s6619_s9  ;;  %3443 = vrot.lane.b32.xlu0 %v3399_v62, %s6619_s9  ;;  %6482 = vpow2.f32 %v3511_v26  ;;  %v3605_v46 = vpop.permute.xlu0 %3604  ;;  %v3496_v62 = vmul.f32 %v8830_v6, %v7707_v52 }
 0x988   : > { %6484 = vpow2.f32 %v3515_v39  ;;  %v3635_v48 = vmul.f32 %v3605_v46, %v10049_v9  ;;  %v3636_v53 = vmul.f32 %v3605_v46, %v7991_v34 }
 0x989   : > { %6486 = vpow2.f32 %v3519_v59  ;;  %v3525_v27 = vmul.f32 1.442695, %v3496_v62 }
 0x98a   : > { %v6477_v19 = vpop.eup %6476  ;;  %6488 = vpow2.f32 %v3501_v58 }
 0x98b   : > { %3425 = vrot.lane.b32.xlu1 %v3390_v49, %s6619_s9  ;;  %3447 = vrot.lane.b32.xlu0 %v3401_v3, %s6619_s9  ;;  %v6479_v44 = vpop.eup %6478  ;;  %6490 = vpow2.f32 %v3523_v56  ;;  %v3529_v3 = vmul.f32 1.442695, %v3498_v7  ;;  %v3617_v6 = vpop.permute.xlu0 %3616 }
 0x98c   : > { %v6481_v38 = vpop.eup %6480  ;;  %6492 = vpow2.f32 %v3505_v11 }
 0x98d   : > { %6494 = vpow2.f32 %v3527_v25 }
 0x98e   : > { %6496 = vpow2.f32 %v3509_v43 }
 0x98f   : > { %3429 = vrot.lane.b32.xlu1 %v3392_v41, %s6619_s9  ;;  %3547 = vrot.lane.b32.xlu0 %v6477_v19, %s6620_s10  ;;  %6498 = vpow2.f32 %v3513_v37  ;;  %v3625_v41 = vpop.permute.xlu0 %3624 }
 0x990   : > { %6500 = vpow2.f32 %v3517_v61 }
 0x991   : > { %v6483_v36 = vpop.eup %6482  ;;  %6502 = vpow2.f32 %v3521_v54 }
 0x992   : > { %v6485_v29 = vpop.eup %6484  ;;  %6504 = vpow2.f32 %v3525_v27 }
 0x993   : > { %3433 = vrot.lane.b32.xlu1 %v3394_v57, %s6619_s9  ;;  %3551 = vrot.lane.b32.xlu0 %v6479_v44, %s6620_s10  ;;  %v6487_v17 = vpop.eup %6486  ;;  %6506 = vpow2.f32 %v3529_v3  ;;  %v3633_v19 = vpop.permute.xlu0 %3632 }
 0x994   : > { %v6489_v24 = vpop.eup %6488 }
 0x995   : > { %v6491_v63 = vpop.eup %6490 }
 0x996   : > { %v6493_v0 = vpop.eup %6492 }
 0x997   : > { %3437 = vrot.lane.b32.xlu1 %v3396_v20, %s6619_s9  ;;  %3555 = vrot.lane.b32.xlu0 %v6481_v38, %s6620_s10  ;;  %v6495_v16 = vpop.eup %6494 }
 0x998   : > { %v6497_v21 = vpop.eup %6496 }
 0x999   : > { %v6499_v49 = vpop.eup %6498 }
 0x99a   : > { %v6501_v26 = vpop.eup %6500 }
 0x99b   : > { %3441 = vrot.lane.b32.xlu1 %v3398_v22, %s6619_s9  ;;  %3559 = vrot.lane.b32.xlu0 %v6483_v36, %s6620_s10  ;;  %v6503_v52 = vpop.eup %6502  ;;  %v3645_v36 = vmul.f32 %v3625_v41, %v7915_v28 }
 0x99c   : > { %v6505_v9 = vpop.eup %6504 }
 0x99d   : > { %v6507_v2 = vpop.eup %6506 }
 0x99f   : > { %3445 = vrot.lane.b32.xlu1 %v3400_v1, %s6619_s9  ;;  %3563 = vrot.lane.b32.xlu0 %v6485_v29, %s6620_s10  ;;  %v3650_v1 = vmul.f32 %v3633_v19, %v8164_v5 }
 0x9a3   : > { %3449 = vrot.lane.b32.xlu1 %v3402_v51, %s6619_s9  ;;  %3567 = vrot.lane.b32.xlu0 %v6487_v17, %s6620_s10 }
 0x9a7   : > { %3549 = vrot.lane.b32.xlu1 %v6489_v24, %s6620_s10  ;;  %3571 = vrot.lane.b32.xlu0 %v6491_v63, %s6620_s10 }
 0x9ab   : > { %3553 = vrot.lane.b32.xlu1 %v6493_v0, %s6620_s10  ;;  %3575 = vrot.lane.b32.xlu0 %v6495_v16, %s6620_s10 }
 0x9af   : > { %3557 = vrot.lane.b32.xlu1 %v6497_v21, %s6620_s10  ;;  %3667 = vrot.lane.b32.xlu0 %v3635_v48, %s6620_s10 }
 0x9b3   : > { %3561 = vrot.lane.b32.xlu1 %v6499_v49, %s6620_s10 }
 0x9b7   : > { %3565 = vrot.lane.b32.xlu1 %v6501_v26, %s6620_s10 }
 0x9bb   : > { %3569 = vrot.lane.b32.xlu1 %v6503_v52, %s6620_s10 }
 0x9bf   : > { %3573 = vrot.lane.b32.xlu1 %v6505_v9, %s6620_s10 }
 0x9c3   : > { %3577 = vrot.lane.b32.xlu1 %v6507_v2, %s6620_s10 }
 0x9c7   : > { %3669 = vrot.lane.b32.xlu1 %v3636_v53, %s6620_s10 }
 0x9e4   : > { %v3424_v39 = vpop.permute.xlu0 %3423 }
 0x9e5   : > { %v3420_v18 = vpop.permute.xlu1 %3419 }
 0x9e9   : > { %v3428_v57 = vpop.permute.xlu0 %3427 }
 0x9ed   : > { %v3432_v15 = vpop.permute.xlu0 %3431 }
 0x9f1   : > { %v3436_v58 = vpop.permute.xlu0 %3435 }
 0x9f6   : > { %v3609_v44 = vpop.permute.xlu1 %3608 }
 0x9f7   : > { %v3637_v40 = vmul.f32 %v3609_v44, %v7901_v14  ;;  %v3638_v59 = vmul.f32 %v3609_v44, %v8019_v12  ;;  %v3641_v14 = vmul.f32 %v3617_v6, %v8052_v45  ;;  %v3642_v12 = vmul.f32 %v3617_v6, %v8152_v31 }
 0x9f8   : > { %v3646_v45 = vmul.f32 %v3625_v41, %v8034_v35  ;;  %v3649_v35 = vmul.f32 %v3633_v19, %v8068_v30 }
 0x9f9   : > { %3673 = vrot.lane.b32.xlu1 %v3638_v59, %s6620_s10  ;;  %3671 = vrot.lane.b32.xlu0 %v3637_v40, %s6620_s10 }
 0x9fa   : > { %v3613_v20 = vpop.permute.xlu1 %3612 }
 0x9fb   : > { %v3639_v34 = vmul.f32 %v3613_v20, %v7930_v42  ;;  %v3640_v38 = vmul.f32 %v3613_v20, %v8124_v33  ;;  %v3440_v33 = vpop.permute.xlu0 %3439 }
 0x9fd   : > { %3677 = vrot.lane.b32.xlu1 %v3640_v38, %s6620_s10  ;;  %3675 = vrot.lane.b32.xlu0 %v3639_v34, %s6620_s10 }
 0x9fe   : > { %v3621_v47 = vpop.permute.xlu1 %3620 }
 0x9ff   : > { %v3643_v32 = vmul.f32 %v3621_v47, %v10050_v13  ;;  %v3644_v42 = vmul.f32 %v3621_v47, %v8005_v10  ;;  %v3444_v13 = vpop.permute.xlu0 %3443 }
 0xa01   : > { %3681 = vrot.lane.b32.xlu1 %v3642_v12, %s6620_s10  ;;  %3679 = vrot.lane.b32.xlu0 %v3641_v14, %s6620_s10 }
 0xa02   : > { %v3629_v56 = vpop.permute.xlu1 %3628 }
 0xa03   : > { %v3647_v11 = vmul.f32 %v3629_v56, %v7946_v23  ;;  %v3648_v25 = vmul.f32 %v3629_v56, %v8137_v4  ;;  %v3448_v43 = vpop.permute.xlu0 %3447 }
 0xa05   : > { %3685 = vrot.lane.b32.xlu1 %v3644_v42, %s6620_s10  ;;  %3683 = vrot.lane.b32.xlu0 %v3643_v32, %s6620_s10 }
 0xa06   : > { %v3422_v22 = vpop.permute.xlu1 %3421 }
 0xa07   : > { %v3451_v31 = vsel %vm1833_vm11, %v3420_v18, %v3422_v22  ;;  %v3548_v50 = vpop.permute.xlu0 %3547 }
 0xa08   : > { %3467 = vst.msk [vmem:[#allocation5 + $0x18] sm:$0xff] %vm417_vm0, %v3451_v31 }
 0xa09   : > { %3689 = vrot.lane.b32.xlu1 %v3646_v45, %s6620_s10  ;;  %3687 = vrot.lane.b32.xlu0 %v3645_v36, %s6620_s10 }
 0xa0a   : > { %v3426_v10 = vpop.permute.xlu1 %3425 }
 0xa0b   : > { %v3452_v55 = vsel %vm1833_vm11, %v3424_v39, %v3426_v10  ;;  %v3552_v37 = vpop.permute.xlu0 %3551 }
 0xa0c   : > { %3468 = vst.msk [vmem:[#allocation5 + $0x38] sm:$0xff] %vm417_vm0, %v3452_v55  ;;  %v8988_v55 = vmov 0.0  }
 0xa0d   : > { %3693 = vrot.lane.b32.xlu1 %v3648_v25, %s6620_s10  ;;  %3691 = vrot.lane.b32.xlu0 %v3647_v11, %s6620_s10 }
 0xa0e   : > { %v3430_v28 = vpop.permute.xlu1 %3429 }
 0xa0f   : > { %v3453_v29 = vsel %vm1833_vm11, %v3428_v57, %v3430_v28  ;;  %v3556_v63 = vpop.permute.xlu0 %3555  ;;  %v8990_v28 = vmov 0.0  }
 0xa10   : > { %3469 = vst.msk [vmem:[#allocation5 + $0x58] sm:$0xff] %vm417_vm0, %v3453_v29 }
 0xa11   : > { %3697 = vrot.lane.b32.xlu1 %v3650_v1, %s6620_s10  ;;  %3695 = vrot.lane.b32.xlu0 %v3649_v35, %s6620_s10 }
 0xa12   : > { %v3434_v23 = vpop.permute.xlu1 %3433 }
 0xa13   : > { %v3454_v4 = vsel %vm1833_vm11, %v3432_v15, %v3434_v23  ;;  %v3560_v46 = vpop.permute.xlu0 %3559 }
 0xa14   : > { %3470 = vst.msk [vmem:[#allocation5 + $0x78] sm:$0xff] %vm417_vm0, %v3454_v4 }
 0xa16   : > { %v3438_v51 = vpop.permute.xlu1 %3437 }
 0xa17   : > { %v3455_v30 = vsel %vm1833_vm11, %v3436_v58, %v3438_v51  ;;  %v3564_v48 = vpop.permute.xlu0 %3563 }
 0xa18   : > { %3471 = vst.msk [vmem:[#allocation5 + $0x98] sm:$0xff] %vm417_vm0, %v3455_v30 }
 0xa1a   : > { %v3442_v5 = vpop.permute.xlu1 %3441 }
 0xa1b   : > { %v3456_v17 = vsel %vm1833_vm11, %v3440_v33, %v3442_v5  ;;  %v3568_v3 = vpop.permute.xlu0 %3567 }
 0xa1c   : > { %3472 = vst.msk [vmem:[#allocation5 + $0xb8] sm:$0xff] %vm417_vm0, %v3456_v17 }
 0xa1e   : > { %v3446_v60 = vpop.permute.xlu1 %3445 }
 0xa1f   : > { %v3457_v24 = vsel %vm1833_vm11, %v3444_v13, %v3446_v60  ;;  %v3572_v9 = vpop.permute.xlu0 %3571 }
 0xa20   : > { %3473 = vst.msk [vmem:[#allocation5 + $0xd8] sm:$0xff] %vm417_vm0, %v3457_v24 }
 0xa22   : > { %v3450_v61 = vpop.permute.xlu1 %3449 }
 0xa23   : > { %v3458_v8 = vsel %vm1833_vm11, %v3448_v43, %v3450_v61  ;;  %v3576_v19 = vpop.permute.xlu0 %3575 }
 0xa24   : > { %3474 = vst.msk [vmem:[#allocation5 + $0xf8] sm:$0xff] %vm417_vm0, %v3458_v8 }
 0xa26   : > { %v3550_v0 = vpop.permute.xlu1 %3549 }
 0xa27   : > { %v3579_v16 = vsel %vm2090_vm12, %v3548_v50, %v3550_v0  ;;  %v3668_v57 = vpop.permute.xlu0 %3667 }
 0xa28   : > { %3595 = vst.msk [vmem:[#allocation4 + $0x18] sm:$0xff] %vm741_vm10, %v3579_v16 }
 0xa2a   : > { %v3554_v54 = vpop.permute.xlu1 %3553 }
 0xa2b   : > { %v3580_v62 = vsel %vm2090_vm12, %v3552_v37, %v3554_v54 }
 0xa2c   : > { %3596 = vst.msk [vmem:[#allocation4 + $0x38] sm:$0xff] %vm741_vm10, %v3580_v62 }
 0xa2e   : > { %v3558_v21 = vpop.permute.xlu1 %3557 }
 0xa2f   : > { %v3581_v27 = vsel %vm2090_vm12, %v3556_v63, %v3558_v21 }
 0xa30   : > { %3597 = vst.msk [vmem:[#allocation4 + $0x58] sm:$0xff] %vm741_vm10, %v3581_v27 }
 0xa32   : > { %v3562_v7 = vpop.permute.xlu1 %3561 }
 0xa33   : > { %v3582_v49 = vsel %vm2090_vm12, %v3560_v46, %v3562_v7 }
 0xa34   : > { %3598 = vst.msk [vmem:[#allocation4 + $0x78] sm:$0xff] %vm741_vm10, %v3582_v49 }
 0xa36   : > { %v3566_v26 = vpop.permute.xlu1 %3565 }
 0xa37   : > { %v3583_v52 = vsel %vm2090_vm12, %v3564_v48, %v3566_v26 }
 0xa38   : > { %3599 = vst.msk [vmem:[#allocation4 + $0x98] sm:$0xff] %vm741_vm10, %v3583_v52 }
 0xa3a   : > { %v3570_v2 = vpop.permute.xlu1 %3569 }
 0xa3b   : > { %v3584_v53 = vsel %vm2090_vm12, %v3568_v3, %v3570_v2 }
 0xa3c   : > { %3600 = vst.msk [vmem:[#allocation4 + $0xb8] sm:$0xff] %vm741_vm10, %v3584_v53 }
 0xa3e   : > { %v3574_v6 = vpop.permute.xlu1 %3573 }
 0xa3f   : > { %v3585_v41 = vsel %vm2090_vm12, %v3572_v9, %v3574_v6 }
 0xa40   : > { %3601 = vst.msk [vmem:[#allocation4 + $0xd8] sm:$0xff] %vm741_vm10, %v3585_v41 }
 0xa42   : > { %v3578_v39 = vpop.permute.xlu1 %3577 }
 0xa43   : > { %v3586_v18 = vsel %vm2090_vm12, %v3576_v19, %v3578_v39 }
 0xa44   : > { %3602 = vst.msk [vmem:[#allocation4 + $0xf8] sm:$0xff] %vm741_vm10, %v3586_v18 }
 0xa46   : > { %v3670_v44 = vpop.permute.xlu1 %3669 }
 0xa47   : > { %v3699_v40 = vsel %vm2090_vm12, %v3668_v57, %v3670_v44 }
 0xa48   : > { %3715 = vst.msk [vmem:[#allocation5 + $0x18] sm:$0xff] %vm741_vm10, %v3699_v40 }
 0xa6b   : > { %v3672_v59 = vpop.permute.xlu0 %3671  ;;  %v3674_v15 = vpop.permute.xlu1 %3673 }
 0xa6c   : > { %v3700_v20 = vsel %vm2090_vm12, %v3672_v59, %v3674_v15 }
 0xa6d   : > { %3716 = vst.msk [vmem:[#allocation5 + $0x38] sm:$0xff] %vm741_vm10, %v3700_v20 }
 0xa6f   : > { %v3676_v34 = vpop.permute.xlu0 %3675  ;;  %v3678_v38 = vpop.permute.xlu1 %3677 }
 0xa70   : > { %v3701_v58 = vsel %vm2090_vm12, %v3676_v34, %v3678_v38 }
 0xa71   : > { %3717 = vst.msk [vmem:[#allocation5 + $0x58] sm:$0xff] %vm741_vm10, %v3701_v58 }
 0xa73   : > { %v3680_v47 = vpop.permute.xlu0 %3679  ;;  %v3682_v14 = vpop.permute.xlu1 %3681 }
 0xa74   : > { %v3702_v12 = vsel %vm2090_vm12, %v3680_v47, %v3682_v14 }
 0xa75   : > { %3718 = vst.msk [vmem:[#allocation5 + $0x78] sm:$0xff] %vm741_vm10, %v3702_v12 }
 0xa77   : > { %v3684_v56 = vpop.permute.xlu0 %3683  ;;  %v3686_v32 = vpop.permute.xlu1 %3685 }
 0xa78   : > { %v3703_v42 = vsel %vm2090_vm12, %v3684_v56, %v3686_v32 }
 0xa79   : > { %3719 = vst.msk [vmem:[#allocation5 + $0x98] sm:$0xff] %vm741_vm10, %v3703_v42 }
 0xa7b   : > { %v3688_v33 = vpop.permute.xlu0 %3687  ;;  %v3690_v22 = vpop.permute.xlu1 %3689 }
 0xa7c   : > { %v3704_v36 = vsel %vm2090_vm12, %v3688_v33, %v3690_v22 }
 0xa7d   : > { %3720 = vst.msk [vmem:[#allocation5 + $0xb8] sm:$0xff] %vm741_vm10, %v3704_v36 }
 0xa7f   : > { %v3692_v45 = vpop.permute.xlu0 %3691  ;;  %v3694_v31 = vpop.permute.xlu1 %3693 }
 0xa80   : > { %v3705_v13 = vsel %vm2090_vm12, %v3692_v45, %v3694_v31 }
 0xa81   : > { %3721 = vst.msk [vmem:[#allocation5 + $0xd8] sm:$0xff] %vm741_vm10, %v3705_v13 }
 0xa83   : > { %v3696_v10 = vpop.permute.xlu0 %3695  ;;  %v3698_v11 = vpop.permute.xlu1 %3697 }
 0xa84   : > { %v3706_v25 = vsel %vm2090_vm12, %v3696_v10, %v3698_v11 }
 0xa85   : > { %3722 = vst.msk [vmem:[#allocation5 + $0xf8] sm:$0xff] %vm741_vm10, %v3706_v25 }
 0xa86 LB: >> { %s9002_s12 = sshll.u32 %s6605_s11, 3  ;;  %v10059_v63 = vld [vmem:[#allocation9_spill] sm:$0xff]  ;;  %v10060_v16 = vld [vmem:[#allocation12_spill] sm:$0xff]  ;;  %vm4120_vm13 = vcmask 1040384   ;;  %vm4125_vm14 = vcmask 1041408   ;;  %vm4130_vm15 = vcmask 1042432   ;;  %s6605_s11 = sphi %s8992_s11, %s3728_s11   ;;  %v6601_v28 = vphi %v8990_v28, %v9070_v28   ;;  %v6597_v55 = vphi %v8988_v55, %v3951_v55  }
 0xa87   : >> { %s3735_s14 = sshra.s32 %s9002_s12, 3  ;;  %s3759_s15 = sadd.s32 1, %s9002_s12  ;;  %v10061_v62 = vld [vmem:[#allocation56_spill] sm:$0xff]  ;;  %v10062_v21 = vld [vmem:[#allocation33_spill] sm:$0xff]  ;;  %vm4135_vm1 = vcmask 1043456   ;;  %vm4140_vm2 = vcmask 1044480  }
 0xa88   : >> { %s5789_s16 = sshll.u32 %s3735_s14, 5  ;;  %s3761_s17 = sshra.s32 %s3759_s15, 3  ;;  %vm4145_vm3 = vcmask 1045504   ;;  %vm4150_vm4 = vcmask 1046528  }
 0xa89   : >> { %s3739_s18 = scalar_lea.vmem [#allocation2], %s5789_s16  ;;  %s9007_s25 = scalar_lea.vmem [#allocation3], %s5789_s16 }
 0xa8a   : >> { %v3740_v35 = vld [vmem:[%s3739_s18] ss:$8 sm:$0xf]  ;;  %s3764_s26 = sand.u32 7, %s3759_s15  ;;  %s5792_s29 = sshll.u32 %s3761_s17, 5 }
 0xa8b   : >> { %v3744_v1 = vld [vmem:[%s9007_s25] ss:$8 sm:$0xf]  ;;  %v3741_v29 = vmul.f32 %v6601_v28, %v3740_v35  ;;  %s3767_s30 = sadd.s32 %s5792_s29, %s3764_s26  ;;  %s3787_s7 = sadd.s32 2, %s9002_s12 }
 0xa8c   : >> { %s3768_s8 = scalar_lea.vmem [#allocation2], %s3767_s30  ;;  %s3771_s9 = scalar_lea.vmem [#allocation3], %s3767_s30 }
 0xa8d   : >> { %v3745_v43 = vadd.f32 %v3744_v1, %v3741_v29  ;;  %v3769_v23 = vld [vmem:[%s3768_s8] ss:$8 sm:$0xf]  ;;  %s3789_s10 = sshra.s32 %s3787_s7, 3  ;;  %s3792_s14 = sand.u32 7, %s3787_s7 }
 0xa8e   : >> { %v3772_v4 = vld [vmem:[%s3771_s9] ss:$8 sm:$0xf]  ;;  %s5794_s18 = sshll.u32 %s3789_s10, 5  ;;  %s3815_s16 = sadd.s32 3, %s9002_s12 }
 0xa8f   : >> { %v3770_v50 = vmul.f32 %v3769_v23, %v3745_v43  ;;  %s3795_s28 = sadd.s32 %s5794_s18, %s3792_s14  ;;  %s3817_s6 = sshra.s32 %s3815_s16, 3  ;;  %v3956_v61 = vrot.slane %v3745_v43, %v10059_v63  ;;  %v3960_v46 = vrot.slane %v3745_v43, %v10060_v16  ;;  %v3964_v48 = vrot.slane %v3745_v43, %v10061_v62 }
 0xa90   : >> { %s3796_s13 = scalar_lea.vmem [#allocation2], %s3795_s28  ;;  %s3799_s15 = scalar_lea.vmem [#allocation3], %s3795_s28  ;;  %v3968_v27 = vrot.slane %v3745_v43, %v10062_v21 }
 0xa91   : >> { %v3773_v51 = vadd.f32 %v3772_v4, %v3770_v50  ;;  %v3797_v30 = vld [vmem:[%s3796_s13] ss:$8 sm:$0xf]  ;;  %s3820_s17 = sand.u32 7, %s3815_s16  ;;  %s5796_s26 = sshll.u32 %s3817_s6, 5 }
 0xa92   : >> { %v3800_v5 = vld [vmem:[%s3799_s15] ss:$8 sm:$0xf]  ;;  %s3823_s29 = sadd.s32 %s5796_s26, %s3820_s17  ;;  %s3843_s30 = sadd.s32 4, %s9002_s12 }
 0xa93   : >> { %v3798_v17 = vmul.f32 %v3797_v30, %v3773_v51  ;;  %s3824_s8 = scalar_lea.vmem [#allocation2], %s3823_s29  ;;  %s3827_s9 = scalar_lea.vmem [#allocation3], %s3823_s29  ;;  %v3977_v8 = vrot.slane %v3773_v51, %v10059_v63  ;;  %v3981_v54 = vrot.slane %v3773_v51, %v10060_v16  ;;  %v3985_v7 = vrot.slane %v3773_v51, %v10061_v62 }
 0xa94   : >> { %v3825_v60 = vld [vmem:[%s3824_s8] ss:$8 sm:$0xf]  ;;  %s3845_s7 = sshra.s32 %s3843_s30, 3  ;;  %s3848_s13 = sand.u32 7, %s3843_s30  ;;  %v3989_v49 = vrot.slane %v3773_v51, %v10062_v21 }
 0xa95   : >> { %v3801_v37 = vadd.f32 %v3800_v5, %v3798_v17  ;;  %v3828_v24 = vld [vmem:[%s3827_s9] ss:$8 sm:$0xf]  ;;  %s5798_s28 = sshll.u32 %s3845_s7, 5  ;;  %s3871_s6 = sadd.s32 5, %s9002_s12  ;;  %v4121_v52 = vsel %vm4120_vm13, %v3956_v61, %v3977_v8  ;;  %v4122_v6 = vsel %vm4120_vm13, %v3960_v46, %v3981_v54  ;;  %v4123_v57 = vsel %vm4120_vm13, %v3964_v48, %v3985_v7 }
 0xa96   : >> { %s3851_s10 = sadd.s32 %s5798_s28, %s3848_s13  ;;  %s3873_s14 = sshra.s32 %s3871_s6, 3  ;;  %v4124_v44 = vsel %vm4120_vm13, %v3968_v27, %v3989_v49 }
 0xa97   : >> { %v3826_v0 = vmul.f32 %v3825_v60, %v3801_v37  ;;  %v3998_v26 = vrot.slane %v3801_v37, %v10059_v63  ;;  %s3852_s18 = scalar_lea.vmem [#allocation2], %s3851_s10  ;;  %s3855_s16 = scalar_lea.vmem [#allocation3], %s3851_s10  ;;  %v4002_v53 = vrot.slane %v3801_v37, %v10060_v16  ;;  %v4006_v41 = vrot.slane %v3801_v37, %v10061_v62 }
 0xa98   : >> { %v3853_v9 = vld [vmem:[%s3852_s18] ss:$8 sm:$0xf]  ;;  %v4010_v19 = vrot.slane %v3801_v37, %v10062_v21  ;;  %s3876_s15 = sand.u32 7, %s3871_s6  ;;  %s5800_s17 = sshll.u32 %s3873_s14, 5 }
 0xa99   : >> { %v3829_v3 = vadd.f32 %v3828_v24, %v3826_v0  ;;  %v3856_v2 = vld [vmem:[%s3855_s16] ss:$8 sm:$0xf]  ;;  %s3879_s26 = sadd.s32 %s5800_s17, %s3876_s15  ;;  %s3899_s29 = sadd.s32 6, %s9002_s12  ;;  %v4126_v40 = vsel %vm4125_vm14, %v4121_v52, %v3998_v26  ;;  %v4127_v47 = vsel %vm4125_vm14, %v4122_v6, %v4002_v53  ;;  %v4128_v14 = vsel %vm4125_vm14, %v4123_v57, %v4006_v41 }
 0xa9a   : >> { %s3880_s30 = scalar_lea.vmem [#allocation2], %s3879_s26  ;;  %s3883_s8 = scalar_lea.vmem [#allocation3], %s3879_s26  ;;  %v4129_v12 = vsel %vm4125_vm14, %v4124_v44, %v4010_v19 }
 0xa9b   : >> { %v3854_v39 = vmul.f32 %v3853_v9, %v3829_v3  ;;  %v4019_v18 = vrot.slane %v3829_v3, %v10059_v63  ;;  %v4023_v15 = vrot.slane %v3829_v3, %v10060_v16  ;;  %v4027_v20 = vrot.slane %v3829_v3, %v10061_v62  ;;  %v3881_v38 = vld [vmem:[%s3880_s30] ss:$8 sm:$0xf]  ;;  %s3901_s9 = sshra.s32 %s3899_s29, 3  ;;  %s3904_s7 = sand.u32 7, %s3899_s29 }
 0xa9c   : >> { %v4031_v34 = vrot.slane %v3829_v3, %v10062_v21  ;;  %v3884_v58 = vld [vmem:[%s3883_s8] ss:$8 sm:$0xf]  ;;  %s5802_s13 = sshll.u32 %s3901_s9, 5  ;;  %s3927_s28 = sadd.s32 7, %s9002_s12 }
 0xa9d   : >> { %v3857_v59 = vadd.f32 %v3856_v2, %v3854_v39  ;;  %v4131_v42 = vsel %vm4130_vm15, %v4126_v40, %v4019_v18  ;;  %s3907_s6 = sadd.s32 %s5802_s13, %s3904_s7  ;;  %s3928_s10 = sshra.s32 %s3927_s28, 3  ;;  %v4132_v31 = vsel %vm4130_vm15, %v4127_v47, %v4023_v15  ;;  %v4133_v13 = vsel %vm4130_vm15, %v4128_v14, %v4027_v20 }
 0xa9e   : >> { %v4134_v10 = vsel %vm4130_vm15, %v4129_v12, %v4031_v34  ;;  %s3908_s12 = scalar_lea.vmem [#allocation2], %s3907_s6  ;;  %s3911_s14 = scalar_lea.vmem [#allocation3], %s3907_s6 }
 0xa9f   : >> { %v3882_v56 = vmul.f32 %v3881_v38, %v3857_v59  ;;  %v4040_v32 = vrot.slane %v3857_v59, %v10059_v63  ;;  %v4044_v33 = vrot.slane %v3857_v59, %v10060_v16  ;;  %v4048_v22 = vrot.slane %v3857_v59, %v10061_v62  ;;  %v3909_v25 = vld [vmem:[%s3908_s12] ss:$8 sm:$0xf]  ;;  %s3931_s18 = sand.u32 7, %s3927_s28  ;;  %s5804_s16 = sshll.u32 %s3928_s10, 5 }
 0xaa0   : >> { %v4052_v36 = vrot.slane %v3857_v59, %v10062_v21  ;;  %v3912_v28 = vld [vmem:[%s3911_s14] ss:$8 sm:$0xf]  ;;  %s3934_s15 = sadd.s32 %s5804_s16, %s3931_s18  ;;  %s10063_s17 = ssub.s32 7, %s6605_s11 }
 0xaa1   : >> { %v3885_v45 = vadd.f32 %v3884_v58, %v3882_v56  ;;  %v4136_v11 = vsel %vm4135_vm1, %v4131_v42, %v4040_v32  ;;  %v4137_v4 = vsel %vm4135_vm1, %v4132_v31, %v4044_v33  ;;  %v4138_v50 = vsel %vm4135_vm1, %v4133_v13, %v4048_v22  ;;  %s9058_s26 = sshll.u32 %s10063_s17, 3  ;;  %s3935_s29 = scalar_lea.vmem [#allocation2], %s3934_s15 }
 0xaa2   : >> { %v4139_v51 = vsel %vm4135_vm1, %v4134_v10, %v4052_v36  ;;  %v3936_v5 = vld [vmem:[%s3935_s29] ss:$8 sm:$0xf]  ;;  %s3938_s30 = scalar_lea.vmem [#allocation3], %s3934_s15  ;;  %s3734_s8 = sadd.s32 7, %s9058_s26 }
 0xaa3   : >> { %v4061_v35 = vrot.slane %v3885_v45, %v10059_v63  ;;  %v4065_v1 = vrot.slane %v3885_v45, %v10060_v16  ;;  %v4069_v29 = vrot.slane %v3885_v45, %v10061_v62  ;;  %v4073_v43 = vrot.slane %v3885_v45, %v10062_v21  ;;  %v3939_v17 = vld [vmem:[%s3938_s30] ss:$8 sm:$0xf]  ;;  %s3760_s9 = sadd.s32 6, %s9058_s26  ;;  %s3746_s7 = sshra.s32 %s3734_s8, 3 }
 0xaa4   : >> { %v3910_v23 = vmul.f32 %v3909_v25, %v3885_v45  ;;  %s3749_s13 = sand.u32 7, %s3734_s8  ;;  %s5791_s28 = sshll.u32 %s3746_s7, 5 }
 0xaa5   : >> { %v4141_v37 = vsel %vm4140_vm2, %v4136_v11, %v4061_v35  ;;  %v4142_v60 = vsel %vm4140_vm2, %v4137_v4, %v4065_v1  ;;  %v4143_v24 = vsel %vm4140_vm2, %v4138_v50, %v4069_v29  ;;  %v4144_v61 = vsel %vm4140_vm2, %v4139_v51, %v4073_v43  ;;  %s3774_s6 = sshra.s32 %s3760_s9, 3  ;;  %s3752_s10 = sadd.s32 %s5791_s28, %s3749_s13 }
 0xaa6   : >> { %v3913_v30 = vadd.f32 %v3912_v28, %v3910_v23  ;;  %s3777_s12 = sand.u32 7, %s3760_s9  ;;  %s3753_s14 = scalar_lea.vmem [#allocation4], %s3752_s10 }
 0xaa7   : >> { %v3754_v53 = vld [vmem:[%s3753_s14] ss:$8 sm:$0xf]  ;;  %s3756_s18 = scalar_lea.vmem [#allocation5], %s3752_s10  ;;  %s5793_s16 = sshll.u32 %s3774_s6, 5 }
 0xaa8   : >> { %v3937_v8 = vmul.f32 %v3936_v5, %v3913_v30  ;;  %v4082_v0 = vrot.slane %v3913_v30, %v10059_v63  ;;  %v4086_v46 = vrot.slane %v3913_v30, %v10060_v16  ;;  %v4090_v54 = vrot.slane %v3913_v30, %v10061_v62  ;;  %v3757_v18 = vld [vmem:[%s3756_s18] ss:$8 sm:$0xf]  ;;  %s3788_s15 = sadd.s32 5, %s9058_s26  ;;  %s3780_s17 = sadd.s32 %s5793_s16, %s3777_s12 }
 0xaa9   : >> { %v4094_v48 = vrot.slane %v3913_v30, %v10062_v21  ;;  %v3755_v57 = vmul.f32 %v6597_v55, %v3754_v53  ;;  %s3802_s29 = sshra.s32 %s3788_s15, 3  ;;  %s3781_s30 = scalar_lea.vmem [#allocation4], %s3780_s17 }
 0xaaa   : >> { %v9070_v28 = vadd.f32 %v3939_v17, %v3937_v8   ;;  %v4146_v27 = vsel %vm4145_vm3, %v4141_v37, %v4082_v0  ;;  %v4147_v7 = vsel %vm4145_vm3, %v4142_v60, %v4086_v46  ;;  %v4148_v49 = vsel %vm4145_vm3, %v4143_v24, %v4090_v54  ;;  %v3782_v40 = vld [vmem:[%s3781_s30] ss:$8 sm:$0xf]  ;;  %s3784_s8 = scalar_lea.vmem [#allocation5], %s3780_s17  ;;  %s3805_s9 = sand.u32 7, %s3788_s15 }
 0xaab   : >> { %v4149_v3 = vsel %vm4145_vm3, %v4144_v61, %v4094_v48  ;;  %v9094_v44 = vadd.f32 %v3757_v18, %v3755_v57  ;;  %v3785_v59 = vld [vmem:[%s3784_s8] ss:$8 sm:$0xf]  ;;  %s5795_s7 = sshll.u32 %s3802_s29, 5  ;;  %s3816_s28 = sadd.s32 4, %s9058_s26 }
 0xaac   : >> { %v4103_v26 = vrot.slane %v9070_v28, %v10059_v63  ;;  %v4107_v52 = vrot.slane %v9070_v28, %v10060_v16  ;;  %v4111_v9 = vrot.slane %v9070_v28, %v10061_v62  ;;  %v4115_v2 = vrot.slane %v9070_v28, %v10062_v21  ;;  %s3808_s13 = sadd.s32 %s5795_s7, %s3805_s9  ;;  %s3830_s10 = sshra.s32 %s3816_s28, 3 }
 0xaad   : >> { %v3783_v15 = vmul.f32 %v3782_v40, %v9094_v44  ;;  %s3812_s6 = scalar_lea.vmem [#allocation5], %s3808_s13  ;;  %s3833_s12 = sand.u32 7, %s3816_s28  ;;  %v4310_v35 = vrot.slane %v9094_v44, %v10059_v63  ;;  %v4314_v1 = vrot.slane %v9094_v44, %v10060_v16  ;;  %v4318_v29 = vrot.slane %v9094_v44, %v10061_v62 }
 0xaae   : >> { %v4151_v6 = vsel %vm4150_vm4, %v4146_v27, %v4103_v26  ;;  %v4152_v41 = vsel %vm4150_vm4, %v4147_v7, %v4107_v52  ;;  %v4153_v19 = vsel %vm4150_vm4, %v4148_v49, %v4111_v9  ;;  %v4154_v39 = vsel %vm4150_vm4, %v4149_v3, %v4115_v2  ;;  %v3813_v55 = vld [vmem:[%s3812_s6] ss:$8 sm:$0xf]  ;;  %s5797_s14 = sshll.u32 %s3830_s10, 5  ;;  %s3844_s18 = sadd.s32 3, %s9058_s26 }
 0xaaf   : >> { %4155 = vst [vmem:[%s9007_s25] sm:$0xff] %v4151_v6  ;;  %4156 = vst [vmem:[%s9007_s25 + $0x8] sm:$0xff] %v4152_v41  ;;  %v9098_v20 = vadd.f32 %v3785_v59, %v3783_v15  ;;  %s3836_s16 = sadd.s32 %s5797_s14, %s3833_s12  ;;  %s3858_s15 = sshra.s32 %s3844_s18, 3  ;;  %v4322_v51 = vrot.slane %v9094_v44, %v10062_v21 }
 0xab0   : >> { %4157 = vst [vmem:[%s9007_s25 + $0x10] sm:$0xff] %v4153_v19  ;;  %4158 = vst [vmem:[%s9007_s25 + $0x18] sm:$0xff] %v4154_v39  ;;  %s3809_s25 = scalar_lea.vmem [#allocation4], %s3808_s13  ;;  %s3837_s17 = scalar_lea.vmem [#allocation4], %s3836_s16 }
 0xab1   : >> { %v3810_v34 = vld [vmem:[%s3809_s25] ss:$8 sm:$0xf]  ;;  %s3840_s29 = scalar_lea.vmem [#allocation5], %s3836_s16  ;;  %s3861_s30 = sand.u32 7, %s3844_s18  ;;  %v4289_v4 = vrot.slane %v9098_v20, %v10059_v63  ;;  %v4293_v50 = vrot.slane %v9098_v20, %v10060_v16  ;;  %v4297_v37 = vrot.slane %v9098_v20, %v10061_v62  ;;  %v4301_v60 = vrot.slane %v9098_v20, %v10062_v21 }
 0xab2   : >> { %v3811_v38 = vmul.f32 %v3810_v34, %v9098_v20  ;;  %v3838_v47 = vld [vmem:[%s3837_s17] ss:$8 sm:$0xf]  ;;  %s5799_s8 = sshll.u32 %s3858_s15, 5  ;;  %s3872_s7 = sadd.s32 2, %s9058_s26 }
 0xab3   : >> { %v3841_v14 = vld [vmem:[%s3840_s29] ss:$8 sm:$0xf]  ;;  %s3864_s9 = sadd.s32 %s5799_s8, %s3861_s30  ;;  %s3886_s25 = sshra.s32 %s3872_s7, 3 }
 0xab4   : >> { %v9102_v58 = vadd.f32 %v3813_v55, %v3811_v38  ;;  %s3865_s13 = scalar_lea.vmem [#allocation4], %s3864_s9  ;;  %s3868_s28 = scalar_lea.vmem [#allocation5], %s3864_s9 }
 0xab5   : >> { %v3866_v32 = vld [vmem:[%s3865_s13] ss:$8 sm:$0xf]  ;;  %s3889_s6 = sand.u32 7, %s3872_s7  ;;  %s5801_s10 = sshll.u32 %s3886_s25, 5 }
 0xab6   : >> { %v3839_v12 = vmul.f32 %v3838_v47, %v9102_v58  ;;  %v3869_v42 = vld [vmem:[%s3868_s28] ss:$8 sm:$0xf]  ;;  %s3900_s12 = sadd.s32 1, %s9058_s26  ;;  %s3892_s14 = sadd.s32 %s5801_s10, %s3889_s6  ;;  %v4268_v5 = vrot.slane %v9102_v58, %v10059_v63  ;;  %v4272_v17 = vrot.slane %v9102_v58, %v10060_v16  ;;  %v4276_v8 = vrot.slane %v9102_v58, %v10061_v62 }
 0xab7   : >> { %s3914_s18 = sshra.s32 %s3900_s12, 3  ;;  %s3893_s16 = scalar_lea.vmem [#allocation4], %s3892_s14  ;;  %v4280_v0 = vrot.slane %v9102_v58, %v10062_v21 }
 0xab8   : >> { %v9106_v56 = vadd.f32 %v3841_v14, %v3839_v12  ;;  %v3894_v36 = vld [vmem:[%s3893_s16] ss:$8 sm:$0xf]  ;;  %s3896_s15 = scalar_lea.vmem [#allocation5], %s3892_s14  ;;  %s3917_s17 = sand.u32 7, %s3900_s12 }
 0xab9   : >> { %v3897_v45 = vld [vmem:[%s3896_s15] ss:$8 sm:$0xf]  ;;  %s5803_s29 = sshll.u32 %s3914_s18, 5  ;;  %s3941_s8 = sshra.s32 %s9058_s26, 3 }
 0xaba   : >> { %v3867_v33 = vmul.f32 %v3866_v32, %v9106_v56  ;;  %s3920_s30 = sadd.s32 %s5803_s29, %s3917_s17  ;;  %s5805_s13 = sshll.u32 %s3941_s8, 5  ;;  %v4247_v39 = vrot.slane %v9106_v56, %v10059_v63  ;;  %v4251_v18 = vrot.slane %v9106_v56, %v10060_v16  ;;  %v4255_v57 = vrot.slane %v9106_v56, %v10061_v62 }
 0xabb   : >> { %s3921_s9 = scalar_lea.vmem [#allocation4], %s3920_s30  ;;  %s3924_s7 = scalar_lea.vmem [#allocation5], %s3920_s30  ;;  %v4259_v40 = vrot.slane %v9106_v56, %v10062_v21 }
 0xabc   : >> { %v9110_v22 = vadd.f32 %v3869_v42, %v3867_v33  ;;  %v3922_v10 = vld [vmem:[%s3921_s9] ss:$8 sm:$0xf]  ;;  %s3945_s28 = scalar_lea.vmem [#allocation4], %s5805_s13  ;;  %s9126_s26 = scalar_lea.vmem [#allocation5], %s5805_s13 }
 0xabd   : >> { %v3925_v11 = vld [vmem:[%s3924_s7] ss:$8 sm:$0xf]  ;;  %s3728_s11 = sadd.s32 1, %s6605_s11  }
 0xabe   : >> { %v3895_v31 = vmul.f32 %v3894_v36, %v9110_v22  ;;  %v3946_v23 = vld [vmem:[%s3945_s28] ss:$8 sm:$0xf]  ;;  %v4226_v61 = vrot.slane %v9110_v22, %v10059_v63  ;;  %v4230_v54 = vrot.slane %v9110_v22, %v10060_v16  ;;  %v4234_v48 = vrot.slane %v9110_v22, %v10061_v62  ;;  %p3725_p7 = scmp.ge.s32.totalorder %s3728_s11, 8  }
 0xabf   : >> { %v3950_v30 = vld [vmem:[%s9126_s26] ss:$8 sm:$0xf]  ;;  %v4238_v27 = vrot.slane %v9110_v22, %v10062_v21  ;;  %s10072_s11 = smov (%p3725_p7), 64   ;;  %s10074_s10 = scalar_lea.vmem (%p3725_p7), %s9772_s4, %s10109_s19 }
 0xac0   : >> { %v3898_v13 = vadd.f32 %v3897_v45, %v3895_v31  ;;  %v10064_v44 = vld [vmem:[#allocation25_spill] sm:$0xff] (%p3725_p7)  ;;  %v10071_v28 = vld [vmem:[#allocation26_spill] sm:$0xff] (%p3725_p7) }
 0xac2   : >> { %v3923_v25 = vmul.f32 %v3922_v10, %v3898_v13  ;;  %v4205_v26 = vrot.slane %v3898_v13, %v10059_v63  ;;  %v4209_v52 = vrot.slane %v3898_v13, %v10060_v16  ;;  %v4213_v9 = vrot.slane %v3898_v13, %v10061_v62 }
 0xac3   : >> { %v4217_v2 = vrot.slane %v3898_v13, %v10062_v21 }
 0xac4   : >> { %v3926_v43 = vadd.f32 %v3925_v11, %v3923_v25 }
 0xac6   : >> { %v3947_v24 = vmul.f32 %v3946_v23, %v3926_v43  ;;  %v4184_v46 = vrot.slane %v3926_v43, %v10059_v63  ;;  %v4188_v7 = vrot.slane %v3926_v43, %v10060_v16  ;;  %v4192_v49 = vrot.slane %v3926_v43, %v10061_v62 }
 0xac7   : >> { %v4196_v3 = vrot.slane %v3926_v43, %v10062_v21 }
 0xac8   : >> { %v3951_v55 = vadd.f32 %v3950_v30, %v3947_v24   ;;  %v6633_v24 = vmov (%p3725_p7), 77  }
 0xaca   : >> { %v4163_v53 = vrot.slane %v3951_v55, %v10059_v63  ;;  %v4167_v6 = vrot.slane %v3951_v55, %v10060_v16  ;;  %v4171_v41 = vrot.slane %v3951_v55, %v10061_v62  ;;  %v4175_v19 = vrot.slane %v3951_v55, %v10062_v21 }
 0xacb   : > { %v6628_v62 = vmov (%p3725_p7), 72   ;;  %v6630_v63 = vmov (%p3725_p7), 74   ;;  %v6631_v16 = vmov (%p3725_p7), 75   ;;  %v6632_v55 = vmov (%p3725_p7), 76  }
 0xacc   : >> { %v4327_v59 = vsel %vm4120_vm13, %v4163_v53, %v4184_v46  ;;  %v4328_v15 = vsel %vm4120_vm13, %v4167_v6, %v4188_v7  ;;  %v4329_v20 = vsel %vm4120_vm13, %v4171_v41, %v4192_v49  ;;  %v4330_v34 = vsel %vm4120_vm13, %v4175_v19, %v4196_v3  ;;  %6511 = vset.pattern.permute.xlu1 (%p3725_p7), %v6628_v62  ;;  %v9282_v3 = vld [vmem:[#allocation3] sm:$0xff] (%p3725_p7) }
 0xacd   : >> { %v4331_v38 = vsel %vm4125_vm14, %v4327_v59, %v4205_v26  ;;  %v4332_v58 = vsel %vm4125_vm14, %v4328_v15, %v4209_v52  ;;  %v4333_v47 = vsel %vm4125_vm14, %v4329_v20, %v4213_v9  ;;  %v4334_v14 = vsel %vm4125_vm14, %v4330_v34, %v4217_v2  ;;  %6510 = vset.pattern.permute.xlu0 (%p3725_p7), %v6628_v62  ;;  %v9284_v26 = vld [vmem:[#allocation3 + $0x20] sm:$0xff] (%p3725_p7)  ;;  %v9340_v62 = vld [vmem:[#allocation3 + $0x68] sm:$0xff] (%p3725_p7) }
 0xace   : >> { %v4335_v12 = vsel %vm4130_vm15, %v4331_v38, %v4226_v61  ;;  %v4336_v21 = vsel %vm4130_vm15, %v4332_v58, %v4230_v54  ;;  %v4337_v56 = vsel %vm4130_vm15, %v4333_v47, %v4234_v48  ;;  %v4338_v32 = vsel %vm4130_vm15, %v4334_v14, %v4238_v27  ;;  %3727 = sbr.rel (!%p3725_p7) target bundleno = 2694 (0xa86), region = 122  ;;  %4383 = vperm.xlu1 (%p3725_p7), %6511, %v10064_v44   ;;  %v9290_v6 = vld [vmem:[#allocation3 + $0x40] sm:$0xff] (%p3725_p7) }
 0xacf   : >> { %v4339_v42 = vsel %vm4135_vm1, %v4335_v12, %v4247_v39  ;;  %v4340_v33 = vsel %vm4135_vm1, %v4336_v21, %v4251_v18  ;;  %v4341_v22 = vsel %vm4135_vm1, %v4337_v56, %v4255_v57  ;;  %v4342_v36 = vsel %vm4135_vm1, %v4338_v32, %v4259_v40  ;;  %v9292_v41 = vld [vmem:[#allocation3 + $0x60] sm:$0xff] (%p3725_p7) }
 0xad0   : >> { %v4343_v45 = vsel %vm4140_vm2, %v4339_v42, %v4268_v5  ;;  %v4344_v31 = vsel %vm4140_vm2, %v4340_v33, %v4272_v17  ;;  %v4345_v13 = vsel %vm4140_vm2, %v4341_v22, %v4276_v8  ;;  %v4346_v10 = vsel %vm4140_vm2, %v4342_v36, %v4280_v0  ;;  %v10069_v17 = vld [vmem:[#allocation18_spill] sm:$0xff] (%p3725_p7) }
 0xad1   : >> { %v4347_v11 = vsel %vm4145_vm3, %v4343_v45, %v4289_v4  ;;  %v4348_v25 = vsel %vm4145_vm3, %v4344_v31, %v4293_v50  ;;  %v4349_v43 = vsel %vm4145_vm3, %v4345_v13, %v4297_v37  ;;  %v4350_v23 = vsel %vm4145_vm3, %v4346_v10, %v4301_v60  ;;  %v10070_v37 = vld [vmem:[#allocation30_spill] sm:$0xff] (%p3725_p7)  ;;  %v9328_v13 = vld [vmem:[#allocation3 + $0x8] sm:$0xff] (%p3725_p7) }
 0xad2   : >> { %v4351_v30 = vsel %vm4150_vm4, %v4347_v11, %v4310_v35  ;;  %v4352_v5 = vsel %vm4150_vm4, %v4348_v25, %v4314_v1  ;;  %v4353_v4 = vsel %vm4150_vm4, %v4349_v43, %v4318_v29  ;;  %v4354_v50 = vsel %vm4150_vm4, %v4350_v23, %v4322_v51  ;;  %v10065_v35 = vld [vmem:[#allocation17_spill] sm:$0xff] (%p3725_p7)  ;;  %v10068_v51 = vld [vmem:[#allocation22_spill] sm:$0xff] (%p3725_p7)  ;;  %v9334_v23 = vld [vmem:[#allocation3 + $0x28] sm:$0xff] (%p3725_p7) }
 0xad3   : >> { %4355 = vst [vmem:[%s9126_s26] sm:$0xff] %v4351_v30  ;;  %4356 = vst [vmem:[%s9126_s26 + $0x8] sm:$0xff] %v4352_v5  ;;  %4375 = vperm.xlu0 (%p3725_p7), %6510, %v10065_v35   ;;  %v10066_v1 = vld [vmem:[#allocation29_spill] sm:$0xff] (%p3725_p7)  ;;  %v6629_v60 = vmov (%p3725_p7), 73   ;;  %v6634_v61 = vmov (%p3725_p7), 78   ;;  %v9298_v40 = vld [vmem:[#allocation3 + $0xa0] sm:$0xff] (%p3725_p7) }
 0xad4   : >> { %4357 = vst [vmem:[%s9126_s26 + $0x10] sm:$0xff] %v4353_v4  ;;  %4358 = vst [vmem:[%s9126_s26 + $0x18] sm:$0xff] %v4354_v50  ;;  %4387 = vperm.xlu1 (%p3725_p7), %6511, %v10066_v1   ;;  %v10067_v29 = vld [vmem:[#allocation21_spill] sm:$0xff] (%p3725_p7)  ;;  %v9300_v59 = vld [vmem:[#allocation3 + $0x80] sm:$0xff] (%p3725_p7) }
 0xad5   : > { %v9306_v58 = vld [vmem:[#allocation3 + $0xe0] sm:$0xff]  ;;  %v9338_v50 = vld [vmem:[#allocation3 + $0x48] sm:$0xff] }
 0xad6   : > { %v9308_v47 = vld [vmem:[#allocation3 + $0xc0] sm:$0xff] }
 0xad7   : > { %4379 = vperm.xlu0 %6510, %v10067_v29  }
 0xad8   : > { %4395 = vperm.xlu1 %6511, %v10068_v51  }
 0xadb   : > { %4391 = vperm.xlu0 %6510, %v10069_v17  }
 0xadc   : > { %4403 = vperm.xlu1 %6511, %v10070_v37  }
 0xadf   : > { %4399 = vperm.xlu0 %6510, %v10071_v28  }
 0xae0   : > { %6513 = vset.pattern.permute.xlu1 %v6629_v60 }
 0xae1   : > { %4435 = vperm.xlu1 %6513, %v10067_v29  }
 0xae3   : > { %6512 = vset.pattern.permute.xlu0 %v6629_v60 }
 0xae4   : > { %4431 = vperm.xlu0 %6512, %v10065_v35  }
 0xae5   : > { %4439 = vperm.xlu1 %6513, %v10064_v44  }
 0xae8   : > { %4443 = vperm.xlu0 %6512, %v10066_v1  }
 0xae9   : > { %4447 = vperm.xlu1 %6513, %v10069_v17  }
 0xaec   : > { %4451 = vperm.xlu0 %6512, %v10068_v51  }
 0xaed   : > { %4455 = vperm.xlu1 %6513, %v10071_v28  }
 0xaf0   : > { %4459 = vperm.xlu0 %6512, %v10070_v37  }
 0xaf1   : > { %6514 = vset.pattern.permute.xlu1 %v6630_v63 }
 0xaf2   : > { %4511 = vperm.xlu1 %6514, %v10065_v35  }
 0xaf4   : > { %6515 = vset.pattern.permute.xlu0 %v6630_v63 }
 0xaf5   : > { %4515 = vperm.xlu0 %6515, %v10067_v29  }
 0xaf6   : > { %4519 = vperm.xlu1 %6514, %v10064_v44  }
 0xaf9   : > { %4527 = vperm.xlu0 %6515, %v10069_v17  }
 0xafa   : > { %4523 = vperm.xlu1 %6514, %v10066_v1  }
 0xafd   : > { %4535 = vperm.xlu0 %6515, %v10071_v28  }
 0xafe   : > { %4531 = vperm.xlu1 %6514, %v10068_v51  }
 0xb01   : > { %6516 = vset.pattern.permute.xlu0 %v6631_v16 }
 0xb02   : > { %4567 = vperm.xlu0 %6516, %v10065_v35   ;;  %4539 = vperm.xlu1 %6514, %v10070_v37  }
 0xb06   : > { %4579 = vperm.xlu0 %6516, %v10066_v1   ;;  %6517 = vset.pattern.permute.xlu1 %v6631_v16 }
 0xb07   : > { %4571 = vperm.xlu1 %6517, %v10067_v29  }
 0xb0a   : > { %4587 = vperm.xlu0 %6516, %v10068_v51  }
 0xb0b   : > { %4575 = vperm.xlu1 %6517, %v10064_v44  }
 0xb0e   : > { %4595 = vperm.xlu0 %6516, %v10070_v37  }
 0xb0f   : > { %4583 = vperm.xlu1 %6517, %v10069_v17  }
 0xb12   : > { %6519 = vset.pattern.permute.xlu0 %v6632_v55 }
 0xb13   : > { %4651 = vperm.xlu0 %6519, %v10067_v29   ;;  %4591 = vperm.xlu1 %6517, %v10071_v28  }
 0xb17   : > { %4663 = vperm.xlu0 %6519, %v10069_v17   ;;  %6518 = vset.pattern.permute.xlu1 %v6632_v55 }
 0xb18   : > { %4647 = vperm.xlu1 %6518, %v10065_v35  }
 0xb1b   : > { %4671 = vperm.xlu0 %6519, %v10071_v28  }
 0xb1c   : > { %4655 = vperm.xlu1 %6518, %v10064_v44  }
 0xb1f   : > { %6520 = vset.pattern.permute.xlu0 %v6633_v24 }
 0xb20   : > { %4703 = vperm.xlu0 %6520, %v10065_v35   ;;  %4659 = vperm.xlu1 %6518, %v10066_v1  }
 0xb24   : > { %4715 = vperm.xlu0 %6520, %v10066_v1   ;;  %4667 = vperm.xlu1 %6518, %v10068_v51  }
 0xb28   : > { %4723 = vperm.xlu0 %6520, %v10068_v51   ;;  %4675 = vperm.xlu1 %6518, %v10070_v37  }
 0xb2c   : > { %6521 = vset.pattern.permute.xlu1 %v6633_v24  ;;  %v9346_v24 = vld [vmem:[#allocation3 + $0x88] sm:$0xff] }
 0xb2d   : > { %4707 = vperm.xlu1 %6521, %v10067_v29  }
 0xb31   : > { %4711 = vperm.xlu1 %6521, %v10064_v44  }
 0xb35   : > { %4719 = vperm.xlu1 %6521, %v10069_v17  }
 0xb39   : > { %4727 = vperm.xlu1 %6521, %v10071_v28  }
 0xb3d   : > { %6522 = vset.pattern.permute.xlu1 %v6634_v61 }
 0xb4d   : > { %v9266_v8 = vpop.permute.xlu1 %4383 }
 0xb52   : > { %v9268_v0 = vpop.permute.xlu0 %4375 }
 0xb53   : > { %v9270_v46 = vpop.permute.xlu1 %4387 }
 0xb56   : > { %v9272_v54 = vpop.permute.xlu0 %4379 }
 0xb57   : > { %v9274_v48 = vpop.permute.xlu1 %4395 }
 0xb5a   : > { %v9276_v27 = vpop.permute.xlu0 %4391 }
 0xb5b   : > { %v9278_v7 = vpop.permute.xlu1 %4403 }
 0xb5e   : > { %v9280_v49 = vpop.permute.xlu0 %4399 }
 0xb60   : > { %v4436_v52 = vpop.permute.xlu1 %4435 }
 0xb61   : > { %v4463_v2 = vmul.f32 %v4436_v52, %v9284_v26  ;;  %v9348_v52 = vld [vmem:[#allocation3 + $0xa8] sm:$0xff] }
 0xb63   : > { %v4432_v9 = vpop.permute.xlu0 %4431  ;;  %4480 = vrot.lane.b32.xlu0 %v4463_v2, %s10072_s11 }
 0xb64   : > { %v4462_v53 = vmul.f32 %v4432_v9, %v9282_v3  ;;  %v4440_v19 = vpop.permute.xlu1 %4439 }
 0xb65   : > { %v4464_v18 = vmul.f32 %v4440_v19, %v9290_v6 }
 0xb66   : > { %4478 = vrot.lane.b32.xlu1 %v4462_v53, %s10072_s11 }
 0xb67   : > { %v4444_v39 = vpop.permute.xlu0 %4443 }
 0xb68   : > { %v4465_v57 = vmul.f32 %v4444_v39, %v9292_v41  ;;  %v4448_v15 = vpop.permute.xlu1 %4447  ;;  %v9356_v39 = vld [vmem:[#allocation3 + $0xc8] sm:$0xff] }
 0xb69   : > { %v4466_v34 = vmul.f32 %v4448_v15, %v9300_v59 }
 0xb6a   : > { %4482 = vrot.lane.b32.xlu1 %v4464_v18, %s10072_s11  ;;  %4484 = vrot.lane.b32.xlu0 %v4465_v57, %s10072_s11  ;;  %v9358_v18 = vld [vmem:[#allocation3 + $0xe8] sm:$0xff] }
 0xb6b   : > { %v4452_v20 = vpop.permute.xlu0 %4451 }
 0xb6c   : > { %v4467_v38 = vmul.f32 %v4452_v20, %v9298_v40  ;;  %v4456_v14 = vpop.permute.xlu1 %4455 }
 0xb6d   : > { %v4468_v21 = vmul.f32 %v4456_v14, %v9308_v47 }
 0xb6e   : > { %4486 = vrot.lane.b32.xlu1 %v4466_v34, %s10072_s11  ;;  %4488 = vrot.lane.b32.xlu0 %v4467_v38, %s10072_s11 }
 0xb6f   : > { %v4460_v12 = vpop.permute.xlu0 %4459 }
 0xb70   : > { %v4469_v56 = vmul.f32 %v4460_v12, %v9306_v58  ;;  %v9371_v12 = vld [vmem:[#allocation3 + $0x10] sm:$0xff] }
 0xb71   : > { %v9314_v32 = vpop.permute.xlu1 %4511 }
 0xb72   : > { %4490 = vrot.lane.b32.xlu1 %v4468_v21, %s10072_s11  ;;  %4492 = vrot.lane.b32.xlu0 %v4469_v56, %s10072_s11 }
 0xb74   : > { %v9316_v42 = vpop.permute.xlu0 %4515 }
 0xb75   : > { %v9318_v33 = vpop.permute.xlu1 %4519 }
 0xb78   : > { %v9320_v22 = vpop.permute.xlu0 %4527 }
 0xb79   : > { %v9322_v36 = vpop.permute.xlu1 %4523 }
 0xb7c   : > { %v9324_v45 = vpop.permute.xlu0 %4535 }
 0xb7d   : > { %v9326_v31 = vpop.permute.xlu1 %4531 }
 0xb81   : > { %v4568_v10 = vpop.permute.xlu0 %4567  ;;  %v9331_v25 = vpop.permute.xlu1 %4539 }
 0xb82   : > { %v4598_v11 = vmul.f32 %v4568_v10, %v9328_v13 }
 0xb84   : > { %4614 = vrot.lane.b32.xlu1 %v4598_v11, %s10072_s11 }
 0xb85   : > { %v4580_v43 = vpop.permute.xlu0 %4579 }
 0xb86   : > { %v4572_v30 = vpop.permute.xlu1 %4571  ;;  %v4601_v55 = vmul.f32 %v4580_v43, %v9340_v62 }
 0xb87   : > { %v4599_v4 = vmul.f32 %v4572_v30, %v9334_v23 }
 0xb89   : > { %v4588_v5 = vpop.permute.xlu0 %4587  ;;  %4616 = vrot.lane.b32.xlu0 %v4599_v4, %s10072_s11 }
 0xb8a   : > { %v4576_v60 = vpop.permute.xlu1 %4575  ;;  %v4603_v19 = vmul.f32 %v4588_v5, %v9348_v52  ;;  %v9384_v5 = vld [vmem:[#allocation3 + $0x30] sm:$0xff] }
 0xb8b   : > { %v4600_v16 = vmul.f32 %v4576_v60, %v9338_v50  ;;  %v9386_v60 = vld [vmem:[#allocation3 + $0x70] sm:$0xff] }
 0xb8d   : > { %v4596_v63 = vpop.permute.xlu0 %4595  ;;  %4618 = vrot.lane.b32.xlu1 %v4600_v16, %s10072_s11  ;;  %4620 = vrot.lane.b32.xlu0 %v4601_v55, %s10072_s11  ;;  %v9389_v55 = vld [vmem:[#allocation3 + $0x50] sm:$0xff] }
 0xb8e   : > { %v4584_v9 = vpop.permute.xlu1 %4583  ;;  %v4605_v34 = vmul.f32 %v4596_v63, %v9358_v18 }
 0xb8f   : > { %v4602_v53 = vmul.f32 %v4584_v9, %v9346_v24  ;;  %v9393_v9 = vld [vmem:[#allocation3 + $0xb0] sm:$0xff] }
 0xb91   : > { %4622 = vrot.lane.b32.xlu1 %v4602_v53, %s10072_s11  ;;  %4624 = vrot.lane.b32.xlu0 %v4603_v19, %s10072_s11 }
 0xb92   : > { %v9350_v2 = vpop.permute.xlu0 %4651  ;;  %v4592_v57 = vpop.permute.xlu1 %4591 }
 0xb93   : > { %v4604_v20 = vmul.f32 %v4592_v57, %v9356_v39 }
 0xb95   : > { %4626 = vrot.lane.b32.xlu1 %v4604_v20, %s10072_s11  ;;  %4628 = vrot.lane.b32.xlu0 %v4605_v34, %s10072_s11  ;;  %v9396_v20 = vld [vmem:[#allocation3 + $0x90] sm:$0xff] }
 0xb96   : > { %v9360_v15 = vpop.permute.xlu0 %4663 }
 0xb97   : > { %v9366_v38 = vpop.permute.xlu1 %4647 }
 0xb99   : > { %4731 = vperm.xlu0 %6520, %v10070_v37  }
 0xb9a   : > { %v9368_v14 = vpop.permute.xlu0 %4671 }
 0xb9b   : > { %v9373_v21 = vpop.permute.xlu1 %4655 }
 0xb9d   : > { %6523 = vset.pattern.permute.xlu0 %v6634_v61 }
 0xb9f   : > { %v4704_v56 = vpop.permute.xlu0 %4703  ;;  %v9378_v11 = vpop.permute.xlu1 %4659 }
 0xba0   : > { %v4734_v10 = vmul.f32 %v4704_v56, %v9371_v12 }
 0xba2   : > { %4750 = vrot.lane.b32.xlu1 %v4734_v10, %s10072_s11 }
 0xba3   : > { %v9380_v43 = vpop.permute.xlu1 %4667  ;;  %v4716_v4 = vpop.permute.xlu0 %4715 }
 0xba4   : > { %v4737_v61 = vmul.f32 %v4716_v4, %v9386_v60 }
 0xba7   : > { %v9382_v30 = vpop.permute.xlu1 %4675  ;;  %v4724_v19 = vpop.permute.xlu0 %4723 }
 0xba8   : > { %10073 = vst [vmem:[#allocation45_spill] sm:$0xff] %v9382_v30  ;;  %v4739_v34 = vmul.f32 %v4724_v19, %v9393_v9 }
 0xbac   : > { %v4708_v63 = vpop.permute.xlu1 %4707 }
 0xbad   : > { %v4735_v16 = vmul.f32 %v4708_v63, %v9384_v5  ;;  %v9402_v63 = vld [vmem:[#allocation3 + $0xd0] sm:$0xff] }
 0xbaf   : > { %4752 = vrot.lane.b32.xlu0 %v4735_v16, %s10072_s11 }
 0xbb0   : > { %v4712_v53 = vpop.permute.xlu1 %4711 }
 0xbb1   : > { %v4736_v57 = vmul.f32 %v4712_v53, %v9389_v55  ;;  %v10075_v53 = vld [vmem:[#allocation7_spill] sm:$0xff] }
 0xbb3   : > { %4754 = vrot.lane.b32.xlu1 %v4736_v57, %s10072_s11  ;;  %4756 = vrot.lane.b32.xlu0 %v4737_v61, %s10072_s11  ;;  %v5784_v61 = vld [vmem:[%s10074_s10] ss:$0 sm:$0xff]  ;;  %v4414_v57 = vmul.f32 %v9282_v3, %v9268_v0 }
 0xbb4   : > { %v4720_v56 = vpop.permute.xlu1 %4719  ;;  %v4366_v19 = vmul.f32 %v5784_v61, %v10075_v53  ;;  %v4417_v53 = vmul.f32 %v9292_v41, %v9270_v46  ;;  %v4418_v46 = vmul.f32 %v9300_v59, %v9276_v27 }
 0xbb5   : > { %v4738_v10 = vmul.f32 %v4720_v56, %v9396_v20  ;;  %v10076_v56 = vld [vmem:[#allocation8_spill] sm:$0xff] }
 0xbb6   : > { %v4422_v0 = vadd.f32 %v4414_v57, %v4366_v19  ;;  %v10080_v19 = vld [vmem:[#allocation11_spill] sm:$0xff] }
 0xbb7   : > { %4758 = vrot.lane.b32.xlu1 %v4738_v10, %s10072_s11  ;;  %4760 = vrot.lane.b32.xlu0 %v4739_v34, %s10072_s11  ;;  %v4415_v34 = vmul.f32 %v9284_v26, %v9272_v54  ;;  %v4367_v10 = vmul.f32 %v5784_v61, %v10076_v56  ;;  %v4550_v56 = vmul.f32 %v9328_v13, %v9314_v32 }
 0xbb8   : > { %v4728_v4 = vpop.permute.xlu1 %4727  ;;  %v4371_v57 = vmul.f32 %v5784_v61, %v10080_v19  ;;  %v4552_v13 = vmul.f32 %v9338_v50, %v9318_v33  ;;  %v4554_v50 = vmul.f32 %v9346_v24, %v9320_v22 }
 0xbb9   : > { %v4740_v16 = vmul.f32 %v4728_v4, %v9402_v63  ;;  %v9887_v4 = vmov 79   ;;  %v4423_v3 = vadd.f32 %v4415_v34, %v4367_v10 }
 0xbbb   : > { %4762 = vrot.lane.b32.xlu1 %v4740_v16, %s10072_s11  ;;  %v10077_v16 = vld [vmem:[#allocation13_spill] sm:$0xff] }
 0xbbc   : > { %v4368_v30 = vmul.f32 %v5784_v61, %v10077_v16  ;;  %v4551_v16 = vmul.f32 %v9334_v23, %v9316_v42 }
 0xbbf   : > { %4783 = vperm.xlu1 %6522, %v10065_v35  }
 0xbc3   : > { %4791 = vperm.xlu1 %6522, %v10064_v44  }
 0xbc7   : > { %4795 = vperm.xlu1 %6522, %v10066_v1  }
 0xbcb   : > { %4803 = vperm.xlu1 %6522, %v10068_v51   ;;  %v10078_v51 = vld [vmem:[#allocation14_spill] sm:$0xff] }
 0xbcc   : > { %v4369_v1 = vmul.f32 %v5784_v61, %v10078_v51 }
 0xbce   : > { %v4425_v10 = vadd.f32 %v4417_v53, %v4369_v1 }
 0xbcf   : > { %4811 = vperm.xlu1 %6522, %v10070_v37   ;;  %v4416_v37 = vmul.f32 %v9290_v6, %v9266_v8  ;;  %v4419_v8 = vmul.f32 %v9298_v40, %v9274_v48  ;;  %v10079_v6 = vld [vmem:[#allocation10_spill] sm:$0xff]  ;;  %v4553_v48 = vmul.f32 %v9340_v62, %v9322_v36  ;;  %v4555_v62 = vmul.f32 %v9348_v52, %v9326_v31 }
 0xbd0   : > { %v4370_v41 = vmul.f32 %v5784_v61, %v10079_v6 }
 0xbd1   : > { %v4424_v34 = vadd.f32 %v4416_v37, %v4368_v30  ;;  %v4427_v23 = vadd.f32 %v4419_v8, %v4371_v57  ;;  %v10082_v37 = vld [vmem:[#allocation16_spill] sm:$0xff]  ;;  %v4421_v30 = vmul.f32 %v9306_v58, %v9278_v7  ;;  %v4687_v57 = vmul.f32 %v9384_v5, %v9350_v2 }
 0xbd2   : > { %v4426_v59 = vadd.f32 %v4418_v46, %v4370_v41  ;;  %v4373_v1 = vmul.f32 %v5784_v61, %v10082_v37  ;;  %v4686_v46 = vmul.f32 %v9371_v12, %v9366_v38  ;;  %v4691_v2 = vmul.f32 %v9393_v9, %v9380_v43  ;;  %v10083_v9 = vld [vmem:[#allocation21_spill] sm:$0xff] }
 0xbd3   : > { %6525 = vset.pattern.permute.xlu1 %v9887_v4 }
 0xbd4   : > { %4843 = vperm.xlu1 %6525, %v10067_v29  }
 0xbd5   : > { %v4481_v26 = vpop.permute.xlu0 %4480 }
 0xbd6   : > { %v4503_v51 = vadd.f32 %v4481_v26, %v4423_v3 }
 0xbd8   : > { %v4479_v54 = vpop.permute.xlu1 %4478  ;;  %v4559_v29 = vadd.f32 %v4551_v16, %v4503_v51  ;;  %4847 = vperm.xlu1 %6525, %v10064_v44   ;;  %v4420_v44 = vmul.f32 %v9308_v47, %v9280_v49  ;;  %v4556_v16 = vmul.f32 %v9356_v39, %v9324_v45  ;;  %v4557_v51 = vmul.f32 %v9358_v18, %v9331_v25 }
 0xbd9   : > { %v4502_v4 = vadd.f32 %v4479_v54, %v4422_v0  ;;  %v10081_v0 = vld [vmem:[#allocation15_spill] sm:$0xff] }
 0xbda   : > { %v4372_v3 = vmul.f32 %v5784_v61, %v10081_v0 }
 0xbdb   : > { %v4558_v35 = vadd.f32 %v4550_v56, %v4502_v4  ;;  %v4429_v56 = vadd.f32 %v4421_v30, %v4373_v1  ;;  %v10087_v1 = vld [vmem:[#allocation22_spill] sm:$0xff] }
 0xbdc   : > { %v4483_v32 = vpop.permute.xlu1 %4482  ;;  %v4485_v42 = vpop.permute.xlu0 %4484  ;;  %4855 = vperm.xlu1 %6525, %v10069_v17   ;;  %v4428_v26 = vadd.f32 %v4420_v44, %v4372_v3  ;;  %v10086_v3 = vld [vmem:[#allocation29_spill] sm:$0xff]  ;;  %v10088_v30 = vld [vmem:[#allocation30_spill] sm:$0xff] }
 0xbdd   : > { %v4504_v40 = vadd.f32 %v4483_v32, %v4424_v34  ;;  %v4505_v27 = vadd.f32 %v4485_v42, %v4425_v10  ;;  %v4688_v34 = vmul.f32 %v9389_v55, %v9373_v21  ;;  %v4689_v10 = vmul.f32 %v9386_v60, %v9378_v11 }
 0xbde   : > { %v4692_v60 = vmul.f32 %v9402_v63, %v9368_v14  ;;  %v10084_v14 = vmov 79   ;;  %v10085_v63 = vld [vmem:[#allocation17_spill] sm:$0xff] }
 0xbdf   : > { %v4560_v4 = vadd.f32 %v4552_v13, %v4504_v40  ;;  %v4561_v53 = vadd.f32 %v4553_v48, %v4505_v27 }
 0xbe0   : > { %v4487_v33 = vpop.permute.xlu1 %4486  ;;  %v4489_v36 = vpop.permute.xlu0 %4488  ;;  %4863 = vperm.xlu1 %6525, %v10071_v28  }
 0xbe1   : > { %v4506_v54 = vadd.f32 %v4487_v33, %v4426_v59  ;;  %v4507_v61 = vadd.f32 %v4489_v36, %v4427_v23  ;;  %v9493_v23 = vld [vmem:[#allocation3 + $0xf0] sm:$0xff] }
 0xbe3   : > { %v4562_v7 = vadd.f32 %v4554_v50, %v4506_v54  ;;  %v4563_v58 = vadd.f32 %v4555_v62, %v4507_v61 }
 0xbe4   : > { %v4491_v49 = vpop.permute.xlu1 %4490  ;;  %v4493_v47 = vpop.permute.xlu0 %4492 }
 0xbe5   : > { %v4508_v22 = vadd.f32 %v4491_v49, %v4428_v26  ;;  %v4509_v24 = vadd.f32 %v4493_v47, %v4429_v56  ;;  %v9521_v26 = vld [vmem:[#allocation3 + $0x38] sm:$0xff] }
 0xbe7   : > { %v4564_v8 = vadd.f32 %v4556_v16, %v4508_v22  ;;  %v9463_v31 = vadd.f32 %v4557_v51, %v4509_v24 }
 0xbf6   : > { %v4615_v52 = vpop.permute.xlu1 %4614 }
 0xbf7   : > { %v4638_v6 = vadd.f32 %v4615_v52, %v4558_v35  ;;  %v9535_v52 = vld [vmem:[#allocation3 + $0x18] sm:$0xff] }
 0xbf9   : > { %v9467_v41 = vadd.f32 %v4686_v46, %v4638_v6 }
 0xbfb   : > { %v4617_v19 = vpop.permute.xlu0 %4616 }
 0xbfc   : > { %v4639_v45 = vadd.f32 %v4617_v19, %v4559_v29  ;;  %v4690_v29 = vmul.f32 %v9396_v20, %v9360_v15  ;;  %v4817_v19 = vld [vmem:[#allocation3 + $0x78] sm:$0xff] }
 0xbfe   : > { %v9471_v39 = vadd.f32 %v4687_v57, %v4639_v45 }
 0xbff   : > { %v4619_v25 = vpop.permute.xlu1 %4618  ;;  %v4621_v18 = vpop.permute.xlu0 %4620 }
 0xc00   : > { %v4640_v32 = vadd.f32 %v4619_v25, %v4560_v4  ;;  %v4641_v38 = vadd.f32 %v4621_v18, %v4561_v53  ;;  %v4816_v4 = vld [vmem:[#allocation3 + $0x58] sm:$0xff] }
 0xc02   : > { %v4696_v35 = vadd.f32 %v4688_v34, %v4640_v32  ;;  %v9477_v12 = vadd.f32 %v4689_v10, %v4641_v38  ;;  %v4819_v34 = vld [vmem:[#allocation3 + $0xb8] sm:$0xff] }
 0xc03   : > { %v4623_v42 = vpop.permute.xlu1 %4622  ;;  %v4625_v13 = vpop.permute.xlu0 %4624  ;;  %v9541_v10 = vld [vmem:[#allocation3 + $0x98] sm:$0xff] }
 0xc04   : > { %v4642_v5 = vadd.f32 %v4623_v42, %v4562_v7  ;;  %v4643_v48 = vadd.f32 %v4625_v13, %v4563_v58  ;;  %v9546_v13 = vld [vmem:[#allocation3 + $0xd8] sm:$0xff] }
 0xc06   : > { %v9483_v40 = vadd.f32 %v4690_v29, %v4642_v5  ;;  %v9485_v21 = vadd.f32 %v4691_v2, %v4643_v48  ;;  %v4821_v29 = vld [vmem:[#allocation3 + $0xf8] sm:$0xff] }
 0xc07   : > { %v4627_v11 = vpop.permute.xlu1 %4626  ;;  %v9491_v59 = vpop.permute.xlu0 %4628 }
 0xc08   : > { %v4644_v55 = vadd.f32 %v4627_v11, %v4564_v8  ;;  %v10089_v11 = vld [vmem:[#allocation20_spill] sm:$0xff] }
 0xc0a   : > { %v9489_v27 = vadd.f32 %v4692_v60, %v4644_v55  ;;  %v10090_v60 = vld [vmem:[#allocation23_spill] sm:$0xff] }
 0xc0b   : > { %v10091_v55 = vld [vmem:[#allocation27_spill] sm:$0xff] }
 0xc14   : > { %v9500_v20 = vpop.permute.xlu1 %4750 }
 0xc18   : > { %v4732_v15 = vpop.permute.xlu0 %4731 }
 0xc19   : > { %v4741_v43 = vmul.f32 %v4732_v15, %v9493_v23  ;;  %v10092_v15 = vld [vmem:[#allocation19_spill] sm:$0xff] }
 0xc1b   : > { %4764 = vrot.lane.b32.xlu0 %v4741_v43, %s10072_s11  ;;  %v10093_v43 = vld [vmem:[#allocation31_spill] sm:$0xff] }
 0xc1f   : > { %4787 = vperm.xlu0 %6523, %v10083_v9   ;;  %v10094_v9 = vld [vmem:[#allocation28_spill] sm:$0xff] }
 0xc21   : > { %v9525_v58 = vpop.permute.xlu0 %4752 }
 0xc23   : > { %4799 = vperm.xlu0 %6523, %v10069_v17   ;;  %v6636_v17 = vmov 24  }
 0xc24   : > { %6526 = vset.pattern.permute.xlu1 %v6636_v17 }
 0xc25   : > { %v4755_v0 = vpop.permute.xlu1 %4754  ;;  %v4757_v49 = vpop.permute.xlu0 %4756 }
 0xc26   : > { %v4776_v33 = vadd.f32 %v4755_v0, %v4696_v35  ;;  %v10096_v0 = vld [vmem:[#allocation32_spill] sm:$0xff] }
 0xc27   : > { %4807 = vperm.xlu0 %6523, %v10071_v28  }
 0xc29   : > { %v9505_v37 = vpop.permute.xlu1 %4758  ;;  %v4761_v47 = vpop.permute.xlu0 %4760 }
 0xc2b   : > { %6524 = vset.pattern.permute.xlu0 %v10084_v14  ;;  %v10095_v14 = vld [vmem:[#allocation24_spill] sm:$0xff] }
 0xc2c   : > { %4839 = vperm.xlu0 %6524, %v10085_v63   ;;  %v6637_v63 = vmov 25  }
 0xc2d   : > { %v9509_v44 = vpop.permute.xlu1 %4762 }
 0xc30   : > { %4851 = vperm.xlu0 %6524, %v10086_v3   ;;  %v6638_v3 = vmov 26  }
 0xc34   : > { %4859 = vperm.xlu0 %6524, %v10087_v1  }
 0xc38   : > { %4867 = vperm.xlu0 %6524, %v10088_v30  }
 0xc3c   : > { %6527 = vset.pattern.permute.xlu0 %v6636_v17  ;;  %v4645_v17 = vadd.f32 %v9491_v59, %v9463_v31 }
 0xc3e   : > { %v9511_v28 = vpop.permute.xlu1 %4783 }
 0xc42   : > { %v4792_v53 = vpop.permute.xlu1 %4791 }
 0xc43   : > { %v4824_v36 = vmul.f32 %v4816_v4, %v4792_v53  ;;  %v10097_v53 = vld [vmem:[#allocation45_spill] sm:$0xff] }
 0xc45   : > { %v9513_v50 = vadd.f32 %v4824_v36, %v4776_v33  ;;  %v4693_v33 = vmul.f32 %v9493_v23, %v10097_v53 }
 0xc46   : > { %v9515_v62 = vpop.permute.xlu1 %4795 }
 0xc47   : > { %v4825_v1 = vmul.f32 %v4817_v19, %v9515_v62 }
 0xc4a   : > { %v9517_v54 = vpop.permute.xlu1 %4803 }
 0xc4b   : > { %v4827_v36 = vmul.f32 %v4819_v34, %v9517_v54  ;;  %v4822_v54 = vmul.f32 %v9535_v52, %v9511_v28  ;;  %v4778_v28 = vadd.f32 %v9505_v37, %v9483_v40 }
 0xc4e   : > { %v9519_v61 = vpop.permute.xlu1 %4811 }
 0xc4f   : > { %v4829_v62 = vmul.f32 %v4821_v29, %v9519_v61  ;;  %v4775_v61 = vadd.f32 %v9525_v58, %v9471_v39 }
 0xc53   : > { %v4844_v56 = vpop.permute.xlu1 %4843 }
 0xc54   : > { %v4871_v7 = vmul.f32 %v4844_v56, %v9521_v26 }
 0xc56   : > { %4888 = vrot.lane.b32.xlu0 %v4871_v7, %s10072_s11 }
 0xc57   : > { %v4848_v8 = vpop.permute.xlu1 %4847 }
 0xc58   : > { %v4872_v25 = vmul.f32 %v4848_v8, %v4816_v4  ;;  %v4777_v4 = vadd.f32 %v4757_v49, %v9477_v12  ;;  %v4779_v8 = vadd.f32 %v4761_v47, %v9485_v21 }
 0xc5a   : > { %v4833_v56 = vadd.f32 %v4825_v1, %v4777_v4  ;;  %v4953_v4 = vld [vmem:[#allocation5 + $0x60] sm:$0xff] }
 0xc5b   : > { %v4856_v57 = vpop.permute.xlu1 %4855 }
 0xc5c   : > { %v4874_v38 = vmul.f32 %v4856_v57, %v9541_v10 }
 0xc5f   : > { %v4864_v42 = vpop.permute.xlu1 %4863 }
 0xc60   : > { %v4876_v5 = vmul.f32 %v4864_v42, %v9546_v13 }
 0xc8d   : > { %v9527_v16 = vpop.permute.xlu0 %4764 }
 0xc9e   : > { %v9529_v51 = vpop.permute.xlu0 %4787 }
 0xc9f   : > { %v4823_v21 = vmul.f32 %v9521_v26, %v9529_v51 }
 0xca2   : > { %v9531_v22 = vpop.permute.xlu0 %4799 }
 0xca6   : > { %v9533_v24 = vpop.permute.xlu0 %4807 }
 0xca7   : > { %v4828_v39 = vmul.f32 %v9546_v13, %v9533_v24 }
 0xcab   : > { %v4840_v46 = vpop.permute.xlu0 %4839 }
 0xcac   : > { %v4870_v6 = vmul.f32 %v4840_v46, %v9535_v52  ;;  %v4701_v46 = vadd.f32 %v4693_v33, %v4645_v17  ;;  %v4956_v17 = vld [vmem:[#allocation5 + $0xc0] sm:$0xff] }
 0xcae   : > { %4886 = vrot.lane.b32.xlu1 %v4870_v6, %s10072_s11  ;;  %v4781_v57 = vadd.f32 %v9527_v16, %v4701_v46  ;;  %v4774_v16 = vadd.f32 %v9500_v20, %v9467_v41  ;;  %v4954_v41 = vld [vmem:[#allocation5 + $0x80] sm:$0xff] }
 0xcaf   : > { %v4852_v45 = vpop.permute.xlu0 %4851  ;;  %v4952_v20 = vld [vmem:[#allocation5 + $0x40] sm:$0xff] }
 0xcb0   : > { %v4873_v18 = vmul.f32 %v4852_v45, %v4817_v19  ;;  %v4835_v45 = vadd.f32 %v4827_v36, %v4779_v8  ;;  %v4837_v12 = vadd.f32 %v4829_v62, %v4781_v57  ;;  %v4830_v42 = vadd.f32 %v4822_v54, %v4774_v16 }
 0xcb2   : > { %4890 = vrot.lane.b32.xlu1 %v4872_v25, %s10072_s11  ;;  %4892 = vrot.lane.b32.xlu0 %v4873_v18, %s10072_s11 }
 0xcb3   : > { %v4860_v32 = vpop.permute.xlu0 %4859 }
 0xcb4   : > { %v4875_v35 = vmul.f32 %v4860_v32, %v4819_v34  ;;  %v4951_v34 = vld [vmem:[#allocation5 + $0x20] sm:$0xff] }
 0xcb5   : > { %v4950_v32 = vld [vmem:[#allocation5] sm:$0xff] }
 0xcb6   : > { %4894 = vrot.lane.b32.xlu1 %v4874_v38, %s10072_s11  ;;  %4896 = vrot.lane.b32.xlu0 %v4875_v35, %s10072_s11  ;;  %v4826_v38 = vmul.f32 %v9541_v10, %v9531_v22  ;;  %v4831_v35 = vadd.f32 %v4823_v21, %v4775_v61  ;;  %v4780_v10 = vadd.f32 %v9509_v44, %v9489_v27  ;;  %v4955_v27 = vld [vmem:[#allocation5 + $0xa0] sm:$0xff] }
 0xcb7   : > { %v4868_v2 = vpop.permute.xlu0 %4867 }
 0xcb8   : > { %v4877_v48 = vmul.f32 %v4868_v2, %v4821_v29  ;;  %v4834_v58 = vadd.f32 %v4826_v38, %v4778_v28  ;;  %v4836_v53 = vadd.f32 %v4828_v39, %v4780_v10  ;;  %v6639_v28 = vmov 27  }
 0xcba   : > { %4898 = vrot.lane.b32.xlu1 %v4876_v5, %s10072_s11  ;;  %4900 = vrot.lane.b32.xlu0 %v4877_v48, %s10072_s11 }
 0xcbe   : > { %4919 = vperm.xlu1 %6526, %v10089_v11   ;;  %4923 = vperm.xlu0 %6527, %v10090_v60  }
 0xcc2   : > { %4927 = vperm.xlu1 %6526, %v10091_v55   ;;  %4935 = vperm.xlu0 %6527, %v10092_v15  }
 0xcc6   : > { %4931 = vperm.xlu1 %6526, %v10093_v43   ;;  %4943 = vperm.xlu0 %6527, %v10094_v9  }
 0xcc8   : > { %v4889_v30 = vpop.permute.xlu0 %4888 }
 0xcc9   : > { %v4911_v26 = vadd.f32 %v4889_v30, %v4831_v35 }
 0xcca   : > { %4939 = vperm.xlu1 %6526, %v10095_v14   ;;  %6528 = vset.pattern.permute.xlu0 %v6637_v63 }
 0xccb   : > { %4975 = vperm.xlu0 %6528, %v10089_v11  }
 0xcce   : > { %4947 = vperm.xlu1 %6526, %v10096_v0  }
 0xccf   : > { %4987 = vperm.xlu0 %6528, %v10093_v43  }
 0xcd2   : > { %6529 = vset.pattern.permute.xlu1 %v6637_v63 }
 0xcd3   : > { %4979 = vperm.xlu1 %6529, %v10090_v60   ;;  %4995 = vperm.xlu0 %6528, %v10095_v14  }
 0xcd7   : > { %4983 = vperm.xlu1 %6529, %v10091_v55   ;;  %5003 = vperm.xlu0 %6528, %v10096_v0  }
 0xcdb   : > { %4991 = vperm.xlu1 %6529, %v10092_v15   ;;  %6531 = vset.pattern.permute.xlu0 %v6638_v3 }
 0xcdf   : > { %4999 = vperm.xlu1 %6529, %v10094_v9  }
 0xce3   : > { %6530 = vset.pattern.permute.xlu1 %v6638_v3 }
 0xd20   : > { %v4887_v19 = vpop.permute.xlu1 %4886 }
 0xd21   : > { %v4910_v51 = vadd.f32 %v4887_v19, %v4830_v42 }
 0xd24   : > { %v4893_v7 = vpop.permute.xlu0 %4892  ;;  %v4891_v25 = vpop.permute.xlu1 %4890 }
 0xd25   : > { %v4913_v6 = vadd.f32 %v4893_v7, %v4833_v56  ;;  %v4912_v63 = vadd.f32 %v4891_v25, %v9513_v50 }
 0xd28   : > { %v4897_v31 = vpop.permute.xlu0 %4896  ;;  %v4895_v18 = vpop.permute.xlu1 %4894 }
 0xd29   : > { %v4915_v59 = vadd.f32 %v4897_v31, %v4835_v45  ;;  %v4914_v3 = vadd.f32 %v4895_v18, %v4834_v58  ;;  %v4957_v45 = vld [vmem:[#allocation5 + $0xe0] sm:$0xff] }
 0xd2c   : > { %v4901_v49 = vpop.permute.xlu0 %4900  ;;  %v4899_v47 = vpop.permute.xlu1 %4898 }
 0xd2d   : > { %v4917_v23 = vadd.f32 %v4901_v49, %v4837_v12  ;;  %v4916_v56 = vadd.f32 %v4899_v47, %v4836_v53 }
 0xd3d   : > { %v4920_v52 = vpop.permute.xlu1 %4919  ;;  %v4924_v29 = vpop.permute.xlu0 %4923 }
 0xd3e   : > { %v4959_v2 = vmul.f32 %v4951_v34, %v4924_v29  ;;  %v4958_v5 = vmul.f32 %v4950_v32, %v4920_v52  ;;  %v6640_v52 = vmov 28  }
 0xd40   : > { %v9591_v48 = vadd.f32 %v4958_v5, %v4910_v51  ;;  %v9593_v22 = vadd.f32 %v4959_v2, %v4911_v26 }
 0xd41   : > { %v4928_v40 = vpop.permute.xlu1 %4927  ;;  %v4936_v37 = vpop.permute.xlu0 %4935 }
 0xd42   : > { %v4962_v1 = vmul.f32 %v4954_v41, %v4936_v37  ;;  %v4960_v30 = vmul.f32 %v4952_v20, %v4928_v40 }
 0xd44   : > { %v9598_v33 = vadd.f32 %v4960_v30, %v4912_v63  ;;  %v9600_v24 = vadd.f32 %v4962_v1, %v4914_v3 }
 0xd45   : > { %v4932_v13 = vpop.permute.xlu1 %4931  ;;  %v4944_v36 = vpop.permute.xlu0 %4943 }
 0xd46   : > { %v4964_v7 = vmul.f32 %v4956_v17, %v4944_v36  ;;  %v4961_v8 = vmul.f32 %v4953_v4, %v4932_v13  ;;  %v5088_v36 = vld [vmem:[#allocation5 + $0x48] sm:$0xff] }
 0xd48   : > { %v4969_v44 = vadd.f32 %v4961_v8, %v4913_v6  ;;  %v9602_v46 = vadd.f32 %v4964_v7, %v4916_v56  ;;  %v5090_v56 = vld [vmem:[#allocation5 + $0x88] sm:$0xff] }
 0xd49   : > { %v4940_v50 = vpop.permute.xlu1 %4939 }
 0xd4a   : > { %v4963_v57 = vmul.f32 %v4955_v27, %v4940_v50  ;;  %v4976_v62 = vpop.permute.xlu0 %4975  ;;  %v5089_v50 = vld [vmem:[#allocation5 + $0x68] sm:$0xff] }
 0xd4b   : > { %v5006_v19 = vmul.f32 %v4976_v62, %v4950_v32 }
 0xd4c   : > { %v4971_v31 = vadd.f32 %v4963_v57, %v4915_v59  ;;  %v5092_v57 = vld [vmem:[#allocation5 + $0xc8] sm:$0xff] }
 0xd4d   : > { %v4948_v12 = vpop.permute.xlu1 %4947  ;;  %5022 = vrot.lane.b32.xlu1 %v5006_v19, %s10072_s11 }
 0xd4e   : > { %v4965_v49 = vmul.f32 %v4957_v45, %v4948_v12  ;;  %v4988_v25 = vpop.permute.xlu0 %4987 }
 0xd4f   : > { %v5009_v16 = vmul.f32 %v4988_v25, %v4953_v4 }
 0xd50   : > { %v4973_v18 = vadd.f32 %v4965_v49, %v4917_v23  ;;  %v5091_v49 = vld [vmem:[#allocation5 + $0xa8] sm:$0xff] }
 0xd52   : > { %v4980_v54 = vpop.permute.xlu1 %4979  ;;  %v4996_v47 = vpop.permute.xlu0 %4995 }
 0xd53   : > { %v5007_v21 = vmul.f32 %v4980_v54, %v4951_v34  ;;  %v5011_v59 = vmul.f32 %v4996_v47, %v4955_v27 }
 0xd55   : > { %5024 = vrot.lane.b32.xlu0 %v5007_v21, %s10072_s11 }
 0xd56   : > { %v4984_v6 = vpop.permute.xlu1 %4983  ;;  %v5004_v35 = vpop.permute.xlu0 %5003 }
 0xd57   : > { %v5008_v61 = vmul.f32 %v4984_v6, %v4952_v20  ;;  %v5013_v34 = vmul.f32 %v5004_v35, %v4957_v45 }
 0xd59   : > { %5026 = vrot.lane.b32.xlu1 %v5008_v61, %s10072_s11  ;;  %5028 = vrot.lane.b32.xlu0 %v5009_v16, %s10072_s11  ;;  %v5093_v16 = vld [vmem:[#allocation5 + $0xe8] sm:$0xff] }
 0xd5a   : > { %v4992_v32 = vpop.permute.xlu1 %4991 }
 0xd5b   : > { %v5010_v38 = vmul.f32 %v4992_v32, %v4954_v41 }
 0xd5d   : > { %5030 = vrot.lane.b32.xlu1 %v5010_v38, %s10072_s11  ;;  %5032 = vrot.lane.b32.xlu0 %v5011_v59, %s10072_s11 }
 0xd5e   : > { %v5000_v23 = vpop.permute.xlu1 %4999 }
 0xd5f   : > { %v5012_v42 = vmul.f32 %v5000_v23, %v4956_v17  ;;  %v5086_v17 = vld [vmem:[#allocation5 + $0x8] sm:$0xff] }
 0xd61   : > { %5034 = vrot.lane.b32.xlu1 %v5012_v42, %s10072_s11  ;;  %5036 = vrot.lane.b32.xlu0 %v5013_v34, %s10072_s11 }
 0xd65   : > { %5055 = vperm.xlu1 %6530, %v10089_v11   ;;  %5059 = vperm.xlu0 %6531, %v10090_v60  }
 0xd69   : > { %5063 = vperm.xlu1 %6530, %v10091_v55   ;;  %5071 = vperm.xlu0 %6531, %v10092_v15  }
 0xd6d   : > { %5067 = vperm.xlu1 %6530, %v10093_v43   ;;  %5079 = vperm.xlu0 %6531, %v10094_v9  }
 0xd71   : > { %5075 = vperm.xlu1 %6530, %v10095_v14   ;;  %6532 = vset.pattern.permute.xlu0 %v6639_v28 }
 0xd72   : > { %5111 = vperm.xlu0 %6532, %v10089_v11  }
 0xd75   : > { %5083 = vperm.xlu1 %6530, %v10096_v0  }
 0xd76   : > { %5123 = vperm.xlu0 %6532, %v10093_v43  }
 0xd79   : > { %6533 = vset.pattern.permute.xlu1 %v6639_v28 }
 0xd7a   : > { %5115 = vperm.xlu1 %6533, %v10090_v60   ;;  %5131 = vperm.xlu0 %6532, %v10095_v14  }
 0xd7e   : > { %5119 = vperm.xlu1 %6533, %v10091_v55   ;;  %5139 = vperm.xlu0 %6532, %v10096_v0  }
 0xd82   : > { %5127 = vperm.xlu1 %6533, %v10092_v15   ;;  %6535 = vset.pattern.permute.xlu0 %v6640_v52 }
 0xd86   : > { %5135 = vperm.xlu1 %6533, %v10094_v9  }
 0xd8a   : > { %6534 = vset.pattern.permute.xlu1 %v6640_v52 }
 0xdbf   : > { %v5023_v29 = vpop.permute.xlu1 %5022 }
 0xdc0   : > { %v5046_v26 = vadd.f32 %v5023_v29, %v9591_v48  ;;  %v5087_v48 = vld [vmem:[#allocation5 + $0x28] sm:$0xff] }
 0xdc7   : > { %v5025_v51 = vpop.permute.xlu0 %5024 }
 0xdc8   : > { %v5047_v2 = vadd.f32 %v5025_v51, %v9593_v22 }
 0xdcb   : > { %v5027_v5 = vpop.permute.xlu1 %5026  ;;  %v5029_v41 = vpop.permute.xlu0 %5028 }
 0xdcc   : > { %v5048_v20 = vadd.f32 %v5027_v5, %v9598_v33  ;;  %v5049_v39 = vadd.f32 %v5029_v41, %v4969_v44 }
 0xdcf   : > { %v5031_v58 = vpop.permute.xlu1 %5030  ;;  %v5033_v10 = vpop.permute.xlu0 %5032 }
 0xdd0   : > { %v5050_v40 = vadd.f32 %v5031_v58, %v9600_v24  ;;  %v5051_v37 = vadd.f32 %v5033_v10, %v4971_v31  ;;  %v6641_v58 = vmov 29   ;;  %v6642_v10 = vmov 31  }
 0xdd3   : > { %v5035_v63 = vpop.permute.xlu1 %5034  ;;  %v5037_v3 = vpop.permute.xlu0 %5036 }
 0xdd4   : > { %v5052_v1 = vadd.f32 %v5035_v63, %v9602_v46  ;;  %v5053_v30 = vadd.f32 %v5037_v3, %v4973_v18 }
 0xde4   : > { %v5056_v4 = vpop.permute.xlu1 %5055  ;;  %v5060_v53 = vpop.permute.xlu0 %5059 }
 0xde5   : > { %v5094_v22 = vmul.f32 %v5086_v17, %v5056_v4  ;;  %v5095_v13 = vmul.f32 %v5087_v48, %v5060_v53  ;;  %v5222_v53 = vld [vmem:[#allocation5 + $0x10] sm:$0xff] }
 0xde7   : > { %v9633_v33 = vadd.f32 %v5094_v22, %v5046_v26  ;;  %v9635_v7 = vadd.f32 %v5095_v13, %v5047_v2  ;;  %v5223_v22 = vld [vmem:[#allocation5 + $0x30] sm:$0xff] }
 0xde8   : > { %v5064_v8 = vpop.permute.xlu1 %5063  ;;  %v5072_v24 = vpop.permute.xlu0 %5071 }
 0xde9   : > { %v5096_v27 = vmul.f32 %v5088_v36, %v5064_v8  ;;  %v5098_v44 = vmul.f32 %v5090_v56, %v5072_v24  ;;  %v5226_v8 = vld [vmem:[#allocation5 + $0x90] sm:$0xff] }
 0xdeb   : > { %v9637_v46 = vadd.f32 %v5096_v27, %v5048_v20  ;;  %v9639_v62 = vadd.f32 %v5098_v44, %v5050_v40  ;;  %v6643_v40 = vmov 30  }
 0xdec   : > { %v5068_v19 = vpop.permute.xlu1 %5067  ;;  %v5080_v45 = vpop.permute.xlu0 %5079 }
 0xded   : > { %v5097_v31 = vmul.f32 %v5089_v50, %v5068_v19  ;;  %v5100_v12 = vmul.f32 %v5092_v57, %v5080_v45  ;;  %v5228_v19 = vld [vmem:[#allocation5 + $0xd0] sm:$0xff] }
 0xdef   : > { %v9641_v25 = vadd.f32 %v5097_v31, %v5049_v39  ;;  %v9643_v18 = vadd.f32 %v5100_v12, %v5052_v1 }
 0xdf0   : > { %v5076_v54 = vpop.permute.xlu1 %5075 }
 0xdf1   : > { %v5099_v21 = vmul.f32 %v5091_v49, %v5076_v54  ;;  %v5112_v47 = vpop.permute.xlu0 %5111  ;;  %v5227_v54 = vld [vmem:[#allocation5 + $0xb0] sm:$0xff] }
 0xdf2   : > { %v5142_v6 = vmul.f32 %v5112_v47, %v5086_v17 }
 0xdf3   : > { %v9645_v61 = vadd.f32 %v5099_v21, %v5051_v37 }
 0xdf4   : > { %v5084_v32 = vpop.permute.xlu1 %5083  ;;  %5158 = vrot.lane.b32.xlu1 %v5142_v6, %s10072_s11 }
 0xdf5   : > { %v5101_v59 = vmul.f32 %v5093_v16, %v5084_v32  ;;  %v5124_v38 = vpop.permute.xlu0 %5123 }
 0xdf6   : > { %v5145_v52 = vmul.f32 %v5124_v38, %v5089_v50 }
 0xdf7   : > { %v9648_v35 = vadd.f32 %v5101_v59, %v5053_v30  ;;  %v5229_v59 = vld [vmem:[#allocation5 + $0xf0] sm:$0xff] }
 0xdf9   : > { %v5116_v23 = vpop.permute.xlu1 %5115  ;;  %v5132_v42 = vpop.permute.xlu0 %5131 }
 0xdfa   : > { %v5143_v34 = vmul.f32 %v5116_v23, %v5087_v48  ;;  %v5147_v51 = vmul.f32 %v5132_v42, %v5091_v49 }
 0xdfc   : > { %5160 = vrot.lane.b32.xlu0 %v5143_v34, %s10072_s11 }
 0xdfd   : > { %v5120_v28 = vpop.permute.xlu1 %5119  ;;  %v5140_v5 = vpop.permute.xlu0 %5139 }
 0xdfe   : > { %v5144_v29 = vmul.f32 %v5120_v28, %v5088_v36  ;;  %v5149_v20 = vmul.f32 %v5140_v5, %v5093_v16 }
 0xe00   : > { %5162 = vrot.lane.b32.xlu1 %v5144_v29, %s10072_s11  ;;  %5164 = vrot.lane.b32.xlu0 %v5145_v52, %s10072_s11 }
 0xe01   : > { %v5128_v26 = vpop.permute.xlu1 %5127 }
 0xe02   : > { %v5146_v2 = vmul.f32 %v5128_v26, %v5090_v56 }
 0xe04   : > { %5166 = vrot.lane.b32.xlu1 %v5146_v2, %s10072_s11  ;;  %5168 = vrot.lane.b32.xlu0 %v5147_v51, %s10072_s11 }
 0xe05   : > { %v5136_v41 = vpop.permute.xlu1 %5135 }
 0xe06   : > { %v5148_v39 = vmul.f32 %v5136_v41, %v5092_v57 }
 0xe08   : > { %5170 = vrot.lane.b32.xlu1 %v5148_v39, %s10072_s11  ;;  %5172 = vrot.lane.b32.xlu0 %v5149_v20, %s10072_s11 }
 0xe0c   : > { %5191 = vperm.xlu1 %6534, %v10089_v11   ;;  %5195 = vperm.xlu0 %6535, %v10090_v60  }
 0xe10   : > { %5199 = vperm.xlu1 %6534, %v10091_v55   ;;  %5207 = vperm.xlu0 %6535, %v10092_v15  }
 0xe14   : > { %5203 = vperm.xlu1 %6534, %v10093_v43   ;;  %5215 = vperm.xlu0 %6535, %v10094_v9  }
 0xe18   : > { %5211 = vperm.xlu1 %6534, %v10095_v14   ;;  %6536 = vset.pattern.permute.xlu0 %v6641_v58 }
 0xe19   : > { %5247 = vperm.xlu0 %6536, %v10089_v11  }
 0xe1c   : > { %5219 = vperm.xlu1 %6534, %v10096_v0  }
 0xe1d   : > { %5259 = vperm.xlu0 %6536, %v10093_v43  }
 0xe20   : > { %6537 = vset.pattern.permute.xlu1 %v6641_v58 }
 0xe21   : > { %5251 = vperm.xlu1 %6537, %v10090_v60   ;;  %5267 = vperm.xlu0 %6536, %v10095_v14  }
 0xe25   : > { %5255 = vperm.xlu1 %6537, %v10091_v55   ;;  %5275 = vperm.xlu0 %6536, %v10096_v0  }
 0xe29   : > { %5263 = vperm.xlu1 %6537, %v10092_v15   ;;  %6539 = vset.pattern.permute.xlu0 %v6642_v10 }
 0xe2a   : > { %5387 = vperm.xlu0 %6539, %v10090_v60  }
 0xe2d   : > { %5271 = vperm.xlu1 %6537, %v10094_v9  }
 0xe2e   : > { %5399 = vperm.xlu0 %6539, %v10092_v15  }
 0xe31   : > { %6538 = vset.pattern.permute.xlu1 %v6642_v10 }
 0xe32   : > { %5383 = vperm.xlu1 %6538, %v10089_v11   ;;  %5407 = vperm.xlu0 %6539, %v10094_v9  }
 0xe36   : > { %5391 = vperm.xlu1 %6538, %v10091_v55   ;;  %6540 = vset.pattern.permute.xlu0 %v6643_v40 }
 0xe37   : > { %5327 = vperm.xlu0 %6540, %v10089_v11  }
 0xe3a   : > { %5395 = vperm.xlu1 %6538, %v10093_v43  }
 0xe3b   : > { %5339 = vperm.xlu0 %6540, %v10093_v43  }
 0xe3e   : > { %5403 = vperm.xlu1 %6538, %v10095_v14  }
 0xe3f   : > { %5347 = vperm.xlu0 %6540, %v10095_v14  }
 0xe42   : > { %5411 = vperm.xlu1 %6538, %v10096_v0  }
 0xe43   : > { %5355 = vperm.xlu0 %6540, %v10096_v0  }
 0xe46   : > { %6541 = vset.pattern.permute.xlu1 %v6643_v40 }
 0xe47   : > { %5331 = vperm.xlu1 %6541, %v10090_v60   ;;  %6542 = vset.pattern.permute.xlu0 %v6642_v10  ;;  %v5359_v10 = vld [vmem:[#allocation5 + $0x38] sm:$0xff] }
 0xe4b   : > { %5335 = vperm.xlu1 %6541, %v10091_v55  }
 0xe4f   : > { %5343 = vperm.xlu1 %6541, %v10092_v15  }
 0xe53   : > { %5351 = vperm.xlu1 %6541, %v10094_v9  }
 0xe66   : > { %v5159_v11 = vpop.permute.xlu1 %5158 }
 0xe67   : > { %v5182_v43 = vadd.f32 %v5159_v11, %v9633_v33 }
 0xe6e   : > { %v5161_v37 = vpop.permute.xlu0 %5160 }
 0xe6f   : > { %v5183_v14 = vadd.f32 %v5161_v37, %v9635_v7  ;;  %v5224_v7 = vld [vmem:[#allocation5 + $0x50] sm:$0xff] }
 0xe72   : > { %v5163_v63 = vpop.permute.xlu1 %5162  ;;  %v5165_v3 = vpop.permute.xlu0 %5164 }
 0xe73   : > { %v5184_v0 = vadd.f32 %v5163_v63, %v9637_v46  ;;  %v5185_v1 = vadd.f32 %v5165_v3, %v9641_v25 }
 0xe76   : > { %v5167_v60 = vpop.permute.xlu1 %5166  ;;  %v5169_v30 = vpop.permute.xlu0 %5168 }
 0xe77   : > { %v5186_v55 = vadd.f32 %v5167_v60, %v9639_v62  ;;  %v5187_v15 = vadd.f32 %v5169_v30, %v9645_v61  ;;  %v5225_v62 = vld [vmem:[#allocation5 + $0x70] sm:$0xff] }
 0xe7a   : > { %v5171_v17 = vpop.permute.xlu1 %5170  ;;  %v5173_v9 = vpop.permute.xlu0 %5172 }
 0xe7b   : > { %v5188_v48 = vadd.f32 %v5171_v17, %v9643_v18  ;;  %v5189_v4 = vadd.f32 %v5173_v9, %v9648_v35 }
 0xe8b   : > { %v5192_v13 = vpop.permute.xlu1 %5191  ;;  %v5196_v36 = vpop.permute.xlu0 %5195 }
 0xe8c   : > { %v5230_v56 = vmul.f32 %v5222_v53, %v5192_v13  ;;  %v5231_v33 = vmul.f32 %v5223_v22, %v5196_v36 }
 0xe8e   : > { %v9697_v24 = vadd.f32 %v5230_v56, %v5182_v43  ;;  %v9699_v27 = vadd.f32 %v5231_v33, %v5183_v14  ;;  %v5358_v14 = vld [vmem:[#allocation5 + $0x18] sm:$0xff] }
 0xe8f   : > { %v5200_v44 = vpop.permute.xlu1 %5199  ;;  %v5208_v50 = vpop.permute.xlu0 %5207  ;;  %v5365_v33 = vld [vmem:[#allocation5 + $0xf8] sm:$0xff] }
 0xe90   : > { %v5232_v57 = vmul.f32 %v5224_v7, %v5200_v44  ;;  %v5234_v46 = vmul.f32 %v5226_v8, %v5208_v50 }
 0xe92   : > { %v9701_v45 = vadd.f32 %v5232_v57, %v5184_v0  ;;  %v9703_v31 = vadd.f32 %v5234_v46, %v5186_v55  ;;  %v5360_v0 = vld [vmem:[#allocation5 + $0x58] sm:$0xff] }
 0xe93   : > { %v5204_v12 = vpop.permute.xlu1 %5203  ;;  %v5216_v49 = vpop.permute.xlu0 %5215  ;;  %v5362_v55 = vld [vmem:[#allocation5 + $0x98] sm:$0xff] }
 0xe94   : > { %v5233_v25 = vmul.f32 %v5225_v62, %v5204_v12  ;;  %v5236_v18 = vmul.f32 %v5228_v19, %v5216_v49 }
 0xe96   : > { %v9705_v21 = vadd.f32 %v5233_v25, %v5185_v1  ;;  %v9707_v47 = vadd.f32 %v5236_v18, %v5188_v48 }
 0xe97   : > { %v5212_v6 = vpop.permute.xlu1 %5211 }
 0xe98   : > { %v5235_v16 = vmul.f32 %v5227_v54, %v5212_v6  ;;  %v5248_v61 = vpop.permute.xlu0 %5247 }
 0xe99   : > { %v5278_v32 = vmul.f32 %v5248_v61, %v5222_v53 }
 0xe9a   : > { %v9709_v38 = vadd.f32 %v5235_v16, %v5187_v15  ;;  %v5361_v15 = vld [vmem:[#allocation5 + $0x78] sm:$0xff] }
 0xe9b   : > { %v5220_v35 = vpop.permute.xlu1 %5219  ;;  %5294 = vrot.lane.b32.xlu1 %v5278_v32, %s10072_s11 }
 0xe9c   : > { %v5237_v23 = vmul.f32 %v5229_v59, %v5220_v35  ;;  %v5260_v34 = vpop.permute.xlu0 %5259 }
 0xe9d   : > { %v5281_v29 = vmul.f32 %v5260_v34, %v5225_v62 }
 0xe9e   : > { %v9712_v42 = vadd.f32 %v5237_v23, %v5189_v4  ;;  %v5364_v4 = vld [vmem:[#allocation5 + $0xd8] sm:$0xff] }
 0xea0   : > { %v5252_v28 = vpop.permute.xlu1 %5251  ;;  %v5268_v26 = vpop.permute.xlu0 %5267 }
 0xea1   : > { %v5279_v52 = vmul.f32 %v5252_v28, %v5223_v22  ;;  %v5283_v41 = vmul.f32 %v5268_v26, %v5227_v54  ;;  %v5363_v22 = vld [vmem:[#allocation5 + $0xb8] sm:$0xff] }
 0xea3   : > { %5296 = vrot.lane.b32.xlu0 %v5279_v52, %s10072_s11 }
 0xea4   : > { %v5256_v51 = vpop.permute.xlu1 %5255  ;;  %v5276_v39 = vpop.permute.xlu0 %5275 }
 0xea5   : > { %v5280_v2 = vmul.f32 %v5256_v51, %v5224_v7  ;;  %v5285_v40 = vmul.f32 %v5276_v39, %v5229_v59 }
 0xea7   : > { %5298 = vrot.lane.b32.xlu1 %v5280_v2, %s10072_s11  ;;  %5300 = vrot.lane.b32.xlu0 %v5281_v29, %s10072_s11 }
 0xea8   : > { %v5264_v5 = vpop.permute.xlu1 %5263 }
 0xea9   : > { %v5282_v20 = vmul.f32 %v5264_v5, %v5226_v8  ;;  %v5388_v43 = vpop.permute.xlu0 %5387 }
 0xeaa   : > { %v5415_v37 = vmul.f32 %v5388_v43, %v5359_v10 }
 0xeab   : > { %5302 = vrot.lane.b32.xlu1 %v5282_v20, %s10072_s11  ;;  %5304 = vrot.lane.b32.xlu0 %v5283_v41, %s10072_s11 }
 0xeac   : > { %v5272_v58 = vpop.permute.xlu1 %5271 }
 0xead   : > { %v5284_v11 = vmul.f32 %v5272_v58, %v5228_v19  ;;  %v5400_v1 = vpop.permute.xlu0 %5399 }
 0xeae   : > { %v5418_v9 = vmul.f32 %v5400_v1, %v5362_v55 }
 0xeaf   : > { %5306 = vrot.lane.b32.xlu1 %v5284_v11, %s10072_s11  ;;  %5308 = vrot.lane.b32.xlu0 %v5285_v40, %s10072_s11 }
 0xeb1   : > { %v5384_v63 = vpop.permute.xlu1 %5383  ;;  %v5408_v53 = vpop.permute.xlu0 %5407 }
 0xeb2   : > { %v5414_v3 = vmul.f32 %v5384_v63, %v5358_v14  ;;  %v5420_v36 = vmul.f32 %v5408_v53, %v5364_v4 }
 0xeb3   : > { %5432 = vrot.lane.b32.xlu0 %v5415_v37, %s10072_s11 }
 0xeb4   : > { %5430 = vrot.lane.b32.xlu1 %v5414_v3, %s10072_s11 }
 0xeb5   : > { %v5392_v60 = vpop.permute.xlu1 %5391 }
 0xeb6   : > { %v5416_v30 = vmul.f32 %v5392_v60, %v5360_v0  ;;  %v5328_v57 = vpop.permute.xlu0 %5327 }
 0xeb7   : > { %v5366_v25 = vmul.f32 %v5358_v14, %v5328_v57 }
 0xeb8   : > { %5434 = vrot.lane.b32.xlu1 %v5416_v30, %s10072_s11 }
 0xeb9   : > { %v5396_v17 = vpop.permute.xlu1 %5395 }
 0xeba   : > { %v5417_v48 = vmul.f32 %v5396_v17, %v5361_v15  ;;  %v5340_v62 = vpop.permute.xlu0 %5339 }
 0xebb   : > { %v5369_v28 = vmul.f32 %v5361_v15, %v5340_v62 }
 0xebc   : > { %5436 = vrot.lane.b32.xlu0 %v5417_v48, %s10072_s11  ;;  %5438 = vrot.lane.b32.xlu1 %v5418_v9, %s10072_s11 }
 0xebd   : > { %v5404_v13 = vpop.permute.xlu1 %5403 }
 0xebe   : > { %v5419_v56 = vmul.f32 %v5404_v13, %v5363_v22  ;;  %v5348_v12 = vpop.permute.xlu0 %5347 }
 0xebf   : > { %v5371_v41 = vmul.f32 %v5363_v22, %v5348_v12 }
 0xec0   : > { %5440 = vrot.lane.b32.xlu0 %v5419_v56, %s10072_s11  ;;  %5442 = vrot.lane.b32.xlu1 %v5420_v36, %s10072_s11 }
 0xec1   : > { %v5412_v7 = vpop.permute.xlu1 %5411 }
 0xec2   : > { %v5421_v8 = vmul.f32 %v5412_v7, %v5365_v33  ;;  %v5356_v6 = vpop.permute.xlu0 %5355 }
 0xec3   : > { %v5373_v11 = vmul.f32 %v5365_v33, %v5356_v6 }
 0xec4   : > { %5444 = vrot.lane.b32.xlu0 %v5421_v8, %s10072_s11 }
 0xec6   : > { %v5332_v44 = vpop.permute.xlu1 %5331 }
 0xec7   : > { %v5367_v61 = vmul.f32 %v5359_v10, %v5332_v44 }
 0xeca   : > { %v5336_v50 = vpop.permute.xlu1 %5335 }
 0xecb   : > { %v5368_v34 = vmul.f32 %v5360_v0, %v5336_v50 }
 0xece   : > { %v5344_v46 = vpop.permute.xlu1 %5343 }
 0xed2   : > { %v5352_v19 = vpop.permute.xlu1 %5351 }
 0xf0d   : > { %v5295_v49 = vpop.permute.xlu1 %5294 }
 0xf0e   : > { %v5318_v18 = vadd.f32 %v5295_v49, %v9697_v24  ;;  %v5370_v24 = vmul.f32 %v5362_v55, %v5344_v46 }
 0xf10   : > { %v5374_v54 = vadd.f32 %v5366_v25, %v5318_v18 }
 0xf15   : > { %v5297_v16 = vpop.permute.xlu0 %5296 }
 0xf16   : > { %v5319_v32 = vadd.f32 %v5297_v16, %v9699_v27 }
 0xf18   : > { %v5375_v59 = vadd.f32 %v5367_v61, %v5319_v32 }
 0xf19   : > { %v5299_v35 = vpop.permute.xlu1 %5298  ;;  %v5301_v23 = vpop.permute.xlu0 %5300 }
 0xf1a   : > { %v5320_v52 = vadd.f32 %v5299_v35, %v9701_v45  ;;  %v5321_v29 = vadd.f32 %v5301_v23, %v9705_v21  ;;  %v5372_v45 = vmul.f32 %v5364_v4, %v5352_v19 }
 0xf1c   : > { %v5376_v26 = vadd.f32 %v5368_v34, %v5320_v52  ;;  %v5377_v51 = vadd.f32 %v5369_v28, %v5321_v29 }
 0xf1d   : > { %v5303_v2 = vpop.permute.xlu1 %5302  ;;  %v5305_v5 = vpop.permute.xlu0 %5304 }
 0xf1e   : > { %v5322_v20 = vadd.f32 %v5303_v2, %v9703_v31  ;;  %v5323_v27 = vadd.f32 %v5305_v5, %v9709_v38 }
 0xf20   : > { %v5378_v39 = vadd.f32 %v5370_v24, %v5322_v20  ;;  %v5379_v58 = vadd.f32 %v5371_v41, %v5323_v27 }
 0xf21   : > { %v5307_v10 = vpop.permute.xlu1 %5306  ;;  %v5309_v40 = vpop.permute.xlu0 %5308 }
 0xf22   : > { %v5324_v21 = vadd.f32 %v5307_v10, %v9707_v47  ;;  %v5325_v43 = vadd.f32 %v5309_v40, %v9712_v42 }
 0xf24   : > { %v5380_v37 = vadd.f32 %v5372_v45, %v5324_v21  ;;  %v5381_v14 = vadd.f32 %v5373_v11, %v5325_v43 }
 0xf25   : > { %v5433_v31 = vpop.permute.xlu0 %5432 }
 0xf26   : > { %v5455_v63 = vadd.f32 %v5433_v31, %v5375_v59  ;;  %v5431_v3 = vpop.permute.xlu1 %5430 }
 0xf27   : > { %v5454_v38 = vadd.f32 %v5431_v3, %v5374_v54 }
 0xf28   : > { %5463 = vst.msk [vmem:[%s6742_s27 + $0x8] sm:$0xff] %vm417_vm0, %v5455_v63 }
 0xf29   : > { %5462 = vst.msk [vmem:[%s6742_s27] sm:$0xff] %vm417_vm0, %v5454_v38 }
 0xf2a   : > { %v5435_v0 = vpop.permute.xlu1 %5434 }
 0xf2b   : > { %v5456_v1 = vadd.f32 %v5435_v0, %v5376_v26 }
 0xf2d   : > { %5464 = vst.msk [vmem:[%s6742_s27 + $0x10] sm:$0xff] %vm417_vm0, %v5456_v1 }
 0xf2e   : > { %v5439_v47 = vpop.permute.xlu1 %5438  ;;  %v5437_v42 = vpop.permute.xlu0 %5436 }
 0xf2f   : > { %v5458_v60 = vadd.f32 %v5439_v47, %v5378_v39  ;;  %v5457_v30 = vadd.f32 %v5437_v42, %v5377_v51 }
 0xf31   : > { %5466 = vst.msk [vmem:[%s6742_s27 + $0x20] sm:$0xff] %vm417_vm0, %v5458_v60  ;;  %5465 = vst.msk [vmem:[%s6742_s27 + $0x18] sm:$0xff] %vm417_vm0, %v5457_v30 }
 0xf32   : > { %v5443_v55 = vpop.permute.xlu1 %5442  ;;  %v5441_v15 = vpop.permute.xlu0 %5440 }
 0xf33   : > { %v5460_v17 = vadd.f32 %v5443_v55, %v5380_v37  ;;  %v5459_v9 = vadd.f32 %v5441_v15, %v5379_v58 }
 0xf35   : > { %5468 = vst.msk [vmem:[%s6742_s27 + $0x30] sm:$0xff] %vm417_vm0, %v5460_v17  ;;  %5467 = vst.msk [vmem:[%s6742_s27 + $0x28] sm:$0xff] %vm417_vm0, %v5459_v9 }
 0xf36   : > { %v5445_v48 = vpop.permute.xlu0 %5444 }
 0xf37   : > { %v5461_v4 = vadd.f32 %v5445_v48, %v5381_v14 }
 0xf39   : > { %5469 = vst.msk [vmem:[%s6742_s27 + $0x38] sm:$0xff] %vm417_vm0, %v5461_v4 }
 0xf3a PF: > { %s15_s22 = sadd.s32 1, %s6593_s22   ;;  %s10098_s18 = smov %s6585_s20 }
 0xf3b   : > { %p12_p8 = scmp.ge.s32.totalorder %s15_s22, 6   ;;  %s10099_s19 = smov %s6589_s21 }
 0xf3c   : > { %s10100_s20 = smov %s10103_s23  ;;  %s10101_s21 = smov %s10107_s24 }
 0xf3d   :  { %14 = sbr.rel (!%p12_p8) target bundleno = 3 (0x3), region = 133 }

</bundles_post_ra>
